<compile_context>
chip_gen: v7x
topology: tpu7x:2x2x1
jax: 0.10.0
libtpu: 0.0.40
codegen_flags: <defaults>
</compile_context>

<pallas_src>
import functools

import jax
import jax.numpy as jnp
from jax.experimental import pallas as pl
from jax.experimental.pallas import tpu as pltpu

NUM_CLASSES = 8
C = 256                      # fixed by fc1 = Linear(256*7*7, 1024)
POOL = 7
FEAT = C * POOL * POOL       # 12544
HID = 1024
VMEM_LIMIT = 32 * 1024 * 1024   # explicit scoped-VMEM (raises v5e's 16 MiB default)


# ---------------------------------------------------------------------------
# Kernel 1: adaptive max-pool to (7,7), hierarchical reduce, flattened output.
# ---------------------------------------------------------------------------
def adaptive_maxpool_flat_kernel(x_ref, o_ref, *, h, w):
    # x_ref: (BN, H, W, C) NHWC;  o_ref: (BN, 49*C) flattened in (i, j, c) order.
    pieces = []
    for i in range(POOL):
        hs = (i * h) // POOL
        he = -((-(i + 1) * h) // POOL)                  # ceil((i+1)*h / 7)
        # hierarchical stage 1: reduce the H-bin (untiled axis -> cheap VPU max)
        rowmax = jnp.max(x_ref[:, hs:he, :, :], axis=1)         # (BN, W, C)
        for j in range(POOL):
            ws = (j * w) // POOL
            we = -((-(j + 1) * w) // POOL)
            # stage 2: small sublane reduce over the W-bin
            pieces.append(jnp.max(rowmax[:, ws:we, :], axis=1))  # (BN, C)
    # One lane-dense store (offsets are multiples of 256 lanes).
    o_ref[...] = jnp.concatenate(pieces, axis=-1)


def adaptive_maxpool_flat(x_nhwc):
    n, h, w, c = x_nhwc.shape
    # Batch-block the grid step; bn must equal n or be a multiple of 8.
    bn = n if n <= 8 else 8
    kern = functools.partial(adaptive_maxpool_flat_kernel, h=h, w=w)
    return pl.pallas_call(
        kern,
        out_shape=jax.ShapeDtypeStruct((n, POOL * POOL * c), x_nhwc.dtype),
        grid_spec=pltpu.PrefetchScalarGridSpec(
            num_scalar_prefetch=0,
            grid=(pl.cdiv(n, bn),),
            in_specs=[pl.BlockSpec((bn, h, w, c), lambda b: (b, 0, 0, 0))],
            out_specs=pl.BlockSpec((bn, POOL * POOL * c), lambda b: (b, 0)),
        ),
        compiler_params=pltpu.CompilerParams(
            dimension_semantics=("parallel",),
            vmem_limit_bytes=VMEM_LIMIT),
    )(x_nhwc)


# ---------------------------------------------------------------------------
# Kernel 2: fc1 (12544 -> 1024) + ReLU.  bf16 weights, K-tiled, column-split.
# Accumulates directly into the VMEM-resident output block (no acc scratch).
# ---------------------------------------------------------------------------
def fc1_relu_kernel(x_ref, w_ref, b_ref, o_ref):
    k = pl.program_id(1)

    @pl.when(k == 0)
    def _():
        o_ref[...] = jnp.broadcast_to(b_ref[...], o_ref.shape)

    o_ref[...] += jnp.dot(x_ref[...].astype(jnp.bfloat16), w_ref[...],
                          preferred_element_type=jnp.float32)

    @pl.when(k == pl.num_programs(1) - 1)
    def _():
        o_ref[...] = jnp.maximum(o_ref[...], 0.0)


def fc1_relu(x, w, b, *, tk=1792, tn=512):            # 12544 = 7 * 1792
    n, kdim = x.shape
    kdim_w, out = w.shape
    assert kdim == kdim_w and kdim % tk == 0 and out % tn == 0
    return pl.pallas_call(
        fc1_relu_kernel,
        out_shape=jax.ShapeDtypeStruct((n, out), jnp.float32),
        grid_spec=pltpu.PrefetchScalarGridSpec(
            num_scalar_prefetch=0,
            grid=(out // tn, kdim // tk),             # (parallel cols, reduction K)
            in_specs=[pl.BlockSpec((n, tk), lambda j, k: (0, k)),
                      pl.BlockSpec((tk, tn), lambda j, k: (k, j)),
                      pl.BlockSpec((1, tn), lambda j, k: (0, j))],
            out_specs=pl.BlockSpec((n, tn), lambda j, k: (0, j)),
        ),
        compiler_params=pltpu.CompilerParams(
            dimension_semantics=("parallel", "arbitrary"),
            vmem_limit_bytes=VMEM_LIMIT),
    )(x, w, b)


# ---------------------------------------------------------------------------
# Kernel 3: fused head — K-tiled fc2+ReLU, then one lane-dense matmul against
# the fused+padded [wc | wb] weight.
# ---------------------------------------------------------------------------
def head_kernel(h_ref, w2_ref, b2_ref, wh_ref, bh_ref, o_ref, acc_ref):
    k = pl.program_id(0)

    @pl.when(k == 0)
    def _():
        acc_ref[...] = jnp.broadcast_to(b2_ref[...], acc_ref.shape)

    acc_ref[...] += jnp.dot(h_ref[...].astype(jnp.bfloat16), w2_ref[...],
                            preferred_element_type=jnp.float32)

    @pl.when(k == pl.num_programs(0) - 1)
    def _():
        h2 = jnp.maximum(acc_ref[...], 0.0).astype(jnp.bfloat16)
        o_ref[...] = (jnp.dot(h2, wh_ref[...],
                              preferred_element_type=jnp.float32) + bh_ref[...])


def head(h1, w2, b2, wh, bh, *, tk=256):
    n, hid = h1.shape
    hpad = wh.shape[1]
    assert hid % tk == 0
    return pl.pallas_call(
        head_kernel,
        out_shape=jax.ShapeDtypeStruct((n, hpad), jnp.float32),
        grid_spec=pltpu.PrefetchScalarGridSpec(
            num_scalar_prefetch=0,
            grid=(hid // tk,),
            in_specs=[pl.BlockSpec((n, tk), lambda k: (0, k)),
                      pl.BlockSpec((tk, hid), lambda k: (k, 0)),
                      pl.BlockSpec((1, hid), lambda k: (0, 0)),
                      pl.BlockSpec((hid, hpad), lambda k: (0, 0)),
                      pl.BlockSpec((1, hpad), lambda k: (0, 0))],
            out_specs=pl.BlockSpec((n, hpad), lambda k: (0, 0)),
            scratch_shapes=[pltpu.VMEM((n, hid), jnp.float32)],
        ),
        compiler_params=pltpu.CompilerParams(
            dimension_semantics=("arbitrary",),
            vmem_limit_bytes=VMEM_LIMIT),
    )(h1, w2, b2, wh, bh)


# ---------------------------------------------------------------------------
# One-time weight preprocessing (offline; not on the per-call path).
# ---------------------------------------------------------------------------
def prepare_params(p):
    hid = p["w1"].shape[1]
    # Permute w1 rows from torch's (c,i,j) flatten order to the kernel's
    # (i,j,c) NHWC flatten order.
    w1_hwc = (p["w1"].reshape(C, POOL, POOL, hid)
              .transpose(1, 2, 0, 3)
              .reshape(FEAT, hid))
    nc = p["wc"].shape[1]
    nb = p["wb"].shape[1]
    hpad = ((nc + nb + 127) // 128) * 128             # lane-dense padded head
    wh = jnp.zeros((hid, hpad), jnp.float32)
    wh = wh.at[:, :nc].set(p["wc"]).at[:, nc:nc + nb].set(p["wb"])
    bh = jnp.zeros((1, hpad), jnp.float32)
    bh = bh.at[:, :nc].set(p["bc"]).at[:, nc:nc + nb].set(p["bb"])
    return {
        "w1": w1_hwc.astype(jnp.bfloat16),            # bf16 storage, f32 accum
        "b1": p["b1"].astype(jnp.float32),
        "w2": p["w2"].astype(jnp.bfloat16),
        "b2": p["b2"].astype(jnp.float32),
        "wh": wh.astype(jnp.bfloat16),
        "bh": bh,
    }


# ---------------------------------------------------------------------------
# Full forward: all compute in kernels; only the NCHW->NHWC input transpose
# and the final column slice remain as XLA glue.
# ---------------------------------------------------------------------------
def roi_pre_forward(x_nchw, pp, num_classes):
    x_nhwc = jnp.transpose(x_nchw, (0, 2, 3, 1))      # C onto lanes
    feats = adaptive_maxpool_flat(x_nhwc)             # (N, 12544) HWC-major
    h1 = fc1_relu(feats, pp["w1"], pp["b1"])          # (N, 1024)
    out = head(h1, pp["w2"], pp["b2"], pp["wh"], pp["bh"])   # (N, 128) padded
    return out[:, :num_classes], out[:, num_classes:5 * num_classes]


# ---------------------------------------------------------------------------
# Pure-JAX reference (original f32 weights, torch layout) for validation.
# ---------------------------------------------------------------------------
def roi_pre_reference(x_nchw, p):
    n, _, h, w = x_nchw.shape
    rows = []
    for i in range(POOL):
        hs, he = (i * h) // POOL, -((-(i + 1) * h) // POOL)
        cols = []
        for j in range(POOL):
            ws, we = (j * w) // POOL, -((-(j + 1) * w) // POOL)
            cols.append(jnp.max(x_nchw[:, :, hs:he, ws:we], axis=(2, 3)))
        rows.append(jnp.stack(cols, axis=-1))
    pooled = jnp.stack(rows, axis=-2)                 # (N, C, 7, 7)
    feats = pooled.reshape(n, -1)
    h1 = jnp.maximum(feats @ p["w1"] + p["b1"], 0.0)
    h2 = jnp.maximum(h1 @ p["w2"] + p["b2"], 0.0)
    return h2 @ p["wc"] + p["bc"], h2 @ p["wb"] + p["bb"]


if __name__ == "__main__":
    key = jax.random.PRNGKey(0)
    ks = jax.random.split(key, 9)

    N, H, W = 2, 16, 16
    x = jax.random.normal(ks[0], (N, C, H, W), jnp.float32)

    # Deterministic synthetic parameters (JAX convention: weight is (in, out)).
    params = {
        "w1": 0.01 * jax.random.normal(ks[1], (FEAT, HID), jnp.float32),
        "b1": 0.01 * jax.random.normal(ks[2], (1, HID), jnp.float32),
        "w2": 0.02 * jax.random.normal(ks[3], (HID, HID), jnp.float32),
        "b2": 0.01 * jax.random.normal(ks[4], (1, HID), jnp.float32),
        "wc": 0.02 * jax.random.normal(ks[5], (HID, NUM_CLASSES), jnp.float32),
        "bc": 0.01 * jax.random.normal(ks[6], (1, NUM_CLASSES), jnp.float32),
        "wb": 0.02 * jax.random.normal(ks[7], (HID, 4 * NUM_CLASSES), jnp.float32),
        "bb": 0.01 * jax.random.normal(ks[8], (1, 4 * NUM_CLASSES), jnp.float32),
    }

    pp = prepare_params(params)
    fwd = jax.jit(roi_pre_forward, static_argnums=2)
    cls, bbox = jax.block_until_ready(fwd(x, pp, NUM_CLASSES))

    assert cls.shape == (N, NUM_CLASSES) and cls.dtype == jnp.float32
    assert bbox.shape == (N, 4 * NUM_CLASSES) and bbox.dtype == jnp.float32

    rcls, rbbox = roi_pre_reference(x, params)
    assert jnp.allclose(cls, rcls, rtol=2e-2, atol=2e-2), "class_scores mismatch"
    assert jnp.allclose(bbox, rbbox, rtol=2e-2, atol=2e-2), "bbox_preds mismatch"

    print("KERNEL_OK")
</pallas_src>

<mosaic_0001>
module attributes {stable_mosaic.version = 11 : i64} {
  func.func @fc1_relu_kernel(%arg0: i32, %arg1: i32, %arg2: memref<2x1792xf32, #tpu.memory_space<vmem>>, %arg3: memref<1792x512xbf16, #tpu.memory_space<vmem>>, %arg4: memref<1x512xf32, #tpu.memory_space<vmem>>, %arg5: memref<2x512xf32, #tpu.memory_space<vmem>>) attributes {dimension_semantics = [#tpu.dimension_semantics<parallel>, #tpu.dimension_semantics<arbitrary>], iteration_bounds = array<i64: 2, 7>, scalar_prefetch = 0 : i64, scratch_operands = 0 : i64, tpu.core_type = #tpu.core_type<tc>, window_params = [{transform_indices = @transform_0, window_bounds = array<i64: 2, 1792>}, {transform_indices = @transform_1, window_bounds = array<i64: 1792, 512>}, {transform_indices = @transform_2, window_bounds = array<i64: 1, 512>}, {transform_indices = @transform_3, window_bounds = array<i64: 2, 512>}]} {
    %c0_i32 = arith.constant 0 : i32
    %0 = arith.cmpi eq, %arg1, %c0_i32 : i32
    %1 = arith.extui %0 : i1 to i32
    %c0_i32_0 = arith.constant 0 : i32
    %2 = arith.cmpi ne, %1, %c0_i32_0 : i32
    scf.if %2 {
      %c0_9 = arith.constant 0 : index
      %c0_10 = arith.constant 0 : index
      %13 = vector.load %arg4[%c0_9, %c0_10] : memref<1x512xf32, #tpu.memory_space<vmem>>, vector<1x512xf32>
      %14 = vector.shape_cast %13 : vector<1x512xf32> to vector<1x512xf32>
      %15 = vector.broadcast %14 : vector<1x512xf32> to vector<2x512xf32>
      %c0_11 = arith.constant 0 : index
      %c0_12 = arith.constant 0 : index
      %16 = vector.load %arg5[%c0_11, %c0_12] : memref<2x512xf32, #tpu.memory_space<vmem>>, vector<2x512xf32>
      tpu.vector_store %arg5[%c0_11, %c0_12], %15 {strides = array<i32>} : memref<2x512xf32, #tpu.memory_space<vmem>>, vector<2x512xf32>,
    } else {
    }
    %c0 = arith.constant 0 : index
    %c0_1 = arith.constant 0 : index
    %3 = vector.load %arg5[%c0, %c0_1] : memref<2x512xf32, #tpu.memory_space<vmem>>, vector<2x512xf32>
    %c0_2 = arith.constant 0 : index
    %c0_3 = arith.constant 0 : index
    %4 = vector.load %arg2[%c0_2, %c0_3] : memref<2x1792xf32, #tpu.memory_space<vmem>>, vector<2x1792xf32>
    %5 = arith.truncf %4 : vector<2x1792xf32> to vector<2x1792xbf16>
    %c0_4 = arith.constant 0 : index
    %c0_5 = arith.constant 0 : index
    %6 = vector.load %arg3[%c0_4, %c0_5] : memref<1792x512xbf16, #tpu.memory_space<vmem>>, vector<1792x512xbf16>
    %cst = arith.constant dense<0.000000e+00> : vector<2x512xf32>
    %7 = tpu.matmul %5, %6, %cst {dimension_numbers = #tpu.dot_dimension_numbers<[1], [0], [0], [1], [0, 0, 1, 1], [], []>} : vector<2x1792xbf16>, vector<1792x512xbf16>, vector<2x512xf32> -> vector<2x512xf32>
    %8 = arith.addf %3, %7 : vector<2x512xf32>
    %c0_6 = arith.constant 0 : index
    %c0_7 = arith.constant 0 : index
    %9 = vector.load %arg5[%c0_6, %c0_7] : memref<2x512xf32, #tpu.memory_space<vmem>>, vector<2x512xf32>
    tpu.vector_store %arg5[%c0_6, %c0_7], %8 {strides = array<i32>} : memref<2x512xf32, #tpu.memory_space<vmem>>, vector<2x512xf32>,
    %c6_i32 = arith.constant 6 : i32
    %10 = arith.cmpi eq, %arg1, %c6_i32 : i32
    %11 = arith.extui %10 : i1 to i32
    %c0_i32_8 = arith.constant 0 : i32
    %12 = arith.cmpi ne, %11, %c0_i32_8 : i32
    scf.if %12 {
      %c0_9 = arith.constant 0 : index
      %c0_10 = arith.constant 0 : index
      %13 = vector.load %arg5[%c0_9, %c0_10] : memref<2x512xf32, #tpu.memory_space<vmem>>, vector<2x512xf32>
      %cst_11 = arith.constant 0.000000e+00 : f32
      %14 = vector.broadcast %cst_11 : f32 to vector<2x512xf32>
      %15 = arith.maximumf %13, %14 : vector<2x512xf32>
      %c0_12 = arith.constant 0 : index
      %c0_13 = arith.constant 0 : index
      %16 = vector.load %arg5[%c0_12, %c0_13] : memref<2x512xf32, #tpu.memory_space<vmem>>, vector<2x512xf32>
      tpu.vector_store %arg5[%c0_12, %c0_13], %15 {strides = array<i32>} : memref<2x512xf32, #tpu.memory_space<vmem>>, vector<2x512xf32>,
    } else {
    }
    return
  }
  func.func @transform_0(%arg0: i32, %arg1: i32) -> (i32, i32) {
    %c0_i32 = arith.constant 0 : i32
    %c0_i32_0 = arith.constant 0 : i32
    return %c0_i32, %arg1 : i32, i32
  }
  func.func @transform_1(%arg0: i32, %arg1: i32) -> (i32, i32) {
    %c0_i32 = arith.constant 0 : i32
    return %arg1, %arg0 : i32, i32
  }
  func.func @transform_2(%arg0: i32, %arg1: i32) -> (i32, i32) {
    %c0_i32 = arith.constant 0 : i32
    %c0_i32_0 = arith.constant 0 : i32
    return %c0_i32, %arg0 : i32, i32
  }
  func.func @transform_3(%arg0: i32, %arg1: i32) -> (i32, i32) {
    %c0_i32 = arith.constant 0 : i32
    %c0_i32_0 = arith.constant 0 : i32
    return %c0_i32, %arg0 : i32, i32
  }
}

module attributes {stable_mosaic.version = 11 : i64} {
  func.func @adaptive_maxpool_flat_kernel(%arg0: i32, %arg1: memref<2x16x16x256xf32, #tpu.memory_space<vmem>>, %arg2: memref<2x12544xf32, #tpu.memory_space<vmem>>) attributes {dimension_semantics = [#tpu.dimension_semantics<parallel>], iteration_bounds = array<i64: 1>, scalar_prefetch = 0 : i64, scratch_operands = 0 : i64, tpu.core_type = #tpu.core_type<tc>, window_params = [{transform_indices = @transform_0, window_bounds = array<i64: 2, 16, 16, 256>}, {transform_indices = @transform_1, window_bounds = array<i64: 2, 12544>}]} {
    %c0 = arith.constant 0 : index
    %c0_0 = arith.constant 0 : index
    %c0_1 = arith.constant 0 : index
    %c0_2 = arith.constant 0 : index
    %0 = vector.load %arg1[%c0, %c0_0, %c0_1, %c0_2] : memref<2x16x16x256xf32, #tpu.memory_space<vmem>>, vector<2x3x16x256xf32>
    %cst = arith.constant dense<0xFF800000> : vector<2x16x256xf32>
    %1 = vector.multi_reduction <maximumf>, %0, %cst [1] : vector<2x3x16x256xf32> to vector<2x16x256xf32>
    %2 = vector.extract_strided_slice %1 {offsets = [0, 0, 0], sizes = [2, 3, 256], strides = [1, 1, 1]} : vector<2x16x256xf32> to vector<2x3x256xf32>
    %cst_3 = arith.constant dense<0xFF800000> : vector<2x256xf32>
    %3 = vector.multi_reduction <maximumf>, %2, %cst_3 [1] : vector<2x3x256xf32> to vector<2x256xf32>
    %4 = vector.extract_strided_slice %1 {offsets = [0, 2, 0], sizes = [2, 3, 256], strides = [1, 1, 1]} : vector<2x16x256xf32> to vector<2x3x256xf32>
    %cst_4 = arith.constant dense<0xFF800000> : vector<2x256xf32>
    %5 = vector.multi_reduction <maximumf>, %4, %cst_4 [1] : vector<2x3x256xf32> to vector<2x256xf32>
    %6 = vector.extract_strided_slice %1 {offsets = [0, 4, 0], sizes = [2, 3, 256], strides = [1, 1, 1]} : vector<2x16x256xf32> to vector<2x3x256xf32>
    %cst_5 = arith.constant dense<0xFF800000> : vector<2x256xf32>
    %7 = vector.multi_reduction <maximumf>, %6, %cst_5 [1] : vector<2x3x256xf32> to vector<2x256xf32>
    %8 = vector.extract_strided_slice %1 {offsets = [0, 6, 0], sizes = [2, 4, 256], strides = [1, 1, 1]} : vector<2x16x256xf32> to vector<2x4x256xf32>
    %cst_6 = arith.constant dense<0xFF800000> : vector<2x256xf32>
    %9 = vector.multi_reduction <maximumf>, %8, %cst_6 [1] : vector<2x4x256xf32> to vector<2x256xf32>
    %10 = vector.extract_strided_slice %1 {offsets = [0, 9, 0], sizes = [2, 3, 256], strides = [1, 1, 1]} : vector<2x16x256xf32> to vector<2x3x256xf32>
    %cst_7 = arith.constant dense<0xFF800000> : vector<2x256xf32>
    %11 = vector.multi_reduction <maximumf>, %10, %cst_7 [1] : vector<2x3x256xf32> to vector<2x256xf32>
    %12 = vector.extract_strided_slice %1 {offsets = [0, 11, 0], sizes = [2, 3, 256], strides = [1, 1, 1]} : vector<2x16x256xf32> to vector<2x3x256xf32>
    %cst_8 = arith.constant dense<0xFF800000> : vector<2x256xf32>
    %13 = vector.multi_reduction <maximumf>, %12, %cst_8 [1] : vector<2x3x256xf32> to vector<2x256xf32>
    %14 = vector.extract_strided_slice %1 {offsets = [0, 13, 0], sizes = [2, 3, 256], strides = [1, 1, 1]} : vector<2x16x256xf32> to vector<2x3x256xf32>
    %cst_9 = arith.constant dense<0xFF800000> : vector<2x256xf32>
    %15 = vector.multi_reduction <maximumf>, %14, %cst_9 [1] : vector<2x3x256xf32> to vector<2x256xf32>
    %c0_10 = arith.constant 0 : index
    %c2 = arith.constant 2 : index
    %c0_11 = arith.constant 0 : index
    %c0_12 = arith.constant 0 : index
    %16 = vector.load %arg1[%c0_10, %c2, %c0_11, %c0_12] : memref<2x16x16x256xf32, #tpu.memory_space<vmem>>, vector<2x3x16x256xf32>
    %cst_13 = arith.constant dense<0xFF800000> : vector<2x16x256xf32>
    %17 = vector.multi_reduction <maximumf>, %16, %cst_13 [1] : vector<2x3x16x256xf32> to vector<2x16x256xf32>
    %18 = vector.extract_strided_slice %17 {offsets = [0, 0, 0], sizes = [2, 3, 256], strides = [1, 1, 1]} : vector<2x16x256xf32> to vector<2x3x256xf32>
    %cst_14 = arith.constant dense<0xFF800000> : vector<2x256xf32>
    %19 = vector.multi_reduction <maximumf>, %18, %cst_14 [1] : vector<2x3x256xf32> to vector<2x256xf32>
    %20 = vector.extract_strided_slice %17 {offsets = [0, 2, 0], sizes = [2, 3, 256], strides = [1, 1, 1]} : vector<2x16x256xf32> to vector<2x3x256xf32>
    %cst_15 = arith.constant dense<0xFF800000> : vector<2x256xf32>
    %21 = vector.multi_reduction <maximumf>, %20, %cst_15 [1] : vector<2x3x256xf32> to vector<2x256xf32>
    %22 = vector.extract_strided_slice %17 {offsets = [0, 4, 0], sizes = [2, 3, 256], strides = [1, 1, 1]} : vector<2x16x256xf32> to vector<2x3x256xf32>
    %cst_16 = arith.constant dense<0xFF800000> : vector<2x256xf32>
    %23 = vector.multi_reduction <maximumf>, %22, %cst_16 [1] : vector<2x3x256xf32> to vector<2x256xf32>
    %24 = vector.extract_strided_slice %17 {offsets = [0, 6, 0], sizes = [2, 4, 256], strides = [1, 1, 1]} : vector<2x16x256xf32> to vector<2x4x256xf32>
    %cst_17 = arith.constant dense<0xFF800000> : vector<2x256xf32>
    %25 = vector.multi_reduction <maximumf>, %24, %cst_17 [1] : vector<2x4x256xf32> to vector<2x256xf32>
    %26 = vector.extract_strided_slice %17 {offsets = [0, 9, 0], sizes = [2, 3, 256], strides = [1, 1, 1]} : vector<2x16x256xf32> to vector<2x3x256xf32>
    %cst_18 = arith.constant dense<0xFF800000> : vector<2x256xf32>
    %27 = vector.multi_reduction <maximumf>, %26, %cst_18 [1] : vector<2x3x256xf32> to vector<2x256xf32>
    %28 = vector.extract_strided_slice %17 {offsets = [0, 11, 0], sizes = [2, 3, 256], strides = [1, 1, 1]} : vector<2x16x256xf32> to vector<2x3x256xf32>
    %cst_19 = arith.constant dense<0xFF800000> : vector<2x256xf32>
    %29 = vector.multi_reduction <maximumf>, %28, %cst_19 [1] : vector<2x3x256xf32> to vector<2x256xf32>
    %30 = vector.extract_strided_slice %17 {offsets = [0, 13, 0], sizes = [2, 3, 256], strides = [1, 1, 1]} : vector<2x16x256xf32> to vector<2x3x256xf32>
    %cst_20 = arith.constant dense<0xFF800000> : vector<2x256xf32>
    %31 = vector.multi_reduction <maximumf>, %30, %cst_20 [1] : vector<2x3x256xf32> to vector<2x256xf32>
    %c0_21 = arith.constant 0 : index
    %c4 = arith.constant 4 : index
    %c0_22 = arith.constant 0 : index
    %c0_23 = arith.constant 0 : index
    %32 = vector.load %arg1[%c0_21, %c4, %c0_22, %c0_23] : memref<2x16x16x256xf32, #tpu.memory_space<vmem>>, vector<2x3x16x256xf32>
    %cst_24 = arith.constant dense<0xFF800000> : vector<2x16x256xf32>
    %33 = vector.multi_reduction <maximumf>, %32, %cst_24 [1] : vector<2x3x16x256xf32> to vector<2x16x256xf32>
    %34 = vector.extract_strided_slice %33 {offsets = [0, 0, 0], sizes = [2, 3, 256], strides = [1, 1, 1]} : vector<2x16x256xf32> to vector<2x3x256xf32>
    %cst_25 = arith.constant dense<0xFF800000> : vector<2x256xf32>
    %35 = vector.multi_reduction <maximumf>, %34, %cst_25 [1] : vector<2x3x256xf32> to vector<2x256xf32>
    %36 = vector.extract_strided_slice %33 {offsets = [0, 2, 0], sizes = [2, 3, 256], strides = [1, 1, 1]} : vector<2x16x256xf32> to vector<2x3x256xf32>
    %cst_26 = arith.constant dense<0xFF800000> : vector<2x256xf32>
    %37 = vector.multi_reduction <maximumf>, %36, %cst_26 [1] : vector<2x3x256xf32> to vector<2x256xf32>
    %38 = vector.extract_strided_slice %33 {offsets = [0, 4, 0], sizes = [2, 3, 256], strides = [1, 1, 1]} : vector<2x16x256xf32> to vector<2x3x256xf32>
    %cst_27 = arith.constant dense<0xFF800000> : vector<2x256xf32>
    %39 = vector.multi_reduction <maximumf>, %38, %cst_27 [1] : vector<2x3x256xf32> to vector<2x256xf32>
    %40 = vector.extract_strided_slice %33 {offsets = [0, 6, 0], sizes = [2, 4, 256], strides = [1, 1, 1]} : vector<2x16x256xf32> to vector<2x4x256xf32>
    %cst_28 = arith.constant dense<0xFF800000> : vector<2x256xf32>
    %41 = vector.multi_reduction <maximumf>, %40, %cst_28 [1] : vector<2x4x256xf32> to vector<2x256xf32>
    %42 = vector.extract_strided_slice %33 {offsets = [0, 9, 0], sizes = [2, 3, 256], strides = [1, 1, 1]} : vector<2x16x256xf32> to vector<2x3x256xf32>
    %cst_29 = arith.constant dense<0xFF800000> : vector<2x256xf32>
    %43 = vector.multi_reduction <maximumf>, %42, %cst_29 [1] : vector<2x3x256xf32> to vector<2x256xf32>
    %44 = vector.extract_strided_slice %33 {offsets = [0, 11, 0], sizes = [2, 3, 256], strides = [1, 1, 1]} : vector<2x16x256xf32> to vector<2x3x256xf32>
    %cst_30 = arith.constant dense<0xFF800000> : vector<2x256xf32>
    %45 = vector.multi_reduction <maximumf>, %44, %cst_30 [1] : vector<2x3x256xf32> to vector<2x256xf32>
    %46 = vector.extract_strided_slice %33 {offsets = [0, 13, 0], sizes = [2, 3, 256], strides = [1, 1, 1]} : vector<2x16x256xf32> to vector<2x3x256xf32>
    %cst_31 = arith.constant dense<0xFF800000> : vector<2x256xf32>
    %47 = vector.multi_reduction <maximumf>, %46, %cst_31 [1] : vector<2x3x256xf32> to vector<2x256xf32>
    %c0_32 = arith.constant 0 : index
    %c6 = arith.constant 6 : index
    %c0_33 = arith.constant 0 : index
    %c0_34 = arith.constant 0 : index
    %48 = vector.load %arg1[%c0_32, %c6, %c0_33, %c0_34] : memref<2x16x16x256xf32, #tpu.memory_space<vmem>>, vector<2x4x16x256xf32>
    %cst_35 = arith.constant dense<0xFF800000> : vector<2x16x256xf32>
    %49 = vector.multi_reduction <maximumf>, %48, %cst_35 [1] : vector<2x4x16x256xf32> to vector<2x16x256xf32>
    %50 = vector.extract_strided_slice %49 {offsets = [0, 0, 0], sizes = [2, 3, 256], strides = [1, 1, 1]} : vector<2x16x256xf32> to vector<2x3x256xf32>
    %cst_36 = arith.constant dense<0xFF800000> : vector<2x256xf32>
    %51 = vector.multi_reduction <maximumf>, %50, %cst_36 [1] : vector<2x3x256xf32> to vector<2x256xf32>
    %52 = vector.extract_strided_slice %49 {offsets = [0, 2, 0], sizes = [2, 3, 256], strides = [1, 1, 1]} : vector<2x16x256xf32> to vector<2x3x256xf32>
    %cst_37 = arith.constant dense<0xFF800000> : vector<2x256xf32>
    %53 = vector.multi_reduction <maximumf>, %52, %cst_37 [1] : vector<2x3x256xf32> to vector<2x256xf32>
    %54 = vector.extract_strided_slice %49 {offsets = [0, 4, 0], sizes = [2, 3, 256], strides = [1, 1, 1]} : vector<2x16x256xf32> to vector<2x3x256xf32>
    %cst_38 = arith.constant dense<0xFF800000> : vector<2x256xf32>
    %55 = vector.multi_reduction <maximumf>, %54, %cst_38 [1] : vector<2x3x256xf32> to vector<2x256xf32>
    %56 = vector.extract_strided_slice %49 {offsets = [0, 6, 0], sizes = [2, 4, 256], strides = [1, 1, 1]} : vector<2x16x256xf32> to vector<2x4x256xf32>
    %cst_39 = arith.constant dense<0xFF800000> : vector<2x256xf32>
    %57 = vector.multi_reduction <maximumf>, %56, %cst_39 [1] : vector<2x4x256xf32> to vector<2x256xf32>
    %58 = vector.extract_strided_slice %49 {offsets = [0, 9, 0], sizes = [2, 3, 256], strides = [1, 1, 1]} : vector<2x16x256xf32> to vector<2x3x256xf32>
    %cst_40 = arith.constant dense<0xFF800000> : vector<2x256xf32>
    %59 = vector.multi_reduction <maximumf>, %58, %cst_40 [1] : vector<2x3x256xf32> to vector<2x256xf32>
    %60 = vector.extract_strided_slice %49 {offsets = [0, 11, 0], sizes = [2, 3, 256], strides = [1, 1, 1]} : vector<2x16x256xf32> to vector<2x3x256xf32>
    %cst_41 = arith.constant dense<0xFF800000> : vector<2x256xf32>
    %61 = vector.multi_reduction <maximumf>, %60, %cst_41 [1] : vector<2x3x256xf32> to vector<2x256xf32>
    %62 = vector.extract_strided_slice %49 {offsets = [0, 13, 0], sizes = [2, 3, 256], strides = [1, 1, 1]} : vector<2x16x256xf32> to vector<2x3x256xf32>
    %cst_42 = arith.constant dense<0xFF800000> : vector<2x256xf32>
    %63 = vector.multi_reduction <maximumf>, %62, %cst_42 [1] : vector<2x3x256xf32> to vector<2x256xf32>
    %c0_43 = arith.constant 0 : index
    %c9 = arith.constant 9 : index
    %c0_44 = arith.constant 0 : index
    %c0_45 = arith.constant 0 : index
    %64 = vector.load %arg1[%c0_43, %c9, %c0_44, %c0_45] : memref<2x16x16x256xf32, #tpu.memory_space<vmem>>, vector<2x3x16x256xf32>
    %cst_46 = arith.constant dense<0xFF800000> : vector<2x16x256xf32>
    %65 = vector.multi_reduction <maximumf>, %64, %cst_46 [1] : vector<2x3x16x256xf32> to vector<2x16x256xf32>
    %66 = vector.extract_strided_slice %65 {offsets = [0, 0, 0], sizes = [2, 3, 256], strides = [1, 1, 1]} : vector<2x16x256xf32> to vector<2x3x256xf32>
    %cst_47 = arith.constant dense<0xFF800000> : vector<2x256xf32>
    %67 = vector.multi_reduction <maximumf>, %66, %cst_47 [1] : vector<2x3x256xf32> to vector<2x256xf32>
    %68 = vector.extract_strided_slice %65 {offsets = [0, 2, 0], sizes = [2, 3, 256], strides = [1, 1, 1]} : vector<2x16x256xf32> to vector<2x3x256xf32>
    %cst_48 = arith.constant dense<0xFF800000> : vector<2x256xf32>
    %69 = vector.multi_reduction <maximumf>, %68, %cst_48 [1] : vector<2x3x256xf32> to vector<2x256xf32>
    %70 = vector.extract_strided_slice %65 {offsets = [0, 4, 0], sizes = [2, 3, 256], strides = [1, 1, 1]} : vector<2x16x256xf32> to vector<2x3x256xf32>
    %cst_49 = arith.constant dense<0xFF800000> : vector<2x256xf32>
    %71 = vector.multi_reduction <maximumf>, %70, %cst_49 [1] : vector<2x3x256xf32> to vector<2x256xf32>
    %72 = vector.extract_strided_slice %65 {offsets = [0, 6, 0], sizes = [2, 4, 256], strides = [1, 1, 1]} : vector<2x16x256xf32> to vector<2x4x256xf32>
    %cst_50 = arith.constant dense<0xFF800000> : vector<2x256xf32>
    %73 = vector.multi_reduction <maximumf>, %72, %cst_50 [1] : vector<2x4x256xf32> to vector<2x256xf32>
    %74 = vector.extract_strided_slice %65 {offsets = [0, 9, 0], sizes = [2, 3, 256], strides = [1, 1, 1]} : vector<2x16x256xf32> to vector<2x3x256xf32>
    %cst_51 = arith.constant dense<0xFF800000> : vector<2x256xf32>
    %75 = vector.multi_reduction <maximumf>, %74, %cst_51 [1] : vector<2x3x256xf32> to vector<2x256xf32>
    %76 = vector.extract_strided_slice %65 {offsets = [0, 11, 0], sizes = [2, 3, 256], strides = [1, 1, 1]} : vector<2x16x256xf32> to vector<2x3x256xf32>
    %cst_52 = arith.constant dense<0xFF800000> : vector<2x256xf32>
    %77 = vector.multi_reduction <maximumf>, %76, %cst_52 [1] : vector<2x3x256xf32> to vector<2x256xf32>
    %78 = vector.extract_strided_slice %65 {offsets = [0, 13, 0], sizes = [2, 3, 256], strides = [1, 1, 1]} : vector<2x16x256xf32> to vector<2x3x256xf32>
    %cst_53 = arith.constant dense<0xFF800000> : vector<2x256xf32>
    %79 = vector.multi_reduction <maximumf>, %78, %cst_53 [1] : vector<2x3x256xf32> to vector<2x256xf32>
    %c0_54 = arith.constant 0 : index
    %c11 = arith.constant 11 : index
    %c0_55 = arith.constant 0 : index
    %c0_56 = arith.constant 0 : index
    %80 = vector.load %arg1[%c0_54, %c11, %c0_55, %c0_56] : memref<2x16x16x256xf32, #tpu.memory_space<vmem>>, vector<2x3x16x256xf32>
    %cst_57 = arith.constant dense<0xFF800000> : vector<2x16x256xf32>
    %81 = vector.multi_reduction <maximumf>, %80, %cst_57 [1] : vector<2x3x16x256xf32> to vector<2x16x256xf32>
    %82 = vector.extract_strided_slice %81 {offsets = [0, 0, 0], sizes = [2, 3, 256], strides = [1, 1, 1]} : vector<2x16x256xf32> to vector<2x3x256xf32>
    %cst_58 = arith.constant dense<0xFF800000> : vector<2x256xf32>
    %83 = vector.multi_reduction <maximumf>, %82, %cst_58 [1] : vector<2x3x256xf32> to vector<2x256xf32>
    %84 = vector.extract_strided_slice %81 {offsets = [0, 2, 0], sizes = [2, 3, 256], strides = [1, 1, 1]} : vector<2x16x256xf32> to vector<2x3x256xf32>
    %cst_59 = arith.constant dense<0xFF800000> : vector<2x256xf32>
    %85 = vector.multi_reduction <maximumf>, %84, %cst_59 [1] : vector<2x3x256xf32> to vector<2x256xf32>
    %86 = vector.extract_strided_slice %81 {offsets = [0, 4, 0], sizes = [2, 3, 256], strides = [1, 1, 1]} : vector<2x16x256xf32> to vector<2x3x256xf32>
    %cst_60 = arith.constant dense<0xFF800000> : vector<2x256xf32>
    %87 = vector.multi_reduction <maximumf>, %86, %cst_60 [1] : vector<2x3x256xf32> to vector<2x256xf32>
    %88 = vector.extract_strided_slice %81 {offsets = [0, 6, 0], sizes = [2, 4, 256], strides = [1, 1, 1]} : vector<2x16x256xf32> to vector<2x4x256xf32>
    %cst_61 = arith.constant dense<0xFF800000> : vector<2x256xf32>
    %89 = vector.multi_reduction <maximumf>, %88, %cst_61 [1] : vector<2x4x256xf32> to vector<2x256xf32>
    %90 = vector.extract_strided_slice %81 {offsets = [0, 9, 0], sizes = [2, 3, 256], strides = [1, 1, 1]} : vector<2x16x256xf32> to vector<2x3x256xf32>
    %cst_62 = arith.constant dense<0xFF800000> : vector<2x256xf32>
    %91 = vector.multi_reduction <maximumf>, %90, %cst_62 [1] : vector<2x3x256xf32> to vector<2x256xf32>
    %92 = vector.extract_strided_slice %81 {offsets = [0, 11, 0], sizes = [2, 3, 256], strides = [1, 1, 1]} : vector<2x16x256xf32> to vector<2x3x256xf32>
    %cst_63 = arith.constant dense<0xFF800000> : vector<2x256xf32>
    %93 = vector.multi_reduction <maximumf>, %92, %cst_63 [1] : vector<2x3x256xf32> to vector<2x256xf32>
    %94 = vector.extract_strided_slice %81 {offsets = [0, 13, 0], sizes = [2, 3, 256], strides = [1, 1, 1]} : vector<2x16x256xf32> to vector<2x3x256xf32>
    %cst_64 = arith.constant dense<0xFF800000> : vector<2x256xf32>
    %95 = vector.multi_reduction <maximumf>, %94, %cst_64 [1] : vector<2x3x256xf32> to vector<2x256xf32>
    %c0_65 = arith.constant 0 : index
    %c13 = arith.constant 13 : index
    %c0_66 = arith.constant 0 : index
    %c0_67 = arith.constant 0 : index
    %96 = vector.load %arg1[%c0_65, %c13, %c0_66, %c0_67] : memref<2x16x16x256xf32, #tpu.memory_space<vmem>>, vector<2x3x16x256xf32>
    %cst_68 = arith.constant dense<0xFF800000> : vector<2x16x256xf32>
    %97 = vector.multi_reduction <maximumf>, %96, %cst_68 [1] : vector<2x3x16x256xf32> to vector<2x16x256xf32>
    %98 = vector.extract_strided_slice %97 {offsets = [0, 0, 0], sizes = [2, 3, 256], strides = [1, 1, 1]} : vector<2x16x256xf32> to vector<2x3x256xf32>
    %cst_69 = arith.constant dense<0xFF800000> : vector<2x256xf32>
    %99 = vector.multi_reduction <maximumf>, %98, %cst_69 [1] : vector<2x3x256xf32> to vector<2x256xf32>
    %100 = vector.extract_strided_slice %97 {offsets = [0, 2, 0], sizes = [2, 3, 256], strides = [1, 1, 1]} : vector<2x16x256xf32> to vector<2x3x256xf32>
    %cst_70 = arith.constant dense<0xFF800000> : vector<2x256xf32>
    %101 = vector.multi_reduction <maximumf>, %100, %cst_70 [1] : vector<2x3x256xf32> to vector<2x256xf32>
    %102 = vector.extract_strided_slice %97 {offsets = [0, 4, 0], sizes = [2, 3, 256], strides = [1, 1, 1]} : vector<2x16x256xf32> to vector<2x3x256xf32>
    %cst_71 = arith.constant dense<0xFF800000> : vector<2x256xf32>
    %103 = vector.multi_reduction <maximumf>, %102, %cst_71 [1] : vector<2x3x256xf32> to vector<2x256xf32>
    %104 = vector.extract_strided_slice %97 {offsets = [0, 6, 0], sizes = [2, 4, 256], strides = [1, 1, 1]} : vector<2x16x256xf32> to vector<2x4x256xf32>
    %cst_72 = arith.constant dense<0xFF800000> : vector<2x256xf32>
    %105 = vector.multi_reduction <maximumf>, %104, %cst_72 [1] : vector<2x4x256xf32> to vector<2x256xf32>
    %106 = vector.extract_strided_slice %97 {offsets = [0, 9, 0], sizes = [2, 3, 256], strides = [1, 1, 1]} : vector<2x16x256xf32> to vector<2x3x256xf32>
    %cst_73 = arith.constant dense<0xFF800000> : vector<2x256xf32>
    %107 = vector.multi_reduction <maximumf>, %106, %cst_73 [1] : vector<2x3x256xf32> to vector<2x256xf32>
    %108 = vector.extract_strided_slice %97 {offsets = [0, 11, 0], sizes = [2, 3, 256], strides = [1, 1, 1]} : vector<2x16x256xf32> to vector<2x3x256xf32>
    %cst_74 = arith.constant dense<0xFF800000> : vector<2x256xf32>
    %109 = vector.multi_reduction <maximumf>, %108, %cst_74 [1] : vector<2x3x256xf32> to vector<2x256xf32>
    %110 = vector.extract_strided_slice %97 {offsets = [0, 13, 0], sizes = [2, 3, 256], strides = [1, 1, 1]} : vector<2x16x256xf32> to vector<2x3x256xf32>
    %cst_75 = arith.constant dense<0xFF800000> : vector<2x256xf32>
    %111 = vector.multi_reduction <maximumf>, %110, %cst_75 [1] : vector<2x3x256xf32> to vector<2x256xf32>
    %112 = tpu.concatenate %3, %5, %7, %9, %11, %13, %15, %19, %21, %23, %25, %27, %29, %31, %35, %37 in 1 : vector<2x256xf32>, vector<2x256xf32>, vector<2x256xf32>, vector<2x256xf32>, vector<2x256xf32>, vector<2x256xf32>, vector<2x256xf32>, vector<2x256xf32>, vector<2x256xf32>, vector<2x256xf32>, vector<2x256xf32>, vector<2x256xf32>, vector<2x256xf32>, vector<2x256xf32>, vector<2x256xf32>, vector<2x256xf32> -> vector<2x4096xf32>
    %113 = tpu.concatenate %39, %41, %43, %45, %47, %51, %53, %55, %57, %59, %61, %63, %67, %69, %71, %73 in 1 : vector<2x256xf32>, vector<2x256xf32>, vector<2x256xf32>, vector<2x256xf32>, vector<2x256xf32>, vector<2x256xf32>, vector<2x256xf32>, vector<2x256xf32>, vector<2x256xf32>, vector<2x256xf32>, vector<2x256xf32>, vector<2x256xf32>, vector<2x256xf32>, vector<2x256xf32>, vector<2x256xf32>, vector<2x256xf32> -> vector<2x4096xf32>
    %114 = tpu.concatenate %75, %77, %79, %83, %85, %87, %89, %91, %93, %95, %99, %101, %103, %105, %107, %109 in 1 : vector<2x256xf32>, vector<2x256xf32>, vector<2x256xf32>, vector<2x256xf32>, vector<2x256xf32>, vector<2x256xf32>, vector<2x256xf32>, vector<2x256xf32>, vector<2x256xf32>, vector<2x256xf32>, vector<2x256xf32>, vector<2x256xf32>, vector<2x256xf32>, vector<2x256xf32>, vector<2x256xf32>, vector<2x256xf32> -> vector<2x4096xf32>
    %115 = tpu.concatenate %112, %113, %114, %111 in 1 : vector<2x4096xf32>, vector<2x4096xf32>, vector<2x4096xf32>, vector<2x256xf32> -> vector<2x12544xf32>
    %c0_76 = arith.constant 0 : index
    %c0_77 = arith.constant 0 : index
    %116 = vector.load %arg2[%c0_76, %c0_77] : memref<2x12544xf32, #tpu.memory_space<vmem>>, vector<2x12544xf32>
    tpu.vector_store %arg2[%c0_76, %c0_77], %115 {strides = array<i32>} : memref<2x12544xf32, #tpu.memory_space<vmem>>, vector<2x12544xf32>,
    return
  }
  func.func @transform_0(%arg0: i32) -> (i32, i32, i32, i32) {
    %c0_i32 = arith.constant 0 : i32
    %c0_i32_0 = arith.constant 0 : i32
    %c0_i32_1 = arith.constant 0 : i32
    %c0_i32_2 = arith.constant 0 : i32
    return %arg0, %c0_i32, %c0_i32_0, %c0_i32_1 : i32, i32, i32, i32
  }
  func.func @transform_1(%arg0: i32) -> (i32, i32) {
    %c0_i32 = arith.constant 0 : i32
    %c0_i32_0 = arith.constant 0 : i32
    return %arg0, %c0_i32 : i32, i32
  }
}

module attributes {stable_mosaic.version = 11 : i64} {
  func.func @head_kernel(%arg0: i32, %arg1: memref<2x256xf32, #tpu.memory_space<vmem>>, %arg2: memref<256x1024xbf16, #tpu.memory_space<vmem>>, %arg3: memref<1x1024xf32, #tpu.memory_space<vmem>>, %arg4: memref<1024x128xbf16, #tpu.memory_space<vmem>>, %arg5: memref<1x128xf32, #tpu.memory_space<vmem>>, %arg6: memref<2x128xf32, #tpu.memory_space<vmem>>, %arg7: memref<2x1024xf32, #tpu.memory_space<vmem>>) attributes {dimension_semantics = [#tpu.dimension_semantics<arbitrary>], iteration_bounds = array<i64: 4>, scalar_prefetch = 0 : i64, scratch_operands = 1 : i64, tpu.core_type = #tpu.core_type<tc>, window_params = [{transform_indices = @transform_0, window_bounds = array<i64: 2, 256>}, {transform_indices = @transform_1, window_bounds = array<i64: 256, 1024>}, {pipeline_mode = #tpu.pipeline_mode<synchronous>, transform_indices = @transform_2, window_bounds = array<i64: 1, 1024>}, {pipeline_mode = #tpu.pipeline_mode<synchronous>, transform_indices = @transform_3, window_bounds = array<i64: 1024, 128>}, {pipeline_mode = #tpu.pipeline_mode<synchronous>, transform_indices = @transform_4, window_bounds = array<i64: 1, 128>}, {pipeline_mode = #tpu.pipeline_mode<synchronous>, transform_indices = @transform_5, window_bounds = array<i64: 2, 128>}]} {
    %c0_i32 = arith.constant 0 : i32
    %0 = arith.cmpi eq, %arg0, %c0_i32 : i32
    %1 = arith.extui %0 : i1 to i32
    %c0_i32_0 = arith.constant 0 : i32
    %2 = arith.cmpi ne, %1, %c0_i32_0 : i32
    scf.if %2 {
      %c0_9 = arith.constant 0 : index
      %c0_10 = arith.constant 0 : index
      %13 = vector.load %arg3[%c0_9, %c0_10] : memref<1x1024xf32, #tpu.memory_space<vmem>>, vector<1x1024xf32>
      %14 = vector.shape_cast %13 : vector<1x1024xf32> to vector<1x1024xf32>
      %15 = vector.broadcast %14 : vector<1x1024xf32> to vector<2x1024xf32>
      %c0_11 = arith.constant 0 : index
      %c0_12 = arith.constant 0 : index
      %16 = vector.load %arg7[%c0_11, %c0_12] : memref<2x1024xf32, #tpu.memory_space<vmem>>, vector<2x1024xf32>
      tpu.vector_store %arg7[%c0_11, %c0_12], %15 {strides = array<i32>} : memref<2x1024xf32, #tpu.memory_space<vmem>>, vector<2x1024xf32>,
    } else {
    }
    %c0 = arith.constant 0 : index
    %c0_1 = arith.constant 0 : index
    %3 = vector.load %arg7[%c0, %c0_1] : memref<2x1024xf32, #tpu.memory_space<vmem>>, vector<2x1024xf32>
    %c0_2 = arith.constant 0 : index
    %c0_3 = arith.constant 0 : index
    %4 = vector.load %arg1[%c0_2, %c0_3] : memref<2x256xf32, #tpu.memory_space<vmem>>, vector<2x256xf32>
    %5 = arith.truncf %4 : vector<2x256xf32> to vector<2x256xbf16>
    %c0_4 = arith.constant 0 : index
    %c0_5 = arith.constant 0 : index
    %6 = vector.load %arg2[%c0_4, %c0_5] : memref<256x1024xbf16, #tpu.memory_space<vmem>>, vector<256x1024xbf16>
    %cst = arith.constant dense<0.000000e+00> : vector<2x1024xf32>
    %7 = tpu.matmul %5, %6, %cst {dimension_numbers = #tpu.dot_dimension_numbers<[1], [0], [0], [1], [0, 0, 1, 1], [], []>} : vector<2x256xbf16>, vector<256x1024xbf16>, vector<2x1024xf32> -> vector<2x1024xf32>
    %8 = arith.addf %3, %7 : vector<2x1024xf32>
    %c0_6 = arith.constant 0 : index
    %c0_7 = arith.constant 0 : index
    %9 = vector.load %arg7[%c0_6, %c0_7] : memref<2x1024xf32, #tpu.memory_space<vmem>>, vector<2x1024xf32>
    tpu.vector_store %arg7[%c0_6, %c0_7], %8 {strides = array<i32>} : memref<2x1024xf32, #tpu.memory_space<vmem>>, vector<2x1024xf32>,
    %c3_i32 = arith.constant 3 : i32
    %10 = arith.cmpi eq, %arg0, %c3_i32 : i32
    %11 = arith.extui %10 : i1 to i32
    %c0_i32_8 = arith.constant 0 : i32
    %12 = arith.cmpi ne, %11, %c0_i32_8 : i32
    scf.if %12 {
      %c0_9 = arith.constant 0 : index
      %c0_10 = arith.constant 0 : index
      %13 = vector.load %arg7[%c0_9, %c0_10] : memref<2x1024xf32, #tpu.memory_space<vmem>>, vector<2x1024xf32>
      %cst_11 = arith.constant 0.000000e+00 : f32
      %14 = vector.broadcast %cst_11 : f32 to vector<2x1024xf32>
      %15 = arith.maximumf %13, %14 : vector<2x1024xf32>
      %16 = arith.truncf %15 : vector<2x1024xf32> to vector<2x1024xbf16>
      %c0_12 = arith.constant 0 : index
      %c0_13 = arith.constant 0 : index
      %17 = vector.load %arg4[%c0_12, %c0_13] : memref<1024x128xbf16, #tpu.memory_space<vmem>>, vector<1024x128xbf16>
      %cst_14 = arith.constant dense<0.000000e+00> : vector<2x128xf32>
      %18 = tpu.matmul %16, %17, %cst_14 {dimension_numbers = #tpu.dot_dimension_numbers<[1], [0], [0], [1], [0, 0, 1, 1], [], []>} : vector<2x1024xbf16>, vector<1024x128xbf16>, vector<2x128xf32> -> vector<2x128xf32>
      %c0_15 = arith.constant 0 : index
      %c0_16 = arith.constant 0 : index
      %19 = vector.load %arg5[%c0_15, %c0_16] : memref<1x128xf32, #tpu.memory_space<vmem>>, vector<1x128xf32>
      %20 = vector.broadcast %19 : vector<1x128xf32> to vector<2x128xf32>
      %21 = arith.addf %18, %20 : vector<2x128xf32>
      %c0_17 = arith.constant 0 : index
      %c0_18 = arith.constant 0 : index
      %22 = vector.load %arg6[%c0_17, %c0_18] : memref<2x128xf32, #tpu.memory_space<vmem>>, vector<2x128xf32>
      tpu.vector_store %arg6[%c0_17, %c0_18], %21 {strides = array<i32>} : memref<2x128xf32, #tpu.memory_space<vmem>>, vector<2x128xf32>,
    } else {
    }
    return
  }
  func.func @transform_0(%arg0: i32) -> (i32, i32) {
    %c0_i32 = arith.constant 0 : i32
    %c0_i32_0 = arith.constant 0 : i32
    return %c0_i32, %arg0 : i32, i32
  }
  func.func @transform_1(%arg0: i32) -> (i32, i32) {
    %c0_i32 = arith.constant 0 : i32
    %c0_i32_0 = arith.constant 0 : i32
    return %arg0, %c0_i32 : i32, i32
  }
  func.func @transform_2(%arg0: i32) -> (i32, i32) {
    %c0_i32 = arith.constant 0 : i32
    %c0_i32_0 = arith.constant 0 : i32
    %c0_i32_1 = arith.constant 0 : i32
    return %c0_i32, %c0_i32_0 : i32, i32
  }
  func.func @transform_3(%arg0: i32) -> (i32, i32) {
    %c0_i32 = arith.constant 0 : i32
    %c0_i32_0 = arith.constant 0 : i32
    %c0_i32_1 = arith.constant 0 : i32
    return %c0_i32, %c0_i32_0 : i32, i32
  }
  func.func @transform_4(%arg0: i32) -> (i32, i32) {
    %c0_i32 = arith.constant 0 : i32
    %c0_i32_0 = arith.constant 0 : i32
    %c0_i32_1 = arith.constant 0 : i32
    return %c0_i32, %c0_i32_0 : i32, i32
  }
  func.func @transform_5(%arg0: i32) -> (i32, i32) {
    %c0_i32 = arith.constant 0 : i32
    %c0_i32_0 = arith.constant 0 : i32
    %c0_i32_1 = arith.constant 0 : i32
    return %c0_i32, %c0_i32_0 : i32, i32
  }
}

</mosaic_0001>

<bundles_post_ra>
// kernel: roi_pre_forward.3
= control target key start
LH: loop header
LB: loop body
LE: loop exit
PB: predicated region body
PF: predicated region fallthrough
CT: control target
= control target key end

     0   :  { %6 = vsyncpa [#allocation3], 0  ;;  %s2555_s6 = smov [#allocation2]   ;;  %s4438_s0 = inlined_call_operand.hbm [shape: f32[2,16,16,256], index: 0, kind: input, shape index: {}]   ;;  %s4439_s1 = inlined_call_operand.vmem [shape: f32[2,12544], index: 1, kind: output, shape index: {}]  }
   0x1   :  { %s12_s7 = sshll.u32 %s2555_s6, 4  ;;  %s2531_s10 = scalar_lea.hbm %s4438_s0, 16384  ;;  %s13_s7 = int_to_ptr.vmem [resolvable:$true] %s12_s7 }
   0x2   :  { %p2532_p0 = scmp.ne.s32.totalorder %s4438_s0, %s2531_s10  ;;  %p2535_p1 = scmp.lt.u32.totalorder %s2531_s10, %s4438_s0 }
   0x4   :  { %p2537_p2 = pnand %p2535_p1, %p2532_p0 }
   0x6   :  { %2540 = shalt.err (!%p2537_p2)
}
   0x7   :  { %s2541_s15 = scalar_lea.vmem %s13_s7, 16384  ;;  %p2546_p4 = scmp.lt.s32.totalorder %s13_s7, %s13_s7 }
   0x8   :  { %p2542_p3 = scmp.ne.s32.totalorder %s13_s7, %s2541_s15  ;;  %p2547_p5 = scmp.lt.s32.totalorder %s2541_s15, %s2541_s15 }
   0xa   :  { %p2548_p6 = por %p2547_p5, %p2546_p4 }
   0xc   :  { %p2549_p7 = pnand %p2548_p6, %p2542_p3 }
   0xe   :  { %2552 = shalt.err (!%p2549_p7)
}
   0xf   :  { %s2556_s16 = smov 256   ;;  %s2557_s17 = smov 16  }
  0x10   :  { %18 = dma.hbm_to_vmem [thread:$0]  %s4438_s0, 16384, %s13_s7, [#allocation3], %s2556_s16, %s2556_s16, %s2557_s17  }
  0x11   :  { %2553 = dma.done.wait [#allocation3], 16384  }
  0x12   :  { %2554 = vsyncadd [#allocation3], 4294950912  ;;  %v22_v0 = vld [vmem:[#allocation2] sm:$0xff]  ;;  %v23_v1 = vld [vmem:[#allocation2 + $0x8] sm:$0xff]  ;;  %vm62_vm0 = vcmask 1042432   ;;  %vm91_vm1 = vcmask 1044482  }
  0x13   :  { %v24_v2 = vld [vmem:[#allocation2 + $0x10] sm:$0xff]  ;;  %v25_v3 = vld [vmem:[#allocation2 + $0x18] sm:$0xff]  ;;  %v26_v4 = vld [vmem:[#allocation2 + $0x20] sm:$0xff]  ;;  %vm120_vm2 = vcmask 1046532   ;;  %vm149_vm3 = vcmask 1047558   ;;  %vm151_vm4 = vcmask 1041408  }
  0x14   :  { %v27_v5 = vld [vmem:[#allocation2 + $0x28] sm:$0xff]  ;;  %v28_v6 = vld [vmem:[#allocation2 + $0x30] sm:$0xff]  ;;  %v29_v7 = vld [vmem:[#allocation2 + $0x38] sm:$0xff]  ;;  %v46_v9 = vmax.f32 %v22_v0, %v26_v4  ;;  %vm187_vm5 = vcmask 1043457   ;;  %vm216_vm6 = vcmask 1045507   ;;  %vm245_vm7 = vcmask 1047557  }
  0x15   :  { %v2581_v8 = vld [vmem:[#allocation2 + $0x40] sm:$0xff]  ;;  %v48_v10 = vmax.f32 %v23_v1, %v27_v5  ;;  %v2583_v11 = vld [vmem:[#allocation2 + $0x48] sm:$0xff]  ;;  %v2585_v12 = vld [vmem:[#allocation2 + $0x50] sm:$0xff]  ;;  %v50_v14 = vmax.f32 %v24_v2, %v28_v6  ;;  %v52_v15 = vmax.f32 %v25_v3, %v29_v7  ;;  %vm1764_vm8 = vcmask 1041409  }
  0x16   :  { %v2587_v13 = vld [vmem:[#allocation2 + $0x58] sm:$0xff]  ;;  %v34_v16 = vld [vmem:[#allocation2 + $0x200] sm:$0xff]  ;;  %v35_v17 = vld [vmem:[#allocation2 + $0x208] sm:$0xff]  ;;  %v2590_v19 = vmax.f32 %v46_v9, %v2581_v8 }
  0x17   :  { %v36_v18 = vld [vmem:[#allocation2 + $0x210] sm:$0xff]  ;;  %v2593_v20 = vmax.f32 %v48_v10, %v2583_v11  ;;  %v37_v21 = vld [vmem:[#allocation2 + $0x218] sm:$0xff]  ;;  %v38_v22 = vld [vmem:[#allocation2 + $0x220] sm:$0xff]  ;;  %v2596_v24 = vmax.f32 %v50_v14, %v2585_v12  ;;  %v2599_v25 = vmax.f32 %v52_v15, %v2587_v13 }
  0x18   :  { %v39_v23 = vld [vmem:[#allocation2 + $0x228] sm:$0xff]  ;;  %v40_v26 = vld [vmem:[#allocation2 + $0x230] sm:$0xff]  ;;  %v41_v27 = vld [vmem:[#allocation2 + $0x238] sm:$0xff]  ;;  %v54_v28 = vmax.f32 %v34_v16, %v38_v22  ;;  %v63_v30 = vsel %vm62_vm0, %v2590_v19, -inf  ;;  %v92_v42 = vsel %vm91_vm1, %v2590_v19, -inf }
  0x19   :  { %v56_v29 = vmax.f32 %v35_v17, %v39_v23  ;;  %v70_v31 = vsel %vm62_vm0, %v2593_v20, -inf  ;;  %v2605_v32 = vld [vmem:[#allocation2 + $0x240] sm:$0xff]  ;;  %v2607_v33 = vld [vmem:[#allocation2 + $0x248] sm:$0xff]  ;;  %v58_v34 = vmax.f32 %v36_v18, %v40_v26  ;;  %v60_v35 = vmax.f32 %v37_v21, %v41_v27  ;;  %v2609_v38 = vld [vmem:[#allocation2 + $0x250] sm:$0xff] }
  0x1a   :  { %v64_v36 = vrot.slane %v63_v30, 4  ;;  %v71_v37 = vrot.slane %v70_v31, 4  ;;  %v2611_v39 = vld [vmem:[#allocation2 + $0x258] sm:$0xff]  ;;  %v2614_v40 = vmax.f32 %v54_v28, %v2605_v32  ;;  %v99_v43 = vsel %vm91_vm1, %v2593_v20, -inf }
  0x1b   :  { %v2617_v41 = vmax.f32 %v56_v29, %v2607_v33  ;;  %v2624_v44 = vmax.f32 %v58_v34, %v2609_v38  ;;  %v2627_v45 = vmax.f32 %v60_v35, %v2611_v39  ;;  %v93_v50 = vrot.slane %v92_v42, 4 }
  0x1c   :  { %v65_v46 = vmax.f32 %v63_v30, %v64_v36  ;;  %v72_v47 = vmax.f32 %v70_v31, %v71_v37  ;;  %v77_v48 = vsel %vm62_vm0, %v2614_v40, -inf  ;;  %v100_v51 = vrot.slane %v99_v43, 4 }
  0x1d   :  { %v84_v49 = vsel %vm62_vm0, %v2617_v41, -inf  ;;  %v78_v54 = vrot.slane %v77_v48, 4  ;;  %v94_v56 = vmax.f32 %v92_v42, %v93_v50  ;;  %v106_v58 = vsel %vm91_vm1, %v2614_v40, -inf }
  0x1e   :  { %v66_v52 = vrot.slane %v65_v46, 2  ;;  %v73_v53 = vrot.slane %v72_v47, 2  ;;  %v85_v55 = vrot.slane %v84_v49, 4  ;;  %v101_v57 = vmax.f32 %v99_v43, %v100_v51 }
  0x1f   :  { %v113_v59 = vsel %vm91_vm1, %v2617_v41, -inf  ;;  %v79_v62 = vmax.f32 %v77_v48, %v78_v54  ;;  %v95_v0 = vrot.slane %v94_v56, 2  ;;  %v107_v2 = vrot.slane %v106_v58, 4 }
  0x20   :  { %v67_v60 = vmax.f32 %v65_v46, %v66_v52  ;;  %v74_v61 = vmax.f32 %v72_v47, %v73_v53  ;;  %v86_v63 = vmax.f32 %v84_v49, %v85_v55  ;;  %v102_v1 = vrot.slane %v101_v57, 2 }
  0x21   :  { %v114_v3 = vrot.slane %v113_v59, 4  ;;  %v80_v6 = vrot.slane %v79_v62, 2  ;;  %v96_v9 = vmax.f32 %v94_v56, %v95_v0  ;;  %v108_v14 = vmax.f32 %v106_v58, %v107_v2 }
  0x22   :  { %v68_v4 = vrot.slane %v67_v60, 1  ;;  %v75_v5 = vrot.slane %v74_v61, 1  ;;  %v87_v7 = vrot.slane %v86_v63, 2  ;;  %v103_v10 = vmax.f32 %v101_v57, %v102_v1 }
  0x23   :  { %v115_v15 = vmax.f32 %v113_v59, %v114_v3  ;;  %v81_v18 = vmax.f32 %v79_v62, %v80_v6  ;;  %v97_v22 = vrot.slane %v96_v9, 1  ;;  %v109_v26 = vrot.slane %v108_v14, 2 }
  0x24   :  { %v2637_v16 = vmax.f32 %v67_v60, %v68_v4  ;;  %v2639_v17 = vmax.f32 %v74_v61, %v75_v5  ;;  %v88_v21 = vmax.f32 %v86_v63, %v87_v7  ;;  %v104_v23 = vrot.slane %v103_v10, 1 }
  0x25   :  { %v116_v27 = vrot.slane %v115_v15, 2  ;;  %v82_v28 = vrot.slane %v81_v18, 1  ;;  %v121_v30 = vsel %vm120_vm2, %v2590_v19, -inf  ;;  %v128_v31 = vsel %vm120_vm2, %v2593_v20, -inf }
  0x26   :  { %v89_v29 = vrot.slane %v88_v21, 1  ;;  %v2645_v34 = vmax.f32 %v96_v9, %v97_v22  ;;  %v2647_v35 = vmax.f32 %v103_v10, %v104_v23  ;;  %v110_v36 = vmax.f32 %v108_v14, %v109_v26 }
  0x27   :  { %v117_v37 = vmax.f32 %v115_v15, %v116_v27  ;;  %v2649_v42 = vmax.f32 %v81_v18, %v82_v28  ;;  %v122_v46 = vrot.slane %v121_v30, 4  ;;  %v129_v47 = vrot.slane %v128_v31, 4 }
  0x28   :  { %v2651_v43 = vmax.f32 %v88_v21, %v89_v29  ;;  %v111_v48 = vrot.slane %v110_v36, 1  ;;  %v135_v50 = vsel %vm120_vm2, %v2614_v40, -inf  ;;  %v142_v51 = vsel %vm120_vm2, %v2617_v41, -inf }
  0x29   :  { %v118_v49 = vrot.slane %v117_v37, 1  ;;  %v123_v52 = vmax.f32 %v121_v30, %v122_v46  ;;  %v130_v53 = vmax.f32 %v128_v31, %v129_v47  ;;  %v136_v54 = vrot.slane %v135_v50, 4 }
  0x2a   :  { %v143_v55 = vrot.slane %v142_v51, 4  ;;  %v2657_v56 = vmax.f32 %v110_v36, %v111_v48  ;;  %v150_v58 = vsel %vm149_vm3, %v2590_v19, -inf  ;;  %v152_v59 = vsel %vm151_vm4, %v2596_v24, -inf }
  0x2b   :  { %v2659_v57 = vmax.f32 %v117_v37, %v118_v49  ;;  %v124_v60 = vrot.slane %v123_v52, 2  ;;  %v131_v61 = vrot.slane %v130_v53, 2  ;;  %v137_v62 = vmax.f32 %v135_v50, %v136_v54 }
  0x2c   :  { %v144_v63 = vmax.f32 %v142_v51, %v143_v55  ;;  %v153_v0 = vmax.f32 %v150_v58, %v152_v59  ;;  %v160_v1 = vsel %vm149_vm3, %v2593_v20, -inf  ;;  %v161_v2 = vsel %vm151_vm4, %v2599_v25, -inf }
  0x2d   :  { %v169_v3 = vsel %vm149_vm3, %v2614_v40, -inf  ;;  %v125_v4 = vmax.f32 %v123_v52, %v124_v60  ;;  %v132_v5 = vmax.f32 %v130_v53, %v131_v61  ;;  %v138_v19 = vrot.slane %v137_v62, 2 }
  0x2e   :  { %v145_v6 = vrot.slane %v144_v63, 2  ;;  %v154_v7 = vrot.slane %v153_v0, 4  ;;  %v162_v9 = vmax.f32 %v160_v1, %v161_v2  ;;  %v170_v10 = vsel %vm151_vm4, %v2624_v44, -inf }
  0x2f   :  { %v178_v14 = vsel %vm149_vm3, %v2617_v41, -inf  ;;  %v126_v15 = vrot.slane %v125_v4, 1  ;;  %v133_v20 = vrot.slane %v132_v5, 1  ;;  %v139_v18 = vmax.f32 %v137_v62, %v138_v19 }
  0x30   :  { %v146_v21 = vmax.f32 %v144_v63, %v145_v6  ;;  %v155_v22 = vmax.f32 %v153_v0, %v154_v7  ;;  %v163_v23 = vrot.slane %v162_v9, 4  ;;  %v171_v40 = vmax.f32 %v169_v3, %v170_v10 }
  0x31   :  { %v179_v26 = vsel %vm151_vm4, %v2627_v45, -inf  ;;  %v2677_v27 = vmax.f32 %v125_v4, %v126_v15  ;;  %v2679_v28 = vmax.f32 %v132_v5, %v133_v20  ;;  %v140_v29 = vrot.slane %v139_v18, 1 }
  0x32   :  { %v147_v30 = vrot.slane %v146_v21, 1  ;;  %v156_v31 = vrot.slane %v155_v22, 2  ;;  %v164_v36 = vmax.f32 %v162_v9, %v163_v23  ;;  %v172_v41 = vrot.slane %v171_v40, 4 }
  0x33   :  { %v180_v37 = vmax.f32 %v178_v14, %v179_v26  ;;  %v2681_v46 = vmax.f32 %v139_v18, %v140_v29  ;;  %v188_v48 = vsel %vm187_vm5, %v2596_v24, -inf  ;;  %v195_v49 = vsel %vm187_vm5, %v2599_v25, -inf }
  0x34   :  { %v2683_v47 = vmax.f32 %v146_v21, %v147_v30  ;;  %v157_v50 = vmax.f32 %v155_v22, %v156_v31  ;;  %v165_v51 = vrot.slane %v164_v36, 2  ;;  %v173_v52 = vmax.f32 %v171_v40, %v172_v41 }
  0x35   :  { %v181_v53 = vrot.slane %v180_v37, 4  ;;  %v189_v54 = vrot.slane %v188_v48, 4  ;;  %v196_v55 = vrot.slane %v195_v49, 4  ;;  %v202_v58 = vsel %vm187_vm5, %v2624_v44, -inf }
  0x36   :  { %v209_v59 = vsel %vm187_vm5, %v2627_v45, -inf  ;;  %v158_v60 = vrot.slane %v157_v50, 1  ;;  %v166_v61 = vmax.f32 %v164_v36, %v165_v51  ;;  %v174_v62 = vrot.slane %v173_v52, 2 }
  0x37   :  { %v182_v63 = vmax.f32 %v180_v37, %v181_v53  ;;  %v190_v0 = vmax.f32 %v188_v48, %v189_v54  ;;  %v197_v1 = vmax.f32 %v195_v49, %v196_v55  ;;  %v203_v2 = vrot.slane %v202_v58, 4 }
  0x38   :  { %v210_v3 = vrot.slane %v209_v59, 4  ;;  %v2693_v4 = vmax.f32 %v157_v50, %v158_v60  ;;  %v167_v5 = vrot.slane %v166_v61, 1  ;;  %v175_v19 = vmax.f32 %v173_v52, %v174_v62 }
  0x39   :  { %v183_v6 = vrot.slane %v182_v63, 2  ;;  %v191_v7 = vrot.slane %v190_v0, 2  ;;  %v198_v9 = vrot.slane %v197_v1, 2  ;;  %v204_v10 = vmax.f32 %v202_v58, %v203_v2 }
  0x3a   :  { %v211_v14 = vmax.f32 %v209_v59, %v210_v3  ;;  %v2695_v15 = vmax.f32 %v166_v61, %v167_v5  ;;  %v176_v20 = vrot.slane %v175_v19, 1  ;;  %v217_v21 = vsel %vm216_vm6, %v2596_v24, -inf }
  0x3b   :  { %v184_v18 = vmax.f32 %v182_v63, %v183_v6  ;;  %v192_v22 = vmax.f32 %v190_v0, %v191_v7  ;;  %v199_v23 = vmax.f32 %v197_v1, %v198_v9  ;;  %v205_v40 = vrot.slane %v204_v10, 2 }
  0x3c   :  { %4440 = vst [vmem:[#allocation5_spill] sm:$0xff] %v2695_v15  ;;  %v212_v26 = vrot.slane %v211_v14, 2  ;;  %v2699_v29 = vmax.f32 %v175_v19, %v176_v20  ;;  %v218_v31 = vrot.slane %v217_v21, 4  ;;  %v224_v36 = vsel %vm216_vm6, %v2599_v25, -inf }
  0x3d   :  { %v185_v30 = vrot.slane %v184_v18, 1  ;;  %v193_v41 = vrot.slane %v192_v22, 1  ;;  %v200_v37 = vrot.slane %v199_v23, 1  ;;  %v206_v48 = vmax.f32 %v204_v10, %v205_v40 }
  0x3e   :  { %v213_v49 = vmax.f32 %v211_v14, %v212_v26  ;;  %v219_v51 = vmax.f32 %v217_v21, %v218_v31  ;;  %v225_v52 = vrot.slane %v224_v36, 4  ;;  %v231_v53 = vsel %vm216_vm6, %v2624_v44, -inf  ;;  %v279_v31 = vld [vmem:[#allocation2 + $0x60] sm:$0xff] }
  0x3f   :  { %v2703_v50 = vmax.f32 %v184_v18, %v185_v30  ;;  %v2707_v54 = vmax.f32 %v192_v22, %v193_v41  ;;  %v2709_v55 = vmax.f32 %v199_v23, %v200_v37  ;;  %v207_v58 = vrot.slane %v206_v48, 1 }
  0x40   :  { %v214_v59 = vrot.slane %v213_v49, 1  ;;  %v220_v60 = vrot.slane %v219_v51, 2  ;;  %v226_v61 = vmax.f32 %v224_v36, %v225_v52  ;;  %v232_v62 = vrot.slane %v231_v53, 4  ;;  %v280_v52 = vld [vmem:[#allocation2 + $0x68] sm:$0xff] }
  0x41   :  { %4441 = vst [vmem:[#allocation6_spill] sm:$0xff] %v2703_v50  ;;  %4442 = vst [vmem:[#allocation7_spill] sm:$0xff] %v2707_v54  ;;  %v238_v63 = vsel %vm216_vm6, %v2627_v45, -inf  ;;  %v2713_v0 = vmax.f32 %v206_v48, %v207_v58  ;;  %v246_v3 = vsel %vm245_vm7, %v2596_v24, -inf  ;;  %v253_v10 = vsel %vm245_vm7, %v2599_v25, -inf }
  0x42   :  { %4443 = vst [vmem:[#allocation8_spill] sm:$0xff] %v2709_v55  ;;  %v2715_v1 = vmax.f32 %v213_v49, %v214_v59  ;;  %v239_v2 = vrot.slane %v238_v63, 4  ;;  %v221_v5 = vmax.f32 %v219_v51, %v220_v60  ;;  %v227_v19 = vrot.slane %v226_v61, 2  ;;  %v281_v59 = vld [vmem:[#allocation2 + $0x70] sm:$0xff] }
  0x43   :  { %4444 = vst [vmem:[#allocation9_spill] sm:$0xff] %v2713_v0  ;;  %v233_v6 = vmax.f32 %v231_v53, %v232_v62  ;;  %v247_v7 = vrot.slane %v246_v3, 4  ;;  %v260_v14 = vsel %vm245_vm7, %v2624_v44, -inf  ;;  %v267_v20 = vsel %vm245_vm7, %v2627_v45, -inf }
  0x44   :  { %4445 = vst [vmem:[#allocation10_spill] sm:$0xff] %v2715_v1  ;;  %v240_v9 = vmax.f32 %v238_v63, %v239_v2  ;;  %v222_v18 = vrot.slane %v221_v5, 1  ;;  %v228_v21 = vmax.f32 %v226_v61, %v227_v19  ;;  %v254_v24 = vrot.slane %v253_v10, 4 }
  0x45   :  { %v234_v22 = vrot.slane %v233_v6, 2  ;;  %v248_v23 = vmax.f32 %v246_v3, %v247_v7  ;;  %v261_v26 = vrot.slane %v260_v14, 4  ;;  %v268_v30 = vrot.slane %v267_v20, 4  ;;  %v282_v3 = vld [vmem:[#allocation2 + $0x78] sm:$0xff]  ;;  %v291_v7 = vld [vmem:[#allocation2 + $0x260] sm:$0xff] }
  0x46   :  { %v241_v40 = vrot.slane %v240_v9, 2  ;;  %v2725_v36 = vmax.f32 %v221_v5, %v222_v18  ;;  %v229_v41 = vrot.slane %v228_v21, 1  ;;  %v255_v49 = vmax.f32 %v253_v10, %v254_v24  ;;  %v2730_v5 = vld [vmem:[#allocation2 + $0x80] sm:$0xff] }
  0x47   :  { %v235_v37 = vmax.f32 %v233_v6, %v234_v22  ;;  %v249_v25 = vrot.slane %v248_v23, 2  ;;  %v262_v44 = vmax.f32 %v260_v14, %v261_v26  ;;  %v269_v51 = vmax.f32 %v267_v20, %v268_v30  ;;  %v292_v22 = vld [vmem:[#allocation2 + $0x268] sm:$0xff] }
  0x48   :  { %4446 = vst [vmem:[#allocation11_spill] sm:$0xff] %v2725_v36  ;;  %v242_v48 = vmax.f32 %v240_v9, %v241_v40  ;;  %v2727_v45 = vmax.f32 %v228_v21, %v229_v41  ;;  %v299_v60 = vmax.f32 %v2581_v8, %v279_v31  ;;  %v256_v62 = vrot.slane %v255_v49, 2  ;;  %v2740_v21 = vld [vmem:[#allocation2 + $0x88] sm:$0xff] }
  0x49   :  { %v236_v53 = vrot.slane %v235_v37, 1  ;;  %v250_v58 = vmax.f32 %v248_v23, %v249_v25  ;;  %v263_v63 = vrot.slane %v262_v44, 2  ;;  %v270_v2 = vrot.slane %v269_v51, 2  ;;  %v293_v23 = vld [vmem:[#allocation2 + $0x270] sm:$0xff]  ;;  %v2751_v25 = vld [vmem:[#allocation2 + $0x98] sm:$0xff] }
  0x4a   :  { %4447 = vst [vmem:[#allocation12_spill] sm:$0xff] %v2727_v45  ;;  %v243_v61 = vrot.slane %v242_v48, 1  ;;  %v2735_v9 = vmax.f32 %v299_v60, %v2730_v5  ;;  %v301_v10 = vmax.f32 %v2583_v11, %v280_v52  ;;  %v257_v20 = vmax.f32 %v255_v49, %v256_v62  ;;  %v2770_v60 = vld [vmem:[#allocation2 + $0x288] sm:$0xff] }
  0x4b   :  { %v2732_v19 = vmax.f32 %v235_v37, %v236_v53  ;;  %v251_v6 = vrot.slane %v250_v58, 1  ;;  %v264_v8 = vmax.f32 %v262_v44, %v263_v63  ;;  %v271_v18 = vmax.f32 %v269_v51, %v270_v2  ;;  %v2749_v37 = vld [vmem:[#allocation2 + $0x90] sm:$0xff]  ;;  %v2754_v44 = vld [vmem:[#allocation2 + $0x280] sm:$0xff]  ;;  %v2786_v2 = vld [vmem:[#allocation2 + $0x298] sm:$0xff] }
  0x4c   :  { %v2738_v14 = vmax.f32 %v242_v48, %v243_v61  ;;  %v2745_v24 = vmax.f32 %v301_v10, %v2740_v21  ;;  %v303_v26 = vmax.f32 %v2585_v12, %v281_v59  ;;  %v305_v30 = vmax.f32 %v2587_v13, %v282_v3  ;;  %v294_v48 = vld [vmem:[#allocation2 + $0x278] sm:$0xff] }
  0x4d   :  { %4448 = vst [vmem:[#allocation13_spill] sm:$0xff] %v2732_v19  ;;  %v2742_v40 = vmax.f32 %v250_v58, %v251_v6  ;;  %v258_v31 = vrot.slane %v257_v20, 1  ;;  %v265_v11 = vrot.slane %v264_v8, 1  ;;  %v272_v41 = vrot.slane %v271_v18, 1 }
  0x4e   :  { %4449 = vst [vmem:[#allocation14_spill] sm:$0xff] %v2738_v14  ;;  %v307_v49 = vmax.f32 %v2605_v32, %v291_v7  ;;  %v2757_v51 = vmax.f32 %v303_v26, %v2749_v37  ;;  %v2760_v52 = vmax.f32 %v305_v30, %v2751_v25  ;;  %v309_v12 = vmax.f32 %v2607_v33, %v292_v22  ;;  %v2772_v32 = vld [vmem:[#allocation2 + $0x290] sm:$0xff] }
  0x4f   :  { %4450 = vst [vmem:[#allocation15_spill] sm:$0xff] %v2742_v40  ;;  %v311_v13 = vmax.f32 %v2609_v38, %v293_v23  ;;  %v2764_v53 = vmax.f32 %v257_v20, %v258_v31  ;;  %v2766_v58 = vmax.f32 %v264_v8, %v265_v11  ;;  %v2768_v59 = vmax.f32 %v271_v18, %v272_v41 }
  0x50   :  { %v2775_v61 = vmax.f32 %v307_v49, %v2754_v44  ;;  %v2778_v62 = vmax.f32 %v309_v12, %v2770_v60  ;;  %v313_v38 = vmax.f32 %v2611_v39, %v294_v48  ;;  %v315_v63 = vsel %vm62_vm0, %v2735_v9, -inf }
  0x51   :  { %4451 = vst [vmem:[#allocation16_spill] sm:$0xff] %v2764_v53  ;;  %4452 = vst [vmem:[#allocation17_spill] sm:$0xff] %v2766_v58  ;;  %v2781_v33 = vmax.f32 %v311_v13, %v2772_v32  ;;  %v316_v3 = vrot.slane %v315_v63, 4  ;;  %v322_v6 = vsel %vm62_vm0, %v2745_v24, -inf  ;;  %v343_v10 = vsel %vm91_vm1, %v2735_v9, -inf }
  0x52   :  { %4453 = vst [vmem:[#allocation18_spill] sm:$0xff] %v2768_v59  ;;  %v329_v7 = vsel %vm62_vm0, %v2775_v61, -inf  ;;  %v2795_v20 = vmax.f32 %v313_v38, %v2786_v2  ;;  %v323_v8 = vrot.slane %v322_v6, 4  ;;  %v336_v18 = vsel %vm62_vm0, %v2778_v62, -inf }
  0x53   :  { %v330_v39 = vrot.slane %v329_v7, 4  ;;  %v317_v22 = vmax.f32 %v315_v63, %v316_v3  ;;  %v337_v23 = vrot.slane %v336_v18, 4  ;;  %v344_v26 = vrot.slane %v343_v10, 4 }
  0x54   :  { %v350_v30 = vsel %vm91_vm1, %v2745_v24, -inf  ;;  %v324_v31 = vmax.f32 %v322_v6, %v323_v8  ;;  %v357_v48 = vsel %vm91_vm1, %v2775_v61, -inf  ;;  %v364_v63 = vsel %vm91_vm1, %v2778_v62, -inf }
  0x55   :  { %v331_v11 = vmax.f32 %v329_v7, %v330_v39  ;;  %v351_v41 = vrot.slane %v350_v30, 4  ;;  %v318_v49 = vrot.slane %v317_v22, 2  ;;  %v338_v12 = vmax.f32 %v336_v18, %v337_v23 }
  0x56   :  { %v345_v13 = vmax.f32 %v343_v10, %v344_v26  ;;  %v358_v38 = vrot.slane %v357_v48, 4  ;;  %v325_v59 = vrot.slane %v324_v31, 2  ;;  %v365_v39 = vrot.slane %v364_v63, 4 }
  0x57   :  { %v332_v53 = vrot.slane %v331_v11, 2  ;;  %v352_v58 = vmax.f32 %v350_v30, %v351_v41  ;;  %v319_v3 = vmax.f32 %v317_v22, %v318_v49  ;;  %v339_v40 = vrot.slane %v338_v12, 2 }
  0x58   :  { %v346_v14 = vrot.slane %v345_v13, 2  ;;  %v359_v45 = vmax.f32 %v357_v48, %v358_v38  ;;  %v326_v6 = vmax.f32 %v324_v31, %v325_v59  ;;  %v366_v55 = vmax.f32 %v364_v63, %v365_v39 }
  0x59   :  { %v333_v7 = vmax.f32 %v331_v11, %v332_v53  ;;  %v353_v8 = vrot.slane %v352_v58, 2  ;;  %v320_v19 = vrot.slane %v319_v3, 1  ;;  %v340_v36 = vmax.f32 %v338_v12, %v339_v40 }
  0x5a   :  { %v347_v1 = vmax.f32 %v345_v13, %v346_v14  ;;  %v360_v18 = vrot.slane %v359_v45, 2  ;;  %v327_v10 = vrot.slane %v326_v6, 1  ;;  %v367_v59 = vrot.slane %v366_v55, 2 }
  0x5b   :  { %v334_v23 = vrot.slane %v333_v7, 1  ;;  %v354_v26 = vmax.f32 %v352_v58, %v353_v8  ;;  %v2805_v30 = vmax.f32 %v319_v3, %v320_v19  ;;  %v341_v41 = vrot.slane %v340_v36, 1 }
  0x5c   :  { %v348_v0 = vrot.slane %v347_v1, 1  ;;  %v361_v22 = vmax.f32 %v359_v45, %v360_v18  ;;  %v2807_v49 = vmax.f32 %v326_v6, %v327_v10  ;;  %v371_v58 = vsel %vm120_vm2, %v2735_v9, -inf }
  0x5d   :  { %4454 = vst [vmem:[#allocation19_spill] sm:$0xff] %v2805_v30  ;;  %v2809_v48 = vmax.f32 %v333_v7, %v334_v23  ;;  %v355_v53 = vrot.slane %v354_v26, 1  ;;  %v2811_v31 = vmax.f32 %v340_v36, %v341_v41  ;;  %v368_v19 = vmax.f32 %v366_v55, %v367_v59 }
  0x5e   :  { %4455 = vst [vmem:[#allocation20_spill] sm:$0xff] %v2807_v49  ;;  %v2813_v40 = vmax.f32 %v347_v1, %v348_v0  ;;  %v362_v14 = vrot.slane %v361_v22, 1  ;;  %v372_v12 = vrot.slane %v371_v58, 4  ;;  %v378_v45 = vsel %vm120_vm2, %v2745_v24, -inf }
  0x5f   :  { %4456 = vst [vmem:[#allocation21_spill] sm:$0xff] %v2809_v48  ;;  %4457 = vst [vmem:[#allocation22_spill] sm:$0xff] %v2811_v31  ;;  %v2817_v11 = vmax.f32 %v354_v26, %v355_v53  ;;  %v379_v38 = vrot.slane %v378_v45, 4  ;;  %v385_v36 = vsel %vm120_vm2, %v2775_v61, -inf  ;;  %v392_v0 = vsel %vm120_vm2, %v2778_v62, -inf }
  0x60   :  { %4458 = vst [vmem:[#allocation23_spill] sm:$0xff] %v2813_v40  ;;  %v2821_v13 = vmax.f32 %v361_v22, %v362_v14  ;;  %v369_v1 = vrot.slane %v368_v19, 1  ;;  %v373_v63 = vmax.f32 %v371_v58, %v372_v12  ;;  %v386_v3 = vrot.slane %v385_v36, 4 }
  0x61   :  { %4459 = vst [vmem:[#allocation24_spill] sm:$0xff] %v2817_v11  ;;  %v393_v6 = vrot.slane %v392_v0, 4  ;;  %v380_v7 = vmax.f32 %v378_v45, %v379_v38  ;;  %v399_v55 = vsel %vm149_vm3, %v2735_v9, -inf  ;;  %v400_v8 = vsel %vm151_vm4, %v2757_v51, -inf }
  0x62   :  { %4460 = vst [vmem:[#allocation25_spill] sm:$0xff] %v2821_v13  ;;  %v408_v39 = vsel %vm149_vm3, %v2745_v24, -inf  ;;  %v2833_v18 = vmax.f32 %v368_v19, %v369_v1  ;;  %v374_v10 = vrot.slane %v373_v63, 2  ;;  %v387_v23 = vmax.f32 %v385_v36, %v386_v3 }
  0x63   :  { %v394_v26 = vmax.f32 %v392_v0, %v393_v6  ;;  %v381_v41 = vrot.slane %v380_v7, 2  ;;  %v401_v22 = vmax.f32 %v399_v55, %v400_v8  ;;  %v409_v53 = vsel %vm151_vm4, %v2760_v52, -inf }
  0x64   :  { %4461 = vst [vmem:[#allocation26_spill] sm:$0xff] %v2833_v18  ;;  %v417_v59 = vsel %vm149_vm3, %v2775_v61, -inf  ;;  %v375_v9 = vmax.f32 %v373_v63, %v374_v10  ;;  %v388_v14 = vrot.slane %v387_v23, 2  ;;  %v410_v12 = vmax.f32 %v408_v39, %v409_v53 }
  0x65   :  { %v395_v58 = vrot.slane %v394_v26, 2  ;;  %v382_v45 = vmax.f32 %v380_v7, %v381_v41  ;;  %v402_v38 = vrot.slane %v401_v22, 4  ;;  %v418_v24 = vsel %vm151_vm4, %v2781_v33, -inf }
  0x66   :  { %v426_v19 = vsel %vm149_vm3, %v2778_v62, -inf  ;;  %v376_v36 = vrot.slane %v375_v9, 1  ;;  %v389_v0 = vmax.f32 %v387_v23, %v388_v14  ;;  %v411_v3 = vrot.slane %v410_v12, 4 }
  0x67   :  { %v396_v1 = vmax.f32 %v394_v26, %v395_v58  ;;  %v383_v6 = vrot.slane %v382_v45, 1  ;;  %v403_v55 = vmax.f32 %v401_v22, %v402_v38  ;;  %v419_v8 = vmax.f32 %v417_v59, %v418_v24 }
  0x68   :  { %v427_v61 = vsel %vm151_vm4, %v2795_v20, -inf  ;;  %v2845_v63 = vmax.f32 %v375_v9, %v376_v36  ;;  %v390_v7 = vrot.slane %v389_v0, 1  ;;  %v412_v10 = vmax.f32 %v410_v12, %v411_v3 }
  0x69   :  { %v397_v39 = vrot.slane %v396_v1, 1  ;;  %v2847_v41 = vmax.f32 %v382_v45, %v383_v6  ;;  %v404_v53 = vrot.slane %v403_v55, 2  ;;  %v420_v18 = vrot.slane %v419_v8, 4 }
  0x6a   :  { %4462 = vst [vmem:[#allocation27_spill] sm:$0xff] %v2845_v63  ;;  %v428_v62 = vmax.f32 %v426_v19, %v427_v61  ;;  %v2849_v11 = vmax.f32 %v389_v0, %v390_v7  ;;  %v413_v26 = vrot.slane %v412_v10, 2  ;;  %v435_v22 = vsel %vm187_vm5, %v2757_v51, -inf }
  0x6b   :  { %4463 = vst [vmem:[#allocation28_spill] sm:$0xff] %v2847_v41  ;;  %v2851_v23 = vmax.f32 %v396_v1, %v397_v39  ;;  %v405_v59 = vmax.f32 %v403_v55, %v404_v53  ;;  %v421_v14 = vmax.f32 %v419_v8, %v420_v18  ;;  %v436_v58 = vrot.slane %v435_v22, 4 }
  0x6c   :  { %4464 = vst [vmem:[#allocation29_spill] sm:$0xff] %v2849_v11  ;;  %v429_v9 = vrot.slane %v428_v62, 4  ;;  %v414_v38 = vmax.f32 %v412_v10, %v413_v26  ;;  %v442_v12 = vsel %vm187_vm5, %v2760_v52, -inf  ;;  %v449_v45 = vsel %vm187_vm5, %v2781_v33, -inf }
  0x6d   :  { %4465 = vst [vmem:[#allocation30_spill] sm:$0xff] %v2851_v23  ;;  %v456_v24 = vsel %vm187_vm5, %v2795_v20, -inf  ;;  %v406_v19 = vrot.slane %v405_v59, 1  ;;  %v422_v36 = vrot.slane %v421_v14, 2  ;;  %v437_v1 = vmax.f32 %v435_v22, %v436_v58 }
  0x6e   :  { %v430_v0 = vmax.f32 %v428_v62, %v429_v9  ;;  %v415_v3 = vrot.slane %v414_v38, 1  ;;  %v443_v6 = vrot.slane %v442_v12, 4  ;;  %v450_v55 = vrot.slane %v449_v45, 4 }
  0x6f   :  { %v457_v18 = vrot.slane %v456_v24, 4  ;;  %v2861_v8 = vmax.f32 %v405_v59, %v406_v19  ;;  %v423_v61 = vmax.f32 %v421_v14, %v422_v36  ;;  %v438_v39 = vrot.slane %v437_v1, 2 }
  0x70   :  { %v431_v7 = vrot.slane %v430_v0, 2  ;;  %v2863_v10 = vmax.f32 %v414_v38, %v415_v3  ;;  %v444_v53 = vmax.f32 %v442_v12, %v443_v6  ;;  %v451_v26 = vmax.f32 %v449_v45, %v450_v55 }
  0x71   :  { %4466 = vst [vmem:[#allocation31_spill] sm:$0xff] %v2861_v8  ;;  %v458_v23 = vmax.f32 %v456_v24, %v457_v18  ;;  %v424_v41 = vrot.slane %v423_v61, 1  ;;  %v439_v63 = vmax.f32 %v437_v1, %v438_v39  ;;  %v463_v62 = vsel %vm216_vm6, %v2757_v51, -inf }
  0x72   :  { %4467 = vst [vmem:[#allocation32_spill] sm:$0xff] %v2863_v10  ;;  %v432_v11 = vmax.f32 %v430_v0, %v431_v7  ;;  %v445_v22 = vrot.slane %v444_v53, 2  ;;  %v452_v9 = vrot.slane %v451_v26, 2  ;;  %v464_v13 = vrot.slane %v463_v62, 4 }
  0x73   :  { %v459_v58 = vrot.slane %v458_v23, 2  ;;  %v2867_v59 = vmax.f32 %v423_v61, %v424_v41  ;;  %v440_v19 = vrot.slane %v439_v63, 1  ;;  %v470_v38 = vsel %vm216_vm6, %v2760_v52, -inf }
  0x74   :  { %v433_v14 = vrot.slane %v432_v11, 1  ;;  %v446_v12 = vmax.f32 %v444_v53, %v445_v22  ;;  %v453_v45 = vmax.f32 %v451_v26, %v452_v9  ;;  %v465_v36 = vmax.f32 %v463_v62, %v464_v13 }
  0x75   :  { %4468 = vst [vmem:[#allocation33_spill] sm:$0xff] %v2867_v59  ;;  %v460_v24 = vmax.f32 %v458_v23, %v459_v58  ;;  %v2873_v1 = vmax.f32 %v439_v63, %v440_v19  ;;  %v471_v3 = vrot.slane %v470_v38, 4  ;;  %v477_v6 = vsel %vm216_vm6, %v2781_v33, -inf }
  0x76   :  { %v2871_v0 = vmax.f32 %v432_v11, %v433_v14  ;;  %v447_v55 = vrot.slane %v446_v12, 1  ;;  %v454_v41 = vrot.slane %v453_v45, 1  ;;  %v466_v61 = vrot.slane %v465_v36, 2 }
  0x77   :  { %4470 = vst [vmem:[#allocation35_spill] sm:$0xff] %v2873_v1  ;;  %v461_v18 = vrot.slane %v460_v24, 1  ;;  %v472_v7 = vmax.f32 %v470_v38, %v471_v3  ;;  %v478_v39 = vrot.slane %v477_v6, 4  ;;  %v484_v53 = vsel %vm216_vm6, %v2795_v20, -inf  ;;  %v525_v1 = vld [vmem:[#allocation2 + $0xa8] sm:$0xff] }
  0x78   :  { %4469 = vst [vmem:[#allocation34_spill] sm:$0xff] %v2871_v0  ;;  %v491_v13 = vsel %vm245_vm7, %v2757_v51, -inf  ;;  %v2881_v11 = vmax.f32 %v446_v12, %v447_v55  ;;  %v2883_v63 = vmax.f32 %v453_v45, %v454_v41  ;;  %v467_v26 = vmax.f32 %v465_v36, %v466_v61  ;;  %v524_v55 = vld [vmem:[#allocation2 + $0xa0] sm:$0xff] }
  0x79   :  { %v2885_v23 = vmax.f32 %v460_v24, %v461_v18  ;;  %v473_v62 = vrot.slane %v472_v7, 2  ;;  %v479_v22 = vmax.f32 %v477_v6, %v478_v39  ;;  %v485_v9 = vrot.slane %v484_v53, 4 }
  0x7a   :  { %4471 = vst [vmem:[#allocation36_spill] sm:$0xff] %v2881_v11  ;;  %4472 = vst [vmem:[#allocation37_spill] sm:$0xff] %v2883_v63  ;;  %v492_v58 = vrot.slane %v491_v13, 4  ;;  %v468_v14 = vrot.slane %v467_v26, 1  ;;  %v498_v19 = vsel %vm245_vm7, %v2760_v52, -inf  ;;  %v505_v38 = vsel %vm245_vm7, %v2781_v33, -inf }
  0x7b   :  { %4473 = vst [vmem:[#allocation38_spill] sm:$0xff] %v2885_v23  ;;  %v512_v51 = vsel %vm245_vm7, %v2795_v20, -inf  ;;  %v474_v12 = vmax.f32 %v472_v7, %v473_v62  ;;  %v480_v45 = vrot.slane %v479_v22, 2  ;;  %v486_v3 = vmax.f32 %v484_v53, %v485_v9  ;;  %v2898_v9 = vld [vmem:[#allocation2 + $0xc0] sm:$0xff] }
  0x7c   :  { %v493_v24 = vmax.f32 %v491_v13, %v492_v58  ;;  %v2893_v36 = vmax.f32 %v467_v26, %v468_v14  ;;  %v499_v6 = vrot.slane %v498_v19, 4  ;;  %v506_v41 = vrot.slane %v505_v38, 4  ;;  %v526_v26 = vld [vmem:[#allocation2 + $0xb0] sm:$0xff] }
  0x7d   :  { %v513_v18 = vrot.slane %v512_v51, 4  ;;  %v475_v61 = vrot.slane %v474_v12, 1  ;;  %v481_v39 = vmax.f32 %v479_v22, %v480_v45  ;;  %v487_v23 = vrot.slane %v486_v3, 2  ;;  %v527_v22 = vld [vmem:[#allocation2 + $0xb8] sm:$0xff] }
  0x7e   :  { %4474 = vst [vmem:[#allocation39_spill] sm:$0xff] %v2893_v36  ;;  %v494_v52 = vrot.slane %v493_v24, 2  ;;  %v500_v11 = vmax.f32 %v498_v19, %v499_v6  ;;  %v507_v63 = vmax.f32 %v505_v38, %v506_v41  ;;  %v544_v20 = vmax.f32 %v2730_v5, %v524_v55  ;;  %v2905_v5 = vld [vmem:[#allocation2 + $0xc8] sm:$0xff]  ;;  %v536_v55 = vld [vmem:[#allocation2 + $0x2a0] sm:$0xff]  ;;  %v538_v41 = vld [vmem:[#allocation2 + $0x2b0] sm:$0xff] }
  0x7f   :  { %v514_v33 = vmax.f32 %v512_v51, %v513_v18  ;;  %v2896_v7 = vmax.f32 %v474_v12, %v475_v61  ;;  %v482_v53 = vrot.slane %v481_v39, 1  ;;  %v488_v13 = vmax.f32 %v486_v3, %v487_v23  ;;  %v537_v6 = vld [vmem:[#allocation2 + $0x2a8] sm:$0xff] }
  0x80   :  { %v495_v62 = vmax.f32 %v493_v24, %v494_v52  ;;  %v501_v58 = vrot.slane %v500_v11, 2  ;;  %v508_v14 = vrot.slane %v507_v63, 2  ;;  %v2901_v45 = vmax.f32 %v544_v20, %v2898_v9  ;;  %v539_v20 = vld [vmem:[#allocation2 + $0x2b8] sm:$0xff] }
  0x81   :  { %4475 = vst [vmem:[#allocation40_spill] sm:$0xff] %v2896_v7  ;;  %v515_v36 = vrot.slane %v514_v33, 2  ;;  %v2903_v19 = vmax.f32 %v481_v39, %v482_v53  ;;  %v489_v38 = vrot.slane %v488_v13, 1  ;;  %v546_v12 = vmax.f32 %v2740_v21, %v525_v1  ;;  %v2913_v39 = vld [vmem:[#allocation2 + $0xd0] sm:$0xff] }
  0x82   :  { %v496_v51 = vrot.slane %v495_v62, 1  ;;  %v502_v23 = vmax.f32 %v500_v11, %v501_v58  ;;  %v509_v3 = vmax.f32 %v507_v63, %v508_v14  ;;  %v548_v18 = vmax.f32 %v2749_v37, %v526_v26 }
  0x83   :  { %4476 = vst [vmem:[#allocation41_spill] sm:$0xff] %v2903_v19  ;;  %v516_v24 = vmax.f32 %v514_v33, %v515_v36  ;;  %v2909_v61 = vmax.f32 %v488_v13, %v489_v38  ;;  %v2916_v53 = vmax.f32 %v546_v12, %v2905_v5  ;;  %v550_v21 = vmax.f32 %v2751_v25, %v527_v22  ;;  %v2919_v36 = vld [vmem:[#allocation2 + $0xd8] sm:$0xff]  ;;  %v2936_v22 = vld [vmem:[#allocation2 + $0x2c0] sm:$0xff]  ;;  %v2938_v38 = vld [vmem:[#allocation2 + $0x2c8] sm:$0xff] }
  0x84   :  { %v2911_v52 = vmax.f32 %v495_v62, %v496_v51  ;;  %v503_v1 = vrot.slane %v502_v23, 1  ;;  %v510_v11 = vrot.slane %v509_v3, 1  ;;  %v2922_v33 = vmax.f32 %v548_v18, %v2913_v39  ;;  %v2940_v51 = vld [vmem:[#allocation2 + $0x2d0] sm:$0xff]  ;;  %v2943_v18 = vld [vmem:[#allocation2 + $0x2d8] sm:$0xff] }
  0x85   :  { %4477 = vst [vmem:[#allocation42_spill] sm:$0xff] %v2909_v61  ;;  %v517_v63 = vrot.slane %v516_v24, 1  ;;  %v2925_v37 = vmax.f32 %v550_v21, %v2919_v36  ;;  %v552_v13 = vmax.f32 %v2754_v44, %v536_v55  ;;  %v554_v62 = vmax.f32 %v2770_v60, %v537_v6 }
  0x86   :  { %4478 = vst [vmem:[#allocation43_spill] sm:$0xff] %v2911_v52  ;;  %v556_v26 = vmax.f32 %v2772_v32, %v538_v41  ;;  %v2930_v58 = vmax.f32 %v502_v23, %v503_v1  ;;  %v2932_v25 = vmax.f32 %v509_v3, %v510_v11  ;;  %v558_v12 = vmax.f32 %v2786_v2, %v539_v20 }
  0x87   :  { %v2934_v14 = vmax.f32 %v516_v24, %v517_v63  ;;  %v2946_v44 = vmax.f32 %v552_v13, %v2936_v22  ;;  %v2949_v60 = vmax.f32 %v554_v62, %v2938_v38  ;;  %v560_v23 = vsel %vm62_vm0, %v2901_v45, -inf }
  0x88   :  { %4479 = vst [vmem:[#allocation44_spill] sm:$0xff] %v2930_v58  ;;  %4480 = vst [vmem:[#allocation45_spill] sm:$0xff] %v2932_v25  ;;  %v2952_v32 = vmax.f32 %v556_v26, %v2940_v51  ;;  %v2957_v3 = vmax.f32 %v558_v12, %v2943_v18  ;;  %v561_v24 = vrot.slane %v560_v23, 4  ;;  %v567_v2 = vsel %vm62_vm0, %v2916_v53, -inf }
  0x89   :  { %4481 = vst [vmem:[#allocation46_spill] sm:$0xff] %v2934_v14  ;;  %v588_v55 = vsel %vm91_vm1, %v2901_v45, -inf  ;;  %v568_v6 = vrot.slane %v567_v2, 4  ;;  %v574_v41 = vsel %vm62_vm0, %v2946_v44, -inf  ;;  %v581_v20 = vsel %vm62_vm0, %v2949_v60, -inf }
  0x8a   :  { %v589_v21 = vrot.slane %v588_v55, 4  ;;  %v562_v1 = vmax.f32 %v560_v23, %v561_v24  ;;  %v575_v11 = vrot.slane %v574_v41, 4  ;;  %v582_v63 = vrot.slane %v581_v20, 4 }
  0x8b   :  { %v595_v13 = vsel %vm91_vm1, %v2916_v53, -inf  ;;  %v569_v62 = vmax.f32 %v567_v2, %v568_v6  ;;  %v602_v14 = vsel %vm91_vm1, %v2946_v44, -inf  ;;  %v609_v23 = vsel %vm91_vm1, %v2949_v60, -inf }
  0x8c   :  { %v590_v26 = vmax.f32 %v588_v55, %v589_v21  ;;  %v596_v12 = vrot.slane %v595_v13, 4  ;;  %v563_v58 = vrot.slane %v562_v1, 2  ;;  %v576_v25 = vmax.f32 %v574_v41, %v575_v11 }
  0x8d   :  { %v583_v52 = vmax.f32 %v581_v20, %v582_v63  ;;  %v603_v61 = vrot.slane %v602_v14, 4  ;;  %v570_v7 = vrot.slane %v569_v62, 2  ;;  %v610_v21 = vrot.slane %v609_v23, 4 }
  0x8e   :  { %v591_v19 = vrot.slane %v590_v26, 2  ;;  %v597_v0 = vmax.f32 %v595_v13, %v596_v12  ;;  %v564_v24 = vmax.f32 %v562_v1, %v563_v58  ;;  %v577_v10 = vrot.slane %v576_v25, 2 }
  0x8f   :  { %v584_v59 = vrot.slane %v583_v52, 2  ;;  %v604_v8 = vmax.f32 %v602_v14, %v603_v61  ;;  %v571_v2 = vmax.f32 %v569_v62, %v570_v7  ;;  %v611_v48 = vmax.f32 %v609_v23, %v610_v21 }
  0x90   :  { %v592_v55 = vmax.f32 %v590_v26, %v591_v19  ;;  %v598_v6 = vrot.slane %v597_v0, 2  ;;  %v565_v40 = vrot.slane %v564_v24, 1  ;;  %v578_v31 = vmax.f32 %v576_v25, %v577_v10 }
  0x91   :  { %v585_v49 = vmax.f32 %v583_v52, %v584_v59  ;;  %v605_v41 = vrot.slane %v604_v8, 2  ;;  %v572_v20 = vrot.slane %v571_v2, 1  ;;  %v612_v19 = vrot.slane %v611_v48, 2 }
  0x92   :  { %v593_v11 = vrot.slane %v592_v55, 1  ;;  %v599_v63 = vmax.f32 %v597_v0, %v598_v6  ;;  %v2973_v13 = vmax.f32 %v564_v24, %v565_v40  ;;  %v579_v12 = vrot.slane %v578_v31, 1 }
  0x93   :  { %v586_v30 = vrot.slane %v585_v49, 1  ;;  %v606_v58 = vmax.f32 %v604_v8, %v605_v41  ;;  %v2975_v1 = vmax.f32 %v571_v2, %v572_v20  ;;  %v616_v0 = vsel %vm120_vm2, %v2901_v45, -inf }
  0x94   :  { %4482 = vst [vmem:[#allocation47_spill] sm:$0xff] %v2973_v13  ;;  %v2977_v61 = vmax.f32 %v592_v55, %v593_v11  ;;  %v600_v7 = vrot.slane %v599_v63, 1  ;;  %v2979_v14 = vmax.f32 %v578_v31, %v579_v12  ;;  %v613_v40 = vmax.f32 %v611_v48, %v612_v19 }
  0x95   :  { %4483 = vst [vmem:[#allocation48_spill] sm:$0xff] %v2975_v1  ;;  %v2981_v10 = vmax.f32 %v585_v49, %v586_v30  ;;  %v607_v59 = vrot.slane %v606_v58, 1  ;;  %v617_v25 = vrot.slane %v616_v0, 4  ;;  %v623_v8 = vsel %vm120_vm2, %v2916_v53, -inf }
  0x96   :  { %4484 = vst [vmem:[#allocation49_spill] sm:$0xff] %v2977_v61  ;;  %4485 = vst [vmem:[#allocation50_spill] sm:$0xff] %v2979_v14  ;;  %v2985_v52 = vmax.f32 %v599_v63, %v600_v7  ;;  %v624_v26 = vrot.slane %v623_v8, 4  ;;  %v630_v31 = vsel %vm120_vm2, %v2946_v44, -inf  ;;  %v637_v30 = vsel %vm120_vm2, %v2949_v60, -inf }
  0x97   :  { %4486 = vst [vmem:[#allocation51_spill] sm:$0xff] %v2981_v10  ;;  %v2989_v62 = vmax.f32 %v606_v58, %v607_v59  ;;  %v614_v49 = vrot.slane %v613_v40, 1  ;;  %v618_v23 = vmax.f32 %v616_v0, %v617_v25  ;;  %v631_v24 = vrot.slane %v630_v31, 4 }
  0x98   :  { %4487 = vst [vmem:[#allocation52_spill] sm:$0xff] %v2985_v52  ;;  %v638_v2 = vrot.slane %v637_v30, 4  ;;  %v625_v55 = vmax.f32 %v623_v8, %v624_v26  ;;  %v644_v48 = vsel %vm149_vm3, %v2901_v45, -inf  ;;  %v645_v6 = vsel %vm151_vm4, %v2922_v33, -inf }
  0x99   :  { %4488 = vst [vmem:[#allocation53_spill] sm:$0xff] %v2989_v62  ;;  %v653_v21 = vsel %vm149_vm3, %v2916_v53, -inf  ;;  %v3001_v41 = vmax.f32 %v613_v40, %v614_v49  ;;  %v619_v20 = vrot.slane %v618_v23, 2  ;;  %v632_v11 = vmax.f32 %v630_v31, %v631_v24 }
  0x9a   :  { %v639_v63 = vmax.f32 %v637_v30, %v638_v2  ;;  %v626_v12 = vrot.slane %v625_v55, 2  ;;  %v646_v58 = vmax.f32 %v644_v48, %v645_v6  ;;  %v654_v7 = vsel %vm151_vm4, %v2925_v37, -inf }
  0x9b   :  { %4489 = vst [vmem:[#allocation54_spill] sm:$0xff] %v3001_v41  ;;  %v662_v19 = vsel %vm149_vm3, %v2946_v44, -inf  ;;  %v620_v45 = vmax.f32 %v618_v23, %v619_v20  ;;  %v633_v59 = vrot.slane %v632_v11, 2  ;;  %v655_v25 = vmax.f32 %v653_v21, %v654_v7 }
  0x9c   :  { %v640_v0 = vrot.slane %v639_v63, 2  ;;  %v627_v8 = vmax.f32 %v625_v55, %v626_v12  ;;  %v647_v26 = vrot.slane %v646_v58, 4  ;;  %v663_v53 = vsel %vm151_vm4, %v2952_v32, -inf }
  0x9d   :  { %v671_v40 = vsel %vm149_vm3, %v2949_v60, -inf  ;;  %v621_v31 = vrot.slane %v620_v45, 1  ;;  %v634_v30 = vmax.f32 %v632_v11, %v633_v59  ;;  %v656_v24 = vrot.slane %v655_v25, 4 }
  0x9e   :  { %v641_v49 = vmax.f32 %v639_v63, %v640_v0  ;;  %v628_v2 = vrot.slane %v627_v8, 1  ;;  %v648_v48 = vmax.f32 %v646_v58, %v647_v26  ;;  %v664_v6 = vmax.f32 %v662_v19, %v663_v53 }
  0x9f   :  { %v672_v44 = vsel %vm151_vm4, %v2957_v3, -inf  ;;  %v3013_v23 = vmax.f32 %v620_v45, %v621_v31  ;;  %v635_v55 = vrot.slane %v634_v30, 1  ;;  %v657_v20 = vmax.f32 %v655_v25, %v656_v24 }
  0xa0   :  { %v642_v21 = vrot.slane %v641_v49, 1  ;;  %v3015_v12 = vmax.f32 %v627_v8, %v628_v2  ;;  %v649_v7 = vrot.slane %v648_v48, 2  ;;  %v665_v41 = vrot.slane %v664_v6, 4 }
  0xa1   :  { %4490 = vst [vmem:[#allocation55_spill] sm:$0xff] %v3013_v23  ;;  %v673_v60 = vmax.f32 %v671_v40, %v672_v44  ;;  %v3017_v52 = vmax.f32 %v634_v30, %v635_v55  ;;  %v658_v63 = vrot.slane %v657_v20, 2  ;;  %v680_v58 = vsel %vm187_vm5, %v2922_v33, -inf }
  0xa2   :  { %4491 = vst [vmem:[#allocation56_spill] sm:$0xff] %v3015_v12  ;;  %v3019_v11 = vmax.f32 %v641_v49, %v642_v21  ;;  %v650_v19 = vmax.f32 %v648_v48, %v649_v7  ;;  %v666_v59 = vmax.f32 %v664_v6, %v665_v41  ;;  %v681_v0 = vrot.slane %v680_v58, 4 }
  0xa3   :  { %4492 = vst [vmem:[#allocation57_spill] sm:$0xff] %v3017_v52  ;;  %v674_v45 = vrot.slane %v673_v60, 4  ;;  %v659_v26 = vmax.f32 %v657_v20, %v658_v63  ;;  %v687_v25 = vsel %vm187_vm5, %v2925_v37, -inf  ;;  %v694_v8 = vsel %vm187_vm5, %v2952_v32, -inf }
  0xa4   :  { %4493 = vst [vmem:[#allocation58_spill] sm:$0xff] %v3019_v11  ;;  %v701_v53 = vsel %vm187_vm5, %v2957_v3, -inf  ;;  %v651_v40 = vrot.slane %v650_v19, 1  ;;  %v667_v31 = vrot.slane %v666_v59, 2  ;;  %v682_v49 = vmax.f32 %v680_v58, %v681_v0 }
  0xa5   :  { %v675_v30 = vmax.f32 %v673_v60, %v674_v45  ;;  %v660_v24 = vrot.slane %v659_v26, 1  ;;  %v688_v2 = vrot.slane %v687_v25, 4  ;;  %v695_v48 = vrot.slane %v694_v8, 4 }
  0xa6   :  { %v702_v41 = vrot.slane %v701_v53, 4  ;;  %v3029_v6 = vmax.f32 %v650_v19, %v651_v40  ;;  %v668_v44 = vmax.f32 %v666_v59, %v667_v31  ;;  %v683_v21 = vrot.slane %v682_v49, 2 }
  0xa7   :  { %v676_v55 = vrot.slane %v675_v30, 2  ;;  %v3031_v20 = vmax.f32 %v659_v26, %v660_v24  ;;  %v689_v7 = vmax.f32 %v687_v25, %v688_v2  ;;  %v696_v63 = vmax.f32 %v694_v8, %v695_v48 }
  0xa8   :  { %4494 = vst [vmem:[#allocation59_spill] sm:$0xff] %v3029_v6  ;;  %v703_v11 = vmax.f32 %v701_v53, %v702_v41  ;;  %v669_v12 = vrot.slane %v668_v44, 1  ;;  %v684_v23 = vmax.f32 %v682_v49, %v683_v21  ;;  %v708_v60 = vsel %vm216_vm6, %v2922_v33, -inf }
  0xa9   :  { %4495 = vst [vmem:[#allocation60_spill] sm:$0xff] %v3031_v20  ;;  %v677_v52 = vmax.f32 %v675_v30, %v676_v55  ;;  %v690_v58 = vrot.slane %v689_v7, 2  ;;  %v697_v45 = vrot.slane %v696_v63, 2  ;;  %v709_v62 = vrot.slane %v708_v60, 4 }
  0xaa   :  { %v704_v0 = vrot.slane %v703_v11, 2  ;;  %v3035_v19 = vmax.f32 %v668_v44, %v669_v12  ;;  %v685_v40 = vrot.slane %v684_v23, 1  ;;  %v715_v26 = vsel %vm216_vm6, %v2925_v37, -inf }
  0xab   :  { %v678_v59 = vrot.slane %v677_v52, 1  ;;  %v691_v25 = vmax.f32 %v689_v7, %v690_v58  ;;  %v698_v8 = vmax.f32 %v696_v63, %v697_v45  ;;  %v710_v31 = vmax.f32 %v708_v60, %v709_v62 }
  0xac   :  { %4496 = vst [vmem:[#allocation61_spill] sm:$0xff] %v3035_v19  ;;  %v705_v53 = vmax.f32 %v703_v11, %v704_v0  ;;  %v3041_v49 = vmax.f32 %v684_v23, %v685_v40  ;;  %v716_v24 = vrot.slane %v715_v26, 4  ;;  %v722_v2 = vsel %vm216_vm6, %v2952_v32, -inf }
  0xad   :  { %v3039_v30 = vmax.f32 %v677_v52, %v678_v59  ;;  %v692_v48 = vrot.slane %v691_v25, 1  ;;  %v699_v12 = vrot.slane %v698_v8, 1  ;;  %v711_v44 = vrot.slane %v710_v31, 2 }
  0xae   :  { %4498 = vst [vmem:[#allocation63_spill] sm:$0xff] %v3041_v49  ;;  %v706_v41 = vrot.slane %v705_v53, 1  ;;  %v717_v55 = vmax.f32 %v715_v26, %v716_v24  ;;  %v723_v21 = vrot.slane %v722_v2, 4  ;;  %v729_v7 = vsel %vm216_vm6, %v2957_v3, -inf }
  0xaf   :  { %4497 = vst [vmem:[#allocation62_spill] sm:$0xff] %v3039_v30  ;;  %v736_v62 = vsel %vm245_vm7, %v2922_v33, -inf  ;;  %v3049_v52 = vmax.f32 %v691_v25, %v692_v48  ;;  %v3051_v23 = vmax.f32 %v698_v8, %v699_v12  ;;  %v712_v63 = vmax.f32 %v710_v31, %v711_v44  ;;  %v769_v48 = vld [vmem:[#allocation2 + $0xe0] sm:$0xff]  ;;  %v770_v30 = vld [vmem:[#allocation2 + $0xe8] sm:$0xff] }
  0xb0   :  { %v3053_v11 = vmax.f32 %v705_v53, %v706_v41  ;;  %v718_v60 = vrot.slane %v717_v55, 2  ;;  %v724_v58 = vmax.f32 %v722_v2, %v723_v21  ;;  %v730_v45 = vrot.slane %v729_v7, 4 }
  0xb1   :  { %4499 = vst [vmem:[#allocation64_spill] sm:$0xff] %v3049_v52  ;;  %4500 = vst [vmem:[#allocation65_spill] sm:$0xff] %v3051_v23  ;;  %v737_v0 = vrot.slane %v736_v62, 4  ;;  %v713_v59 = vrot.slane %v712_v63, 1  ;;  %v743_v40 = vsel %vm245_vm7, %v2925_v37, -inf  ;;  %v750_v26 = vsel %vm245_vm7, %v2952_v32, -inf }
  0xb2   :  { %4501 = vst [vmem:[#allocation66_spill] sm:$0xff] %v3053_v11  ;;  %v757_v33 = vsel %vm245_vm7, %v2957_v3, -inf  ;;  %v719_v25 = vmax.f32 %v717_v55, %v718_v60  ;;  %v725_v8 = vrot.slane %v724_v58, 2  ;;  %v731_v24 = vmax.f32 %v729_v7, %v730_v45  ;;  %v773_v52 = vld [vmem:[#allocation2 + $0x100] sm:$0xff] }
  0xb3   :  { %v738_v53 = vmax.f32 %v736_v62, %v737_v0  ;;  %v3061_v31 = vmax.f32 %v712_v63, %v713_v59  ;;  %v744_v2 = vrot.slane %v743_v40, 4  ;;  %v751_v12 = vrot.slane %v750_v26, 4  ;;  %v771_v59 = vld [vmem:[#allocation2 + $0xf0] sm:$0xff] }
  0xb4   :  { %v758_v41 = vrot.slane %v757_v33, 4  ;;  %v720_v44 = vrot.slane %v719_v25, 1  ;;  %v726_v21 = vmax.f32 %v724_v58, %v725_v8  ;;  %v732_v11 = vrot.slane %v731_v24, 2 }
  0xb5   :  { %4502 = vst [vmem:[#allocation67_spill] sm:$0xff] %v3061_v31  ;;  %v739_v37 = vrot.slane %v738_v53, 2  ;;  %v745_v23 = vmax.f32 %v743_v40, %v744_v2  ;;  %v752_v32 = vmax.f32 %v750_v26, %v751_v12  ;;  %v797_v3 = vmax.f32 %v2898_v9, %v769_v48  ;;  %v774_v31 = vld [vmem:[#allocation2 + $0x108] sm:$0xff]  ;;  %v772_v26 = vld [vmem:[#allocation2 + $0xf8] sm:$0xff] }
  0xb6   :  { %v759_v49 = vmax.f32 %v757_v33, %v758_v41  ;;  %v3064_v55 = vmax.f32 %v719_v25, %v720_v44  ;;  %v727_v7 = vrot.slane %v726_v21, 1  ;;  %v733_v62 = vmax.f32 %v731_v24, %v732_v11  ;;  %v3068_v33 = vld [vmem:[#allocation2 + $0x120] sm:$0xff]  ;;  %v775_v11 = vld [vmem:[#allocation2 + $0x110] sm:$0xff]  ;;  %v776_v44 = vld [vmem:[#allocation2 + $0x118] sm:$0xff] }
  0xb7   :  { %v740_v63 = vmax.f32 %v738_v53, %v739_v37  ;;  %v746_v60 = vrot.slane %v745_v23, 2  ;;  %v753_v45 = vrot.slane %v752_v32, 2  ;;  %v798_v58 = vmax.f32 %v797_v3, %v773_v52  ;;  %v785_v24 = vld [vmem:[#allocation2 + $0x2e0] sm:$0xff]  ;;  %v786_v53 = vld [vmem:[#allocation2 + $0x2e8] sm:$0xff] }
  0xb8   :  { %4503 = vst [vmem:[#allocation68_spill] sm:$0xff] %v3064_v55  ;;  %v760_v0 = vrot.slane %v759_v49, 2  ;;  %v3066_v8 = vmax.f32 %v726_v21, %v727_v7  ;;  %v734_v20 = vrot.slane %v733_v62, 1  ;;  %v800_v9 = vmax.f32 %v2905_v5, %v770_v30  ;;  %v3078_v21 = vld [vmem:[#allocation2 + $0x128] sm:$0xff] }
  0xb9   :  { %v741_v40 = vrot.slane %v740_v63, 1  ;;  %v747_v25 = vmax.f32 %v745_v23, %v746_v60  ;;  %v754_v48 = vmax.f32 %v752_v32, %v753_v45  ;;  %v3072_v12 = vmax.f32 %v798_v58, %v3068_v33  ;;  %v789_v32 = vld [vmem:[#allocation2 + $0x300] sm:$0xff]  ;;  %v790_v7 = vld [vmem:[#allocation2 + $0x308] sm:$0xff]  ;;  %v788_v45 = vld [vmem:[#allocation2 + $0x2f8] sm:$0xff] }
  0xba   :  { %4504 = vst [vmem:[#allocation69_spill] sm:$0xff] %v3066_v8  ;;  %v761_v2 = vmax.f32 %v759_v49, %v760_v0  ;;  %v3074_v41 = vmax.f32 %v733_v62, %v734_v20  ;;  %v801_v37 = vmax.f32 %v800_v9, %v774_v31  ;;  %v803_v3 = vmax.f32 %v2913_v39, %v771_v59  ;;  %v787_v49 = vld [vmem:[#allocation2 + $0x2f0] sm:$0xff] }
  0xbb   :  { %v3076_v52 = vmax.f32 %v740_v63, %v741_v40  ;;  %v748_v5 = vrot.slane %v747_v25, 1  ;;  %v755_v30 = vrot.slane %v754_v48, 1  ;;  %v806_v60 = vmax.f32 %v2919_v36, %v772_v26  ;;  %v3093_v58 = vld [vmem:[#allocation2 + $0x130] sm:$0xff]  ;;  %v3095_v36 = vld [vmem:[#allocation2 + $0x138] sm:$0xff] }
  0xbc   :  { %4505 = vst [vmem:[#allocation70_spill] sm:$0xff] %v3074_v41  ;;  %v762_v23 = vrot.slane %v761_v2, 1  ;;  %v3083_v20 = vmax.f32 %v801_v37, %v3078_v21  ;;  %v804_v62 = vmax.f32 %v803_v3, %v775_v11  ;;  %v809_v63 = vmax.f32 %v2936_v22, %v785_v24  ;;  %v791_v40 = vld [vmem:[#allocation2 + $0x310] sm:$0xff]  ;;  %v792_v26 = vld [vmem:[#allocation2 + $0x318] sm:$0xff] }
  0xbd   :  { %4506 = vst [vmem:[#allocation71_spill] sm:$0xff] %v3076_v52  ;;  %v812_v0 = vmax.f32 %v2938_v38, %v786_v53  ;;  %v3087_v31 = vmax.f32 %v747_v25, %v748_v5  ;;  %v3089_v39 = vmax.f32 %v754_v48, %v755_v30  ;;  %v807_v9 = vmax.f32 %v806_v60, %v776_v44  ;;  %v3101_v25 = vld [vmem:[#allocation2 + $0x320] sm:$0xff]  ;;  %v3103_v48 = vld [vmem:[#allocation2 + $0x328] sm:$0xff]  ;;  %v3125_v60 = vld [vmem:[#allocation2 + $0x338] sm:$0xff] }
  0xbe   :  { %v3091_v59 = vmax.f32 %v761_v2, %v762_v23  ;;  %v3098_v37 = vmax.f32 %v804_v62, %v3093_v58  ;;  %v810_v11 = vmax.f32 %v809_v63, %v789_v32  ;;  %v815_v38 = vmax.f32 %v2940_v51, %v787_v49  ;;  %v3119_v23 = vld [vmem:[#allocation2 + $0x330] sm:$0xff] }
  0xbf   :  { %4507 = vst [vmem:[#allocation72_spill] sm:$0xff] %v3087_v31  ;;  %4508 = vst [vmem:[#allocation73_spill] sm:$0xff] %v3089_v39  ;;  %v813_v22 = vmax.f32 %v812_v0, %v790_v7  ;;  %v3106_v2 = vmax.f32 %v807_v9, %v3095_v36  ;;  %v818_v24 = vmax.f32 %v2943_v18, %v788_v45  ;;  %v821_v53 = vsel %vm62_vm0, %v3072_v12, -inf }
  0xc0   :  { %4509 = vst [vmem:[#allocation74_spill] sm:$0xff] %v3091_v59  ;;  %v828_v44 = vsel %vm62_vm0, %v3083_v20, -inf  ;;  %v3114_v3 = vmax.f32 %v810_v11, %v3101_v25  ;;  %v816_v5 = vmax.f32 %v815_v38, %v791_v40  ;;  %v822_v30 = vrot.slane %v821_v53, 4 }
  0xc1   :  { %v3117_v51 = vmax.f32 %v813_v22, %v3103_v48  ;;  %v819_v49 = vmax.f32 %v818_v24, %v792_v26  ;;  %v829_v32 = vrot.slane %v828_v44, 4  ;;  %v849_v18 = vsel %vm91_vm1, %v3072_v12, -inf }
  0xc2   :  { %v856_v7 = vsel %vm91_vm1, %v3083_v20, -inf  ;;  %v3128_v45 = vmax.f32 %v816_v5, %v3119_v23  ;;  %v823_v62 = vmax.f32 %v821_v53, %v822_v30  ;;  %v835_v63 = vsel %vm62_vm0, %v3114_v3, -inf }
  0xc3   :  { %v842_v0 = vsel %vm62_vm0, %v3117_v51, -inf  ;;  %v3135_v40 = vmax.f32 %v819_v49, %v3125_v60  ;;  %v830_v9 = vmax.f32 %v828_v44, %v829_v32  ;;  %v836_v26 = vrot.slane %v835_v63, 4 }
  0xc4   :  { %v843_v11 = vrot.slane %v842_v0, 4  ;;  %v824_v22 = vrot.slane %v823_v62, 2  ;;  %v850_v38 = vrot.slane %v849_v18, 4  ;;  %v857_v24 = vrot.slane %v856_v7, 4 }
  0xc5   :  { %v863_v5 = vsel %vm91_vm1, %v3114_v3, -inf  ;;  %v831_v59 = vrot.slane %v830_v9, 2  ;;  %v837_v53 = vmax.f32 %v835_v63, %v836_v26  ;;  %v870_v49 = vsel %vm91_vm1, %v3117_v51, -inf }
  0xc6   :  { %v844_v30 = vmax.f32 %v842_v0, %v843_v11  ;;  %v864_v31 = vrot.slane %v863_v5, 4  ;;  %v825_v39 = vmax.f32 %v823_v62, %v824_v22  ;;  %v851_v52 = vmax.f32 %v849_v18, %v850_v38 }
  0xc7   :  { %v858_v41 = vmax.f32 %v856_v7, %v857_v24  ;;  %v832_v55 = vmax.f32 %v830_v9, %v831_v59  ;;  %v838_v44 = vrot.slane %v837_v53, 2  ;;  %v871_v10 = vrot.slane %v870_v49, 4 }
  0xc8   :  { %v845_v32 = vrot.slane %v844_v30, 2  ;;  %v865_v8 = vmax.f32 %v863_v5, %v864_v31  ;;  %v826_v19 = vrot.slane %v825_v39, 1  ;;  %v852_v6 = vrot.slane %v851_v52, 2 }
  0xc9   :  { %v859_v61 = vrot.slane %v858_v41, 2  ;;  %v833_v1 = vrot.slane %v832_v55, 1  ;;  %v839_v14 = vmax.f32 %v837_v53, %v838_v44  ;;  %v872_v7 = vmax.f32 %v870_v49, %v871_v10 }
  0xca   :  { %v846_v13 = vmax.f32 %v844_v30, %v845_v32  ;;  %v866_v63 = vrot.slane %v865_v8, 2  ;;  %v3141_v0 = vmax.f32 %v825_v39, %v826_v19  ;;  %v853_v62 = vmax.f32 %v851_v52, %v852_v6 }
  0xcb   :  { %v860_v18 = vmax.f32 %v858_v41, %v859_v61  ;;  %v3143_v26 = vmax.f32 %v832_v55, %v833_v1  ;;  %v840_v11 = vrot.slane %v839_v14, 1  ;;  %v873_v38 = vrot.slane %v872_v7, 2 }
  0xcc   :  { %4510 = vst [vmem:[#allocation75_spill] sm:$0xff] %v3141_v0  ;;  %v847_v59 = vrot.slane %v846_v13, 1  ;;  %v867_v9 = vmax.f32 %v865_v8, %v866_v63  ;;  %v854_v22 = vrot.slane %v853_v62, 1  ;;  %v877_v24 = vsel %vm120_vm2, %v3072_v12, -inf }
  0xcd   :  { %4511 = vst [vmem:[#allocation76_spill] sm:$0xff] %v3143_v26  ;;  %v861_v31 = vrot.slane %v860_v18, 1  ;;  %v3147_v5 = vmax.f32 %v839_v14, %v840_v11  ;;  %v878_v39 = vrot.slane %v877_v24, 4  ;;  %v874_v1 = vmax.f32 %v872_v7, %v873_v38 }
  0xce   :  { %v3149_v53 = vmax.f32 %v846_v13, %v847_v59  ;;  %v868_v19 = vrot.slane %v867_v9, 1  ;;  %v3151_v6 = vmax.f32 %v853_v62, %v854_v22  ;;  %v884_v10 = vsel %vm120_vm2, %v3083_v20, -inf }
  0xcf   :  { %4512 = vst [vmem:[#allocation77_spill] sm:$0xff] %v3147_v5  ;;  %v3153_v61 = vmax.f32 %v860_v18, %v861_v31  ;;  %v879_v8 = vmax.f32 %v877_v24, %v878_v39  ;;  %v885_v41 = vrot.slane %v884_v10, 4  ;;  %v891_v14 = vsel %vm120_vm2, %v3114_v3, -inf }
  0xd0   :  { %4513 = vst [vmem:[#allocation78_spill] sm:$0xff] %v3149_v53  ;;  %4514 = vst [vmem:[#allocation79_spill] sm:$0xff] %v3151_v6  ;;  %v3157_v55 = vmax.f32 %v867_v9, %v868_v19  ;;  %v875_v52 = vrot.slane %v874_v1, 1  ;;  %v892_v13 = vrot.slane %v891_v14, 4  ;;  %v898_v30 = vsel %vm120_vm2, %v3117_v51, -inf }
  0xd1   :  { %4515 = vst [vmem:[#allocation80_spill] sm:$0xff] %v3153_v61  ;;  %v905_v49 = vsel %vm149_vm3, %v3072_v12, -inf  ;;  %v880_v44 = vrot.slane %v879_v8, 2  ;;  %v886_v32 = vmax.f32 %v884_v10, %v885_v41  ;;  %v899_v63 = vrot.slane %v898_v30, 4 }
  0xd2   :  { %4516 = vst [vmem:[#allocation81_spill] sm:$0xff] %v3157_v55  ;;  %v906_v62 = vsel %vm151_vm4, %v3098_v37, -inf  ;;  %v3167_v18 = vmax.f32 %v874_v1, %v875_v52  ;;  %v893_v7 = vmax.f32 %v891_v14, %v892_v13  ;;  %v914_v59 = vsel %vm149_vm3, %v3083_v20, -inf }
  0xd3   :  { %v907_v11 = vmax.f32 %v905_v49, %v906_v62  ;;  %v881_v9 = vmax.f32 %v879_v8, %v880_v44  ;;  %v887_v22 = vrot.slane %v886_v32, 2  ;;  %v900_v31 = vmax.f32 %v898_v30, %v899_v63 }
  0xd4   :  { %4517 = vst [vmem:[#allocation82_spill] sm:$0xff] %v3167_v18  ;;  %v915_v38 = vsel %vm151_vm4, %v3106_v2, -inf  ;;  %v894_v12 = vrot.slane %v893_v7, 2  ;;  %v923_v39 = vsel %vm149_vm3, %v3114_v3, -inf  ;;  %v924_v14 = vsel %vm151_vm4, %v3128_v45, -inf }
  0xd5   :  { %v908_v24 = vrot.slane %v907_v11, 4  ;;  %v916_v19 = vmax.f32 %v914_v59, %v915_v38  ;;  %v882_v10 = vrot.slane %v881_v9, 1  ;;  %v888_v1 = vmax.f32 %v886_v32, %v887_v22 }
  0xd6   :  { %v901_v41 = vrot.slane %v900_v31, 2  ;;  %v895_v52 = vmax.f32 %v893_v7, %v894_v12  ;;  %v925_v13 = vmax.f32 %v923_v39, %v924_v14  ;;  %v932_v63 = vsel %vm149_vm3, %v3117_v51, -inf }
  0xd7   :  { %v909_v20 = vmax.f32 %v907_v11, %v908_v24  ;;  %v917_v8 = vrot.slane %v916_v19, 4  ;;  %v3177_v30 = vmax.f32 %v881_v9, %v882_v10  ;;  %v889_v49 = vrot.slane %v888_v1, 1 }
  0xd8   :  { %v902_v44 = vmax.f32 %v900_v31, %v901_v41  ;;  %v896_v62 = vrot.slane %v895_v52, 1  ;;  %v926_v38 = vrot.slane %v925_v13, 4  ;;  %v933_v7 = vsel %vm151_vm4, %v3135_v40, -inf }
  0xd9   :  { %4518 = vst [vmem:[#allocation83_spill] sm:$0xff] %v3177_v30  ;;  %v910_v59 = vrot.slane %v909_v20, 2  ;;  %v918_v3 = vmax.f32 %v916_v19, %v917_v8  ;;  %v3181_v32 = vmax.f32 %v888_v1, %v889_v49  ;;  %v941_v11 = vsel %vm187_vm5, %v3098_v37, -inf }
  0xda   :  { %v903_v22 = vrot.slane %v902_v44, 1  ;;  %v3187_v9 = vmax.f32 %v895_v52, %v896_v62  ;;  %v927_v24 = vmax.f32 %v925_v13, %v926_v38  ;;  %v934_v51 = vmax.f32 %v932_v63, %v933_v7 }
  0xdb   :  { %4519 = vst [vmem:[#allocation84_spill] sm:$0xff] %v3181_v32  ;;  %v911_v12 = vmax.f32 %v909_v20, %v910_v59  ;;  %v919_v31 = vrot.slane %v918_v3, 2  ;;  %v942_v10 = vrot.slane %v941_v11, 4  ;;  %v948_v19 = vsel %vm187_vm5, %v3106_v2, -inf }
  0xdc   :  { %4520 = vst [vmem:[#allocation85_spill] sm:$0xff] %v3187_v9  ;;  %v3189_v39 = vmax.f32 %v902_v44, %v903_v22  ;;  %v928_v14 = vrot.slane %v927_v24, 2  ;;  %v949_v8 = vrot.slane %v948_v19, 4  ;;  %v935_v49 = vrot.slane %v934_v51, 4 }
  0xdd   :  { %v912_v1 = vrot.slane %v911_v12, 1  ;;  %v920_v41 = vmax.f32 %v918_v3, %v919_v31  ;;  %v943_v32 = vmax.f32 %v941_v11, %v942_v10  ;;  %v955_v52 = vsel %vm187_vm5, %v3128_v45, -inf }
  0xde   :  { %4521 = vst [vmem:[#allocation86_spill] sm:$0xff] %v3189_v39  ;;  %v962_v20 = vsel %vm187_vm5, %v3135_v40, -inf  ;;  %v929_v63 = vmax.f32 %v927_v24, %v928_v14  ;;  %v950_v62 = vmax.f32 %v948_v19, %v949_v8  ;;  %v936_v59 = vmax.f32 %v934_v51, %v935_v49 }
  0xdf   :  { %v3197_v13 = vmax.f32 %v911_v12, %v912_v1  ;;  %v921_v44 = vrot.slane %v920_v41, 1  ;;  %v944_v38 = vrot.slane %v943_v32, 2  ;;  %v956_v22 = vrot.slane %v955_v52, 4 }
  0xe0   :  { %v963_v7 = vrot.slane %v962_v20, 4  ;;  %v930_v31 = vrot.slane %v929_v63, 1  ;;  %v951_v39 = vrot.slane %v950_v62, 2  ;;  %v969_v11 = vsel %vm216_vm6, %v3098_v37, -inf }
  0xe1   :  { %4522 = vst [vmem:[#allocation87_spill] sm:$0xff] %v3197_v13  ;;  %v3199_v3 = vmax.f32 %v920_v41, %v921_v44  ;;  %v937_v10 = vrot.slane %v936_v59, 2  ;;  %v945_v9 = vmax.f32 %v943_v32, %v944_v38  ;;  %v957_v30 = vmax.f32 %v955_v52, %v956_v22 }
  0xe2   :  { %v964_v18 = vmax.f32 %v962_v20, %v963_v7  ;;  %v3203_v12 = vmax.f32 %v929_v63, %v930_v31  ;;  %v952_v1 = vmax.f32 %v950_v62, %v951_v39  ;;  %v970_v24 = vrot.slane %v969_v11, 4 }
  0xe3   :  { %4523 = vst [vmem:[#allocation88_spill] sm:$0xff] %v3199_v3  ;;  %v976_v51 = vsel %vm216_vm6, %v3106_v2, -inf  ;;  %v938_v19 = vmax.f32 %v936_v59, %v937_v10  ;;  %v946_v14 = vrot.slane %v945_v9, 1  ;;  %v958_v41 = vrot.slane %v957_v30, 2 }
  0xe4   :  { %4524 = vst [vmem:[#allocation89_spill] sm:$0xff] %v3203_v12  ;;  %v965_v8 = vrot.slane %v964_v18, 2  ;;  %v953_v49 = vrot.slane %v952_v1, 1  ;;  %v971_v44 = vmax.f32 %v969_v11, %v970_v24  ;;  %v977_v3 = vrot.slane %v976_v51, 4 }
  0xe5   :  { %v983_v13 = vsel %vm216_vm6, %v3128_v45, -inf  ;;  %v939_v32 = vrot.slane %v938_v19, 1  ;;  %v3209_v52 = vmax.f32 %v945_v9, %v946_v14  ;;  %v959_v20 = vmax.f32 %v957_v30, %v958_v41 }
  0xe6   :  { %v966_v63 = vmax.f32 %v964_v18, %v965_v8  ;;  %v3211_v39 = vmax.f32 %v952_v1, %v953_v49  ;;  %v972_v62 = vrot.slane %v971_v44, 2  ;;  %v978_v38 = vmax.f32 %v976_v51, %v977_v3 }
  0xe7   :  { %4525 = vst [vmem:[#allocation90_spill] sm:$0xff] %v3209_v52  ;;  %v984_v22 = vrot.slane %v983_v13, 4  ;;  %v3213_v59 = vmax.f32 %v938_v19, %v939_v32  ;;  %v960_v7 = vrot.slane %v959_v20, 1  ;;  %v990_v11 = vsel %vm216_vm6, %v3135_v40, -inf }
  0xe8   :  { %4526 = vst [vmem:[#allocation91_spill] sm:$0xff] %v3211_v39  ;;  %v967_v31 = vrot.slane %v966_v63, 1  ;;  %v973_v10 = vmax.f32 %v971_v44, %v972_v62  ;;  %v979_v24 = vrot.slane %v978_v38, 2  ;;  %v991_v61 = vrot.slane %v990_v11, 4  ;;  %v1030_v44 = vld [vmem:[#allocation2 + $0x140] sm:$0xff] }
  0xe9   :  { %4527 = vst [vmem:[#allocation92_spill] sm:$0xff] %v3213_v59  ;;  %v985_v12 = vmax.f32 %v983_v13, %v984_v22  ;;  %v3217_v9 = vmax.f32 %v959_v20, %v960_v7  ;;  %v997_v18 = vsel %vm245_vm7, %v3098_v37, -inf  ;;  %v1004_v3 = vsel %vm245_vm7, %v3106_v2, -inf  ;;  %v1031_v7 = vld [vmem:[#allocation2 + $0x148] sm:$0xff] }
  0xea   :  { %v3219_v30 = vmax.f32 %v966_v63, %v967_v31  ;;  %v974_v1 = vrot.slane %v973_v10, 1  ;;  %v980_v51 = vmax.f32 %v978_v38, %v979_v24  ;;  %v992_v14 = vmax.f32 %v990_v11, %v991_v61 }
  0xeb   :  { %4528 = vst [vmem:[#allocation93_spill] sm:$0xff] %v3217_v9  ;;  %v986_v19 = vrot.slane %v985_v12, 2  ;;  %v998_v41 = vrot.slane %v997_v18, 4  ;;  %v1005_v8 = vrot.slane %v1004_v3, 4  ;;  %v1011_v13 = vsel %vm245_vm7, %v3128_v45, -inf }
  0xec   :  { %4529 = vst [vmem:[#allocation94_spill] sm:$0xff] %v3219_v30  ;;  %v1018_v49 = vsel %vm245_vm7, %v3135_v40, -inf  ;;  %v3229_v32 = vmax.f32 %v973_v10, %v974_v1  ;;  %v981_v20 = vrot.slane %v980_v51, 1  ;;  %v993_v63 = vrot.slane %v992_v14, 2  ;;  %v1032_v10 = vld [vmem:[#allocation2 + $0x150] sm:$0xff]  ;;  %v1033_v1 = vld [vmem:[#allocation2 + $0x158] sm:$0xff] }
  0xed   :  { %v987_v37 = vmax.f32 %v985_v12, %v986_v19  ;;  %v999_v62 = vmax.f32 %v997_v18, %v998_v41  ;;  %v1006_v2 = vmax.f32 %v1004_v3, %v1005_v8  ;;  %v1012_v22 = vrot.slane %v1011_v13, 4  ;;  %v3242_v8 = vld [vmem:[#allocation2 + $0x168] sm:$0xff] }
  0xee   :  { %4530 = vst [vmem:[#allocation95_spill] sm:$0xff] %v3229_v32  ;;  %v1019_v38 = vrot.slane %v1018_v49, 4  ;;  %v3231_v61 = vmax.f32 %v980_v51, %v981_v20  ;;  %v994_v11 = vmax.f32 %v992_v14, %v993_v63  ;;  %v1050_v45 = vmax.f32 %v3068_v33, %v1030_v44  ;;  %v3234_v32 = vld [vmem:[#allocation2 + $0x160] sm:$0xff]  ;;  %v3246_v20 = vld [vmem:[#allocation2 + $0x170] sm:$0xff] }
  0xef   :  { %v988_v31 = vrot.slane %v987_v37, 1  ;;  %v1000_v24 = vrot.slane %v999_v62, 2  ;;  %v1007_v30 = vrot.slane %v1006_v2, 2  ;;  %v1013_v40 = vmax.f32 %v1011_v13, %v1012_v22  ;;  %v1042_v13 = vld [vmem:[#allocation2 + $0x340] sm:$0xff] }
  0xf0   :  { %4531 = vst [vmem:[#allocation96_spill] sm:$0xff] %v3231_v61  ;;  %v1020_v39 = vmax.f32 %v1018_v49, %v1019_v38  ;;  %v995_v18 = vrot.slane %v994_v11, 1  ;;  %v3239_v3 = vmax.f32 %v1050_v45, %v3234_v32  ;;  %v1052_v51 = vmax.f32 %v3078_v21, %v1031_v7  ;;  %v1043_v49 = vld [vmem:[#allocation2 + $0x348] sm:$0xff]  ;;  %v3253_v38 = vld [vmem:[#allocation2 + $0x178] sm:$0xff]  ;;  %v1044_v7 = vld [vmem:[#allocation2 + $0x350] sm:$0xff] }
  0xf1   :  { %v3236_v12 = vmax.f32 %v987_v37, %v988_v31  ;;  %v1001_v19 = vmax.f32 %v999_v62, %v1000_v24  ;;  %v1008_v14 = vmax.f32 %v1006_v2, %v1007_v30  ;;  %v1014_v41 = vrot.slane %v1013_v40, 2  ;;  %v1045_v31 = vld [vmem:[#allocation2 + $0x358] sm:$0xff] }
  0xf2   :  { %v1021_v33 = vrot.slane %v1020_v39, 2  ;;  %v3244_v44 = vmax.f32 %v994_v11, %v995_v18  ;;  %v3249_v37 = vmax.f32 %v1052_v51, %v3242_v8  ;;  %v1054_v63 = vmax.f32 %v3093_v58, %v1032_v10  ;;  %v3269_v18 = vld [vmem:[#allocation2 + $0x368] sm:$0xff] }
  0xf3   :  { %4532 = vst [vmem:[#allocation97_spill] sm:$0xff] %v3236_v12  ;;  %v1056_v22 = vmax.f32 %v3095_v36, %v1033_v1  ;;  %v1002_v21 = vrot.slane %v1001_v19, 1  ;;  %v1009_v62 = vrot.slane %v1008_v14, 1  ;;  %v1015_v30 = vmax.f32 %v1013_v40, %v1014_v41  ;;  %v3267_v1 = vld [vmem:[#allocation2 + $0x360] sm:$0xff] }
  0xf4   :  { %4533 = vst [vmem:[#allocation98_spill] sm:$0xff] %v3244_v44  ;;  %v1022_v2 = vmax.f32 %v1020_v39, %v1021_v33  ;;  %v3256_v11 = vmax.f32 %v1054_v63, %v3246_v20  ;;  %v1058_v24 = vmax.f32 %v3101_v25, %v1042_v13  ;;  %v1060_v58 = vmax.f32 %v3103_v48, %v1043_v49  ;;  %v3283_v33 = vld [vmem:[#allocation2 + $0x370] sm:$0xff]  ;;  %v3285_v13 = vld [vmem:[#allocation2 + $0x378] sm:$0xff] }
  0xf5   :  { %v3259_v45 = vmax.f32 %v1056_v22, %v3253_v38  ;;  %v3263_v10 = vmax.f32 %v1001_v19, %v1002_v21  ;;  %v3265_v36 = vmax.f32 %v1008_v14, %v1009_v62  ;;  %v1016_v40 = vrot.slane %v1015_v30, 1 }
  0xf6   :  { %v1023_v39 = vrot.slane %v1022_v2, 1  ;;  %v3272_v51 = vmax.f32 %v1058_v24, %v3267_v1  ;;  %v3275_v41 = vmax.f32 %v1060_v58, %v3269_v18  ;;  %v1062_v25 = vmax.f32 %v3119_v23, %v1044_v7 }
  0xf7   :  { %4534 = vst [vmem:[#allocation99_spill] sm:$0xff] %v3263_v10  ;;  %4535 = vst [vmem:[#allocation100_spill] sm:$0xff] %v3265_v36  ;;  %v1064_v48 = vmax.f32 %v3125_v60, %v1045_v31  ;;  %v3279_v19 = vmax.f32 %v1015_v30, %v1016_v40  ;;  %v1066_v49 = vsel %vm62_vm0, %v3239_v3, -inf  ;;  %v1073_v63 = vsel %vm62_vm0, %v3249_v37, -inf }
  0xf8   :  { %v3281_v14 = vmax.f32 %v1022_v2, %v1023_v39  ;;  %v3292_v22 = vmax.f32 %v1062_v25, %v3283_v33  ;;  %v1067_v60 = vrot.slane %v1066_v49, 4  ;;  %v1074_v21 = vrot.slane %v1073_v63, 4 }
  0xf9   :  { %4536 = vst [vmem:[#allocation101_spill] sm:$0xff] %v3279_v19  ;;  %v3295_v23 = vmax.f32 %v1064_v48, %v3285_v13  ;;  %v1080_v62 = vsel %vm62_vm0, %v3272_v51, -inf  ;;  %v1087_v30 = vsel %vm62_vm0, %v3275_v41, -inf  ;;  %v1094_v2 = vsel %vm91_vm1, %v3239_v3, -inf }
  0xfa   :  { %4537 = vst [vmem:[#allocation102_spill] sm:$0xff] %v3281_v14  ;;  %v1101_v7 = vsel %vm91_vm1, %v3249_v37, -inf  ;;  %v1068_v31 = vmax.f32 %v1066_v49, %v1067_v60  ;;  %v1075_v24 = vmax.f32 %v1073_v63, %v1074_v21  ;;  %v1081_v58 = vrot.slane %v1080_v62, 4 }
  0xfb   :  { %v1088_v40 = vrot.slane %v1087_v30, 4  ;;  %v1095_v39 = vrot.slane %v1094_v2, 4  ;;  %v1102_v25 = vrot.slane %v1101_v7, 4  ;;  %v1108_v48 = vsel %vm91_vm1, %v3272_v51, -inf }
  0xfc   :  { %v1115_v14 = vsel %vm91_vm1, %v3275_v41, -inf  ;;  %v1069_v36 = vrot.slane %v1068_v31, 2  ;;  %v1076_v19 = vrot.slane %v1075_v24, 2  ;;  %v1082_v10 = vmax.f32 %v1080_v62, %v1081_v58 }
  0xfd   :  { %v1089_v44 = vmax.f32 %v1087_v30, %v1088_v40  ;;  %v1096_v61 = vmax.f32 %v1094_v2, %v1095_v39  ;;  %v1103_v12 = vmax.f32 %v1101_v7, %v1102_v25  ;;  %v1109_v9 = vrot.slane %v1108_v48, 4 }
  0xfe   :  { %v1116_v52 = vrot.slane %v1115_v14, 4  ;;  %v1070_v49 = vmax.f32 %v1068_v31, %v1069_v36  ;;  %v1077_v63 = vmax.f32 %v1075_v24, %v1076_v19  ;;  %v1083_v60 = vrot.slane %v1082_v10, 2 }
  0xff   :  { %v1090_v21 = vrot.slane %v1089_v44, 2  ;;  %v1097_v59 = vrot.slane %v1096_v61, 2  ;;  %v1104_v55 = vrot.slane %v1103_v12, 2  ;;  %v1110_v6 = vmax.f32 %v1108_v48, %v1109_v9 }
 0x100   :  { %v1117_v53 = vmax.f32 %v1115_v14, %v1116_v52  ;;  %v1071_v26 = vrot.slane %v1070_v49, 1  ;;  %v1078_v5 = vrot.slane %v1077_v63, 1  ;;  %v1084_v0 = vmax.f32 %v1082_v10, %v1083_v60 }
 0x101   :  { %v1091_v54 = vmax.f32 %v1089_v44, %v1090_v21  ;;  %v1098_v50 = vmax.f32 %v1096_v61, %v1097_v59  ;;  %v1105_v15 = vmax.f32 %v1103_v12, %v1104_v55  ;;  %v1111_v62 = vrot.slane %v1110_v6, 2 }
 0x102   :  { %v1118_v30 = vrot.slane %v1117_v53, 2  ;;  %v3309_v2 = vmax.f32 %v1070_v49, %v1071_v26  ;;  %v3311_v7 = vmax.f32 %v1077_v63, %v1078_v5  ;;  %v1085_v36 = vrot.slane %v1084_v0, 1 }
 0x103   :  { %v1092_v19 = vrot.slane %v1091_v54, 1  ;;  %v1099_v31 = vrot.slane %v1098_v50, 1  ;;  %v1106_v24 = vrot.slane %v1105_v15, 1  ;;  %v1112_v58 = vmax.f32 %v1110_v6, %v1111_v62 }
 0x104   :  { %4538 = vst [vmem:[#allocation103_spill] sm:$0xff] %v3311_v7  ;;  %v1119_v40 = vmax.f32 %v1117_v53, %v1118_v30  ;;  %v3313_v9 = vmax.f32 %v1084_v0, %v1085_v36  ;;  %v1122_v59 = vsel %vm120_vm2, %v3239_v3, -inf  ;;  %v1129_v55 = vsel %vm120_vm2, %v3249_v37, -inf }
 0x105   :  { %v3315_v52 = vmax.f32 %v1091_v54, %v1092_v19  ;;  %v3321_v26 = vmax.f32 %v1098_v50, %v1099_v31  ;;  %v3323_v5 = vmax.f32 %v1105_v15, %v1106_v24  ;;  %v1113_v61 = vrot.slane %v1112_v58, 1 }
 0x106   :  { %v1120_v12 = vrot.slane %v1119_v40, 1  ;;  %v1123_v44 = vrot.slane %v1122_v59, 4  ;;  %v1130_v10 = vrot.slane %v1129_v55, 4  ;;  %v1136_v0 = vsel %vm120_vm2, %v3272_v51, -inf }
 0x107   :  { %4539 = vst [vmem:[#allocation104_spill] sm:$0xff] %v3315_v52  ;;  %4540 = vst [vmem:[#allocation105_spill] sm:$0xff] %v3321_v26  ;;  %v1143_v54 = vsel %vm120_vm2, %v3275_v41, -inf  ;;  %v3329_v53 = vmax.f32 %v1112_v58, %v1113_v61  ;;  %v1137_v14 = vrot.slane %v1136_v0, 4  ;;  %v1150_v15 = vsel %vm149_vm3, %v3239_v3, -inf }
 0x108   :  { %4541 = vst [vmem:[#allocation106_spill] sm:$0xff] %v3323_v5  ;;  %v3331_v6 = vmax.f32 %v1119_v40, %v1120_v12  ;;  %v1144_v39 = vrot.slane %v1143_v54, 4  ;;  %v1124_v50 = vmax.f32 %v1122_v59, %v1123_v44  ;;  %v1131_v25 = vmax.f32 %v1129_v55, %v1130_v10 }
 0x109   :  { %4542 = vst [vmem:[#allocation107_spill] sm:$0xff] %v3329_v53  ;;  %v1151_v48 = vsel %vm151_vm4, %v3256_v11, -inf  ;;  %v1138_v49 = vmax.f32 %v1136_v0, %v1137_v14  ;;  %v1159_v21 = vsel %vm149_vm3, %v3249_v37, -inf  ;;  %v1160_v36 = vsel %vm151_vm4, %v3259_v45, -inf }
 0x10a   :  { %4543 = vst [vmem:[#allocation108_spill] sm:$0xff] %v3331_v6  ;;  %v1145_v63 = vmax.f32 %v1143_v54, %v1144_v39  ;;  %v1152_v60 = vmax.f32 %v1150_v15, %v1151_v48  ;;  %v1125_v62 = vrot.slane %v1124_v50, 2  ;;  %v1132_v30 = vrot.slane %v1131_v25, 2 }
 0x10b   :  { %v1168_v19 = vsel %vm149_vm3, %v3272_v51, -inf  ;;  %v1139_v31 = vrot.slane %v1138_v49, 2  ;;  %v1161_v58 = vmax.f32 %v1159_v21, %v1160_v36  ;;  %v1169_v55 = vsel %vm151_vm4, %v3292_v22, -inf }
 0x10c   :  { %v1146_v24 = vrot.slane %v1145_v63, 2  ;;  %v1153_v3 = vrot.slane %v1152_v60, 4  ;;  %v1126_v40 = vmax.f32 %v1124_v50, %v1125_v62  ;;  %v1133_v59 = vmax.f32 %v1131_v25, %v1132_v30 }
 0x10d   :  { %v1177_v37 = vsel %vm149_vm3, %v3275_v41, -inf  ;;  %v1140_v61 = vmax.f32 %v1138_v49, %v1139_v31  ;;  %v1162_v10 = vrot.slane %v1161_v58, 4  ;;  %v1170_v14 = vmax.f32 %v1168_v19, %v1169_v55 }
 0x10e   :  { %v1147_v12 = vmax.f32 %v1145_v63, %v1146_v24  ;;  %v1154_v44 = vmax.f32 %v1152_v60, %v1153_v3  ;;  %v1127_v0 = vrot.slane %v1126_v40, 1  ;;  %v1134_v54 = vrot.slane %v1133_v59, 1 }
 0x10f   :  { %v1178_v51 = vsel %vm151_vm4, %v3295_v23, -inf  ;;  %v1141_v39 = vrot.slane %v1140_v61, 1  ;;  %v1163_v25 = vmax.f32 %v1161_v58, %v1162_v10  ;;  %v1171_v62 = vrot.slane %v1170_v14, 4 }
 0x110   :  { %v1148_v15 = vrot.slane %v1147_v12, 1  ;;  %v1155_v50 = vrot.slane %v1154_v44, 2  ;;  %v3349_v48 = vmax.f32 %v1126_v40, %v1127_v0  ;;  %v3351_v21 = vmax.f32 %v1133_v59, %v1134_v54 }
 0x111   :  { %v1179_v41 = vmax.f32 %v1177_v37, %v1178_v51  ;;  %v3353_v49 = vmax.f32 %v1140_v61, %v1141_v39  ;;  %v1164_v30 = vrot.slane %v1163_v25, 2  ;;  %v1172_v36 = vmax.f32 %v1170_v14, %v1171_v62 }
 0x112   :  { %4544 = vst [vmem:[#allocation109_spill] sm:$0xff] %v3349_v48  ;;  %4545 = vst [vmem:[#allocation110_spill] sm:$0xff] %v3351_v21  ;;  %v3355_v63 = vmax.f32 %v1147_v12, %v1148_v15  ;;  %v1156_v60 = vmax.f32 %v1154_v44, %v1155_v50  ;;  %v1186_v31 = vsel %vm187_vm5, %v3256_v11, -inf  ;;  %v1193_v24 = vsel %vm187_vm5, %v3259_v45, -inf }
 0x113   :  { %4546 = vst [vmem:[#allocation111_spill] sm:$0xff] %v3353_v49  ;;  %v1180_v19 = vrot.slane %v1179_v41, 4  ;;  %v1165_v58 = vmax.f32 %v1163_v25, %v1164_v30  ;;  %v1187_v40 = vrot.slane %v1186_v31, 4  ;;  %v1194_v59 = vrot.slane %v1193_v24, 4 }
 0x114   :  { %4547 = vst [vmem:[#allocation112_spill] sm:$0xff] %v3355_v63  ;;  %v1157_v3 = vrot.slane %v1156_v60, 1  ;;  %v1173_v55 = vrot.slane %v1172_v36, 2  ;;  %v1200_v61 = vsel %vm187_vm5, %v3292_v22, -inf  ;;  %v1207_v12 = vsel %vm187_vm5, %v3295_v23, -inf }
 0x115   :  { %v1181_v37 = vmax.f32 %v1179_v41, %v1180_v19  ;;  %v1166_v10 = vrot.slane %v1165_v58, 1  ;;  %v1188_v0 = vmax.f32 %v1186_v31, %v1187_v40  ;;  %v1195_v54 = vmax.f32 %v1193_v24, %v1194_v59 }
 0x116   :  { %v3365_v44 = vmax.f32 %v1156_v60, %v1157_v3  ;;  %v1174_v14 = vmax.f32 %v1172_v36, %v1173_v55  ;;  %v1201_v39 = vrot.slane %v1200_v61, 4  ;;  %v1208_v15 = vrot.slane %v1207_v12, 4 }
 0x117   :  { %v1182_v51 = vrot.slane %v1181_v37, 2  ;;  %v3367_v50 = vmax.f32 %v1165_v58, %v1166_v10  ;;  %v1189_v25 = vrot.slane %v1188_v0, 2  ;;  %v1196_v62 = vrot.slane %v1195_v54, 2 }
 0x118   :  { %4548 = vst [vmem:[#allocation113_spill] sm:$0xff] %v3365_v44  ;;  %v1214_v41 = vsel %vm216_vm6, %v3256_v11, -inf  ;;  %v1175_v30 = vrot.slane %v1174_v14, 1  ;;  %v1202_v63 = vmax.f32 %v1200_v61, %v1201_v39  ;;  %v1209_v21 = vmax.f32 %v1207_v12, %v1208_v15 }
 0x119   :  { %4549 = vst [vmem:[#allocation114_spill] sm:$0xff] %v3367_v50  ;;  %v1183_v19 = vmax.f32 %v1181_v37, %v1182_v51  ;;  %v1190_v60 = vmax.f32 %v1188_v0, %v1189_v25  ;;  %v1197_v3 = vmax.f32 %v1195_v54, %v1196_v62  ;;  %v1215_v44 = vrot.slane %v1214_v41, 4 }
 0x11a   :  { %v1221_v36 = vsel %vm216_vm6, %v3259_v45, -inf  ;;  %v3373_v31 = vmax.f32 %v1174_v14, %v1175_v30  ;;  %v1203_v58 = vrot.slane %v1202_v63, 2  ;;  %v1210_v40 = vrot.slane %v1209_v21, 2 }
 0x11b   :  { %v1184_v24 = vrot.slane %v1183_v19, 1  ;;  %v1191_v59 = vrot.slane %v1190_v60, 1  ;;  %v1198_v55 = vrot.slane %v1197_v3, 1  ;;  %v1216_v10 = vmax.f32 %v1214_v41, %v1215_v44 }
 0x11c   :  { %4550 = vst [vmem:[#allocation115_spill] sm:$0xff] %v3373_v31  ;;  %v1222_v50 = vrot.slane %v1221_v36, 4  ;;  %v1204_v37 = vmax.f32 %v1202_v63, %v1203_v58  ;;  %v1211_v61 = vmax.f32 %v1209_v21, %v1210_v40  ;;  %v1228_v12 = vsel %vm216_vm6, %v3292_v22, -inf }
 0x11d   :  { %v3375_v49 = vmax.f32 %v1183_v19, %v1184_v24  ;;  %v3379_v0 = vmax.f32 %v1190_v60, %v1191_v59  ;;  %v3381_v54 = vmax.f32 %v1197_v3, %v1198_v55  ;;  %v1217_v14 = vrot.slane %v1216_v10, 2 }
 0x11e   :  { %v1223_v51 = vmax.f32 %v1221_v36, %v1222_v50  ;;  %v1205_v39 = vrot.slane %v1204_v37, 1  ;;  %v1212_v15 = vrot.slane %v1211_v61, 1  ;;  %v1229_v25 = vrot.slane %v1228_v12, 4 }
 0x11f   :  { %4551 = vst [vmem:[#allocation116_spill] sm:$0xff] %v3375_v49  ;;  %4552 = vst [vmem:[#allocation117_spill] sm:$0xff] %v3379_v0  ;;  %v1235_v44 = vsel %vm216_vm6, %v3295_v23, -inf  ;;  %v1218_v62 = vmax.f32 %v1216_v10, %v1217_v14  ;;  %v1242_v21 = vsel %vm245_vm7, %v3256_v11, -inf  ;;  %v1249_v58 = vsel %vm245_vm7, %v3259_v45, -inf }
 0x120   :  { %4553 = vst [vmem:[#allocation118_spill] sm:$0xff] %v3381_v54  ;;  %v1224_v41 = vrot.slane %v1223_v51, 2  ;;  %v1236_v30 = vrot.slane %v1235_v44, 4  ;;  %v3387_v63 = vmax.f32 %v1204_v37, %v1205_v39  ;;  %v3389_v19 = vmax.f32 %v1211_v61, %v1212_v15  ;;  %v1275_v39 = vld [vmem:[#allocation2 + $0x180] sm:$0xff] }
 0x121   :  { %v1230_v60 = vmax.f32 %v1228_v12, %v1229_v25  ;;  %v1243_v3 = vrot.slane %v1242_v21, 4  ;;  %v1219_v24 = vrot.slane %v1218_v62, 1  ;;  %v1250_v55 = vrot.slane %v1249_v58, 4 }
 0x122   :  { %4554 = vst [vmem:[#allocation119_spill] sm:$0xff] %v3387_v63  ;;  %4555 = vst [vmem:[#allocation120_spill] sm:$0xff] %v3389_v19  ;;  %v1225_v50 = vmax.f32 %v1223_v51, %v1224_v41  ;;  %v1237_v36 = vmax.f32 %v1235_v44, %v1236_v30  ;;  %v1256_v10 = vsel %vm245_vm7, %v3292_v22, -inf  ;;  %v1263_v51 = vsel %vm245_vm7, %v3295_v23, -inf  ;;  %v1276_v44 = vld [vmem:[#allocation2 + $0x188] sm:$0xff] }
 0x123   :  { %v1231_v40 = vrot.slane %v1230_v60, 2  ;;  %v1244_v59 = vmax.f32 %v1242_v21, %v1243_v3  ;;  %v3395_v14 = vmax.f32 %v1218_v62, %v1219_v24  ;;  %v1257_v61 = vrot.slane %v1256_v10, 4 }
 0x124   :  { %v1226_v11 = vrot.slane %v1225_v50, 1  ;;  %v1238_v37 = vrot.slane %v1237_v36, 2  ;;  %v1251_v25 = vmax.f32 %v1249_v58, %v1250_v55  ;;  %v1264_v21 = vrot.slane %v1263_v51, 4  ;;  %v3402_v58 = vld [vmem:[#allocation2 + $0x1a0] sm:$0xff] }
 0x125   :  { %4556 = vst [vmem:[#allocation121_spill] sm:$0xff] %v3395_v14  ;;  %v1232_v12 = vmax.f32 %v1230_v60, %v1231_v40  ;;  %v1245_v15 = vrot.slane %v1244_v59, 2  ;;  %v1258_v30 = vmax.f32 %v1256_v10, %v1257_v61  ;;  %v1295_v24 = vmax.f32 %v3234_v32, %v1275_v39  ;;  %v1277_v60 = vld [vmem:[#allocation2 + $0x190] sm:$0xff]  ;;  %v1278_v40 = vld [vmem:[#allocation2 + $0x198] sm:$0xff]  ;;  %v3407_v10 = vld [vmem:[#allocation2 + $0x1a8] sm:$0xff] }
 0x126   :  { %v3399_v45 = vmax.f32 %v1225_v50, %v1226_v11  ;;  %v1239_v41 = vmax.f32 %v1237_v36, %v1238_v37  ;;  %v1252_v62 = vrot.slane %v1251_v25, 2  ;;  %v1265_v54 = vmax.f32 %v1263_v51, %v1264_v21  ;;  %v1287_v11 = vld [vmem:[#allocation2 + $0x380] sm:$0xff] }
 0x127   :  { %v1233_v3 = vrot.slane %v1232_v12, 1  ;;  %v1246_v22 = vmax.f32 %v1244_v59, %v1245_v15  ;;  %v1259_v19 = vrot.slane %v1258_v30, 2  ;;  %v1297_v23 = vmax.f32 %v3242_v8, %v1276_v44  ;;  %v1288_v59 = vld [vmem:[#allocation2 + $0x388] sm:$0xff]  ;;  %v1289_v15 = vld [vmem:[#allocation2 + $0x390] sm:$0xff] }
 0x128   :  { %4557 = vst [vmem:[#allocation122_spill] sm:$0xff] %v3399_v45  ;;  %v1240_v14 = vrot.slane %v1239_v41, 1  ;;  %v1253_v36 = vmax.f32 %v1251_v25, %v1252_v62  ;;  %v3410_v37 = vmax.f32 %v1295_v24, %v3402_v58  ;;  %v1266_v39 = vrot.slane %v1265_v54, 2  ;;  %v3421_v62 = vld [vmem:[#allocation2 + $0x1b0] sm:$0xff]  ;;  %v3423_v24 = vld [vmem:[#allocation2 + $0x1b8] sm:$0xff] }
 0x129   :  { %v3405_v55 = vmax.f32 %v1232_v12, %v1233_v3  ;;  %v1247_v50 = vrot.slane %v1246_v22, 1  ;;  %v1260_v61 = vmax.f32 %v1258_v30, %v1259_v19  ;;  %v3415_v51 = vmax.f32 %v1297_v23, %v3407_v10  ;;  %v3431_v23 = vld [vmem:[#allocation2 + $0x3a8] sm:$0xff] }
 0x12a   :  { %v3412_v32 = vmax.f32 %v1239_v41, %v1240_v14  ;;  %v1254_v12 = vrot.slane %v1253_v36, 1  ;;  %v1299_v25 = vmax.f32 %v3246_v20, %v1277_v60  ;;  %v1301_v44 = vmax.f32 %v3253_v38, %v1278_v40  ;;  %v1290_v14 = vld [vmem:[#allocation2 + $0x398] sm:$0xff] }
 0x12b   :  { %4558 = vst [vmem:[#allocation123_spill] sm:$0xff] %v3405_v55  ;;  %v3417_v8 = vmax.f32 %v1246_v22, %v1247_v50  ;;  %v1261_v21 = vrot.slane %v1260_v61, 1  ;;  %v1267_v3 = vmax.f32 %v1265_v54, %v1266_v39  ;;  %v1303_v19 = vmax.f32 %v3267_v1, %v1287_v11  ;;  %v3429_v22 = vld [vmem:[#allocation2 + $0x3a0] sm:$0xff]  ;;  %v3442_v1 = vld [vmem:[#allocation2 + $0x3b0] sm:$0xff]  ;;  %v3460_v39 = vld [vmem:[#allocation2 + $0x3b8] sm:$0xff] }
 0x12c   :  { %4559 = vst [vmem:[#allocation124_spill] sm:$0xff] %v3412_v32  ;;  %v1305_v41 = vmax.f32 %v3269_v18, %v1288_v59  ;;  %v3427_v30 = vmax.f32 %v1253_v36, %v1254_v12  ;;  %v3434_v20 = vmax.f32 %v1299_v25, %v3421_v62  ;;  %v3437_v38 = vmax.f32 %v1301_v44, %v3423_v24 }
 0x12d   :  { %4560 = vst [vmem:[#allocation125_spill] sm:$0xff] %v3417_v8  ;;  %v1307_v54 = vmax.f32 %v3283_v33, %v1289_v15  ;;  %v3440_v60 = vmax.f32 %v1260_v61, %v1261_v21  ;;  %v1268_v40 = vrot.slane %v1267_v3, 1  ;;  %v3445_v18 = vmax.f32 %v1303_v19, %v3429_v22 }
 0x12e   :  { %4561 = vst [vmem:[#allocation126_spill] sm:$0xff] %v3427_v30  ;;  %v3448_v50 = vmax.f32 %v1305_v41, %v3431_v23  ;;  %v1309_v11 = vmax.f32 %v3285_v13, %v1290_v14  ;;  %v1311_v59 = vsel %vm62_vm0, %v3410_v37, -inf  ;;  %v1318_v33 = vsel %vm62_vm0, %v3415_v51, -inf }
 0x12f   :  { %4562 = vst [vmem:[#allocation127_spill] sm:$0xff] %v3440_v60  ;;  %v3451_v36 = vmax.f32 %v1307_v54, %v3442_v1  ;;  %v3458_v61 = vmax.f32 %v1267_v3, %v1268_v40  ;;  %v1312_v15 = vrot.slane %v1311_v59, 4  ;;  %v1319_v12 = vrot.slane %v1318_v33, 4 }
 0x130   :  { %v1325_v25 = vsel %vm62_vm0, %v3445_v18, -inf  ;;  %v3465_v44 = vmax.f32 %v1309_v11, %v3460_v39  ;;  %v1332_v13 = vsel %vm62_vm0, %v3448_v50, -inf  ;;  %v1339_v14 = vsel %vm91_vm1, %v3410_v37, -inf }
 0x131   :  { %4563 = vst [vmem:[#allocation128_spill] sm:$0xff] %v3458_v61  ;;  %v1326_v21 = vrot.slane %v1325_v25, 4  ;;  %v1313_v19 = vmax.f32 %v1311_v59, %v1312_v15  ;;  %v1320_v3 = vmax.f32 %v1318_v33, %v1319_v12  ;;  %v1333_v41 = vrot.slane %v1332_v13, 4 }
 0x132   :  { %v1340_v54 = vrot.slane %v1339_v14, 4  ;;  %v1346_v61 = vsel %vm91_vm1, %v3415_v51, -inf  ;;  %v1353_v30 = vsel %vm91_vm1, %v3445_v18, -inf  ;;  %v1360_v11 = vsel %vm91_vm1, %v3448_v50, -inf }
 0x133   :  { %v1327_v40 = vmax.f32 %v1325_v25, %v1326_v21  ;;  %v1314_v60 = vrot.slane %v1313_v19, 2  ;;  %v1321_v8 = vrot.slane %v1320_v3, 2  ;;  %v1334_v32 = vmax.f32 %v1332_v13, %v1333_v41 }
 0x134   :  { %v1341_v45 = vmax.f32 %v1339_v14, %v1340_v54  ;;  %v1347_v63 = vrot.slane %v1346_v61, 4  ;;  %v1354_v59 = vrot.slane %v1353_v30, 4  ;;  %v1361_v33 = vrot.slane %v1360_v11, 4 }
 0x135   :  { %v1328_v55 = vrot.slane %v1327_v40, 2  ;;  %v1315_v15 = vmax.f32 %v1313_v19, %v1314_v60  ;;  %v1322_v12 = vmax.f32 %v1320_v3, %v1321_v8  ;;  %v1335_v25 = vrot.slane %v1334_v32, 2 }
 0x136   :  { %v1342_v21 = vrot.slane %v1341_v45, 2  ;;  %v1348_v49 = vmax.f32 %v1346_v61, %v1347_v63  ;;  %v1355_v31 = vmax.f32 %v1353_v30, %v1354_v59  ;;  %v1362_v48 = vmax.f32 %v1360_v11, %v1361_v33 }
 0x137   :  { %v1329_v0 = vmax.f32 %v1327_v40, %v1328_v55  ;;  %v1316_v6 = vrot.slane %v1315_v15, 1  ;;  %v1323_v5 = vrot.slane %v1322_v12, 1  ;;  %v1336_v53 = vmax.f32 %v1334_v32, %v1335_v25 }
 0x138   :  { %v1343_v26 = vmax.f32 %v1341_v45, %v1342_v21  ;;  %v1349_v7 = vrot.slane %v1348_v49, 2  ;;  %v1356_v13 = vrot.slane %v1355_v31, 2  ;;  %v1363_v14 = vrot.slane %v1362_v48, 2 }
 0x139   :  { %v1330_v52 = vrot.slane %v1329_v0, 1  ;;  %v3477_v41 = vmax.f32 %v1315_v15, %v1316_v6  ;;  %v3479_v54 = vmax.f32 %v1322_v12, %v1323_v5  ;;  %v1337_v60 = vrot.slane %v1336_v53, 1 }
 0x13a   :  { %v1344_v8 = vrot.slane %v1343_v26, 1  ;;  %v1350_v55 = vmax.f32 %v1348_v49, %v1349_v7  ;;  %v1357_v63 = vmax.f32 %v1355_v31, %v1356_v13  ;;  %v1364_v30 = vmax.f32 %v1362_v48, %v1363_v14 }
 0x13b   :  { %v3481_v19 = vmax.f32 %v1329_v0, %v1330_v52  ;;  %v3483_v61 = vmax.f32 %v1336_v53, %v1337_v60  ;;  %v1367_v45 = vsel %vm120_vm2, %v3410_v37, -inf  ;;  %v1374_v6 = vsel %vm120_vm2, %v3415_v51, -inf }
 0x13c   :  { %v3485_v3 = vmax.f32 %v1343_v26, %v1344_v8  ;;  %v1351_v32 = vrot.slane %v1350_v55, 1  ;;  %v1358_v5 = vrot.slane %v1357_v63, 1  ;;  %v1365_v40 = vrot.slane %v1364_v30, 1 }
 0x13d   :  { %v1368_v11 = vrot.slane %v1367_v45, 4  ;;  %v1375_v59 = vrot.slane %v1374_v6, 4  ;;  %v1381_v7 = vsel %vm120_vm2, %v3445_v18, -inf  ;;  %v1388_v52 = vsel %vm120_vm2, %v3448_v50, -inf }
 0x13e   :  { %v1395_v26 = vsel %vm149_vm3, %v3410_v37, -inf  ;;  %v3497_v53 = vmax.f32 %v1350_v55, %v1351_v32  ;;  %v3499_v48 = vmax.f32 %v1357_v63, %v1358_v5  ;;  %v3501_v49 = vmax.f32 %v1364_v30, %v1365_v40 }
 0x13f   :  { %v1369_v31 = vmax.f32 %v1367_v45, %v1368_v11  ;;  %v1376_v0 = vmax.f32 %v1374_v6, %v1375_v59  ;;  %v1382_v33 = vrot.slane %v1381_v7, 4  ;;  %v1389_v15 = vrot.slane %v1388_v52, 4 }
 0x140   :  { %v1396_v12 = vsel %vm151_vm4, %v3434_v20, -inf  ;;  %v1404_v13 = vsel %vm149_vm3, %v3415_v51, -inf  ;;  %v1405_v37 = vsel %vm151_vm4, %v3437_v38, -inf  ;;  %v1413_v45 = vsel %vm149_vm3, %v3445_v18, -inf }
 0x141   :  { %v1370_v25 = vrot.slane %v1369_v31, 2  ;;  %v1397_v21 = vmax.f32 %v1395_v26, %v1396_v12  ;;  %v1377_v14 = vrot.slane %v1376_v0, 2  ;;  %v1383_v60 = vmax.f32 %v1381_v7, %v1382_v33 }
 0x142   :  { %v1390_v8 = vmax.f32 %v1388_v52, %v1389_v15  ;;  %v1406_v55 = vmax.f32 %v1404_v13, %v1405_v37  ;;  %v1414_v6 = vsel %vm151_vm4, %v3451_v36, -inf  ;;  %v1422_v7 = vsel %vm149_vm3, %v3448_v50, -inf }
 0x143   :  { %v1371_v63 = vmax.f32 %v1369_v31, %v1370_v25  ;;  %v1398_v30 = vrot.slane %v1397_v21, 4  ;;  %v1378_v32 = vmax.f32 %v1376_v0, %v1377_v14  ;;  %v1384_v5 = vrot.slane %v1383_v60, 2 }
 0x144   :  { %v1391_v40 = vrot.slane %v1390_v8, 2  ;;  %v1407_v11 = vrot.slane %v1406_v55, 4  ;;  %v1415_v26 = vmax.f32 %v1413_v45, %v1414_v6  ;;  %v1423_v0 = vsel %vm151_vm4, %v3465_v44, -inf }
 0x145   :  { %v1372_v51 = vrot.slane %v1371_v63, 1  ;;  %v1399_v59 = vmax.f32 %v1397_v21, %v1398_v30  ;;  %v1379_v52 = vrot.slane %v1378_v32, 1  ;;  %v1385_v33 = vmax.f32 %v1383_v60, %v1384_v5 }
 0x146   :  { %v1392_v31 = vmax.f32 %v1390_v8, %v1391_v40  ;;  %v1408_v15 = vmax.f32 %v1406_v55, %v1407_v11  ;;  %v1416_v25 = vrot.slane %v1415_v26, 4  ;;  %v1424_v6 = vmax.f32 %v1422_v7, %v1423_v0 }
 0x147   :  { %v3515_v12 = vmax.f32 %v1371_v63, %v1372_v51  ;;  %v1400_v18 = vrot.slane %v1399_v59, 2  ;;  %v3519_v13 = vmax.f32 %v1378_v32, %v1379_v52  ;;  %v1386_v37 = vrot.slane %v1385_v33, 1 }
 0x148   :  { %v1393_v14 = vrot.slane %v1392_v31, 1  ;;  %v1409_v21 = vrot.slane %v1408_v15, 2  ;;  %v1417_v45 = vmax.f32 %v1415_v26, %v1416_v25  ;;  %v1431_v50 = vsel %vm187_vm5, %v3434_v20, -inf }
 0x149   :  { %4564 = vst [vmem:[#allocation129_spill] sm:$0xff] %v3515_v12  ;;  %4565 = vst [vmem:[#allocation130_spill] sm:$0xff] %v3519_v13  ;;  %v1401_v30 = vmax.f32 %v1399_v59, %v1400_v18  ;;  %v3523_v60 = vmax.f32 %v1385_v33, %v1386_v37  ;;  %v1432_v63 = vrot.slane %v1431_v50, 4  ;;  %v1425_v11 = vrot.slane %v1424_v6, 4 }
 0x14a   :  { %v3525_v8 = vmax.f32 %v1392_v31, %v1393_v14  ;;  %v1410_v55 = vmax.f32 %v1408_v15, %v1409_v21  ;;  %v1418_v40 = vrot.slane %v1417_v45, 2  ;;  %v1438_v32 = vsel %vm187_vm5, %v3437_v38, -inf }
 0x14b   :  { %4566 = vst [vmem:[#allocation131_spill] sm:$0xff] %v3523_v60  ;;  %v1402_v5 = vrot.slane %v1401_v30, 1  ;;  %v1433_v52 = vmax.f32 %v1431_v50, %v1432_v63  ;;  %v1439_v59 = vrot.slane %v1438_v32, 4  ;;  %v1445_v26 = vsel %vm187_vm5, %v3451_v36, -inf }
 0x14c   :  { %4567 = vst [vmem:[#allocation132_spill] sm:$0xff] %v3525_v8  ;;  %v1411_v51 = vrot.slane %v1410_v55, 1  ;;  %v1419_v33 = vmax.f32 %v1417_v45, %v1418_v40  ;;  %v1426_v18 = vmax.f32 %v1424_v6, %v1425_v11  ;;  %v1446_v31 = vrot.slane %v1445_v26, 4 }
 0x14d   :  { %v3531_v7 = vmax.f32 %v1401_v30, %v1402_v5  ;;  %v1434_v15 = vrot.slane %v1433_v52, 2  ;;  %v1440_v0 = vmax.f32 %v1438_v32, %v1439_v59  ;;  %v1452_v37 = vsel %vm187_vm5, %v3465_v44, -inf }
 0x14e   :  { %v3533_v25 = vmax.f32 %v1410_v55, %v1411_v51  ;;  %v1420_v14 = vrot.slane %v1419_v33, 1  ;;  %v1427_v21 = vrot.slane %v1426_v18, 2  ;;  %v1447_v8 = vmax.f32 %v1445_v26, %v1446_v31 }
 0x14f   :  { %4568 = vst [vmem:[#allocation133_spill] sm:$0xff] %v3531_v7  ;;  %v1453_v50 = vrot.slane %v1452_v37, 4  ;;  %v1435_v63 = vmax.f32 %v1433_v52, %v1434_v15  ;;  %v1441_v13 = vrot.slane %v1440_v0, 2  ;;  %v1459_v30 = vsel %vm216_vm6, %v3434_v20, -inf }
 0x150   :  { %4569 = vst [vmem:[#allocation134_spill] sm:$0xff] %v3533_v25  ;;  %v1466_v45 = vsel %vm216_vm6, %v3437_v38, -inf  ;;  %v3541_v6 = vmax.f32 %v1419_v33, %v1420_v14  ;;  %v1428_v55 = vmax.f32 %v1426_v18, %v1427_v21  ;;  %v1448_v5 = vrot.slane %v1447_v8, 2 }
 0x151   :  { %v1454_v40 = vmax.f32 %v1452_v37, %v1453_v50  ;;  %v1436_v11 = vrot.slane %v1435_v63, 1  ;;  %v1442_v32 = vmax.f32 %v1440_v0, %v1441_v13  ;;  %v1460_v51 = vrot.slane %v1459_v30, 4 }
 0x152   :  { %4570 = vst [vmem:[#allocation135_spill] sm:$0xff] %v3541_v6  ;;  %v1467_v59 = vrot.slane %v1466_v45, 4  ;;  %v1429_v25 = vrot.slane %v1428_v55, 1  ;;  %v1449_v26 = vmax.f32 %v1447_v8, %v1448_v5  ;;  %v1473_v52 = vsel %vm216_vm6, %v3451_v36, -inf }
 0x153   :  { %v1455_v31 = vrot.slane %v1454_v40, 2  ;;  %v3545_v15 = vmax.f32 %v1435_v63, %v1436_v11  ;;  %v1443_v7 = vrot.slane %v1442_v32, 1  ;;  %v1461_v60 = vmax.f32 %v1459_v30, %v1460_v51 }
 0x154   :  { %v1468_v12 = vmax.f32 %v1466_v45, %v1467_v59  ;;  %v3547_v33 = vmax.f32 %v1428_v55, %v1429_v25  ;;  %v1450_v18 = vrot.slane %v1449_v26, 1  ;;  %v1474_v37 = vrot.slane %v1473_v52, 4 }
 0x155   :  { %4571 = vst [vmem:[#allocation136_spill] sm:$0xff] %v3545_v15  ;;  %v1456_v14 = vmax.f32 %v1454_v40, %v1455_v31  ;;  %v3549_v21 = vmax.f32 %v1442_v32, %v1443_v7  ;;  %v1462_v13 = vrot.slane %v1461_v60, 2  ;;  %v1480_v8 = vsel %vm216_vm6, %v3465_v44, -inf }
 0x156   :  { %4572 = vst [vmem:[#allocation137_spill] sm:$0xff] %v3547_v33  ;;  %v1469_v0 = vrot.slane %v1468_v12, 2  ;;  %v3553_v50 = vmax.f32 %v1449_v26, %v1450_v18  ;;  %v1475_v63 = vmax.f32 %v1473_v52, %v1474_v37  ;;  %v1481_v11 = vrot.slane %v1480_v8, 4  ;;  %v1520_v37 = vld [vmem:[#allocation2 + $0x1c0] sm:$0xff] }
 0x157   :  { %4573 = vst [vmem:[#allocation138_spill] sm:$0xff] %v3549_v21  ;;  %v1457_v5 = vrot.slane %v1456_v14, 1  ;;  %v1463_v15 = vmax.f32 %v1461_v60, %v1462_v13  ;;  %v1487_v25 = vsel %vm245_vm7, %v3434_v20, -inf  ;;  %v1494_v45 = vsel %vm245_vm7, %v3437_v38, -inf  ;;  %v1521_v20 = vld [vmem:[#allocation2 + $0x1c8] sm:$0xff]  ;;  %v1524_v21 = vld [vmem:[#allocation2 + $0x1e0] sm:$0xff] }
 0x158   :  { %4574 = vst [vmem:[#allocation139_spill] sm:$0xff] %v3553_v50  ;;  %v1470_v30 = vmax.f32 %v1468_v12, %v1469_v0  ;;  %v1476_v55 = vrot.slane %v1475_v63, 2  ;;  %v1482_v40 = vmax.f32 %v1480_v8, %v1481_v11  ;;  %v1488_v32 = vrot.slane %v1487_v25, 4 }
 0x159   :  { %v3559_v7 = vmax.f32 %v1456_v14, %v1457_v5  ;;  %v1464_v51 = vrot.slane %v1463_v15, 1  ;;  %v1495_v26 = vrot.slane %v1494_v45, 4  ;;  %v1501_v31 = vsel %vm245_vm7, %v3451_v36, -inf  ;;  %v1525_v36 = vld [vmem:[#allocation2 + $0x1e8] sm:$0xff] }
 0x15a   :  { %v1471_v59 = vrot.slane %v1470_v30, 1  ;;  %v1477_v52 = vmax.f32 %v1475_v63, %v1476_v55  ;;  %v1483_v60 = vrot.slane %v1482_v40, 2  ;;  %v1489_v12 = vmax.f32 %v1487_v25, %v1488_v32  ;;  %v1522_v25 = vld [vmem:[#allocation2 + $0x1d0] sm:$0xff] }
 0x15b   :  { %4575 = vst [vmem:[#allocation140_spill] sm:$0xff] %v3559_v7  ;;  %v1502_v18 = vrot.slane %v1501_v31, 4  ;;  %v3563_v13 = vmax.f32 %v1463_v15, %v1464_v51  ;;  %v1496_v14 = vmax.f32 %v1494_v45, %v1495_v26  ;;  %v1508_v0 = vsel %vm245_vm7, %v3465_v44, -inf  ;;  %v1523_v26 = vld [vmem:[#allocation2 + $0x1d8] sm:$0xff]  ;;  %v1532_v44 = vld [vmem:[#allocation2 + $0x3c0] sm:$0xff] }
 0x15c   :  { %v3565_v38 = vmax.f32 %v1470_v30, %v1471_v59  ;;  %v1478_v8 = vrot.slane %v1477_v52, 1  ;;  %v1484_v5 = vmax.f32 %v1482_v40, %v1483_v60  ;;  %v1490_v11 = vrot.slane %v1489_v12, 2  ;;  %v1526_v60 = vld [vmem:[#allocation2 + $0x1f0] sm:$0xff] }
 0x15d   :  { %4576 = vst [vmem:[#allocation141_spill] sm:$0xff] %v3563_v13  ;;  %v1503_v7 = vmax.f32 %v1501_v31, %v1502_v18  ;;  %v1497_v63 = vrot.slane %v1496_v14, 2  ;;  %v1509_v55 = vrot.slane %v1508_v0, 4  ;;  %v1540_v32 = vmax.f32 %v3402_v58, %v1520_v37  ;;  %v1533_v31 = vld [vmem:[#allocation2 + $0x3c8] sm:$0xff] }
 0x15e   :  { %4577 = vst [vmem:[#allocation142_spill] sm:$0xff] %v3565_v38  ;;  %v1542_v15 = vmax.f32 %v3407_v10, %v1521_v20  ;;  %v3571_v51 = vmax.f32 %v1477_v52, %v1478_v8  ;;  %v1485_v30 = vrot.slane %v1484_v5, 1  ;;  %v1491_v45 = vmax.f32 %v1489_v12, %v1490_v11  ;;  %v1527_v10 = vld [vmem:[#allocation2 + $0x1f8] sm:$0xff]  ;;  %v1536_v52 = vld [vmem:[#allocation2 + $0x3e0] sm:$0xff]  ;;  %v1534_v11 = vld [vmem:[#allocation2 + $0x3d0] sm:$0xff] }
 0x15f   :  { %v1504_v59 = vrot.slane %v1503_v7, 2  ;;  %v1498_v38 = vmax.f32 %v1496_v14, %v1497_v63  ;;  %v1510_v40 = vmax.f32 %v1508_v0, %v1509_v55  ;;  %v3573_v18 = vmax.f32 %v1540_v32, %v1524_v21  ;;  %v1537_v14 = vld [vmem:[#allocation2 + $0x3e8] sm:$0xff] }
 0x160   :  { %4578 = vst [vmem:[#allocation143_spill] sm:$0xff] %v3571_v51  ;;  %v3575_v13 = vmax.f32 %v1542_v15, %v1525_v36  ;;  %v3577_v50 = vmax.f32 %v1484_v5, %v1485_v30  ;;  %v1492_v58 = vrot.slane %v1491_v45, 1  ;;  %v1544_v20 = vmax.f32 %v3421_v62, %v1522_v25  ;;  %v1535_v51 = vld [vmem:[#allocation2 + $0x3d8] sm:$0xff]  ;;  %v1538_v62 = vld [vmem:[#allocation2 + $0x3f0] sm:$0xff] }
 0x161   :  { %v1505_v37 = vmax.f32 %v1503_v7, %v1504_v59  ;;  %v1499_v12 = vrot.slane %v1498_v38, 1  ;;  %v1511_v8 = vrot.slane %v1510_v40, 2  ;;  %v1546_v0 = vmax.f32 %v3423_v24, %v1523_v26  ;;  %v1539_v25 = vld [vmem:[#allocation2 + $0x3f8] sm:$0xff] }
 0x162   :  { %4579 = vst [vmem:[#allocation144_spill] sm:$0xff] %v3577_v50  ;;  %v1548_v21 = vmax.f32 %v3429_v22, %v1532_v44  ;;  %v3582_v63 = vmax.f32 %v1491_v45, %v1492_v58  ;;  %v3584_v5 = vmax.f32 %v1544_v20, %v1526_v60  ;;  %v1550_v7 = vmax.f32 %v3431_v23, %v1533_v31 }
 0x163   :  { %v1506_v36 = vrot.slane %v1505_v37, 1  ;;  %v3587_v55 = vmax.f32 %v1498_v38, %v1499_v12  ;;  %v1512_v32 = vmax.f32 %v1510_v40, %v1511_v8  ;;  %v3589_v15 = vmax.f32 %v1546_v0, %v1527_v10 }
 0x164   :  { %4580 = vst [vmem:[#allocation145_spill] sm:$0xff] %v3582_v63  ;;  %v3591_v30 = vmax.f32 %v1548_v21, %v1536_v52  ;;  %v3595_v24 = vmax.f32 %v1550_v7, %v1537_v14  ;;  %v1552_v22 = vmax.f32 %v3442_v1, %v1534_v11  ;;  %v1554_v45 = vmax.f32 %v3460_v39, %v1535_v51 }
 0x165   :  { %4581 = vst [vmem:[#allocation146_spill] sm:$0xff] %v3587_v55  ;;  %v3593_v59 = vmax.f32 %v1505_v37, %v1506_v36  ;;  %v1513_v26 = vrot.slane %v1512_v32, 1  ;;  %v1556_v23 = vsel %vm62_vm0, %v3573_v18, -inf  ;;  %v1563_v38 = vsel %vm62_vm0, %v3575_v13, -inf }
 0x166   :  { %v1570_v44 = vsel %vm62_vm0, %v3591_v30, -inf  ;;  %v3605_v40 = vmax.f32 %v1552_v22, %v1538_v62  ;;  %v3607_v60 = vmax.f32 %v1554_v45, %v1539_v25  ;;  %v1557_v31 = vrot.slane %v1556_v23, 4 }
 0x167   :  { %4582 = vst [vmem:[#allocation147_spill] sm:$0xff] %v3593_v59  ;;  %v1564_v58 = vrot.slane %v1563_v38, 4  ;;  %v3609_v37 = vmax.f32 %v1512_v32, %v1513_v26  ;;  %v1571_v1 = vrot.slane %v1570_v44, 4  ;;  %v1577_v39 = vsel %vm62_vm0, %v3595_v24, -inf }
 0x168   :  { %v1584_v51 = vsel %vm91_vm1, %v3573_v18, -inf  ;;  %v1558_v10 = vmax.f32 %v1556_v23, %v1557_v31  ;;  %v1578_v20 = vrot.slane %v1577_v39, 4  ;;  %v1591_v11 = vsel %vm91_vm1, %v3575_v13, -inf }
 0x169   :  { %4583 = vst [vmem:[#allocation148_spill] sm:$0xff] %v3609_v37  ;;  %v1565_v52 = vmax.f32 %v1563_v38, %v1564_v58  ;;  %v1585_v12 = vrot.slane %v1584_v51, 4  ;;  %v1572_v8 = vmax.f32 %v1570_v44, %v1571_v1  ;;  %v1598_v14 = vsel %vm91_vm1, %v3591_v30, -inf }
 0x16a   :  { %v1605_v0 = vsel %vm91_vm1, %v3595_v24, -inf  ;;  %v1559_v21 = vrot.slane %v1558_v10, 2  ;;  %v1579_v7 = vmax.f32 %v1577_v39, %v1578_v20  ;;  %v1592_v25 = vrot.slane %v1591_v11, 4 }
 0x16b   :  { %v1566_v36 = vrot.slane %v1565_v52, 2  ;;  %v1586_v32 = vmax.f32 %v1584_v51, %v1585_v12  ;;  %v1573_v62 = vrot.slane %v1572_v8, 2  ;;  %v1599_v22 = vrot.slane %v1598_v14, 4 }
 0x16c   :  { %v1606_v45 = vrot.slane %v1605_v0, 4  ;;  %v1560_v26 = vmax.f32 %v1558_v10, %v1559_v21  ;;  %v1580_v38 = vrot.slane %v1579_v7, 2  ;;  %v1593_v58 = vmax.f32 %v1591_v11, %v1592_v25 }
 0x16d   :  { %v1567_v23 = vmax.f32 %v1565_v52, %v1566_v36  ;;  %v1587_v44 = vrot.slane %v1586_v32, 2  ;;  %v1574_v31 = vmax.f32 %v1572_v8, %v1573_v62  ;;  %v1600_v1 = vmax.f32 %v1598_v14, %v1599_v22 }
 0x16e   :  { %v1607_v37 = vmax.f32 %v1605_v0, %v1606_v45  ;;  %v1561_v55 = vrot.slane %v1560_v26, 1  ;;  %v1581_v63 = vmax.f32 %v1579_v7, %v1580_v38  ;;  %v1594_v6 = vrot.slane %v1593_v58, 2 }
 0x16f   :  { %v1568_v59 = vrot.slane %v1567_v23, 1  ;;  %v1588_v50 = vmax.f32 %v1586_v32, %v1587_v44  ;;  %v1575_v33 = vrot.slane %v1574_v31, 1  ;;  %v1601_v39 = vrot.slane %v1600_v1, 2 }
 0x170   :  { %v1608_v51 = vrot.slane %v1607_v37, 2  ;;  %v3621_v20 = vmax.f32 %v1560_v26, %v1561_v55  ;;  %v1582_v10 = vrot.slane %v1581_v63, 1  ;;  %v1595_v8 = vmax.f32 %v1593_v58, %v1594_v6 }
 0x171   :  { %v3623_v12 = vmax.f32 %v1567_v23, %v1568_v59  ;;  %v1589_v52 = vrot.slane %v1588_v50, 1  ;;  %v3625_v21 = vmax.f32 %v1574_v31, %v1575_v33  ;;  %v1602_v11 = vmax.f32 %v1600_v1, %v1601_v39 }
 0x172   :  { %v1609_v14 = vmax.f32 %v1607_v37, %v1608_v51  ;;  %v3627_v0 = vmax.f32 %v1581_v63, %v1582_v10  ;;  %v1612_v7 = vsel %vm120_vm2, %v3573_v18, -inf  ;;  %v1619_v55 = vsel %vm120_vm2, %v3575_v13, -inf }
 0x173   :  { %v3629_v36 = vmax.f32 %v1588_v50, %v1589_v52  ;;  %v1596_v32 = vrot.slane %v1595_v8, 1  ;;  %v1603_v59 = vrot.slane %v1602_v11, 1  ;;  %v1613_v25 = vrot.slane %v1612_v7, 4 }
 0x174   :  { %v1610_v62 = vrot.slane %v1609_v14, 1  ;;  %v1620_v22 = vrot.slane %v1619_v55, 4  ;;  %v1626_v6 = vsel %vm120_vm2, %v3591_v30, -inf  ;;  %v1633_v33 = vsel %vm120_vm2, %v3595_v24, -inf }
 0x175   :  { %v1640_v50 = vsel %vm149_vm3, %v3573_v18, -inf  ;;  %v3641_v63 = vmax.f32 %v1595_v8, %v1596_v32  ;;  %v3643_v37 = vmax.f32 %v1602_v11, %v1603_v59  ;;  %v1614_v26 = vmax.f32 %v1612_v7, %v1613_v25 }
 0x176   :  { %v3645_v45 = vmax.f32 %v1609_v14, %v1610_v62  ;;  %v1621_v23 = vmax.f32 %v1619_v55, %v1620_v22  ;;  %v1627_v38 = vrot.slane %v1626_v6, 4  ;;  %v1634_v44 = vrot.slane %v1633_v33, 4 }
 0x177   :  { %v1641_v31 = vsel %vm151_vm4, %v3584_v5, -inf  ;;  %v1615_v58 = vrot.slane %v1614_v26, 2  ;;  %v1649_v39 = vsel %vm149_vm3, %v3575_v13, -inf  ;;  %v1650_v18 = vsel %vm151_vm4, %v3589_v15, -inf }
 0x178   :  { %v1642_v1 = vmax.f32 %v1640_v50, %v1641_v31  ;;  %v1622_v51 = vrot.slane %v1621_v23, 2  ;;  %v1628_v10 = vmax.f32 %v1626_v6, %v1627_v38  ;;  %v1635_v52 = vmax.f32 %v1633_v33, %v1634_v44 }
 0x179   :  { %v1651_v8 = vmax.f32 %v1649_v39, %v1650_v18  ;;  %v1616_v11 = vmax.f32 %v1614_v26, %v1615_v58  ;;  %v1658_v7 = vsel %vm149_vm3, %v3591_v30, -inf  ;;  %v1659_v55 = vsel %vm151_vm4, %v3605_v40, -inf }
 0x17a   :  { %v1643_v14 = vrot.slane %v1642_v1, 4  ;;  %v1623_v32 = vmax.f32 %v1621_v23, %v1622_v51  ;;  %v1629_v59 = vrot.slane %v1628_v10, 2  ;;  %v1636_v62 = vrot.slane %v1635_v52, 2 }
 0x17b   :  { %v1652_v25 = vrot.slane %v1651_v8, 4  ;;  %v1617_v13 = vrot.slane %v1616_v11, 1  ;;  %v1660_v50 = vmax.f32 %v1658_v7, %v1659_v55  ;;  %v1667_v6 = vsel %vm149_vm3, %v3595_v24, -inf }
 0x17c   :  { %v1644_v22 = vmax.f32 %v1642_v1, %v1643_v14  ;;  %v1624_v33 = vrot.slane %v1623_v32, 1  ;;  %v1630_v38 = vmax.f32 %v1628_v10, %v1629_v59  ;;  %v1637_v26 = vmax.f32 %v1635_v52, %v1636_v62 }
 0x17d   :  { %v1653_v44 = vmax.f32 %v1651_v8, %v1652_v25  ;;  %v3659_v31 = vmax.f32 %v1616_v11, %v1617_v13  ;;  %v1661_v58 = vrot.slane %v1660_v50, 4  ;;  %v1668_v23 = vsel %vm151_vm4, %v3607_v60, -inf }
 0x17e   :  { %v1645_v30 = vrot.slane %v1644_v22, 2  ;;  %v3663_v39 = vmax.f32 %v1623_v32, %v1624_v33  ;;  %v1631_v18 = vrot.slane %v1630_v38, 1  ;;  %v1638_v51 = vrot.slane %v1637_v26, 1 }
 0x17f   :  { %4584 = vst [vmem:[#allocation149_spill] sm:$0xff] %v3659_v31  ;;  %v1654_v1 = vrot.slane %v1653_v44, 2  ;;  %v1662_v7 = vmax.f32 %v1660_v50, %v1661_v58  ;;  %v1669_v55 = vmax.f32 %v1667_v6, %v1668_v23  ;;  %v1676_v24 = vsel %vm187_vm5, %v3584_v5, -inf }
 0x180   :  { %4585 = vst [vmem:[#allocation150_spill] sm:$0xff] %v3663_v39  ;;  %v1646_v14 = vmax.f32 %v1644_v22, %v1645_v30  ;;  %v3667_v10 = vmax.f32 %v1630_v38, %v1631_v18  ;;  %v3669_v52 = vmax.f32 %v1637_v26, %v1638_v51  ;;  %v1677_v11 = vrot.slane %v1676_v24, 4 }
 0x181   :  { %v1655_v8 = vmax.f32 %v1653_v44, %v1654_v1  ;;  %v1663_v62 = vrot.slane %v1662_v7, 2  ;;  %v1670_v25 = vrot.slane %v1669_v55, 4  ;;  %v1683_v32 = vsel %vm187_vm5, %v3589_v15, -inf }
 0x182   :  { %4586 = vst [vmem:[#allocation151_spill] sm:$0xff] %v3667_v10  ;;  %4587 = vst [vmem:[#allocation152_spill] sm:$0xff] %v3669_v52  ;;  %v1647_v59 = vrot.slane %v1646_v14, 1  ;;  %v1678_v33 = vmax.f32 %v1676_v24, %v1677_v11  ;;  %v1684_v22 = vrot.slane %v1683_v32, 4  ;;  %v1690_v50 = vsel %vm187_vm5, %v3605_v40, -inf }
 0x183   :  { %v1656_v13 = vrot.slane %v1655_v8, 1  ;;  %v1664_v38 = vmax.f32 %v1662_v7, %v1663_v62  ;;  %v1671_v30 = vmax.f32 %v1669_v55, %v1670_v25  ;;  %v1691_v26 = vrot.slane %v1690_v50, 4 }
 0x184   :  { %v3675_v6 = vmax.f32 %v1646_v14, %v1647_v59  ;;  %v1679_v44 = vrot.slane %v1678_v33, 2  ;;  %v1685_v23 = vmax.f32 %v1683_v32, %v1684_v22  ;;  %v1697_v18 = vsel %vm187_vm5, %v3607_v60, -inf }
 0x185   :  { %v3677_v58 = vmax.f32 %v1655_v8, %v1656_v13  ;;  %v1665_v51 = vrot.slane %v1664_v38, 1  ;;  %v1672_v1 = vrot.slane %v1671_v30, 2  ;;  %v1692_v52 = vmax.f32 %v1690_v50, %v1691_v26 }
 0x186   :  { %4588 = vst [vmem:[#allocation153_spill] sm:$0xff] %v3675_v6  ;;  %v1698_v24 = vrot.slane %v1697_v18, 4  ;;  %v1680_v11 = vmax.f32 %v1678_v33, %v1679_v44  ;;  %v1686_v39 = vrot.slane %v1685_v23, 2  ;;  %v1704_v14 = vsel %vm216_vm6, %v3584_v5, -inf }
 0x187   :  { %4589 = vst [vmem:[#allocation154_spill] sm:$0xff] %v3677_v58  ;;  %v1711_v7 = vsel %vm216_vm6, %v3589_v15, -inf  ;;  %v3685_v55 = vmax.f32 %v1664_v38, %v1665_v51  ;;  %v1673_v8 = vmax.f32 %v1671_v30, %v1672_v1  ;;  %v1693_v59 = vrot.slane %v1692_v52, 2 }
 0x188   :  { %v1699_v62 = vmax.f32 %v1697_v18, %v1698_v24  ;;  %v1681_v25 = vrot.slane %v1680_v11, 1  ;;  %v1687_v32 = vmax.f32 %v1685_v23, %v1686_v39  ;;  %v1705_v13 = vrot.slane %v1704_v14, 4 }
 0x189   :  { %v1712_v22 = vrot.slane %v1711_v7, 4  ;;  %v1674_v58 = vrot.slane %v1673_v8, 1  ;;  %v1694_v50 = vmax.f32 %v1692_v52, %v1693_v59  ;;  %v1718_v33 = vsel %vm216_vm6, %v3605_v40, -inf }
 0x18a   :  { %v1700_v26 = vrot.slane %v1699_v62, 2  ;;  %v3689_v44 = vmax.f32 %v1680_v11, %v1681_v25  ;;  %v1688_v6 = vrot.slane %v1687_v32, 1  ;;  %v1706_v10 = vmax.f32 %v1704_v14, %v1705_v13 }
 0x18b   :  { %v1713_v31 = vmax.f32 %v1711_v7, %v1712_v22  ;;  %v3691_v38 = vmax.f32 %v1673_v8, %v1674_v58  ;;  %v1695_v30 = vrot.slane %v1694_v50, 1  ;;  %v1719_v18 = vrot.slane %v1718_v33, 4 }
 0x18c   :  { %4590 = vst [vmem:[#allocation155_spill] sm:$0xff] %v3689_v44  ;;  %v1701_v51 = vmax.f32 %v1699_v62, %v1700_v26  ;;  %v3693_v1 = vmax.f32 %v1687_v32, %v1688_v6  ;;  %v1707_v39 = vrot.slane %v1706_v10, 2  ;;  %v1725_v52 = vsel %vm216_vm6, %v3607_v60, -inf }
 0x18d   :  { %v1714_v23 = vrot.slane %v1713_v31, 2  ;;  %v3697_v24 = vmax.f32 %v1694_v50, %v1695_v30  ;;  %v1720_v11 = vmax.f32 %v1718_v33, %v1719_v18  ;;  %v1726_v25 = vrot.slane %v1725_v52, 4 }
 0x18e   :  { %v1702_v59 = vrot.slane %v1701_v51, 1  ;;  %v1708_v44 = vmax.f32 %v1706_v10, %v1707_v39  ;;  %v1732_v58 = vsel %vm245_vm7, %v3584_v5, -inf  ;;  %v1739_v7 = vsel %vm245_vm7, %v3589_v15, -inf }
 0x18f   :  { %v1715_v14 = vmax.f32 %v1713_v31, %v1714_v23  ;;  %v1721_v8 = vrot.slane %v1720_v11, 2  ;;  %v1727_v62 = vmax.f32 %v1725_v52, %v1726_v25  ;;  %v1733_v32 = vrot.slane %v1732_v58, 4 }
 0x190   :  { %v3703_v6 = vmax.f32 %v1701_v51, %v1702_v59  ;;  %v1709_v13 = vrot.slane %v1708_v44, 1  ;;  %v1740_v50 = vrot.slane %v1739_v7, 4  ;;  %v1746_v26 = vsel %vm245_vm7, %v3605_v40, -inf }
 0x191   :  { %v1716_v22 = vrot.slane %v1715_v14, 1  ;;  %v1722_v33 = vmax.f32 %v1720_v11, %v1721_v8  ;;  %v1728_v10 = vrot.slane %v1727_v62, 2  ;;  %v1734_v31 = vmax.f32 %v1732_v58, %v1733_v32 }
 0x192   :  { %4591 = vst [vmem:[#allocation156_spill] sm:$0xff] %v3703_v6  ;;  %v1747_v30 = vrot.slane %v1746_v26, 4  ;;  %v3707_v18 = vmax.f32 %v1708_v44, %v1709_v13  ;;  %v1741_v15 = vmax.f32 %v1739_v7, %v1740_v50  ;;  %v1753_v51 = vsel %vm245_vm7, %v3607_v60, -inf }
 0x193   :  { %v3709_v5 = vmax.f32 %v1715_v14, %v1716_v22  ;;  %v1723_v39 = vrot.slane %v1722_v33, 1  ;;  %v1729_v23 = vmax.f32 %v1727_v62, %v1728_v10  ;;  %v1735_v52 = vrot.slane %v1734_v31, 2  ;;  %v4595_v10 = vld [vmem:[#allocation9_spill] sm:$0xff] }
 0x194   :  { %v1748_v59 = vmax.f32 %v1746_v26, %v1747_v30  ;;  %v1742_v25 = vrot.slane %v1741_v15, 2  ;;  %v1754_v6 = vrot.slane %v1753_v51, 4  ;;  %v3718_v14 = vsel %vm1764_vm8, %v2649_v42, %v2637_v16  ;;  %v4592_v26 = vld [vmem:[#allocation5_spill] sm:$0xff]  ;;  %v4597_v30 = vld [vmem:[#allocation10_spill] sm:$0xff] }
 0x195   :  { %v3713_v40 = vmax.f32 %v1722_v33, %v1723_v39  ;;  %v1730_v11 = vrot.slane %v1729_v23, 1  ;;  %v1736_v58 = vmax.f32 %v1734_v31, %v1735_v52  ;;  %v3723_v60 = vsel %vm1764_vm8, %v2651_v43, %v2639_v17  ;;  %v4593_v33 = vld [vmem:[#allocation6_spill] sm:$0xff]  ;;  %v4600_v39 = vld [vmem:[#allocation12_spill] sm:$0xff] }
 0x196   :  { %v1749_v8 = vrot.slane %v1748_v59, 2  ;;  %v1743_v44 = vmax.f32 %v1741_v15, %v1742_v25  ;;  %v1755_v32 = vmax.f32 %v1753_v51, %v1754_v6  ;;  %v3730_v22 = vsel %vm1764_vm8, %v2657_v56, %v2645_v34  ;;  %v4599_v15 = vld [vmem:[#allocation13_spill] sm:$0xff]  ;;  %v4602_v25 = vld [vmem:[#allocation15_spill] sm:$0xff] }
 0x197   :  { %v3725_v7 = vmax.f32 %v1729_v23, %v1730_v11  ;;  %v1737_v62 = vrot.slane %v1736_v58, 1  ;;  %v3735_v16 = vsel %vm1764_vm8, %v2659_v57, %v2647_v35  ;;  %v3740_v17 = vsel %vm1764_vm8, %v2681_v46, %v2677_v27  ;;  %v4594_v46 = vld [vmem:[#allocation7_spill] sm:$0xff]  ;;  %v4601_v23 = vld [vmem:[#allocation14_spill] sm:$0xff]  ;;  %v4603_v11 = vld [vmem:[#allocation17_spill] sm:$0xff] }
 0x198   :  { %v1750_v13 = vmax.f32 %v1748_v59, %v1749_v8  ;;  %v1744_v6 = vrot.slane %v1743_v44, 1  ;;  %v1756_v50 = vrot.slane %v1755_v32, 2  ;;  %v3747_v34 = vsel %vm1764_vm8, %v2683_v47, %v2679_v28  ;;  %v4596_v47 = vld [vmem:[#allocation8_spill] sm:$0xff] }
 0x199   :  { %v3742_v42 = vmax.f32 %v1736_v58, %v1737_v62  ;;  %v3752_v56 = vsel %vm1764_vm8, %v2699_v29, %v2693_v4  ;;  %v3759_v27 = vsel %vm1764_vm8, %v4593_v33, %v4592_v26  ;;  %v3764_v31 = vsel %vm1764_vm8, %v4595_v10, %v4594_v46  ;;  %v4598_v29 = vld [vmem:[#allocation11_spill] sm:$0xff]  ;;  %v4604_v8 = vld [vmem:[#allocation16_spill] sm:$0xff]  ;;  %v4611_v46 = vld [vmem:[#allocation25_spill] sm:$0xff] }
 0x19a   :  { %v1751_v43 = vrot.slane %v1750_v13, 1  ;;  %v3754_v35 = vmax.f32 %v1743_v44, %v1744_v6  ;;  %v1757_v57 = vmax.f32 %v1755_v32, %v1756_v50  ;;  %v3771_v4 = vsel %vm1764_vm8, %v4597_v30, %v4596_v47  ;;  %v4605_v44 = vld [vmem:[#allocation18_spill] sm:$0xff]  ;;  %v4606_v62 = vld [vmem:[#allocation19_spill] sm:$0xff]  ;;  %v4608_v50 = vld [vmem:[#allocation20_spill] sm:$0xff] }
 0x19b   :  { %v3776_v51 = vsel %vm1764_vm8, %v4599_v15, %v4598_v29  ;;  %v3781_v52 = vsel %vm1764_vm8, %v4601_v23, %v4600_v39  ;;  %v3786_v58 = vsel %vm1764_vm8, %v4603_v11, %v4602_v25  ;;  %v3791_v32 = vsel %vm1764_vm8, %v4605_v44, %v4604_v8  ;;  %v4610_v33 = vld [vmem:[#allocation23_spill] sm:$0xff]  ;;  %v4612_v47 = vld [vmem:[#allocation24_spill] sm:$0xff]  ;;  %v4613_v30 = vld [vmem:[#allocation26_spill] sm:$0xff] }
 0x19c   :  { %v3766_v28 = vmax.f32 %v1750_v13, %v1751_v43  ;;  %v1758_v59 = vrot.slane %v1757_v57, 1  ;;  %v4607_v13 = vld [vmem:[#allocation21_spill] sm:$0xff]  ;;  %v4609_v43 = vld [vmem:[#allocation22_spill] sm:$0xff]  ;;  %v3806_v10 = vsel %vm1764_vm8, %v4611_v46, %v4610_v33  ;;  %v3811_v29 = vsel %vm1764_vm8, %v4613_v30, %v4612_v47  ;;  %v4614_v15 = vld [vmem:[#allocation27_spill] sm:$0xff] }
 0x19d   :  { %v3796_v6 = vsel %vm1764_vm8, %v4607_v13, %v4606_v62  ;;  %v3801_v26 = vsel %vm1764_vm8, %v4609_v43, %v4608_v50  ;;  %v4615_v39 = vld [vmem:[#allocation29_spill] sm:$0xff]  ;;  %v4616_v11 = vld [vmem:[#allocation28_spill] sm:$0xff]  ;;  %v4617_v8 = vld [vmem:[#allocation30_spill] sm:$0xff] }
 0x19e   :  { %v3816_v23 = vsel %vm1764_vm8, %v4615_v39, %v4614_v15  ;;  %v3818_v25 = vmax.f32 %v1757_v57, %v1758_v59  ;;  %v3823_v44 = vsel %vm1764_vm8, %v4617_v8, %v4616_v11  ;;  %v4618_v62 = vld [vmem:[#allocation31_spill] sm:$0xff]  ;;  %v4619_v13 = vld [vmem:[#allocation33_spill] sm:$0xff]  ;;  %v4621_v43 = vld [vmem:[#allocation32_spill] sm:$0xff] }
 0x19f   :  { %v3828_v50 = vsel %vm1764_vm8, %v4619_v13, %v4618_v62  ;;  %v4622_v33 = vld [vmem:[#allocation34_spill] sm:$0xff]  ;;  %v4624_v47 = vld [vmem:[#allocation35_spill] sm:$0xff]  ;;  %v4625_v30 = vld [vmem:[#allocation37_spill] sm:$0xff] }
 0x1a0   :  { %4620 = vst [vmem:[#allocation5_spill] sm:$0xff] %v3828_v50  ;;  %v3833_v46 = vsel %vm1764_vm8, %v4622_v33, %v4621_v43  ;;  %v3838_v57 = vsel %vm1764_vm8, %v4625_v30, %v4624_v47  ;;  %v4627_v59 = vld [vmem:[#allocation36_spill] sm:$0xff]  ;;  %v4628_v15 = vld [vmem:[#allocation38_spill] sm:$0xff]  ;;  %v4630_v11 = vld [vmem:[#allocation39_spill] sm:$0xff] }
 0x1a1   :  { %4623 = vst [vmem:[#allocation6_spill] sm:$0xff] %v3833_v46  ;;  %4626 = vst [vmem:[#allocation7_spill] sm:$0xff] %v3838_v57  ;;  %v3843_v39 = vsel %vm1764_vm8, %v4628_v15, %v4627_v59  ;;  %v4631_v8 = vld [vmem:[#allocation41_spill] sm:$0xff]  ;;  %v4633_v13 = vld [vmem:[#allocation40_spill] sm:$0xff] }
 0x1a2   :  { %4629 = vst [vmem:[#allocation9_spill] sm:$0xff] %v3843_v39  ;;  %v3848_v62 = vsel %vm1764_vm8, %v4631_v8, %v4630_v11  ;;  %v4634_v50 = vld [vmem:[#allocation42_spill] sm:$0xff]  ;;  %v4636_v33 = vld [vmem:[#allocation43_spill] sm:$0xff]  ;;  %v4637_v46 = vld [vmem:[#allocation45_spill] sm:$0xff] }
 0x1a3   :  { %4632 = vst [vmem:[#allocation8_spill] sm:$0xff] %v3848_v62  ;;  %v3853_v43 = vsel %vm1764_vm8, %v4634_v50, %v4633_v13  ;;  %v3858_v47 = vsel %vm1764_vm8, %v4637_v46, %v4636_v33  ;;  %v4639_v30 = vld [vmem:[#allocation44_spill] sm:$0xff]  ;;  %v4640_v57 = vld [vmem:[#allocation46_spill] sm:$0xff]  ;;  %v4642_v15 = vld [vmem:[#allocation47_spill] sm:$0xff] }
 0x1a4   :  { %4635 = vst [vmem:[#allocation10_spill] sm:$0xff] %v3853_v43  ;;  %4638 = vst [vmem:[#allocation11_spill] sm:$0xff] %v3858_v47  ;;  %v3863_v59 = vsel %vm1764_vm8, %v4640_v57, %v4639_v30  ;;  %v4643_v39 = vld [vmem:[#allocation50_spill] sm:$0xff]  ;;  %v4645_v8 = vld [vmem:[#allocation48_spill] sm:$0xff] }
 0x1a5   :  { %4641 = vst [vmem:[#allocation13_spill] sm:$0xff] %v3863_v59  ;;  %v3868_v11 = vsel %vm1764_vm8, %v4643_v39, %v4642_v15  ;;  %v4646_v62 = vld [vmem:[#allocation51_spill] sm:$0xff]  ;;  %v4648_v13 = vld [vmem:[#allocation49_spill] sm:$0xff]  ;;  %v4651_v33 = vld [vmem:[#allocation52_spill] sm:$0xff] }
 0x1a6   :  { %4644 = vst [vmem:[#allocation12_spill] sm:$0xff] %v3868_v11  ;;  %v3873_v50 = vsel %vm1764_vm8, %v4646_v62, %v4645_v8  ;;  %v4649_v43 = vld [vmem:[#allocation53_spill] sm:$0xff]  ;;  %v4652_v47 = vld [vmem:[#allocation54_spill] sm:$0xff]  ;;  %v4654_v30 = vld [vmem:[#allocation55_spill] sm:$0xff] }
 0x1a7   :  { %4647 = vst [vmem:[#allocation14_spill] sm:$0xff] %v3873_v50  ;;  %v3878_v46 = vsel %vm1764_vm8, %v4649_v43, %v4648_v13  ;;  %v3883_v57 = vsel %vm1764_vm8, %v4652_v47, %v4651_v33  ;;  %v4655_v59 = vld [vmem:[#allocation57_spill] sm:$0xff]  ;;  %v4657_v15 = vld [vmem:[#allocation56_spill] sm:$0xff]  ;;  %v4658_v11 = vld [vmem:[#allocation58_spill] sm:$0xff] }
 0x1a8   :  { %4650 = vst [vmem:[#allocation15_spill] sm:$0xff] %v3878_v46  ;;  %4653 = vst [vmem:[#allocation17_spill] sm:$0xff] %v3883_v57  ;;  %v3888_v39 = vsel %vm1764_vm8, %v4655_v59, %v4654_v30  ;;  %v3893_v62 = vsel %vm1764_vm8, %v4658_v11, %v4657_v15  ;;  %v4660_v8 = vld [vmem:[#allocation59_spill] sm:$0xff]  ;;  %v4661_v50 = vld [vmem:[#allocation61_spill] sm:$0xff] }
 0x1a9   :  { %4656 = vst [vmem:[#allocation16_spill] sm:$0xff] %v3888_v39  ;;  %4659 = vst [vmem:[#allocation18_spill] sm:$0xff] %v3893_v62  ;;  %v3898_v43 = vsel %vm1764_vm8, %v4661_v50, %v4660_v8  ;;  %v4663_v13 = vld [vmem:[#allocation60_spill] sm:$0xff]  ;;  %v4664_v46 = vld [vmem:[#allocation62_spill] sm:$0xff] }
 0x1aa   :  { %4662 = vst [vmem:[#allocation19_spill] sm:$0xff] %v3898_v43  ;;  %v3903_v47 = vsel %vm1764_vm8, %v4664_v46, %v4663_v13  ;;  %v4666_v33 = vld [vmem:[#allocation63_spill] sm:$0xff]  ;;  %v4667_v57 = vld [vmem:[#allocation65_spill] sm:$0xff]  ;;  %v4669_v30 = vld [vmem:[#allocation64_spill] sm:$0xff] }
 0x1ab   :  { %4665 = vst [vmem:[#allocation21_spill] sm:$0xff] %v3903_v47  ;;  %v3908_v59 = vsel %vm1764_vm8, %v4667_v57, %v4666_v33  ;;  %v4670_v39 = vld [vmem:[#allocation66_spill] sm:$0xff]  ;;  %v4672_v15 = vld [vmem:[#allocation67_spill] sm:$0xff]  ;;  %v4673_v62 = vld [vmem:[#allocation69_spill] sm:$0xff] }
 0x1ac   :  { %4668 = vst [vmem:[#allocation20_spill] sm:$0xff] %v3908_v59  ;;  %v3913_v11 = vsel %vm1764_vm8, %v4670_v39, %v4669_v30  ;;  %v3918_v50 = vsel %vm1764_vm8, %v4673_v62, %v4672_v15  ;;  %v4675_v8 = vld [vmem:[#allocation68_spill] sm:$0xff]  ;;  %v4676_v43 = vld [vmem:[#allocation70_spill] sm:$0xff]  ;;  %v4678_v13 = vld [vmem:[#allocation71_spill] sm:$0xff] }
 0x1ad   :  { %4671 = vst [vmem:[#allocation22_spill] sm:$0xff] %v3913_v11  ;;  %4674 = vst [vmem:[#allocation23_spill] sm:$0xff] %v3918_v50  ;;  %v3923_v46 = vsel %vm1764_vm8, %v4676_v43, %v4675_v8  ;;  %v4679_v47 = vld [vmem:[#allocation73_spill] sm:$0xff]  ;;  %v4681_v33 = vld [vmem:[#allocation72_spill] sm:$0xff] }
 0x1ae   :  { %4677 = vst [vmem:[#allocation25_spill] sm:$0xff] %v3923_v46  ;;  %v3928_v57 = vsel %vm1764_vm8, %v4679_v47, %v4678_v13  ;;  %v4682_v59 = vld [vmem:[#allocation74_spill] sm:$0xff]  ;;  %v4684_v30 = vld [vmem:[#allocation75_spill] sm:$0xff]  ;;  %v4685_v11 = vld [vmem:[#allocation77_spill] sm:$0xff] }
 0x1af   :  { %4680 = vst [vmem:[#allocation24_spill] sm:$0xff] %v3928_v57  ;;  %v3933_v39 = vsel %vm1764_vm8, %v4682_v59, %v4681_v33  ;;  %v3938_v62 = vsel %vm1764_vm8, %v4685_v11, %v4684_v30  ;;  %v4687_v15 = vld [vmem:[#allocation76_spill] sm:$0xff]  ;;  %v4688_v50 = vld [vmem:[#allocation78_spill] sm:$0xff]  ;;  %v4690_v8 = vld [vmem:[#allocation79_spill] sm:$0xff] }
 0x1b0   :  { %4683 = vst [vmem:[#allocation26_spill] sm:$0xff] %v3933_v39  ;;  %4686 = vst [vmem:[#allocation27_spill] sm:$0xff] %v3938_v62  ;;  %v3943_v43 = vsel %vm1764_vm8, %v4688_v50, %v4687_v15  ;;  %v4691_v46 = vld [vmem:[#allocation81_spill] sm:$0xff]  ;;  %v4693_v13 = vld [vmem:[#allocation80_spill] sm:$0xff] }
 0x1b1   :  { %4689 = vst [vmem:[#allocation29_spill] sm:$0xff] %v3943_v43  ;;  %v3948_v47 = vsel %vm1764_vm8, %v4691_v46, %v4690_v8  ;;  %v4694_v57 = vld [vmem:[#allocation82_spill] sm:$0xff]  ;;  %v4696_v33 = vld [vmem:[#allocation83_spill] sm:$0xff]  ;;  %v4697_v39 = vld [vmem:[#allocation85_spill] sm:$0xff] }
 0x1b2   :  { %4692 = vst [vmem:[#allocation28_spill] sm:$0xff] %v3948_v47  ;;  %v3953_v59 = vsel %vm1764_vm8, %v4694_v57, %v4693_v13  ;;  %v3958_v11 = vsel %vm1764_vm8, %v4697_v39, %v4696_v33  ;;  %v4699_v30 = vld [vmem:[#allocation84_spill] sm:$0xff]  ;;  %v4700_v62 = vld [vmem:[#allocation86_spill] sm:$0xff]  ;;  %v4702_v15 = vld [vmem:[#allocation87_spill] sm:$0xff] }
 0x1b3   :  { %4695 = vst [vmem:[#allocation30_spill] sm:$0xff] %v3953_v59  ;;  %4698 = vst [vmem:[#allocation31_spill] sm:$0xff] %v3958_v11  ;;  %v3963_v50 = vsel %vm1764_vm8, %v4700_v62, %v4699_v30  ;;  %v4703_v43 = vld [vmem:[#allocation89_spill] sm:$0xff]  ;;  %v4705_v8 = vld [vmem:[#allocation88_spill] sm:$0xff] }
 0x1b4   :  { %4701 = vst [vmem:[#allocation33_spill] sm:$0xff] %v3963_v50  ;;  %v3968_v46 = vsel %vm1764_vm8, %v4703_v43, %v4702_v15  ;;  %v4706_v47 = vld [vmem:[#allocation92_spill] sm:$0xff]  ;;  %v4708_v13 = vld [vmem:[#allocation90_spill] sm:$0xff]  ;;  %v4709_v59 = vld [vmem:[#allocation93_spill] sm:$0xff] }
 0x1b5   :  { %4704 = vst [vmem:[#allocation32_spill] sm:$0xff] %v3968_v46  ;;  %v3973_v57 = vsel %vm1764_vm8, %v4706_v47, %v4705_v8  ;;  %v3978_v39 = vsel %vm1764_vm8, %v4709_v59, %v4708_v13  ;;  %v4711_v33 = vld [vmem:[#allocation91_spill] sm:$0xff]  ;;  %v4712_v11 = vld [vmem:[#allocation94_spill] sm:$0xff]  ;;  %v4714_v50 = vld [vmem:[#allocation97_spill] sm:$0xff] }
 0x1b6   :  { %4707 = vst [vmem:[#allocation34_spill] sm:$0xff] %v3973_v57  ;;  %4710 = vst [vmem:[#allocation35_spill] sm:$0xff] %v3978_v39  ;;  %v3983_v62 = vsel %vm1764_vm8, %v4712_v11, %v4711_v33  ;;  %v4713_v30 = vld [vmem:[#allocation95_spill] sm:$0xff]  ;;  %v4716_v15 = vld [vmem:[#allocation96_spill] sm:$0xff] }
 0x1b7   :  { %v3988_v43 = vsel %vm1764_vm8, %v4714_v50, %v4713_v30  ;;  %v4717_v46 = vld [vmem:[#allocation98_spill] sm:$0xff]  ;;  %v4718_v8 = vld [vmem:[#allocation99_spill] sm:$0xff]  ;;  %v4719_v57 = vld [vmem:[#allocation101_spill] sm:$0xff]  ;;  %v4008_v50 = vsel %vm1764_vm8, %v3313_v9, %v3309_v2 }
 0x1b8   :  { %4715 = vst [vmem:[#allocation37_spill] sm:$0xff] %v3988_v43  ;;  %v3993_v47 = vsel %vm1764_vm8, %v4717_v46, %v4716_v15  ;;  %v3998_v59 = vsel %vm1764_vm8, %v4719_v57, %v4718_v8  ;;  %v4721_v13 = vld [vmem:[#allocation100_spill] sm:$0xff]  ;;  %v4722_v39 = vld [vmem:[#allocation102_spill] sm:$0xff]  ;;  %4724 = vst [vmem:[#allocation39_spill] sm:$0xff] %v4008_v50 }
 0x1b9   :  { %4720 = vst [vmem:[#allocation36_spill] sm:$0xff] %v3998_v59  ;;  %v4003_v11 = vsel %vm1764_vm8, %v4722_v39, %v4721_v13  ;;  %v4725_v33 = vld [vmem:[#allocation103_spill] sm:$0xff]  ;;  %v4726_v30 = vld [vmem:[#allocation104_spill] sm:$0xff]  ;;  %v4728_v15 = vld [vmem:[#allocation105_spill] sm:$0xff] }
 0x1ba   :  { %4723 = vst [vmem:[#allocation38_spill] sm:$0xff] %v4003_v11  ;;  %v4013_v46 = vsel %vm1764_vm8, %v4726_v30, %v4725_v33  ;;  %v4729_v43 = vld [vmem:[#allocation107_spill] sm:$0xff]  ;;  %v4731_v8 = vld [vmem:[#allocation106_spill] sm:$0xff]  ;;  %v4732_v59 = vld [vmem:[#allocation108_spill] sm:$0xff] }
 0x1bb   :  { %4727 = vst [vmem:[#allocation41_spill] sm:$0xff] %v4013_v46  ;;  %v4018_v57 = vsel %vm1764_vm8, %v4729_v43, %v4728_v15  ;;  %v4023_v39 = vsel %vm1764_vm8, %v4732_v59, %v4731_v8  ;;  %v4734_v13 = vld [vmem:[#allocation109_spill] sm:$0xff]  ;;  %v4735_v11 = vld [vmem:[#allocation111_spill] sm:$0xff]  ;;  %v4737_v9 = vld [vmem:[#allocation110_spill] sm:$0xff] }
 0x1bc   :  { %4730 = vst [vmem:[#allocation40_spill] sm:$0xff] %v4018_v57  ;;  %4733 = vst [vmem:[#allocation42_spill] sm:$0xff] %v4023_v39  ;;  %v4028_v2 = vsel %vm1764_vm8, %v4735_v11, %v4734_v13  ;;  %v4738_v50 = vld [vmem:[#allocation112_spill] sm:$0xff]  ;;  %v4740_v30 = vld [vmem:[#allocation113_spill] sm:$0xff] }
 0x1bd   :  { %4736 = vst [vmem:[#allocation43_spill] sm:$0xff] %v4028_v2  ;;  %v4033_v33 = vsel %vm1764_vm8, %v4738_v50, %v4737_v9  ;;  %v4741_v46 = vld [vmem:[#allocation115_spill] sm:$0xff]  ;;  %v4743_v15 = vld [vmem:[#allocation114_spill] sm:$0xff]  ;;  %v4744_v57 = vld [vmem:[#allocation116_spill] sm:$0xff] }
 0x1be   :  { %4739 = vst [vmem:[#allocation45_spill] sm:$0xff] %v4033_v33  ;;  %v4038_v43 = vsel %vm1764_vm8, %v4741_v46, %v4740_v30  ;;  %v4043_v59 = vsel %vm1764_vm8, %v4744_v57, %v4743_v15  ;;  %v4746_v8 = vld [vmem:[#allocation117_spill] sm:$0xff]  ;;  %v4747_v39 = vld [vmem:[#allocation119_spill] sm:$0xff]  ;;  %v4749_v13 = vld [vmem:[#allocation118_spill] sm:$0xff] }
 0x1bf   :  { %4742 = vst [vmem:[#allocation44_spill] sm:$0xff] %v4038_v43  ;;  %4745 = vst [vmem:[#allocation46_spill] sm:$0xff] %v4043_v59  ;;  %v4048_v11 = vsel %vm1764_vm8, %v4747_v39, %v4746_v8  ;;  %v4750_v2 = vld [vmem:[#allocation120_spill] sm:$0xff]  ;;  %v4751_v9 = vld [vmem:[#allocation121_spill] sm:$0xff] }
 0x1c0   :  { %4748 = vst [vmem:[#allocation47_spill] sm:$0xff] %v4048_v11  ;;  %v4053_v50 = vsel %vm1764_vm8, %v4750_v2, %v4749_v13  ;;  %v4752_v33 = vld [vmem:[#allocation123_spill] sm:$0xff]  ;;  %v4753_v30 = vld [vmem:[#allocation122_spill] sm:$0xff]  ;;  %v4754_v43 = vld [vmem:[#allocation124_spill] sm:$0xff] }
 0x1c1   :  { %v4058_v46 = vsel %vm1764_vm8, %v4752_v33, %v4751_v9  ;;  %v4063_v57 = vsel %vm1764_vm8, %v4754_v43, %v4753_v30  ;;  %v4755_v15 = vld [vmem:[#allocation125_spill] sm:$0xff]  ;;  %v4756_v59 = vld [vmem:[#allocation127_spill] sm:$0xff]  ;;  %v4757_v8 = vld [vmem:[#allocation126_spill] sm:$0xff]  ;;  %v4078_v33 = vsel %vm1764_vm8, %v3481_v19, %v3477_v41  ;;  %v4083_v43 = vsel %vm1764_vm8, %v3483_v61, %v3479_v54 }
 0x1c2   :  { %v4068_v39 = vsel %vm1764_vm8, %v4756_v59, %v4755_v15  ;;  %v4758_v11 = vld [vmem:[#allocation128_spill] sm:$0xff]  ;;  %v4088_v59 = vsel %vm1764_vm8, %v3499_v48, %v3485_v3  ;;  %v4760_v13 = vld [vmem:[#allocation129_spill] sm:$0xff]  ;;  %v4761_v9 = vld [vmem:[#allocation131_spill] sm:$0xff] }
 0x1c3   :  { %v4073_v2 = vsel %vm1764_vm8, %v4758_v11, %v4757_v8  ;;  %4759 = vst [vmem:[#allocation50_spill] sm:$0xff] %v4088_v59  ;;  %v4093_v11 = vsel %vm1764_vm8, %v3501_v49, %v3497_v53  ;;  %v4098_v41 = vsel %vm1764_vm8, %v4761_v9, %v4760_v13  ;;  %v4763_v19 = vld [vmem:[#allocation130_spill] sm:$0xff]  ;;  %v4764_v30 = vld [vmem:[#allocation132_spill] sm:$0xff]  ;;  %v4766_v61 = vld [vmem:[#allocation133_spill] sm:$0xff] }
 0x1c4   :  { %4762 = vst [vmem:[#allocation48_spill] sm:$0xff] %v4098_v41  ;;  %v4103_v54 = vsel %vm1764_vm8, %v4764_v30, %v4763_v19  ;;  %v4767_v15 = vld [vmem:[#allocation135_spill] sm:$0xff]  ;;  %v4769_v48 = vld [vmem:[#allocation134_spill] sm:$0xff]  ;;  %v4770_v8 = vld [vmem:[#allocation137_spill] sm:$0xff] }
 0x1c5   :  { %4765 = vst [vmem:[#allocation51_spill] sm:$0xff] %v4103_v54  ;;  %v4108_v3 = vsel %vm1764_vm8, %v4767_v15, %v4766_v61  ;;  %v4113_v53 = vsel %vm1764_vm8, %v4770_v8, %v4769_v48  ;;  %v4772_v49 = vld [vmem:[#allocation136_spill] sm:$0xff]  ;;  %v4773_v59 = vld [vmem:[#allocation139_spill] sm:$0xff]  ;;  %v4775_v9 = vld [vmem:[#allocation138_spill] sm:$0xff] }
 0x1c6   :  { %4768 = vst [vmem:[#allocation49_spill] sm:$0xff] %v4108_v3  ;;  %4771 = vst [vmem:[#allocation53_spill] sm:$0xff] %v4113_v53  ;;  %v4118_v13 = vsel %vm1764_vm8, %v4773_v59, %v4772_v49  ;;  %v4776_v41 = vld [vmem:[#allocation140_spill] sm:$0xff]  ;;  %v4777_v30 = vld [vmem:[#allocation141_spill] sm:$0xff] }
 0x1c7   :  { %4774 = vst [vmem:[#allocation52_spill] sm:$0xff] %v4118_v13  ;;  %v4123_v19 = vsel %vm1764_vm8, %v4776_v41, %v4775_v9  ;;  %v4778_v54 = vld [vmem:[#allocation143_spill] sm:$0xff]  ;;  %v4779_v15 = vld [vmem:[#allocation142_spill] sm:$0xff]  ;;  %v4780_v3 = vld [vmem:[#allocation144_spill] sm:$0xff] }
 0x1c8   :  { %v4128_v61 = vsel %vm1764_vm8, %v4778_v54, %v4777_v30  ;;  %v4133_v48 = vsel %vm1764_vm8, %v4780_v3, %v4779_v15  ;;  %v4781_v8 = vld [vmem:[#allocation145_spill] sm:$0xff]  ;;  %v4782_v53 = vld [vmem:[#allocation147_spill] sm:$0xff]  ;;  %v4783_v49 = vld [vmem:[#allocation146_spill] sm:$0xff]  ;;  %v4148_v54 = vsel %vm1764_vm8, %v3625_v21, %v3621_v20  ;;  %v4153_v3 = vsel %vm1764_vm8, %v3627_v0, %v3623_v12 }
 0x1c9   :  { %v4138_v59 = vsel %vm1764_vm8, %v4782_v53, %v4781_v8  ;;  %v4784_v13 = vld [vmem:[#allocation148_spill] sm:$0xff]  ;;  %v4158_v53 = vsel %vm1764_vm8, %v3643_v37, %v3629_v36  ;;  %v4785_v9 = vld [vmem:[#allocation149_spill] sm:$0xff]  ;;  %v4786_v30 = vld [vmem:[#allocation151_spill] sm:$0xff] }
 0x1ca   :  { %v4143_v41 = vsel %vm1764_vm8, %v4784_v13, %v4783_v49  ;;  %v4163_v13 = vsel %vm1764_vm8, %v3645_v45, %v3641_v63  ;;  %v4168_v20 = vsel %vm1764_vm8, %v4786_v30, %v4785_v9  ;;  %v4787_v21 = vld [vmem:[#allocation150_spill] sm:$0xff]  ;;  %v4788_v15 = vld [vmem:[#allocation152_spill] sm:$0xff]  ;;  %v4789_v0 = vld [vmem:[#allocation153_spill] sm:$0xff]  ;;  %v2055_v30 = vcombine.low %v3718_v14, %v3723_v60 }
 0x1cb   :  { %v4173_v12 = vsel %vm1764_vm8, %v4788_v15, %v4787_v21  ;;  %v4178_v36 = vsel %vm1764_vm8, %v3685_v55, %v4789_v0  ;;  %v4790_v37 = vld [vmem:[#allocation154_spill] sm:$0xff]  ;;  %v4791_v45 = vld [vmem:[#allocation155_spill] sm:$0xff]  ;;  %v4792_v49 = vld [vmem:[#allocation156_spill] sm:$0xff]  ;;  %v4198_v55 = vsel %vm1764_vm8, %v3713_v40, %v3707_v18  ;;  %v2056_v18 = vcombine.low %v3730_v22, %v3735_v16 }
 0x1cc   :  { %v4183_v63 = vsel %vm1764_vm8, %v3691_v38, %v4790_v37  ;;  %v4188_v8 = vsel %vm1764_vm8, %v3697_v24, %v4791_v45  ;;  %v4193_v9 = vsel %vm1764_vm8, %v4792_v49, %v3693_v1  ;;  %v4203_v38 = vsel %vm1764_vm8, %v3725_v7, %v3709_v5  ;;  %v4797_v15 = vld [vmem:[#allocation10_spill] sm:$0xff]  ;;  %v4798_v0 = vld [vmem:[#allocation8_spill] sm:$0xff]  ;;  %v4800_v37 = vld [vmem:[#allocation11_spill] sm:$0xff] }
 0x1cd   :  { %v4208_v24 = vsel %vm1764_vm8, %v3766_v28, %v3742_v42  ;;  %v4213_v1 = vsel %vm1764_vm8, %v3818_v25, %v3754_v35  ;;  %v2558_v40 = vmov 1983009808   ;;  %v2060_v5 = vlaneseq  ;;  %v4802_v45 = vld [vmem:[#allocation12_spill] sm:$0xff]  ;;  %v4804_v49 = vld [vmem:[#allocation15_spill] sm:$0xff] }
 0x1ce   :  { %v2058_v21 = vunpack.c.l.s4 %v2558_v40  ;;  %v2072_v7 = vcombine.low %v3740_v17, %v3747_v34  ;;  %v2073_v42 = vcombine.low %v3752_v56, %v3759_v27  ;;  %v2089_v28 = vcombine.low %v3764_v31, %v3771_v4  ;;  %v4793_v34 = vld [vmem:[#allocation6_spill] sm:$0xff]  ;;  %v4794_v56 = vld [vmem:[#allocation5_spill] sm:$0xff]  ;;  %v4796_v4 = vld [vmem:[#allocation7_spill] sm:$0xff] }
 0x1cf   :  { %v2090_v35 = vcombine.low %v3776_v51, %v3781_v52  ;;  %v2061_v14 = vshrl.u32 %v2060_v5, 7  ;;  %v2106_v60 = vcombine.low %v3786_v58, %v3791_v32  ;;  %v2107_v22 = vcombine.low %v3796_v6, %v3801_v26  ;;  %v4795_v31 = vld [vmem:[#allocation9_spill] sm:$0xff]  ;;  %v4801_v26 = vld [vmem:[#allocation14_spill] sm:$0xff]  ;;  %v4806_v40 = vld [vmem:[#allocation16_spill] sm:$0xff] }
 0x1d0   :  { %v2059_v25 = vunpack.c.0.s8 %v2058_v21  ;;  %v2123_v16 = vcombine.low %v3806_v10, %v3811_v29  ;;  %v2124_v17 = vcombine.low %v3816_v23, %v3823_v44  ;;  %v2140_v27 = vcombine.low %v4794_v56, %v4793_v34  ;;  %v4799_v32 = vld [vmem:[#allocation13_spill] sm:$0xff]  ;;  %v4805_v44 = vld [vmem:[#allocation18_spill] sm:$0xff]  ;;  %v4808_v34 = vld [vmem:[#allocation19_spill] sm:$0xff] }
 0x1d1   :  { %v2141_v51 = vcombine.low %v4796_v4, %v4795_v31  ;;  %v2157_v58 = vcombine.low %v4798_v0, %v4797_v15  ;;  %v2158_v6 = vcombine.low %v4800_v37, %v4799_v32  ;;  %v2174_v10 = vcombine.low %v4802_v45, %v4801_v26  ;;  %v4803_v29 = vld [vmem:[#allocation17_spill] sm:$0xff] }
 0x1d2   :  { %v4239_v52 = vsub.s32 %v2059_v25, %v2061_v14  ;;  %v2175_v23 = vcombine.low %v4804_v49, %v4803_v29  ;;  %v2191_v21 = vcombine.low %v4806_v40, %v4805_v44  ;;  %v4807_v5 = vld [vmem:[#allocation21_spill] sm:$0xff]  ;;  %v4809_v25 = vld [vmem:[#allocation22_spill] sm:$0xff]  ;;  %v4810_v14 = vld [vmem:[#allocation20_spill] sm:$0xff] }
 0x1d3   :  { %v2192_v56 = vcombine.low %v4808_v34, %v4807_v5  ;;  %v2208_v31 = vcombine.low %v4810_v14, %v4809_v25  ;;  %v4813_v14 = vld [vmem:[#allocation26_spill] sm:$0xff] }
 0x1d4   :  { %v2063_v4 = vrot.slane %v2055_v30, %v4239_v52  ;;  %v2070_v15 = vrot.slane %v2056_v18, %v4239_v52  ;;  %v2080_v0 = vrot.slane %v2072_v7, %v4239_v52  ;;  %v2087_v32 = vrot.slane %v2073_v42, %v4239_v52 }
 0x1d5   :  { %v2097_v37 = vrot.slane %v2089_v28, %v4239_v52  ;;  %v2104_v26 = vrot.slane %v2090_v35, %v4239_v52  ;;  %v2114_v45 = vrot.slane %v2106_v60, %v4239_v52  ;;  %v2121_v29 = vrot.slane %v2107_v22, %v4239_v52 }
 0x1d6   :  { %v2071_v49 = vcombine.low %v2063_v4, %v2070_v15  ;;  %v2088_v44 = vcombine.low %v2080_v0, %v2087_v32  ;;  %v2131_v40 = vrot.slane %v2123_v16, %v4239_v52  ;;  %v2138_v30 = vrot.slane %v2124_v17, %v4239_v52  ;;  %v4815_v15 = vld [vmem:[#allocation29_spill] sm:$0xff]  ;;  %v4816_v0 = vld [vmem:[#allocation27_spill] sm:$0xff] }
 0x1d7   :  { %v2105_v5 = vcombine.low %v2097_v37, %v2104_v26  ;;  %v2122_v18 = vcombine.low %v2114_v45, %v2121_v29  ;;  %v2148_v7 = vrot.slane %v2140_v27, %v4239_v52  ;;  %v2155_v42 = vrot.slane %v2141_v51, %v4239_v52  ;;  %v4817_v37 = vld [vmem:[#allocation30_spill] sm:$0xff]  ;;  %v4818_v26 = vld [vmem:[#allocation28_spill] sm:$0xff] }
 0x1d8   :  { %v2139_v34 = vcombine.low %v2131_v40, %v2138_v30  ;;  %v2165_v28 = vrot.slane %v2157_v58, %v4239_v52  ;;  %v2172_v35 = vrot.slane %v2158_v6, %v4239_v52  ;;  %v2182_v60 = vrot.slane %v2174_v10, %v4239_v52  ;;  %2496 = vst [vmem:[%s4439_s1] sm:$0xff] %v2071_v49  ;;  %v4811_v58 = vld [vmem:[#allocation25_spill] sm:$0xff]  ;;  %v4812_v6 = vld [vmem:[#allocation23_spill] sm:$0xff]  ;;  %v4821_v30 = vld [vmem:[#allocation34_spill] sm:$0xff] }
 0x1d9   :  { %2497 = vst [vmem:[%s4439_s1 + $0x8] sm:$0xff] %v2088_v44  ;;  %v2156_v22 = vcombine.low %v2148_v7, %v2155_v42  ;;  %v2189_v16 = vrot.slane %v2175_v23, %v4239_v52  ;;  %v2199_v17 = vrot.slane %v2191_v21, %v4239_v52  ;;  %v2206_v27 = vrot.slane %v2192_v56, %v4239_v52  ;;  %v4814_v23 = vld [vmem:[#allocation24_spill] sm:$0xff]  ;;  %v4819_v49 = vld [vmem:[#allocation33_spill] sm:$0xff]  ;;  %v4820_v44 = vld [vmem:[#allocation31_spill] sm:$0xff] }
 0x1da   :  { %2498 = vst [vmem:[%s4439_s1 + $0x10] sm:$0xff] %v2105_v5  ;;  %2499 = vst [vmem:[%s4439_s1 + $0x18] sm:$0xff] %v2122_v18  ;;  %v2173_v51 = vcombine.low %v2165_v28, %v2172_v35  ;;  %v2209_v10 = vcombine.low %v4812_v6, %v4811_v58  ;;  %v2216_v25 = vrot.slane %v2208_v31, %v4239_v52  ;;  %v4822_v5 = vld [vmem:[#allocation32_spill] sm:$0xff]  ;;  %v4824_v35 = vld [vmem:[#allocation37_spill] sm:$0xff] }
 0x1db   :  { %v2225_v4 = vcombine.low %v4814_v23, %v4813_v14  ;;  %2500 = vst [vmem:[%s4439_s1 + $0x20] sm:$0xff] %v2139_v34  ;;  %v2190_v21 = vcombine.low %v2182_v60, %v2189_v16  ;;  %v2207_v56 = vcombine.low %v2199_v17, %v2206_v27  ;;  %v2226_v32 = vcombine.low %v4816_v0, %v4815_v15  ;;  %v4823_v34 = vld [vmem:[#allocation35_spill] sm:$0xff]  ;;  %v4825_v27 = vld [vmem:[#allocation38_spill] sm:$0xff]  ;;  %v4831_v0 = vld [vmem:[#allocation45_spill] sm:$0xff] }
 0x1dc   :  { %v2242_v45 = vcombine.low %v4818_v26, %v4817_v37  ;;  %2501 = vst [vmem:[%s4439_s1 + $0x28] sm:$0xff] %v2156_v22  ;;  %v2223_v31 = vrot.slane %v2209_v10, %v4239_v52  ;;  %v2243_v40 = vcombine.low %v4820_v44, %v4819_v49  ;;  %v2259_v18 = vcombine.low %v4822_v5, %v4821_v30  ;;  %v4827_v10 = vld [vmem:[#allocation41_spill] sm:$0xff]  ;;  %v4828_v14 = vld [vmem:[#allocation39_spill] sm:$0xff] }
 0x1dd   :  { %v2233_v29 = vrot.slane %v2225_v4, %v4239_v52  ;;  %2502 = vst [vmem:[%s4439_s1 + $0x30] sm:$0xff] %v2173_v51  ;;  %v2240_v7 = vrot.slane %v2226_v32, %v4239_v52  ;;  %v2260_v28 = vcombine.low %v4823_v34, %v3983_v62  ;;  %v2276_v60 = vcombine.low %v4824_v35, %v3993_v47  ;;  %v4826_v51 = vld [vmem:[#allocation36_spill] sm:$0xff]  ;;  %v4832_v32 = vld [vmem:[#allocation43_spill] sm:$0xff] }
 0x1de   :  { %v2250_v42 = vrot.slane %v2242_v45, %v4239_v52  ;;  %2503 = vst [vmem:[%s4439_s1 + $0x38] sm:$0xff] %v2190_v21  ;;  %2504 = vst [vmem:[%s4439_s1 + $0x40] sm:$0xff] %v2207_v56  ;;  %v2224_v22 = vcombine.low %v2216_v25, %v2223_v31  ;;  %v2257_v16 = vrot.slane %v2243_v40, %v4239_v52  ;;  %v4829_v56 = vld [vmem:[#allocation42_spill] sm:$0xff]  ;;  %v4830_v25 = vld [vmem:[#allocation40_spill] sm:$0xff] }
 0x1df   :  { %v2267_v17 = vrot.slane %v2259_v18, %v4239_v52  ;;  %v2277_v58 = vcombine.low %v4826_v51, %v4825_v27  ;;  %v2241_v62 = vcombine.low %v2233_v29, %v2240_v7  ;;  %v2274_v6 = vrot.slane %v2260_v28, %v4239_v52  ;;  %v4833_v31 = vld [vmem:[#allocation46_spill] sm:$0xff]  ;;  %v4834_v29 = vld [vmem:[#allocation44_spill] sm:$0xff]  ;;  %v4835_v44 = vld [vmem:[#allocation47_spill] sm:$0xff] }
 0x1e0   :  { %v2284_v47 = vrot.slane %v2276_v60, %v4239_v52  ;;  %v2293_v23 = vcombine.low %v4828_v14, %v4827_v10  ;;  %v2258_v4 = vcombine.low %v2250_v42, %v2257_v16  ;;  %v2294_v15 = vcombine.low %v4830_v25, %v4829_v56  ;;  %2505 = vst [vmem:[%s4439_s1 + $0x48] sm:$0xff] %v2224_v22  ;;  %v4837_v22 = vld [vmem:[#allocation51_spill] sm:$0xff]  ;;  %v4838_v16 = vld [vmem:[#allocation48_spill] sm:$0xff]  ;;  %v4840_v27 = vld [vmem:[#allocation49_spill] sm:$0xff] }
 0x1e1   :  { %v2291_v21 = vrot.slane %v2277_v58, %v4239_v52  ;;  %v2310_v37 = vcombine.low %v4832_v32, %v4831_v0  ;;  %v2275_v26 = vcombine.low %v2267_v17, %v2274_v6  ;;  %v2311_v49 = vcombine.low %v4834_v29, %v4833_v31  ;;  %2506 = vst [vmem:[%s4439_s1 + $0x50] sm:$0xff] %v2241_v62  ;;  %v4841_v6 = vld [vmem:[#allocation52_spill] sm:$0xff] }
 0x1e2   :  { %v2301_v45 = vrot.slane %v2293_v23, %v4239_v52  ;;  %v2327_v40 = vcombine.low %v4835_v44, %v4053_v50  ;;  %v2308_v5 = vrot.slane %v2294_v15, %v4239_v52  ;;  %v2328_v7 = vcombine.low %v4058_v46, %v4063_v57  ;;  %2507 = vst [vmem:[%s4439_s1 + $0x58] sm:$0xff] %v2258_v4  ;;  %v4836_v57 = vld [vmem:[#allocation50_spill] sm:$0xff] }
 0x1e3   :  { %v2292_v30 = vcombine.low %v2284_v47, %v2291_v21  ;;  %v2318_v18 = vrot.slane %v2310_v37, %v4239_v52  ;;  %v2325_v42 = vrot.slane %v2311_v49, %v4239_v52  ;;  %v2344_v34 = vcombine.low %v4068_v39, %v4073_v2  ;;  %2508 = vst [vmem:[%s4439_s1 + $0x60] sm:$0xff] %v2275_v26 }
 0x1e4   :  { %v2335_v50 = vrot.slane %v2327_v40, %v4239_v52  ;;  %v2345_v28 = vcombine.low %v4078_v33, %v4083_v43  ;;  %v2309_v35 = vcombine.low %v2301_v45, %v2308_v5  ;;  %v2342_v46 = vrot.slane %v2328_v7, %v4239_v52  ;;  %v4839_v43 = vld [vmem:[#allocation53_spill] sm:$0xff] }
 0x1e5   :  { %v2361_v60 = vcombine.low %v4836_v57, %v4093_v11  ;;  %v2362_v17 = vcombine.low %v4838_v16, %v4837_v22  ;;  %2509 = vst [vmem:[%s4439_s1 + $0x68] sm:$0xff] %v2292_v30  ;;  %v2326_v39 = vcombine.low %v2318_v18, %v2325_v42  ;;  %v2352_v2 = vrot.slane %v2344_v34, %v4239_v52 }
 0x1e6   :  { %v2359_v33 = vrot.slane %v2345_v28, %v4239_v52  ;;  %v2378_v51 = vcombine.low %v4840_v27, %v4839_v43  ;;  %v2343_v58 = vcombine.low %v2335_v50, %v2342_v46  ;;  %v2379_v47 = vcombine.low %v4841_v6, %v4123_v19  ;;  %2510 = vst [vmem:[%s4439_s1 + $0x70] sm:$0xff] %v2309_v35 }
 0x1e7   :  { %v2369_v62 = vrot.slane %v2361_v60, %v4239_v52  ;;  %v2376_v11 = vrot.slane %v2362_v17, %v4239_v52  ;;  %v2395_v23 = vcombine.low %v4128_v61, %v4133_v48  ;;  %v2396_v4 = vcombine.low %v4138_v59, %v4143_v41  ;;  %2511 = vst [vmem:[%s4439_s1 + $0x78] sm:$0xff] %v2326_v39 }
 0x1e8   :  { %v2360_v10 = vcombine.low %v2352_v2, %v2359_v33  ;;  %v2386_v14 = vrot.slane %v2378_v51, %v4239_v52  ;;  %v2393_v19 = vrot.slane %v2379_v47, %v4239_v52  ;;  %v2412_v56 = vcombine.low %v4148_v54, %v4153_v3  ;;  %2512 = vst [vmem:[%s4439_s1 + $0x80] sm:$0xff] %v2343_v58 }
 0x1e9   :  { %v2377_v21 = vcombine.low %v2369_v62, %v2376_v11  ;;  %v2413_v25 = vcombine.low %v4158_v53, %v4163_v13  ;;  %v2403_v61 = vrot.slane %v2395_v23, %v4239_v52  ;;  %v2410_v48 = vrot.slane %v2396_v4, %v4239_v52 }
 0x1ea   :  { %v2429_v59 = vcombine.low %v4168_v20, %v4173_v12  ;;  %v2430_v41 = vcombine.low %v4178_v36, %v4183_v63  ;;  %2513 = vst [vmem:[%s4439_s1 + $0x88] sm:$0xff] %v2360_v10  ;;  %v2394_v54 = vcombine.low %v2386_v14, %v2393_v19  ;;  %v2420_v3 = vrot.slane %v2412_v56, %v4239_v52 }
 0x1eb   :  { %v2427_v53 = vrot.slane %v2413_v25, %v4239_v52  ;;  %v2446_v13 = vcombine.low %v4188_v8, %v4193_v9  ;;  %2514 = vst [vmem:[%s4439_s1 + $0x90] sm:$0xff] %v2377_v21  ;;  %v2411_v20 = vcombine.low %v2403_v61, %v2410_v48  ;;  %v2447_v63 = vcombine.low %v4198_v55, %v4203_v38 }
 0x1ec   :  { %v2437_v12 = vrot.slane %v2429_v59, %v4239_v52  ;;  %v2444_v36 = vrot.slane %v2430_v41, %v4239_v52  ;;  %v2463_v32 = vcombine.low %v4208_v24, %v4213_v1  ;;  %2515 = vst [vmem:[%s4439_s1 + $0x98] sm:$0xff] %v2394_v54 }
 0x1ed   :  { %v2428_v15 = vcombine.low %v2420_v3, %v2427_v53  ;;  %v2454_v0 = vrot.slane %v2446_v13, %v4239_v52  ;;  %v2461_v9 = vrot.slane %v2447_v63, %v4239_v52  ;;  %2516 = vst [vmem:[%s4439_s1 + $0xa0] sm:$0xff] %v2411_v20 }
 0x1ee   :  { %v2445_v8 = vcombine.low %v2437_v12, %v2444_v36  ;;  %2526 = vst.sshfl [vmem:[%s4439_s1 + $0xc0] sm:$0x33 pattern:$0x76325410] %v2463_v32 }
 0x1ef   :  { %2517 = vst [vmem:[%s4439_s1 + $0xa8] sm:$0xff] %v2428_v15  ;;  %v2462_v55 = vcombine.low %v2454_v0, %v2461_v9 }
 0x1f0   :  { %2518 = vst [vmem:[%s4439_s1 + $0xb0] sm:$0xff] %v2445_v8 }
 0x1f1   :  { %2519 = vst [vmem:[%s4439_s1 + $0xb8] sm:$0xff] %v2462_v55 }
 0x1f2   :  { %2525 = vsyncpa [#allocation3], 1 }

// kernel: roi_pre_forward.4
= control target key start
LH: loop header
LB: loop body
LE: loop exit
PB: predicated region body
PF: predicated region fallthrough
CT: control target
= control target key end

     0   :  { %s6092_s0 = inlined_call_operand.vmem [shape: f32[2,12544], index: 0, kind: input, shape index: {}]   ;;  %s6093_s1 = inlined_call_operand.hbm [shape: bf16[12544,1024], index: 1, kind: input, shape index: {}]   ;;  %s6094_s2 = inlined_call_operand.hbm [shape: f32[1,1024], index: 2, kind: input, shape index: {}]   ;;  %s6095_s3 = inlined_call_operand.vmem [shape: f32[2,1024], index: 3, kind: output, shape index: {}]  }
   0x1   :  { %6101 = sst [smem:[#allocation9_spill]] %s6093_s1 }
   0x2   :  { %8 = vsyncpa [#allocation3], 0 }
   0x3   :  { %10 = vsyncpa [#allocation3 + $0x1], 0 }
   0x4   :  { %11 = vsyncpa [#allocation5], 0 }
   0x5   :  { %13 = vsyncpa [#allocation5 + $0x1], 0  ;;  %s5302_s12 = smov 0   ;;  %s5304_s13 = smov 0  }
   0x6   :  { %s5306_s14 = smov 0   ;;  %s5308_s15 = smov 0  }
   0x7   :  { %s5310_s16 = smov 0   ;;  %s5312_s17 = smov 0  }
   0x8   :  { %s5314_s18 = smov 0   ;;  %s5316_s19 = smov 0  }
   0x9   :  { %s5318_s20 = smov 0   ;;  %s5320_s21 = smov 0  }
   0xa   :  { %s5322_s22 = smov 0  }
   0xb LB: > { %s28_s23 = sadd.s32 1, %s5265_s20  ;;  %p73_p1 = scmp.ne.s32.totalorder %s5253_s17, %s5249_s16  ;;  %s5273_s22 = sphi %s5322_s22, %s19_s22   ;;  %s5269_s21 = sphi %s5320_s21, %s6129_s21   ;;  %s5265_s20 = sphi %s5318_s20, %s6128_s20   ;;  %s5261_s19 = sphi %s5316_s19, %s6127_s19   ;;  %s5257_s18 = sphi %s5314_s18, %s6126_s18   ;;  %s5253_s17 = sphi %s5312_s17, %s6125_s17   ;;  %s5249_s16 = sphi %s5310_s16, %s6124_s16   ;;  %s5245_s15 = sphi %s5308_s15, %s6123_s15   ;;  %s5241_s14 = sphi %s5306_s14, %s6122_s14   ;;  %s5237_s13 = sphi %s5304_s13, %s6121_s13   ;;  %s5233_s12 = sphi %s5302_s12, %s6120_s12  }
   0xc   : > { %p5359_p0 = scmp.ge.s32.totalorder %s28_s23, 7  ;;  %p6097_p2 = scmp.eq.s32.totalorder %s5273_s22, 0 }
   0xd   : > { %p6096_p4 = scmp.lt.s32.totalorder %s5273_s22, 14  ;;  %s164_s27 = sand.u32 1, %s5253_s17  }
   0xe   : > { %s6131_s23 = smov (%p5359_p0, %s28_s23), 0  ;;  %p75_p3 = por %p6097_p2, %p73_p1 }
   0xf   : > { %s4337_s28 = smul.u32 3584, %s164_s27  ;;  %s3823_s29 = sshll.u32 %s5269_s21, 2 }
  0x10   : > { %s4287_s30 = smul.u32 1792, %s5265_s20  ;;  %p5380_p5 = pnand %p6096_p4, %p75_p3 }
  0x11   : > { %s168_s6 = scalar_lea.vmem [#allocation2], %s4337_s28  ;;  %s6104_s1 = sld [smem:[#allocation9_spill]] }
  0x12   : > { %s175_s5 = sadd.s32 %s4287_s30, %s3823_s29  ;;  %s178_s7 = sshll.u32 %s168_s6, 4  ;;  %s5384_s7 = int_to_ptr.vmem [resolvable:$true] %s178_s7 }
  0x13   : > { %s3825_s8 = sshll.u32 %s175_s5, 6  ;;  %s5392_s24 = scalar_lea.sflag [#allocation3], %s164_s27 }
  0x14   : > { %p5121_p8 = pneg %p5380_p5 }
  0x17   : > { %s5389_s11 = scalar_lea.hbm %s6104_s1, %s3825_s8  ;;  %s5124_s30 = scalar_lea.hbm %s6104_s1, 802816 }
  0x18   : > { %s5119_s26 = scalar_lea.hbm %s5389_s11, 57344  ;;  %p5125_p11 = scmp.lt.u32.totalorder %s5389_s11, %s6104_s1 }
  0x19   : > { %p5120_p7 = scmp.ne.s32.totalorder %s5389_s11, %s5119_s26  ;;  %p5126_p12 = scmp.lt.u32.totalorder %s5124_s30, %s5119_s26 }
  0x1a   : > { %p5128_p1 = scmp.lt.u32.totalorder %s5119_s26, %s5389_s11 }
  0x1b   : > { %p5122_p9 = pnand %p5121_p8, %p5120_p7  ;;  %p5127_p13 = por %p5126_p12, %p5125_p11 }
  0x1d   : > { %p5123_p10 = pneg %p5122_p9  ;;  %p5129_p3 = por %p5128_p1, %p5127_p13 }
  0x1f   : > { %p5130_p4 = pnand %p5129_p3, %p5123_p10 }
  0x21   : > { %5133 = shalt.err (!%p5130_p4)
}
  0x22   : > { %s5134_s27 = scalar_lea.vmem %s5384_s7, 57344  ;;  %s5275_s8 = smov [#allocation2]  }
  0x23   : > { %p5135_p7 = scmp.ne.s32.totalorder %s5384_s7, %s5134_s27  ;;  %s5139_s9 = sshll.u32 %s5275_s8, 4  ;;  %s5140_s9 = int_to_ptr.vmem [resolvable:$false] %s5139_s9 }
  0x24   : > { %s5141_s10 = scalar_lea.vmem %s5140_s9, 114688  ;;  %p5142_p6 = scmp.lt.s32.totalorder %s5384_s7, %s5140_s9 }
  0x25   : > { %p5137_p9 = pnand %p5135_p7, %p5121_p8  ;;  %p5143_p11 = scmp.lt.s32.totalorder %s5141_s10, %s5134_s27 }
  0x27   : > { %p5138_p2 = pneg %p5137_p9  ;;  %p5144_p12 = por %p5143_p11, %p5142_p6 }
  0x29   : > { %p5145_p13 = pnand %p5144_p12, %p5138_p2 }
  0x2b   : > { %5148 = shalt.err (!%p5145_p13)
}
  0x2c   : > { %s5276_s26 = smov 512   ;;  %s5277_s28 = smov 256  }
  0x2d   : > { %s5278_s29 = smov 16   ;;  %p205_p2 = scmp.lt.s32.totalorder %s5273_s22, 15 }
  0x2e   : > { %4346 = dma.hbm_to_vmem [thread:$0]  (!%p5380_p5), %s5389_s11, 57344, %s5384_s7, %s5392_s24, %s5276_s26, %s5277_s28, %s5278_s29  }
  0x2f   : > { %p6105_p4 = scmp.ge.s32.totalorder %s5273_s22, 1  ;;  %s3819_s5 = sadd.s32 4294967295, %s5273_s22  }
  0x30   : > { %s31_s6 = sadd.s32 1, %s5269_s21  ;;  %p79_p8 = scmp.ne.s32.totalorder %s5249_s16, %s5245_s15 }
  0x31   : > { %p5423_p6 = pnand %p6105_p4, %p205_p2  ;;  %s6133_s6 = smov (!%p5359_p0, %s31_s6), %s5269_s21 }
  0x32   : > { %p5434_p10 = scmp.eq.s32.totalorder %s3819_s5, 0  ;;  %p33_p5 = scmp.ge.s32.totalorder %s6133_s6, 2 }
  0x33   : > { %s92_s24 = sadd.s32 1, %s5241_s14  ;;  %p99_p3 = scmp.ne.s32.totalorder %s5241_s14, %s5237_s13 }
  0x34   : > { %p5441_p1 = por %p5434_p10, %p79_p8  ;;  %s6135_s6 = smov (%p33_p5, %s6133_s6), 0 }
  0x35   : > { %6109 = sst [smem:[#allocation8_spill]] %s6135_s6  ;;  %p6110_p0 = scmp.eq.s32.totalorder %s5273_s22, 0 }
  0x36   : > { %s6108_s7 = scalar_select %p5441_p1, 1, 0 }
  0x37   : > { %p5451_p7 = por %p99_p3, %p6110_p0  ;;  %p105_p9 = scmp.ne.s32.totalorder %s5237_s13, %s5233_s12 }
  0x38   : > { %s62_s25 = ssub.s32 %s5269_s21, %s6135_s6  ;;  %s188_s11 = sand.u32 1, %s5241_s14  }
  0x39   : > { %s6112_s27 = ssub.s32 %s5265_s20, %s6131_s23  ;;  %p90_p11 = scmp.eq.s32.totalorder %s62_s25, 0 }
  0x3a   : > { %s63_s8 = sor.u32 %s62_s25, %s6112_s27  ;;  %p5465_p13 = por %p105_p9, %p5434_p10 }
  0x3b   : > { %p64_p12 = scmp.eq.s32.totalorder %s63_s8, 0  ;;  %s6114_s26 = sadd.s32 1, %s5253_s17 }
  0x3c   : > { %s6113_s9 = scalar_select %p5465_p13, 1, 0 }
  0x3d   : > { %s5470_s10 = scalar_select %p90_p11, %s5241_s14, %s92_s24  }
  0x3e   : > { %s5475_s28 = scalar_select %p64_p12, %s5253_s17, %s6114_s26  }
  0x3f   : > { %s3826_s29 = sshll.u32 %s188_s11, 2  ;;  %s4288_s5 = sshll.u32 %s5269_s21, 6 }
  0x40   : > { %s5481_s6 = scalar_lea.hbm %s6094_s2, %s4288_s5  ;;  %s192_s4 = scalar_lea.vmem [#allocation4], %s3826_s29 }
  0x41   : > { %s200_s25 = sshll.u32 %s192_s4, 4  ;;  %p6115_p2 = scmp.lt.s32.totalorder %s5273_s22, 14  ;;  %s5483_s25 = int_to_ptr.vmem [resolvable:$true] %s200_s25 }
  0x42   : > { %s189_s27 = scalar_lea.sflag [#allocation5], %s188_s11  ;;  %s5149_s1 = scalar_lea.hbm %s5481_s6, 64 }
  0x43   : > { %p5489_p4 = pnand %p6115_p2, %p5451_p7  ;;  %p5150_p8 = scmp.ne.s32.totalorder %s5481_s6, %s5149_s1 }
  0x44   : > { %s5154_s15 = scalar_lea.hbm %s6094_s2, 128  ;;  %p5155_p0 = scmp.lt.u32.totalorder %s5481_s6, %s6094_s2 }
  0x45   : > { %p5151_p10 = pneg %p5489_p4  ;;  %p5156_p7 = scmp.lt.u32.totalorder %s5154_s15, %s5149_s1 }
  0x46   : > { %p5158_p11 = scmp.lt.u32.totalorder %s5149_s1, %s5481_s6 }
  0x47   : > { %p5152_p5 = pnand %p5151_p10, %p5150_p8  ;;  %p5157_p9 = por %p5156_p7, %p5155_p0 }
  0x49   : > { %p5153_p3 = pneg %p5152_p5  ;;  %p5159_p12 = por %p5158_p11, %p5157_p9 }
  0x4b   : > { %p5160_p2 = pnand %p5159_p12, %p5153_p3 }
  0x4d   : > { %5163 = shalt.err (!%p5160_p2)
}
  0x4e   : > { %s5164_s11 = scalar_lea.vmem %s5483_s25, 64  ;;  %s5279_s12 = smov [#allocation4]  }
  0x4f   : > { %p5165_p8 = scmp.ne.s32.totalorder %s5483_s25, %s5164_s11  ;;  %s5169_s4 = sshll.u32 %s5279_s12, 4  ;;  %s5170_s4 = int_to_ptr.vmem [resolvable:$false] %s5169_s4 }
  0x50   : > { %s5171_s8 = scalar_lea.vmem %s5170_s4, 128  ;;  %p5172_p1 = scmp.lt.s32.totalorder %s5483_s25, %s5170_s4 }
  0x51   : > { %p5167_p5 = pnand %p5165_p8, %p5151_p10  ;;  %p5173_p0 = scmp.lt.s32.totalorder %s5171_s8, %s5164_s11 }
  0x53   : > { %p5168_p13 = pneg %p5167_p5  ;;  %p5174_p7 = por %p5173_p0, %p5172_p1 }
  0x55   : > { %p5175_p9 = pnand %p5174_p7, %p5168_p13 }
  0x57   : > { %5178 = shalt.err (!%p5175_p9)
}
  0x58   : > { %4349 = dma.hbm_to_vmem [thread:$0]  (!%p5489_p4), %s5481_s6, 64, %s5483_s25, %s189_s27  }
  0x59   : > { %209 = sbr.rel (%p5423_p6) target bundleno = 800 (0x320), region = 32  ;;  %s211_s1 = sand.u32 (!%p5423_p6), 1, %s5249_s16  }
  0x5a   : > { %s4338_s26 = smul.u32 (!%p5423_p6), 3584, %s211_s1  ;;  %s212_s15 = scalar_lea.sflag (!%p5423_p6), [#allocation3], %s211_s1 }
  0x5b   : > { %p6117_p10 = scmp.ne.s32.totalorder (!%p5423_p6), %s6108_s7, 0 }
  0x5c   : > { %s5521_s29 = scalar_lea.vmem (!%p5423_p6), [#allocation2], %s4338_s26 }
  0x60   : > { %5224 = dma.done.wait (%p6117_p10), %s212_s15, 57344  }
  0x61   : > { %5226 = vsyncadd (%p6117_p10), %s212_s15, 4294909952  ;;  %s220_s24 = sand.u32 1, %s5237_s13   ;;  %p6118_p1 = scmp.ne.s32.totalorder %s6113_s9, 0 }
  0x62   : > { %s3830_s5 = sshll.u32 %s220_s24, 2  ;;  %s221_s6 = scalar_lea.sflag [#allocation5], %s220_s24 }
  0x63   : > { %s224_s25 = scalar_lea.vmem [#allocation4], %s3830_s5 }
  0x64   : > { %5228 = dma.done.wait (%p6118_p1), %s221_s6, 64  }
  0x65   : > { %5230 = vsyncadd (%p6118_p1), %s221_s6, 4294967232  ;;  %s257_s30 = smul.u32 14, %s5257_s18  ;;  %s3832_s27 = sshll.u32 %s5261_s19, 2 }
  0x66   : > { %p267_p6 = scmp.lt.s32.totalorder %s3832_s27, 7  ;;  %p3834_p4 = scmp.ne.s32.totalorder %s5257_s18, 0 }
  0x67   : > { %p258_p13 = scmp.lt.s32.totalorder %s257_s30, 97  ;;  %v278_v0 = vlaneseq (!%p3834_p4)  ;;  %v5280_v1 = vmov (!%p3834_p4), 1983009808   ;;  %v276_v4 = vld [vmem:[%s224_s25] sm:$0xf] (!%p3834_p4) }
  0x68   : > { %s6137_s27 = smov (!%p267_p6, %s3832_s27), 7  ;;  %275 = sbr.rel (%p3834_p4) target bundleno = 119 (0x77), region = 44 }
  0x69   : > { %s6139_s30 = smov (!%p258_p13, %s257_s30), 97  ;;  %s3833_s7 = sshll.u32 %s6137_s27, 1  ;;  %v297_v2 = vunpack.c.l.s4 (!%p3834_p4), %v5280_v1  ;;  %v279_v3 = vshrl.u32 (!%p3834_p4), %v278_v0, 7 }
  0x6a   : > { %s3831_s11 = sshll.u32 %s6139_s30, 1  ;;  %s5537_s8 = scalar_lea.vmem %s6095_s3, %s3833_s7 }
  0x6b   : > { %s5542_s9 = scalar_lea.vmem %s6092_s0, %s3831_s11  ;;  %v298_v5 = vunpack.c.0.s8 (!%p3834_p4), %v297_v2  ;;  %v280_v6 = vsub.s32 (!%p3834_p4), 0, %v279_v3  ;;  %v284_v7 = vsub.s32 (!%p3834_p4), 1, %v279_v3  ;;  %v288_v8 = vsub.s32 (!%p3834_p4), 2, %v279_v3 }
  0x6c   : > { %v292_v9 = vsub.s32 (!%p3834_p4), 3, %v279_v3 }
  0x6d   : > { %v301_v10 = vsub.s32 (!%p3834_p4), %v298_v5, %v279_v3  ;;  %v281_v11 = vrot.slane (!%p3834_p4), %v276_v4, %v280_v6  ;;  %v285_v12 = vrot.slane (!%p3834_p4), %v276_v4, %v284_v7  ;;  %v289_v13 = vrot.slane (!%p3834_p4), %v276_v4, %v288_v8 }
  0x6e   : > { %v293_v14 = vrot.slane (!%p3834_p4), %v276_v4, %v292_v9 }
  0x6f   : > { %v294_v15 = vcombine.low %v281_v11, %v285_v12 }
  0x70   : > { %v295_v16 = vcombine.low %v289_v13, %v293_v14 }
  0x71   : > { %v302_v17 = vrot.slane %v294_v15, %v301_v10 }
  0x72   : > { %v309_v18 = vrot.slane %v295_v16, %v301_v10 }
  0x74   : > { %v310_v19 = vcombine.low %v302_v17, %v309_v18 }
  0x76   : > { %312 = vst [vmem:[%s5537_s8] sm:$0xff] %v310_v19 }
  0x77 PF: > { %v4444_v20 = vld [vmem:[%s5521_s29 + $0x4] ss:$16 sps:$4 sm:$0xff]   ;;  %v4446_v21 = vld [vmem:[%s5521_s29 + $0xc] ss:$16 sps:$4 sm:$0xff]   ;;  %v4448_v22 = vld [vmem:[%s5521_s29] ss:$16 sps:$4 sm:$0xff]   ;;  %v326_v58 = vlaneseq }
  0x78   : > { %3097 = vmatprep.subr.bf16.mxu0 %v4444_v20  ;;  %v4449_v23 = vld [vmem:[%s5521_s29 + $0x8] ss:$16 sps:$4 sm:$0xff]   ;;  %3384 = vmatprep.subr.bf16.mxu1 %v4446_v21  ;;  %v4450_v24 = vld [vmem:[%s5521_s29 + $0x24] ss:$16 sps:$4 sm:$0xff]   ;;  %v4452_v25 = vld [vmem:[%s5521_s29 + $0x2c] ss:$16 sps:$4 sm:$0xff]  }
  0x79   : > { %3098 = vmatpush1.bf16.msra.mxu0 %v4448_v22  ;;  %3385 = vmatpush1.bf16.msra.mxu1 %v4449_v23  ;;  %v4454_v26 = vld [vmem:[%s5521_s29 + $0x20] ss:$16 sps:$4 sm:$0xff]   ;;  %v4455_v27 = vld [vmem:[%s5521_s29 + $0x28] ss:$16 sps:$4 sm:$0xff]   ;;  %v4456_v28 = vld [vmem:[%s5521_s29 + $0x44] ss:$16 sps:$4 sm:$0xff]  }
  0x7a   : > { %3099 = vmatprep.subr.bf16.mxu0 %v4450_v24  ;;  %3386 = vmatprep.subr.bf16.mxu1 %v4452_v25  ;;  %v4458_v29 = vld [vmem:[%s5521_s29 + $0x4c] ss:$16 sps:$4 sm:$0xff]   ;;  %v4460_v30 = vld [vmem:[%s5521_s29 + $0x40] ss:$16 sps:$4 sm:$0xff]   ;;  %v4461_v31 = vld [vmem:[%s5521_s29 + $0x48] ss:$16 sps:$4 sm:$0xff]  }
  0x7b   : > { %v4462_v32 = vld [vmem:[%s5521_s29 + $0x64] ss:$16 sps:$4 sm:$0xff]   ;;  %v4464_v33 = vld [vmem:[%s5521_s29 + $0x6c] ss:$16 sps:$4 sm:$0xff]   ;;  %v4466_v34 = vld [vmem:[%s5521_s29 + $0x60] ss:$16 sps:$4 sm:$0xff]  }
  0x7c   : > { %v4467_v35 = vld [vmem:[%s5521_s29 + $0x68] ss:$16 sps:$4 sm:$0xff]   ;;  %v4468_v36 = vld [vmem:[%s5521_s29 + $0x84] ss:$16 sps:$4 sm:$0xff]   ;;  %v4470_v37 = vld [vmem:[%s5521_s29 + $0x8c] ss:$16 sps:$4 sm:$0xff]  }
  0x7d   : > { %3100 = vmatpush1.bf16.msra.mxu0 %v4454_v26  ;;  %3387 = vmatpush1.bf16.msra.mxu1 %v4455_v27  ;;  %v4472_v38 = vld [vmem:[%s5521_s29 + $0x80] ss:$16 sps:$4 sm:$0xff]   ;;  %v4473_v39 = vld [vmem:[%s5521_s29 + $0x88] ss:$16 sps:$4 sm:$0xff]   ;;  %v4474_v40 = vld [vmem:[%s5521_s29 + $0xa4] ss:$16 sps:$4 sm:$0xff]  }
  0x7e   : > { %3101 = vmatprep.subr.bf16.mxu0 %v4456_v28  ;;  %3388 = vmatprep.subr.bf16.mxu1 %v4458_v29  ;;  %v4476_v41 = vld [vmem:[%s5521_s29 + $0xac] ss:$16 sps:$4 sm:$0xff]   ;;  %v4478_v42 = vld [vmem:[%s5521_s29 + $0xa0] ss:$16 sps:$4 sm:$0xff]   ;;  %v4479_v43 = vld [vmem:[%s5521_s29 + $0xa8] ss:$16 sps:$4 sm:$0xff]  }
  0x7f   : > { %v4480_v44 = vld [vmem:[%s5521_s29 + $0xc4] ss:$16 sps:$4 sm:$0xff]   ;;  %v4482_v45 = vld [vmem:[%s5521_s29 + $0xcc] ss:$16 sps:$4 sm:$0xff]   ;;  %v4484_v46 = vld [vmem:[%s5521_s29 + $0xc0] ss:$16 sps:$4 sm:$0xff]  }
  0x80   : > { %v4485_v47 = vld [vmem:[%s5521_s29 + $0xc8] ss:$16 sps:$4 sm:$0xff]   ;;  %v4486_v48 = vld [vmem:[%s5521_s29 + $0xe4] ss:$16 sps:$4 sm:$0xff]   ;;  %v4488_v49 = vld [vmem:[%s5521_s29 + $0xec] ss:$16 sps:$4 sm:$0xff]  }
  0x81   : > { %3102 = vmatpush1.bf16.msra.mxu0 %v4460_v30  ;;  %3389 = vmatpush1.bf16.msra.mxu1 %v4461_v31  ;;  %v4490_v50 = vld [vmem:[%s5521_s29 + $0xe0] ss:$16 sps:$4 sm:$0xff]   ;;  %v4491_v51 = vld [vmem:[%s5521_s29 + $0xe8] ss:$16 sps:$4 sm:$0xff]   ;;  %v4492_v52 = vld [vmem:[%s5521_s29 + $0x104] ss:$16 sps:$4 sm:$0xff]  }
  0x82   : > { %3103 = vmatprep.subr.bf16.mxu0 %v4462_v32  ;;  %3390 = vmatprep.subr.bf16.mxu1 %v4464_v33  ;;  %v4494_v53 = vld [vmem:[%s5521_s29 + $0x10c] ss:$16 sps:$4 sm:$0xff]   ;;  %v4496_v54 = vld [vmem:[%s5521_s29 + $0x100] ss:$16 sps:$4 sm:$0xff]   ;;  %v4497_v55 = vld [vmem:[%s5521_s29 + $0x108] ss:$16 sps:$4 sm:$0xff]  }
  0x83   : > { %v5281_v56 = vmov 1983009808   ;;  %v4498_v59 = vld [vmem:[%s5521_s29 + $0x124] ss:$16 sps:$4 sm:$0xff]   ;;  %v4500_v60 = vld [vmem:[%s5521_s29 + $0x12c] ss:$16 sps:$4 sm:$0xff]  }
  0x84   : > { %v324_v57 = vunpack.c.l.s4 %v5281_v56  ;;  %v4502_v61 = vld [vmem:[%s5521_s29 + $0x120] ss:$16 sps:$4 sm:$0xff]   ;;  %v327_v63 = vshrl.u32 %v326_v58, 7  ;;  %v4503_v0 = vld [vmem:[%s5521_s29 + $0x128] ss:$16 sps:$4 sm:$0xff]   ;;  %p4284_p3 = scmp.ne.s32.totalorder %s5257_s18, 6 }
  0x85   : > { %3104 = vmatpush1.bf16.msra.mxu0 %v4466_v34  ;;  %3391 = vmatpush1.bf16.msra.mxu1 %v4467_v35  ;;  %v4504_v1 = vld [vmem:[%s5521_s29 + $0x144] ss:$16 sps:$4 sm:$0xff]   ;;  %v4506_v2 = vld [vmem:[%s5521_s29 + $0x14c] ss:$16 sps:$4 sm:$0xff]   ;;  %v4508_v3 = vld [vmem:[%s5521_s29 + $0x140] ss:$16 sps:$4 sm:$0xff]  }
  0x86   : > { %3105 = vmatprep.subr.bf16.mxu0 %v4468_v36  ;;  %3392 = vmatprep.subr.bf16.mxu1 %v4470_v37  ;;  %v325_v62 = vunpack.c.0.s8 %v324_v57  ;;  %v4509_v4 = vld [vmem:[%s5521_s29 + $0x148] ss:$16 sps:$4 sm:$0xff]   ;;  %v4510_v6 = vld [vmem:[%s5521_s29 + $0x164] ss:$16 sps:$4 sm:$0xff]   ;;  %v4512_v7 = vld [vmem:[%s5521_s29 + $0x16c] ss:$16 sps:$4 sm:$0xff]  }
  0x87   : > { %v314_v8 = vld [vmem:[%s5542_s9] sm:$0xff]  ;;  %v4515_v11 = vld [vmem:[%s5521_s29 + $0x168] ss:$16 sps:$4 sm:$0xff]   ;;  %v4518_v13 = vld [vmem:[%s5521_s29 + $0x18c] ss:$16 sps:$4 sm:$0xff]  }
  0x88   : > { %v5590_v5 = vsub.s32 %v325_v62, %v327_v63  ;;  %v4514_v9 = vld [vmem:[%s5521_s29 + $0x160] ss:$16 sps:$4 sm:$0xff]   ;;  %v4516_v12 = vld [vmem:[%s5521_s29 + $0x184] ss:$16 sps:$4 sm:$0xff]   ;;  %v4521_v17 = vld [vmem:[%s5521_s29 + $0x188] ss:$16 sps:$4 sm:$0xff]   ;;  %v322_v24 = vcombine.high %v314_v8, %v314_v8 }
  0x89   : > { %3106 = vmatpush1.bf16.msra.mxu0 %v4472_v38  ;;  %3393 = vmatpush1.bf16.msra.mxu1 %v4473_v39  ;;  %v4520_v15 = vld [vmem:[%s5521_s29 + $0x180] ss:$16 sps:$4 sm:$0xff]   ;;  %v4522_v18 = vld [vmem:[%s5521_s29 + $0x1a4] ss:$16 sps:$4 sm:$0xff]   ;;  %v4524_v19 = vld [vmem:[%s5521_s29 + $0x1ac] ss:$16 sps:$4 sm:$0xff]  }
  0x8a   : > { %3107 = vmatprep.subr.bf16.mxu0 %v4474_v40  ;;  %3394 = vmatprep.subr.bf16.mxu1 %v4476_v41  ;;  %v329_v10 = vrot.slane %v314_v8, %v5590_v5  ;;  %v4526_v20 = vld [vmem:[%s5521_s29 + $0x1a0] ss:$16 sps:$4 sm:$0xff]   ;;  %v4527_v21 = vld [vmem:[%s5521_s29 + $0x1a8] ss:$16 sps:$4 sm:$0xff]   ;;  %v4528_v22 = vld [vmem:[%s5521_s29 + $0x1c4] ss:$16 sps:$4 sm:$0xff]   ;;  %v5613_v29 = vrot.slane %v322_v24, %v5590_v5 }
  0x8b   : > { %v4530_v23 = vld [vmem:[%s5521_s29 + $0x1cc] ss:$16 sps:$4 sm:$0xff]   ;;  %v4532_v25 = vld [vmem:[%s5521_s29 + $0x1c0] ss:$16 sps:$4 sm:$0xff]   ;;  %v4533_v26 = vld [vmem:[%s5521_s29 + $0x1c8] ss:$16 sps:$4 sm:$0xff]  }
  0x8c   : > { %v337_v14 = vcombine.high %v329_v10, %v329_v10  ;;  %v4534_v27 = vld [vmem:[%s5521_s29 + $0x1e4] ss:$16 sps:$4 sm:$0xff]   ;;  %v4536_v28 = vld [vmem:[%s5521_s29 + $0x1ec] ss:$16 sps:$4 sm:$0xff]   ;;  %v4538_v30 = vld [vmem:[%s5521_s29 + $0x1e0] ss:$16 sps:$4 sm:$0xff]   ;;  %v338_v34 = vcombine.high %v5613_v29, %v5613_v29  ;;  %v395_v36 = vpack.c.bf16 %v329_v10, %v329_v10 }
  0x8d   : > { %3108 = vmatpush1.bf16.msra.mxu0 %v4478_v42  ;;  %3395 = vmatpush1.bf16.msra.mxu1 %v4479_v43  ;;  %v4539_v31 = vld [vmem:[%s5521_s29 + $0x1e8] ss:$16 sps:$4 sm:$0xff]   ;;  %v4543_v32 = vld [vmem:[%s5521_s29 + $0x204] ss:$16 sps:$4 sm:$0xff]   ;;  %v4546_v33 = vld [vmem:[%s5521_s29 + $0x20c] ss:$16 sps:$4 sm:$0xff]  }
  0x8e   : > { %3109 = vmatprep.subr.bf16.mxu0 %v4480_v44  ;;  %3396 = vmatprep.subr.bf16.mxu1 %v4482_v45  ;;  %v396_v16 = vpack.c.bf16 %v337_v14, %v337_v14  ;;  %v4541_v35 = vld [vmem:[%s5521_s29 + $0x200] ss:$16 sps:$4 sm:$0xff]   ;;  %v4544_v37 = vld [vmem:[%s5521_s29 + $0x208] ss:$16 sps:$4 sm:$0xff]   ;;  %v4549_v38 = vld [vmem:[%s5521_s29 + $0x224] ss:$16 sps:$4 sm:$0xff]   ;;  %v398_v40 = vpack.c.bf16 %v338_v34, %v338_v34 }
  0x8f   : > { %v4552_v39 = vld [vmem:[%s5521_s29 + $0x22c] ss:$16 sps:$4 sm:$0xff]   ;;  %v4547_v41 = vld [vmem:[%s5521_s29 + $0x220] ss:$16 sps:$4 sm:$0xff]   ;;  %v4550_v42 = vld [vmem:[%s5521_s29 + $0x228] ss:$16 sps:$4 sm:$0xff]  }
  0x90   : > { %3129 = vmatprep.mubr.bf16.mxu0 %v396_v16  ;;  %3416 = vmatprep.mubr.bf16.mxu1 %v396_v16  ;;  %v4555_v43 = vld [vmem:[%s5521_s29 + $0x244] ss:$16 sps:$4 sm:$0xff]   ;;  %v4558_v44 = vld [vmem:[%s5521_s29 + $0x24c] ss:$16 sps:$4 sm:$0xff]   ;;  %v4553_v45 = vld [vmem:[%s5521_s29 + $0x240] ss:$16 sps:$4 sm:$0xff]  }
  0x91   : > { %3110 = vmatpush1.bf16.msra.mxu0 %v4484_v46  ;;  %3397 = vmatpush1.bf16.msra.mxu1 %v4485_v47  ;;  %v4556_v46 = vld [vmem:[%s5521_s29 + $0x248] ss:$16 sps:$4 sm:$0xff]   ;;  %v4561_v47 = vld [vmem:[%s5521_s29 + $0x264] ss:$16 sps:$4 sm:$0xff]   ;;  %v4576_v56 = vld [vmem:[%s5521_s29 + $0x2ac] ss:$16 sps:$4 sm:$0xff]  }
  0x92   : > { %3111 = vmatprep.subr.bf16.mxu0 %v4486_v48  ;;  %3398 = vmatprep.subr.bf16.mxu1 %v4488_v49  ;;  %v4564_v48 = vld [vmem:[%s5521_s29 + $0x26c] ss:$16 sps:$4 sm:$0xff]   ;;  %v4559_v49 = vld [vmem:[%s5521_s29 + $0x260] ss:$16 sps:$4 sm:$0xff]   ;;  %v4574_v58 = vld [vmem:[%s5521_s29 + $0x2a8] ss:$16 sps:$4 sm:$0xff]  }
  0x93   : > { %v4571_v57 = vld [vmem:[%s5521_s29 + $0x2a0] ss:$16 sps:$4 sm:$0xff]   ;;  %v4580_v62 = vld [vmem:[%s5521_s29 + $0x2c8] ss:$16 sps:$4 sm:$0xff]   ;;  %v4585_v63 = vld [vmem:[%s5521_s29 + $0x2e4] ss:$16 sps:$4 sm:$0xff]  }
  0x94   : > { %v4597_v8 = vld [vmem:[%s5521_s29 + $0x324] ss:$16 sps:$4 sm:$0xff]   ;;  %v4595_v10 = vld [vmem:[%s5521_s29 + $0x320] ss:$16 sps:$4 sm:$0xff]   ;;  %v4636_v34 = vld [vmem:[%s5521_s29 + $0x3ec] ss:$16 sps:$4 sm:$0xff]  }
  0x95   : > { %3112 = vmatpush1.bf16.msra.mxu0 %v4490_v50  ;;  %3399 = vmatpush1.bf16.msra.mxu1 %v4491_v51  ;;  %v4562_v50 = vld [vmem:[%s5521_s29 + $0x268] ss:$16 sps:$4 sm:$0xff]   ;;  %v4567_v51 = vld [vmem:[%s5521_s29 + $0x284] ss:$16 sps:$4 sm:$0xff]   ;;  %v4601_v14 = vld [vmem:[%s5521_s29 + $0x340] ss:$16 sps:$4 sm:$0xff]  }
  0x96   : > { %3113 = vmatprep.subr.bf16.mxu0 %v4492_v52  ;;  %3400 = vmatprep.subr.bf16.mxu1 %v4494_v53  ;;  %v4570_v52 = vld [vmem:[%s5521_s29 + $0x28c] ss:$16 sps:$4 sm:$0xff]   ;;  %v4565_v53 = vld [vmem:[%s5521_s29 + $0x280] ss:$16 sps:$4 sm:$0xff]   ;;  %v4609_v16 = vld [vmem:[%s5521_s29 + $0x364] ss:$16 sps:$4 sm:$0xff]  }
  0x97   : > { %v4621_v24 = vld [vmem:[%s5521_s29 + $0x3a4] ss:$16 sps:$4 sm:$0xff]  }
  0x99   : > { %3114 = vmatpush1.bf16.msra.mxu0 %v4496_v54  ;;  %3401 = vmatpush1.bf16.msra.mxu1 %v4497_v55  ;;  %v4568_v54 = vld [vmem:[%s5521_s29 + $0x288] ss:$16 sps:$4 sm:$0xff]   ;;  %v4573_v55 = vld [vmem:[%s5521_s29 + $0x2a4] ss:$16 sps:$4 sm:$0xff]  }
  0x9a   : > { %3115 = vmatprep.subr.bf16.mxu0 %v4498_v59  ;;  %3402 = vmatprep.subr.bf16.mxu1 %v4500_v60  ;;  %v4579_v59 = vld [vmem:[%s5521_s29 + $0x2c4] ss:$16 sps:$4 sm:$0xff]   ;;  %v4582_v60 = vld [vmem:[%s5521_s29 + $0x2cc] ss:$16 sps:$4 sm:$0xff]  }
  0x9d   : > { %3116 = vmatpush1.bf16.msra.mxu0 %v4502_v61  ;;  %3403 = vmatpush1.bf16.msra.mxu1 %v4503_v0  ;;  %v4577_v61 = vld [vmem:[%s5521_s29 + $0x2c0] ss:$16 sps:$4 sm:$0xff]   ;;  %v4588_v0 = vld [vmem:[%s5521_s29 + $0x2ec] ss:$16 sps:$4 sm:$0xff]  }
  0x9e   : > { %3117 = vmatprep.subr.bf16.mxu0 %v4504_v1  ;;  %3404 = vmatprep.subr.bf16.mxu1 %v4506_v2  ;;  %v4583_v1 = vld [vmem:[%s5521_s29 + $0x2e0] ss:$16 sps:$4 sm:$0xff]   ;;  %v4586_v2 = vld [vmem:[%s5521_s29 + $0x2e8] ss:$16 sps:$4 sm:$0xff]  }
  0xa1   : > { %3118 = vmatpush1.bf16.msra.mxu0 %v4508_v3  ;;  %3405 = vmatpush1.bf16.msra.mxu1 %v4509_v4  ;;  %v4591_v3 = vld [vmem:[%s5521_s29 + $0x304] ss:$16 sps:$4 sm:$0xff]   ;;  %v4594_v4 = vld [vmem:[%s5521_s29 + $0x30c] ss:$16 sps:$4 sm:$0xff]  }
  0xa2   : > { %3119 = vmatprep.subr.bf16.mxu0 %v4510_v6  ;;  %3406 = vmatprep.subr.bf16.mxu1 %v4512_v7  ;;  %v4589_v6 = vld [vmem:[%s5521_s29 + $0x300] ss:$16 sps:$4 sm:$0xff]   ;;  %v4592_v7 = vld [vmem:[%s5521_s29 + $0x308] ss:$16 sps:$4 sm:$0xff]  }
  0xa5   : > { %3120 = vmatpush1.bf16.msra.mxu0 %v4514_v9  ;;  %3407 = vmatpush1.bf16.msra.mxu1 %v4515_v11  ;;  %v4600_v9 = vld [vmem:[%s5521_s29 + $0x32c] ss:$16 sps:$4 sm:$0xff]   ;;  %v4598_v11 = vld [vmem:[%s5521_s29 + $0x328] ss:$16 sps:$4 sm:$0xff]  }
  0xa6   : > { %3121 = vmatprep.subr.bf16.mxu0 %v4516_v12  ;;  %3408 = vmatprep.subr.bf16.mxu1 %v4518_v13  ;;  %v4603_v12 = vld [vmem:[%s5521_s29 + $0x344] ss:$16 sps:$4 sm:$0xff]   ;;  %v4606_v13 = vld [vmem:[%s5521_s29 + $0x34c] ss:$16 sps:$4 sm:$0xff]  }
  0xa9   : > { %3122 = vmatpush1.bf16.msra.mxu0 %v4520_v15  ;;  %3409 = vmatpush1.bf16.msra.mxu1 %v4521_v17  ;;  %v4604_v15 = vld [vmem:[%s5521_s29 + $0x348] ss:$16 sps:$4 sm:$0xff]   ;;  %v4612_v17 = vld [vmem:[%s5521_s29 + $0x36c] ss:$16 sps:$4 sm:$0xff]  }
  0xaa   : > { %3123 = vmatprep.subr.bf16.mxu0 %v4522_v18  ;;  %3410 = vmatprep.subr.bf16.mxu1 %v4524_v19  ;;  %v4607_v18 = vld [vmem:[%s5521_s29 + $0x360] ss:$16 sps:$4 sm:$0xff]   ;;  %v4610_v19 = vld [vmem:[%s5521_s29 + $0x368] ss:$16 sps:$4 sm:$0xff]  }
  0xad   : > { %3124 = vmatpush1.bf16.msra.mxu0 %v4526_v20  ;;  %3411 = vmatpush1.bf16.msra.mxu1 %v4527_v21  ;;  %v4615_v20 = vld [vmem:[%s5521_s29 + $0x384] ss:$16 sps:$4 sm:$0xff]   ;;  %v4618_v21 = vld [vmem:[%s5521_s29 + $0x38c] ss:$16 sps:$4 sm:$0xff]  }
  0xae   : > { %3125 = vmatprep.subr.bf16.mxu0 %v4528_v22  ;;  %3412 = vmatprep.subr.bf16.mxu1 %v4530_v23  ;;  %v4613_v22 = vld [vmem:[%s5521_s29 + $0x380] ss:$16 sps:$4 sm:$0xff]   ;;  %v4616_v23 = vld [vmem:[%s5521_s29 + $0x388] ss:$16 sps:$4 sm:$0xff]  }
  0xb1   : > { %3126 = vmatpush1.bf16.msra.mxu0 %v4532_v25  ;;  %3413 = vmatpush1.bf16.msra.mxu1 %v4533_v26  ;;  %v4624_v25 = vld [vmem:[%s5521_s29 + $0x3ac] ss:$16 sps:$4 sm:$0xff]   ;;  %v4619_v26 = vld [vmem:[%s5521_s29 + $0x3a0] ss:$16 sps:$4 sm:$0xff]  }
  0xb2   : > { %3127 = vmatprep.subr.bf16.mxu0 %v4534_v27  ;;  %3414 = vmatprep.subr.bf16.mxu1 %v4536_v28  ;;  %v4622_v27 = vld [vmem:[%s5521_s29 + $0x3a8] ss:$16 sps:$4 sm:$0xff]   ;;  %v4627_v28 = vld [vmem:[%s5521_s29 + $0x3c4] ss:$16 sps:$4 sm:$0xff]  }
  0xb5   : > { %3128 = vmatpush1.bf16.msra.mxu0 %v4538_v30  ;;  %3415 = vmatpush1.bf16.msra.mxu1 %v4539_v31  ;;  %v4630_v30 = vld [vmem:[%s5521_s29 + $0x3cc] ss:$16 sps:$4 sm:$0xff]   ;;  %v4625_v31 = vld [vmem:[%s5521_s29 + $0x3c0] ss:$16 sps:$4 sm:$0xff]  }
  0xb6   : > { %3138 = vmatprep.subr.bf16.mxu0 %v4543_v32  ;;  %3425 = vmatprep.subr.bf16.mxu1 %v4546_v33  ;;  %v4628_v32 = vld [vmem:[%s5521_s29 + $0x3c8] ss:$16 sps:$4 sm:$0xff]   ;;  %v4633_v33 = vld [vmem:[%s5521_s29 + $0x3e4] ss:$16 sps:$4 sm:$0xff]  }
  0xb8   : > { %3130 = vmatmul.mubr.bf16.vlgmr.msra.gmra.mrb[0].mxu0 %v395_v36  ;;  %3417 = vmatmul.mubr.bf16.vlgmr.msra.gmra.mrb[0].mxu1 %v395_v36  ;;  %v4634_v36 = vld [vmem:[%s5521_s29 + $0x3e8] ss:$16 sps:$4 sm:$0xff]  }
  0xb9   : > { %3139 = vmatpush1.bf16.msra.mxu0 %v4541_v35  ;;  %3426 = vmatpush1.bf16.msra.mxu1 %v4544_v37  ;;  %v4631_v35 = vld [vmem:[%s5521_s29 + $0x3e0] ss:$16 sps:$4 sm:$0xff]   ;;  %v4639_v37 = vld [vmem:[%s5521_s29 + $0x404] ss:$16 sps:$4 sm:$0xff]  }
  0xba   : > { %3140 = vmatprep.subr.bf16.mxu0 %v4549_v38  ;;  %3427 = vmatprep.subr.bf16.mxu1 %v4552_v39  ;;  %v4642_v38 = vld [vmem:[%s5521_s29 + $0x40c] ss:$16 sps:$4 sm:$0xff]   ;;  %v4637_v39 = vld [vmem:[%s5521_s29 + $0x400] ss:$16 sps:$4 sm:$0xff]  }
  0xbb   : > { %3170 = vmatprep.mubr.bf16.mxu0 %v398_v40  ;;  %3457 = vmatprep.mubr.bf16.mxu1 %v398_v40  ;;  %v397_v40 = vpack.c.bf16 %v5613_v29, %v5613_v29 }
  0xbd   : > { %3141 = vmatpush1.bf16.msra.mxu0 %v4547_v41  ;;  %3428 = vmatpush1.bf16.msra.mxu1 %v4550_v42  ;;  %v4640_v41 = vld [vmem:[%s5521_s29 + $0x408] ss:$16 sps:$4 sm:$0xff]  }
  0xbe   : > { %3142 = vmatprep.subr.bf16.mxu0 %v4555_v43  ;;  %3429 = vmatprep.subr.bf16.mxu1 %v4558_v44  ;;  %v5690_v42 = vld [vmem:[%s5542_s9 + $0x8] sm:$0xff]  ;;  %v4645_v43 = vld [vmem:[%s5521_s29 + $0x424] ss:$16 sps:$4 sm:$0xff]  }
  0xbf   : > { %v4648_v44 = vld [vmem:[%s5521_s29 + $0x42c] ss:$16 sps:$4 sm:$0xff]  }
  0xc1   : > { %3143 = vmatpush1.bf16.msra.mxu0 %v4553_v45  ;;  %3430 = vmatpush1.bf16.msra.mxu1 %v4556_v46  ;;  %v5696_v45 = vrot.slane %v5690_v42, %v5590_v5  ;;  %v4643_v46 = vld [vmem:[%s5521_s29 + $0x420] ss:$16 sps:$4 sm:$0xff]  }
  0xc2   : > { %3144 = vmatprep.subr.bf16.mxu0 %v4561_v47  ;;  %3431 = vmatprep.subr.bf16.mxu1 %v4564_v48  ;;  %v4646_v47 = vld [vmem:[%s5521_s29 + $0x428] ss:$16 sps:$4 sm:$0xff]   ;;  %v4651_v48 = vld [vmem:[%s5521_s29 + $0x444] ss:$16 sps:$4 sm:$0xff]  }
  0xc3   : > { %v354_v29 = vcombine.high %v5696_v45, %v5696_v45 }
  0xc5   : > { %3145 = vmatpush1.bf16.msra.mxu0 %v4559_v49  ;;  %3432 = vmatpush1.bf16.msra.mxu1 %v4562_v50  ;;  %v4654_v49 = vld [vmem:[%s5521_s29 + $0x44c] ss:$16 sps:$4 sm:$0xff]   ;;  %v400_v50 = vpack.c.bf16 %v354_v29, %v354_v29  ;;  %v4735_v29 = vld [vmem:[%s5521_s29 + $0x604] ss:$16 sps:$4 sm:$0xff]  }
  0xc6   : > { %3146 = vmatprep.subr.bf16.mxu0 %v4567_v51  ;;  %3433 = vmatprep.subr.bf16.mxu1 %v4570_v52  ;;  %v4649_v51 = vld [vmem:[%s5521_s29 + $0x440] ss:$16 sps:$4 sm:$0xff]   ;;  %v4652_v52 = vld [vmem:[%s5521_s29 + $0x448] ss:$16 sps:$4 sm:$0xff]  }
  0xc9   : > { %3147 = vmatpush1.bf16.msra.mxu0 %v4565_v53  ;;  %3434 = vmatpush1.bf16.msra.mxu1 %v4568_v54  ;;  %v4657_v53 = vld [vmem:[%s5521_s29 + $0x464] ss:$16 sps:$4 sm:$0xff]   ;;  %v4660_v54 = vld [vmem:[%s5521_s29 + $0x46c] ss:$16 sps:$4 sm:$0xff]  }
  0xca   : > { %3148 = vmatprep.subr.bf16.mxu0 %v4573_v55  ;;  %3435 = vmatprep.subr.bf16.mxu1 %v4576_v56  ;;  %v4655_v55 = vld [vmem:[%s5521_s29 + $0x460] ss:$16 sps:$4 sm:$0xff]   ;;  %v4658_v56 = vld [vmem:[%s5521_s29 + $0x468] ss:$16 sps:$4 sm:$0xff]  }
  0xcd   : > { %3149 = vmatpush1.bf16.msra.mxu0 %v4571_v57  ;;  %3436 = vmatpush1.bf16.msra.mxu1 %v4574_v58  ;;  %v4663_v57 = vld [vmem:[%s5521_s29 + $0x484] ss:$16 sps:$4 sm:$0xff]   ;;  %v4666_v58 = vld [vmem:[%s5521_s29 + $0x48c] ss:$16 sps:$4 sm:$0xff]  }
  0xce   : > { %3150 = vmatprep.subr.bf16.mxu0 %v4579_v59  ;;  %3437 = vmatprep.subr.bf16.mxu1 %v4582_v60  ;;  %v4661_v59 = vld [vmem:[%s5521_s29 + $0x480] ss:$16 sps:$4 sm:$0xff]   ;;  %v4664_v60 = vld [vmem:[%s5521_s29 + $0x488] ss:$16 sps:$4 sm:$0xff]  }
  0xd1   : > { %3151 = vmatpush1.bf16.msra.mxu0 %v4577_v61  ;;  %3438 = vmatpush1.bf16.msra.mxu1 %v4580_v62  ;;  %v4669_v61 = vld [vmem:[%s5521_s29 + $0x4a4] ss:$16 sps:$4 sm:$0xff]   ;;  %v4672_v62 = vld [vmem:[%s5521_s29 + $0x4ac] ss:$16 sps:$4 sm:$0xff]  }
  0xd2   : > { %3152 = vmatprep.subr.bf16.mxu0 %v4585_v63  ;;  %3439 = vmatprep.subr.bf16.mxu1 %v4588_v0  ;;  %v4667_v63 = vld [vmem:[%s5521_s29 + $0x4a0] ss:$16 sps:$4 sm:$0xff]   ;;  %v4670_v0 = vld [vmem:[%s5521_s29 + $0x4a8] ss:$16 sps:$4 sm:$0xff]  }
  0xd5   : > { %3153 = vmatpush1.bf16.msra.mxu0 %v4583_v1  ;;  %3440 = vmatpush1.bf16.msra.mxu1 %v4586_v2  ;;  %v4675_v1 = vld [vmem:[%s5521_s29 + $0x4c4] ss:$16 sps:$4 sm:$0xff]   ;;  %v4678_v2 = vld [vmem:[%s5521_s29 + $0x4cc] ss:$16 sps:$4 sm:$0xff]  }
  0xd6   : > { %3154 = vmatprep.subr.bf16.mxu0 %v4591_v3  ;;  %3441 = vmatprep.subr.bf16.mxu1 %v4594_v4  ;;  %v4673_v3 = vld [vmem:[%s5521_s29 + $0x4c0] ss:$16 sps:$4 sm:$0xff]   ;;  %v4676_v4 = vld [vmem:[%s5521_s29 + $0x4c8] ss:$16 sps:$4 sm:$0xff]  }
  0xd9   : > { %3155 = vmatpush1.bf16.msra.mxu0 %v4589_v6  ;;  %3442 = vmatpush1.bf16.msra.mxu1 %v4592_v7  ;;  %v4681_v6 = vld [vmem:[%s5521_s29 + $0x4e4] ss:$16 sps:$4 sm:$0xff]   ;;  %v4684_v7 = vld [vmem:[%s5521_s29 + $0x4ec] ss:$16 sps:$4 sm:$0xff]  }
  0xda   : > { %3156 = vmatprep.subr.bf16.mxu0 %v4597_v8  ;;  %3443 = vmatprep.subr.bf16.mxu1 %v4600_v9  ;;  %v4679_v8 = vld [vmem:[%s5521_s29 + $0x4e0] ss:$16 sps:$4 sm:$0xff]   ;;  %v4682_v9 = vld [vmem:[%s5521_s29 + $0x4e8] ss:$16 sps:$4 sm:$0xff]  }
  0xdd   : > { %3157 = vmatpush1.bf16.msra.mxu0 %v4595_v10  ;;  %3444 = vmatpush1.bf16.msra.mxu1 %v4598_v11  ;;  %v4687_v10 = vld [vmem:[%s5521_s29 + $0x504] ss:$16 sps:$4 sm:$0xff]   ;;  %v4690_v11 = vld [vmem:[%s5521_s29 + $0x50c] ss:$16 sps:$4 sm:$0xff]  }
  0xde   : > { %3158 = vmatprep.subr.bf16.mxu0 %v4603_v12  ;;  %3445 = vmatprep.subr.bf16.mxu1 %v4606_v13  ;;  %v4685_v12 = vld [vmem:[%s5521_s29 + $0x500] ss:$16 sps:$4 sm:$0xff]   ;;  %v4688_v13 = vld [vmem:[%s5521_s29 + $0x508] ss:$16 sps:$4 sm:$0xff]  }
  0xe1   : > { %3159 = vmatpush1.bf16.msra.mxu0 %v4601_v14  ;;  %3446 = vmatpush1.bf16.msra.mxu1 %v4604_v15  ;;  %v4693_v14 = vld [vmem:[%s5521_s29 + $0x524] ss:$16 sps:$4 sm:$0xff]   ;;  %v4696_v15 = vld [vmem:[%s5521_s29 + $0x52c] ss:$16 sps:$4 sm:$0xff]  }
  0xe2   : > { %3160 = vmatprep.subr.bf16.mxu0 %v4609_v16  ;;  %3447 = vmatprep.subr.bf16.mxu1 %v4612_v17  ;;  %v4691_v16 = vld [vmem:[%s5521_s29 + $0x520] ss:$16 sps:$4 sm:$0xff]   ;;  %v4694_v17 = vld [vmem:[%s5521_s29 + $0x528] ss:$16 sps:$4 sm:$0xff]  }
  0xe5   : > { %3161 = vmatpush1.bf16.msra.mxu0 %v4607_v18  ;;  %3448 = vmatpush1.bf16.msra.mxu1 %v4610_v19  ;;  %v4699_v18 = vld [vmem:[%s5521_s29 + $0x544] ss:$16 sps:$4 sm:$0xff]   ;;  %v4702_v19 = vld [vmem:[%s5521_s29 + $0x54c] ss:$16 sps:$4 sm:$0xff]  }
  0xe6   : > { %3162 = vmatprep.subr.bf16.mxu0 %v4615_v20  ;;  %3449 = vmatprep.subr.bf16.mxu1 %v4618_v21  ;;  %v4697_v20 = vld [vmem:[%s5521_s29 + $0x540] ss:$16 sps:$4 sm:$0xff]   ;;  %v4700_v21 = vld [vmem:[%s5521_s29 + $0x548] ss:$16 sps:$4 sm:$0xff]  }
  0xe9   : > { %3163 = vmatpush1.bf16.msra.mxu0 %v4613_v22  ;;  %3450 = vmatpush1.bf16.msra.mxu1 %v4616_v23  ;;  %v4705_v22 = vld [vmem:[%s5521_s29 + $0x564] ss:$16 sps:$4 sm:$0xff]   ;;  %v4708_v23 = vld [vmem:[%s5521_s29 + $0x56c] ss:$16 sps:$4 sm:$0xff]  }
  0xea   : > { %3164 = vmatprep.subr.bf16.mxu0 %v4621_v24  ;;  %3451 = vmatprep.subr.bf16.mxu1 %v4624_v25  ;;  %v4703_v24 = vld [vmem:[%s5521_s29 + $0x560] ss:$16 sps:$4 sm:$0xff]   ;;  %v4706_v25 = vld [vmem:[%s5521_s29 + $0x568] ss:$16 sps:$4 sm:$0xff]  }
  0xed   : > { %3165 = vmatpush1.bf16.msra.mxu0 %v4619_v26  ;;  %3452 = vmatpush1.bf16.msra.mxu1 %v4622_v27  ;;  %v4711_v26 = vld [vmem:[%s5521_s29 + $0x584] ss:$16 sps:$4 sm:$0xff]   ;;  %v4714_v27 = vld [vmem:[%s5521_s29 + $0x58c] ss:$16 sps:$4 sm:$0xff]  }
  0xee   : > { %3166 = vmatprep.subr.bf16.mxu0 %v4627_v28  ;;  %3453 = vmatprep.subr.bf16.mxu1 %v4630_v30  ;;  %v4709_v28 = vld [vmem:[%s5521_s29 + $0x580] ss:$16 sps:$4 sm:$0xff]   ;;  %v4712_v30 = vld [vmem:[%s5521_s29 + $0x588] ss:$16 sps:$4 sm:$0xff]  }
  0xf1   : > { %3167 = vmatpush1.bf16.msra.mxu0 %v4625_v31  ;;  %3454 = vmatpush1.bf16.msra.mxu1 %v4628_v32  ;;  %v4717_v31 = vld [vmem:[%s5521_s29 + $0x5a4] ss:$16 sps:$4 sm:$0xff]   ;;  %v4720_v32 = vld [vmem:[%s5521_s29 + $0x5ac] ss:$16 sps:$4 sm:$0xff]  }
  0xf2   : > { %3168 = vmatprep.subr.bf16.mxu0 %v4633_v33  ;;  %3455 = vmatprep.subr.bf16.mxu1 %v4636_v34  ;;  %v4715_v33 = vld [vmem:[%s5521_s29 + $0x5a0] ss:$16 sps:$4 sm:$0xff]   ;;  %v4718_v34 = vld [vmem:[%s5521_s29 + $0x5a8] ss:$16 sps:$4 sm:$0xff]  }
  0xf5   : > { %3169 = vmatpush1.bf16.msra.mxu0 %v4631_v35  ;;  %3456 = vmatpush1.bf16.msra.mxu1 %v4634_v36  ;;  %v4723_v35 = vld [vmem:[%s5521_s29 + $0x5c4] ss:$16 sps:$4 sm:$0xff]   ;;  %v4726_v36 = vld [vmem:[%s5521_s29 + $0x5cc] ss:$16 sps:$4 sm:$0xff]  }
  0xf6   : > { %3179 = vmatprep.subr.bf16.mxu0 %v4639_v37  ;;  %3466 = vmatprep.subr.bf16.mxu1 %v4642_v38  ;;  %v339_v37 = vcombine.high %v5690_v42, %v5690_v42  ;;  %v4721_v38 = vld [vmem:[%s5521_s29 + $0x5c0] ss:$16 sps:$4 sm:$0xff]  }
  0xf7   : > { %v4727_v42 = vld [vmem:[%s5521_s29 + $0x5e0] ss:$16 sps:$4 sm:$0xff]  }
  0xf8   : > { %3171 = vmatmul.mubr.bf16.vlgmr.msra.gmra.mrb[0].mxu0 %v397_v40  ;;  %3458 = vmatmul.mubr.bf16.vlgmr.msra.gmra.mrb[0].mxu1 %v397_v40  ;;  %v4729_v40 = vld [vmem:[%s5521_s29 + $0x5e4] ss:$16 sps:$4 sm:$0xff]  }
  0xf9   : > { %3180 = vmatpush1.bf16.msra.mxu0 %v4637_v39  ;;  %3467 = vmatpush1.bf16.msra.mxu1 %v4640_v41  ;;  %v4724_v39 = vld [vmem:[%s5521_s29 + $0x5c8] ss:$16 sps:$4 sm:$0xff]   ;;  %v4732_v41 = vld [vmem:[%s5521_s29 + $0x5ec] ss:$16 sps:$4 sm:$0xff]  }
  0xfa   : > { %3181 = vmatprep.subr.bf16.mxu0 %v4645_v43  ;;  %3468 = vmatprep.subr.bf16.mxu1 %v4648_v44  ;;  %v5759_v43 = vrot.slane %v339_v37, %v5590_v5  ;;  %v4730_v44 = vld [vmem:[%s5521_s29 + $0x5e8] ss:$16 sps:$4 sm:$0xff]   ;;  %v4813_v37 = vld [vmem:[%s5521_s29 + $0x7a4] ss:$16 sps:$4 sm:$0xff]  }
  0xfb   : > { %3211 = vmatprep.mubr.bf16.mxu0 %v400_v50  ;;  %3498 = vmatprep.mubr.bf16.mxu1 %v400_v50  ;;  %v4736_v50 = vld [vmem:[%s5521_s29 + $0x608] ss:$16 sps:$4 sm:$0xff]  }
  0xfd   : > { %3182 = vmatpush1.bf16.msra.mxu0 %v4643_v46  ;;  %3469 = vmatpush1.bf16.msra.mxu1 %v4646_v47  ;;  %v4738_v46 = vld [vmem:[%s5521_s29 + $0x60c] ss:$16 sps:$4 sm:$0xff]   ;;  %v355_v47 = vcombine.high %v5759_v43, %v5759_v43 }
  0xfe   : > { %3183 = vmatprep.subr.bf16.mxu0 %v4651_v48  ;;  %3470 = vmatprep.subr.bf16.mxu1 %v4654_v49  ;;  %v399_v48 = vpack.c.bf16 %v5696_v45, %v5696_v45  ;;  %v4733_v49 = vld [vmem:[%s5521_s29 + $0x600] ss:$16 sps:$4 sm:$0xff]  }
  0xff   : > { %v4739_v45 = vld [vmem:[%s5521_s29 + $0x620] ss:$16 sps:$4 sm:$0xff]  }
 0x101   : > { %3184 = vmatpush1.bf16.msra.mxu0 %v4649_v51  ;;  %3471 = vmatpush1.bf16.msra.mxu1 %v4652_v52  ;;  %v4741_v51 = vld [vmem:[%s5521_s29 + $0x624] ss:$16 sps:$4 sm:$0xff]   ;;  %v4744_v52 = vld [vmem:[%s5521_s29 + $0x62c] ss:$16 sps:$4 sm:$0xff]  }
 0x102   : > { %3185 = vmatprep.subr.bf16.mxu0 %v4657_v53  ;;  %3472 = vmatprep.subr.bf16.mxu1 %v4660_v54  ;;  %v402_v53 = vpack.c.bf16 %v355_v47, %v355_v47  ;;  %v4742_v54 = vld [vmem:[%s5521_s29 + $0x628] ss:$16 sps:$4 sm:$0xff]   ;;  %v4825_v47 = vld [vmem:[%s5521_s29 + $0x7e4] ss:$16 sps:$4 sm:$0xff]  }
 0x105   : > { %3186 = vmatpush1.bf16.msra.mxu0 %v4655_v55  ;;  %3473 = vmatpush1.bf16.msra.mxu1 %v4658_v56  ;;  %v4747_v55 = vld [vmem:[%s5521_s29 + $0x644] ss:$16 sps:$4 sm:$0xff]   ;;  %v4750_v56 = vld [vmem:[%s5521_s29 + $0x64c] ss:$16 sps:$4 sm:$0xff]  }
 0x106   : > { %3187 = vmatprep.subr.bf16.mxu0 %v4663_v57  ;;  %3474 = vmatprep.subr.bf16.mxu1 %v4666_v58  ;;  %v4745_v57 = vld [vmem:[%s5521_s29 + $0x640] ss:$16 sps:$4 sm:$0xff]   ;;  %v4748_v58 = vld [vmem:[%s5521_s29 + $0x648] ss:$16 sps:$4 sm:$0xff]  }
 0x109   : > { %3188 = vmatpush1.bf16.msra.mxu0 %v4661_v59  ;;  %3475 = vmatpush1.bf16.msra.mxu1 %v4664_v60  ;;  %v4753_v59 = vld [vmem:[%s5521_s29 + $0x664] ss:$16 sps:$4 sm:$0xff]   ;;  %v4756_v60 = vld [vmem:[%s5521_s29 + $0x66c] ss:$16 sps:$4 sm:$0xff]  }
 0x10a   : > { %3189 = vmatprep.subr.bf16.mxu0 %v4669_v61  ;;  %3476 = vmatprep.subr.bf16.mxu1 %v4672_v62  ;;  %v4751_v61 = vld [vmem:[%s5521_s29 + $0x660] ss:$16 sps:$4 sm:$0xff]   ;;  %v4754_v62 = vld [vmem:[%s5521_s29 + $0x668] ss:$16 sps:$4 sm:$0xff]  }
 0x10d   : > { %3190 = vmatpush1.bf16.msra.mxu0 %v4667_v63  ;;  %3477 = vmatpush1.bf16.msra.mxu1 %v4670_v0  ;;  %v4759_v63 = vld [vmem:[%s5521_s29 + $0x684] ss:$16 sps:$4 sm:$0xff]   ;;  %v4762_v0 = vld [vmem:[%s5521_s29 + $0x68c] ss:$16 sps:$4 sm:$0xff]  }
 0x10e   : > { %3191 = vmatprep.subr.bf16.mxu0 %v4675_v1  ;;  %3478 = vmatprep.subr.bf16.mxu1 %v4678_v2  ;;  %v4757_v1 = vld [vmem:[%s5521_s29 + $0x680] ss:$16 sps:$4 sm:$0xff]   ;;  %v4760_v2 = vld [vmem:[%s5521_s29 + $0x688] ss:$16 sps:$4 sm:$0xff]  }
 0x111   : > { %3192 = vmatpush1.bf16.msra.mxu0 %v4673_v3  ;;  %3479 = vmatpush1.bf16.msra.mxu1 %v4676_v4  ;;  %v4765_v3 = vld [vmem:[%s5521_s29 + $0x6a4] ss:$16 sps:$4 sm:$0xff]   ;;  %v4768_v4 = vld [vmem:[%s5521_s29 + $0x6ac] ss:$16 sps:$4 sm:$0xff]  }
 0x112   : > { %3193 = vmatprep.subr.bf16.mxu0 %v4681_v6  ;;  %3480 = vmatprep.subr.bf16.mxu1 %v4684_v7  ;;  %v4763_v6 = vld [vmem:[%s5521_s29 + $0x6a0] ss:$16 sps:$4 sm:$0xff]   ;;  %v4766_v7 = vld [vmem:[%s5521_s29 + $0x6a8] ss:$16 sps:$4 sm:$0xff]  }
 0x115   : > { %3194 = vmatpush1.bf16.msra.mxu0 %v4679_v8  ;;  %3481 = vmatpush1.bf16.msra.mxu1 %v4682_v9  ;;  %v4771_v8 = vld [vmem:[%s5521_s29 + $0x6c4] ss:$16 sps:$4 sm:$0xff]   ;;  %v4774_v9 = vld [vmem:[%s5521_s29 + $0x6cc] ss:$16 sps:$4 sm:$0xff]  }
 0x116   : > { %3195 = vmatprep.subr.bf16.mxu0 %v4687_v10  ;;  %3482 = vmatprep.subr.bf16.mxu1 %v4690_v11  ;;  %v4769_v10 = vld [vmem:[%s5521_s29 + $0x6c0] ss:$16 sps:$4 sm:$0xff]   ;;  %v4772_v11 = vld [vmem:[%s5521_s29 + $0x6c8] ss:$16 sps:$4 sm:$0xff]  }
 0x119   : > { %3196 = vmatpush1.bf16.msra.mxu0 %v4685_v12  ;;  %3483 = vmatpush1.bf16.msra.mxu1 %v4688_v13  ;;  %v4777_v12 = vld [vmem:[%s5521_s29 + $0x6e4] ss:$16 sps:$4 sm:$0xff]   ;;  %v4780_v13 = vld [vmem:[%s5521_s29 + $0x6ec] ss:$16 sps:$4 sm:$0xff]  }
 0x11a   : > { %3197 = vmatprep.subr.bf16.mxu0 %v4693_v14  ;;  %3484 = vmatprep.subr.bf16.mxu1 %v4696_v15  ;;  %v4775_v14 = vld [vmem:[%s5521_s29 + $0x6e0] ss:$16 sps:$4 sm:$0xff]   ;;  %v4778_v15 = vld [vmem:[%s5521_s29 + $0x6e8] ss:$16 sps:$4 sm:$0xff]  }
 0x11d   : > { %3198 = vmatpush1.bf16.msra.mxu0 %v4691_v16  ;;  %3485 = vmatpush1.bf16.msra.mxu1 %v4694_v17  ;;  %v4783_v16 = vld [vmem:[%s5521_s29 + $0x704] ss:$16 sps:$4 sm:$0xff]   ;;  %v4786_v17 = vld [vmem:[%s5521_s29 + $0x70c] ss:$16 sps:$4 sm:$0xff]  }
 0x11e   : > { %3199 = vmatprep.subr.bf16.mxu0 %v4699_v18  ;;  %3486 = vmatprep.subr.bf16.mxu1 %v4702_v19  ;;  %v4781_v18 = vld [vmem:[%s5521_s29 + $0x700] ss:$16 sps:$4 sm:$0xff]   ;;  %v4784_v19 = vld [vmem:[%s5521_s29 + $0x708] ss:$16 sps:$4 sm:$0xff]  }
 0x121   : > { %3200 = vmatpush1.bf16.msra.mxu0 %v4697_v20  ;;  %3487 = vmatpush1.bf16.msra.mxu1 %v4700_v21  ;;  %v4789_v20 = vld [vmem:[%s5521_s29 + $0x724] ss:$16 sps:$4 sm:$0xff]   ;;  %v4792_v21 = vld [vmem:[%s5521_s29 + $0x72c] ss:$16 sps:$4 sm:$0xff]  }
 0x122   : > { %3201 = vmatprep.subr.bf16.mxu0 %v4705_v22  ;;  %3488 = vmatprep.subr.bf16.mxu1 %v4708_v23  ;;  %v4787_v22 = vld [vmem:[%s5521_s29 + $0x720] ss:$16 sps:$4 sm:$0xff]   ;;  %v4790_v23 = vld [vmem:[%s5521_s29 + $0x728] ss:$16 sps:$4 sm:$0xff]  }
 0x125   : > { %3202 = vmatpush1.bf16.msra.mxu0 %v4703_v24  ;;  %3489 = vmatpush1.bf16.msra.mxu1 %v4706_v25  ;;  %v4795_v24 = vld [vmem:[%s5521_s29 + $0x744] ss:$16 sps:$4 sm:$0xff]   ;;  %v4798_v25 = vld [vmem:[%s5521_s29 + $0x74c] ss:$16 sps:$4 sm:$0xff]  }
 0x126   : > { %3203 = vmatprep.subr.bf16.mxu0 %v4711_v26  ;;  %3490 = vmatprep.subr.bf16.mxu1 %v4714_v27  ;;  %v4793_v26 = vld [vmem:[%s5521_s29 + $0x740] ss:$16 sps:$4 sm:$0xff]   ;;  %v4796_v27 = vld [vmem:[%s5521_s29 + $0x748] ss:$16 sps:$4 sm:$0xff]  }
 0x129   : > { %3204 = vmatpush1.bf16.msra.mxu0 %v4709_v28  ;;  %3491 = vmatpush1.bf16.msra.mxu1 %v4712_v30  ;;  %v4801_v28 = vld [vmem:[%s5521_s29 + $0x764] ss:$16 sps:$4 sm:$0xff]   ;;  %v4804_v30 = vld [vmem:[%s5521_s29 + $0x76c] ss:$16 sps:$4 sm:$0xff]  }
 0x12a   : > { %3205 = vmatprep.subr.bf16.mxu0 %v4717_v31  ;;  %3492 = vmatprep.subr.bf16.mxu1 %v4720_v32  ;;  %v4799_v31 = vld [vmem:[%s5521_s29 + $0x760] ss:$16 sps:$4 sm:$0xff]   ;;  %v4802_v32 = vld [vmem:[%s5521_s29 + $0x768] ss:$16 sps:$4 sm:$0xff]  }
 0x12d   : > { %3206 = vmatpush1.bf16.msra.mxu0 %v4715_v33  ;;  %3493 = vmatpush1.bf16.msra.mxu1 %v4718_v34  ;;  %v4807_v33 = vld [vmem:[%s5521_s29 + $0x784] ss:$16 sps:$4 sm:$0xff]   ;;  %v4810_v34 = vld [vmem:[%s5521_s29 + $0x78c] ss:$16 sps:$4 sm:$0xff]  }
 0x12e   : > { %3207 = vmatprep.subr.bf16.mxu0 %v4723_v35  ;;  %3494 = vmatprep.subr.bf16.mxu1 %v4726_v36  ;;  %v4805_v35 = vld [vmem:[%s5521_s29 + $0x780] ss:$16 sps:$4 sm:$0xff]   ;;  %v4808_v36 = vld [vmem:[%s5521_s29 + $0x788] ss:$16 sps:$4 sm:$0xff]  }
 0x131   : > { %3208 = vmatpush1.bf16.msra.mxu0 %v4721_v38  ;;  %3495 = vmatpush1.bf16.msra.mxu1 %v4724_v39  ;;  %v4816_v38 = vld [vmem:[%s5521_s29 + $0x7ac] ss:$16 sps:$4 sm:$0xff]   ;;  %v4811_v39 = vld [vmem:[%s5521_s29 + $0x7a0] ss:$16 sps:$4 sm:$0xff]  }
 0x132   : > { %3209 = vmatprep.subr.bf16.mxu0 %v4729_v40  ;;  %3496 = vmatprep.subr.bf16.mxu1 %v4732_v41  ;;  %v4814_v40 = vld [vmem:[%s5521_s29 + $0x7a8] ss:$16 sps:$4 sm:$0xff]   ;;  %v4819_v41 = vld [vmem:[%s5521_s29 + $0x7c4] ss:$16 sps:$4 sm:$0xff]  }
 0x135   : > { %3210 = vmatpush1.bf16.msra.mxu0 %v4727_v42  ;;  %3497 = vmatpush1.bf16.msra.mxu1 %v4730_v44  ;;  %v4822_v42 = vld [vmem:[%s5521_s29 + $0x7cc] ss:$16 sps:$4 sm:$0xff]   ;;  %v4817_v44 = vld [vmem:[%s5521_s29 + $0x7c0] ss:$16 sps:$4 sm:$0xff]  }
 0x136   : > { %3220 = vmatprep.subr.bf16.mxu0 %v4735_v29  ;;  %3507 = vmatprep.subr.bf16.mxu1 %v4738_v46  ;;  %v5827_v29 = vld [vmem:[%s5542_s9 + $0x10] sm:$0xff]  ;;  %v4820_v46 = vld [vmem:[%s5521_s29 + $0x7c8] ss:$16 sps:$4 sm:$0xff]  }
 0x138   : > { %3212 = vmatmul.mubr.bf16.vlgmr.msra.gmra.mrb[0].mxu0 %v399_v48  ;;  %3499 = vmatmul.mubr.bf16.vlgmr.msra.gmra.mrb[0].mxu1 %v399_v48  ;;  %v4828_v48 = vld [vmem:[%s5521_s29 + $0x7ec] ss:$16 sps:$4 sm:$0xff]  }
 0x139   : > { %3221 = vmatpush1.bf16.msra.mxu0 %v4733_v49  ;;  %3508 = vmatpush1.bf16.msra.mxu1 %v4736_v50  ;;  %v5834_v49 = vrot.slane %v5827_v29, %v5590_v5  ;;  %v4823_v50 = vld [vmem:[%s5521_s29 + $0x7e0] ss:$16 sps:$4 sm:$0xff]  }
 0x13a   : > { %3222 = vmatprep.subr.bf16.mxu0 %v4741_v51  ;;  %3509 = vmatprep.subr.bf16.mxu1 %v4744_v52  ;;  %v4826_v51 = vld [vmem:[%s5521_s29 + $0x7e8] ss:$16 sps:$4 sm:$0xff]   ;;  %v4832_v52 = vld [vmem:[%s5521_s29 + $0x804] ss:$16 sps:$4 sm:$0xff]  }
 0x13b   : > { %3252 = vmatprep.mubr.bf16.mxu0 %v402_v53  ;;  %3539 = vmatprep.mubr.bf16.mxu1 %v402_v53  ;;  %v4835_v53 = vld [vmem:[%s5521_s29 + $0x80c] ss:$16 sps:$4 sm:$0xff]  }
 0x13d   : > { %3223 = vmatpush1.bf16.msra.mxu0 %v4739_v45  ;;  %3510 = vmatpush1.bf16.msra.mxu1 %v4742_v54  ;;  %v371_v45 = vcombine.high %v5834_v49, %v5834_v49  ;;  %v4830_v54 = vld [vmem:[%s5521_s29 + $0x800] ss:$16 sps:$4 sm:$0xff]  }
 0x13e   : > { %3224 = vmatprep.subr.bf16.mxu0 %v4747_v55  ;;  %3511 = vmatprep.subr.bf16.mxu1 %v4750_v56  ;;  %v401_v55 = vpack.c.bf16 %v5759_v43, %v5759_v43  ;;  %v4833_v56 = vld [vmem:[%s5521_s29 + $0x808] ss:$16 sps:$4 sm:$0xff]   ;;  %v4844_v43 = vld [vmem:[%s5521_s29 + $0x844] ss:$16 sps:$4 sm:$0xff]  }
 0x141   : > { %3225 = vmatpush1.bf16.msra.mxu0 %v4745_v57  ;;  %3512 = vmatpush1.bf16.msra.mxu1 %v4748_v58  ;;  %v4838_v57 = vld [vmem:[%s5521_s29 + $0x824] ss:$16 sps:$4 sm:$0xff]   ;;  %v4841_v58 = vld [vmem:[%s5521_s29 + $0x82c] ss:$16 sps:$4 sm:$0xff]  }
 0x142   : > { %3226 = vmatprep.subr.bf16.mxu0 %v4753_v59  ;;  %3513 = vmatprep.subr.bf16.mxu1 %v4756_v60  ;;  %v404_v59 = vpack.c.bf16 %v371_v45, %v371_v45  ;;  %v4836_v60 = vld [vmem:[%s5521_s29 + $0x820] ss:$16 sps:$4 sm:$0xff]   ;;  %v4917_v45 = vld [vmem:[%s5521_s29 + $0x9c8] ss:$16 sps:$4 sm:$0xff]  }
 0x145   : > { %3227 = vmatpush1.bf16.msra.mxu0 %v4751_v61  ;;  %3514 = vmatpush1.bf16.msra.mxu1 %v4754_v62  ;;  %v4839_v61 = vld [vmem:[%s5521_s29 + $0x828] ss:$16 sps:$4 sm:$0xff]   ;;  %v4847_v62 = vld [vmem:[%s5521_s29 + $0x84c] ss:$16 sps:$4 sm:$0xff]  }
 0x146   : > { %3228 = vmatprep.subr.bf16.mxu0 %v4759_v63  ;;  %3515 = vmatprep.subr.bf16.mxu1 %v4762_v0  ;;  %v4842_v63 = vld [vmem:[%s5521_s29 + $0x840] ss:$16 sps:$4 sm:$0xff]   ;;  %v4845_v0 = vld [vmem:[%s5521_s29 + $0x848] ss:$16 sps:$4 sm:$0xff]  }
 0x149   : > { %3229 = vmatpush1.bf16.msra.mxu0 %v4757_v1  ;;  %3516 = vmatpush1.bf16.msra.mxu1 %v4760_v2  ;;  %v4850_v1 = vld [vmem:[%s5521_s29 + $0x864] ss:$16 sps:$4 sm:$0xff]   ;;  %v4853_v2 = vld [vmem:[%s5521_s29 + $0x86c] ss:$16 sps:$4 sm:$0xff]  }
 0x14a   : > { %3230 = vmatprep.subr.bf16.mxu0 %v4765_v3  ;;  %3517 = vmatprep.subr.bf16.mxu1 %v4768_v4  ;;  %v4848_v3 = vld [vmem:[%s5521_s29 + $0x860] ss:$16 sps:$4 sm:$0xff]   ;;  %v4851_v4 = vld [vmem:[%s5521_s29 + $0x868] ss:$16 sps:$4 sm:$0xff]  }
 0x14d   : > { %3231 = vmatpush1.bf16.msra.mxu0 %v4763_v6  ;;  %3518 = vmatpush1.bf16.msra.mxu1 %v4766_v7  ;;  %v4856_v6 = vld [vmem:[%s5521_s29 + $0x884] ss:$16 sps:$4 sm:$0xff]   ;;  %v4859_v7 = vld [vmem:[%s5521_s29 + $0x88c] ss:$16 sps:$4 sm:$0xff]  }
 0x14e   : > { %3232 = vmatprep.subr.bf16.mxu0 %v4771_v8  ;;  %3519 = vmatprep.subr.bf16.mxu1 %v4774_v9  ;;  %v4854_v8 = vld [vmem:[%s5521_s29 + $0x880] ss:$16 sps:$4 sm:$0xff]   ;;  %v4857_v9 = vld [vmem:[%s5521_s29 + $0x888] ss:$16 sps:$4 sm:$0xff]  }
 0x151   : > { %3233 = vmatpush1.bf16.msra.mxu0 %v4769_v10  ;;  %3520 = vmatpush1.bf16.msra.mxu1 %v4772_v11  ;;  %v4862_v10 = vld [vmem:[%s5521_s29 + $0x8a4] ss:$16 sps:$4 sm:$0xff]   ;;  %v4865_v11 = vld [vmem:[%s5521_s29 + $0x8ac] ss:$16 sps:$4 sm:$0xff]  }
 0x152   : > { %3234 = vmatprep.subr.bf16.mxu0 %v4777_v12  ;;  %3521 = vmatprep.subr.bf16.mxu1 %v4780_v13  ;;  %v4860_v12 = vld [vmem:[%s5521_s29 + $0x8a0] ss:$16 sps:$4 sm:$0xff]   ;;  %v4863_v13 = vld [vmem:[%s5521_s29 + $0x8a8] ss:$16 sps:$4 sm:$0xff]  }
 0x155   : > { %3235 = vmatpush1.bf16.msra.mxu0 %v4775_v14  ;;  %3522 = vmatpush1.bf16.msra.mxu1 %v4778_v15  ;;  %v4868_v14 = vld [vmem:[%s5521_s29 + $0x8c4] ss:$16 sps:$4 sm:$0xff]   ;;  %v4871_v15 = vld [vmem:[%s5521_s29 + $0x8cc] ss:$16 sps:$4 sm:$0xff]  }
 0x156   : > { %3236 = vmatprep.subr.bf16.mxu0 %v4783_v16  ;;  %3523 = vmatprep.subr.bf16.mxu1 %v4786_v17  ;;  %v4866_v16 = vld [vmem:[%s5521_s29 + $0x8c0] ss:$16 sps:$4 sm:$0xff]   ;;  %v4869_v17 = vld [vmem:[%s5521_s29 + $0x8c8] ss:$16 sps:$4 sm:$0xff]  }
 0x159   : > { %3237 = vmatpush1.bf16.msra.mxu0 %v4781_v18  ;;  %3524 = vmatpush1.bf16.msra.mxu1 %v4784_v19  ;;  %v4874_v18 = vld [vmem:[%s5521_s29 + $0x8e4] ss:$16 sps:$4 sm:$0xff]   ;;  %v4877_v19 = vld [vmem:[%s5521_s29 + $0x8ec] ss:$16 sps:$4 sm:$0xff]  }
 0x15a   : > { %3238 = vmatprep.subr.bf16.mxu0 %v4789_v20  ;;  %3525 = vmatprep.subr.bf16.mxu1 %v4792_v21  ;;  %v4872_v20 = vld [vmem:[%s5521_s29 + $0x8e0] ss:$16 sps:$4 sm:$0xff]   ;;  %v4875_v21 = vld [vmem:[%s5521_s29 + $0x8e8] ss:$16 sps:$4 sm:$0xff]  }
 0x15d   : > { %3239 = vmatpush1.bf16.msra.mxu0 %v4787_v22  ;;  %3526 = vmatpush1.bf16.msra.mxu1 %v4790_v23  ;;  %v4880_v22 = vld [vmem:[%s5521_s29 + $0x904] ss:$16 sps:$4 sm:$0xff]   ;;  %v4883_v23 = vld [vmem:[%s5521_s29 + $0x90c] ss:$16 sps:$4 sm:$0xff]  }
 0x15e   : > { %3240 = vmatprep.subr.bf16.mxu0 %v4795_v24  ;;  %3527 = vmatprep.subr.bf16.mxu1 %v4798_v25  ;;  %v4878_v24 = vld [vmem:[%s5521_s29 + $0x900] ss:$16 sps:$4 sm:$0xff]   ;;  %v4881_v25 = vld [vmem:[%s5521_s29 + $0x908] ss:$16 sps:$4 sm:$0xff]  }
 0x161   : > { %3241 = vmatpush1.bf16.msra.mxu0 %v4793_v26  ;;  %3528 = vmatpush1.bf16.msra.mxu1 %v4796_v27  ;;  %v4886_v26 = vld [vmem:[%s5521_s29 + $0x924] ss:$16 sps:$4 sm:$0xff]   ;;  %v4889_v27 = vld [vmem:[%s5521_s29 + $0x92c] ss:$16 sps:$4 sm:$0xff]  }
 0x162   : > { %3242 = vmatprep.subr.bf16.mxu0 %v4801_v28  ;;  %3529 = vmatprep.subr.bf16.mxu1 %v4804_v30  ;;  %v4884_v28 = vld [vmem:[%s5521_s29 + $0x920] ss:$16 sps:$4 sm:$0xff]   ;;  %v4887_v30 = vld [vmem:[%s5521_s29 + $0x928] ss:$16 sps:$4 sm:$0xff]  }
 0x165   : > { %3243 = vmatpush1.bf16.msra.mxu0 %v4799_v31  ;;  %3530 = vmatpush1.bf16.msra.mxu1 %v4802_v32  ;;  %v4892_v31 = vld [vmem:[%s5521_s29 + $0x944] ss:$16 sps:$4 sm:$0xff]   ;;  %v4895_v32 = vld [vmem:[%s5521_s29 + $0x94c] ss:$16 sps:$4 sm:$0xff]  }
 0x166   : > { %3244 = vmatprep.subr.bf16.mxu0 %v4807_v33  ;;  %3531 = vmatprep.subr.bf16.mxu1 %v4810_v34  ;;  %v4890_v33 = vld [vmem:[%s5521_s29 + $0x940] ss:$16 sps:$4 sm:$0xff]   ;;  %v4893_v34 = vld [vmem:[%s5521_s29 + $0x948] ss:$16 sps:$4 sm:$0xff]  }
 0x169   : > { %3245 = vmatpush1.bf16.msra.mxu0 %v4805_v35  ;;  %3532 = vmatpush1.bf16.msra.mxu1 %v4808_v36  ;;  %v4898_v35 = vld [vmem:[%s5521_s29 + $0x964] ss:$16 sps:$4 sm:$0xff]   ;;  %v4901_v36 = vld [vmem:[%s5521_s29 + $0x96c] ss:$16 sps:$4 sm:$0xff]  }
 0x16a   : > { %3246 = vmatprep.subr.bf16.mxu0 %v4813_v37  ;;  %3533 = vmatprep.subr.bf16.mxu1 %v4816_v38  ;;  %v4896_v37 = vld [vmem:[%s5521_s29 + $0x960] ss:$16 sps:$4 sm:$0xff]   ;;  %v4899_v38 = vld [vmem:[%s5521_s29 + $0x968] ss:$16 sps:$4 sm:$0xff]  }
 0x16d   : > { %3247 = vmatpush1.bf16.msra.mxu0 %v4811_v39  ;;  %3534 = vmatpush1.bf16.msra.mxu1 %v4814_v40  ;;  %v4904_v39 = vld [vmem:[%s5521_s29 + $0x984] ss:$16 sps:$4 sm:$0xff]   ;;  %v4907_v40 = vld [vmem:[%s5521_s29 + $0x98c] ss:$16 sps:$4 sm:$0xff]  }
 0x16e   : > { %3248 = vmatprep.subr.bf16.mxu0 %v4819_v41  ;;  %3535 = vmatprep.subr.bf16.mxu1 %v4822_v42  ;;  %v4902_v41 = vld [vmem:[%s5521_s29 + $0x980] ss:$16 sps:$4 sm:$0xff]   ;;  %v4905_v42 = vld [vmem:[%s5521_s29 + $0x988] ss:$16 sps:$4 sm:$0xff]  }
 0x171   : > { %3249 = vmatpush1.bf16.msra.mxu0 %v4817_v44  ;;  %3536 = vmatpush1.bf16.msra.mxu1 %v4820_v46  ;;  %v4910_v44 = vld [vmem:[%s5521_s29 + $0x9a4] ss:$16 sps:$4 sm:$0xff]   ;;  %v4913_v46 = vld [vmem:[%s5521_s29 + $0x9ac] ss:$16 sps:$4 sm:$0xff]  }
 0x172   : > { %3250 = vmatprep.subr.bf16.mxu0 %v4825_v47  ;;  %3537 = vmatprep.subr.bf16.mxu1 %v4828_v48  ;;  %v4908_v47 = vld [vmem:[%s5521_s29 + $0x9a0] ss:$16 sps:$4 sm:$0xff]   ;;  %v4911_v48 = vld [vmem:[%s5521_s29 + $0x9a8] ss:$16 sps:$4 sm:$0xff]  }
 0x175   : > { %3251 = vmatpush1.bf16.msra.mxu0 %v4823_v50  ;;  %3538 = vmatpush1.bf16.msra.mxu1 %v4826_v51  ;;  %v4916_v50 = vld [vmem:[%s5521_s29 + $0x9c4] ss:$16 sps:$4 sm:$0xff]   ;;  %v4919_v51 = vld [vmem:[%s5521_s29 + $0x9cc] ss:$16 sps:$4 sm:$0xff]  }
 0x176   : > { %3261 = vmatprep.subr.bf16.mxu0 %v4832_v52  ;;  %3548 = vmatprep.subr.bf16.mxu1 %v4835_v53  ;;  %v356_v52 = vcombine.high %v5827_v29, %v5827_v29  ;;  %v4914_v53 = vld [vmem:[%s5521_s29 + $0x9c0] ss:$16 sps:$4 sm:$0xff]  }
 0x177   : > { %v4920_v29 = vld [vmem:[%s5521_s29 + $0x9e0] ss:$16 sps:$4 sm:$0xff]  }
 0x178   : > { %3253 = vmatmul.mubr.bf16.vlgmr.msra.gmra.mrb[0].mxu0 %v401_v55  ;;  %3540 = vmatmul.mubr.bf16.vlgmr.msra.gmra.mrb[0].mxu1 %v401_v55  ;;  %v4925_v55 = vld [vmem:[%s5521_s29 + $0x9ec] ss:$16 sps:$4 sm:$0xff]  }
 0x179   : > { %3262 = vmatpush1.bf16.msra.mxu0 %v4830_v54  ;;  %3549 = vmatpush1.bf16.msra.mxu1 %v4833_v56  ;;  %v4922_v54 = vld [vmem:[%s5521_s29 + $0x9e4] ss:$16 sps:$4 sm:$0xff]   ;;  %v5907_v56 = vrot.slane %v356_v52, %v5590_v5 }
 0x17a   : > { %3263 = vmatprep.subr.bf16.mxu0 %v4838_v57  ;;  %3550 = vmatprep.subr.bf16.mxu1 %v4841_v58  ;;  %v4923_v57 = vld [vmem:[%s5521_s29 + $0x9e8] ss:$16 sps:$4 sm:$0xff]   ;;  %v4928_v58 = vld [vmem:[%s5521_s29 + $0xa04] ss:$16 sps:$4 sm:$0xff]  }
 0x17b   : > { %3293 = vmatprep.mubr.bf16.mxu0 %v404_v59  ;;  %3580 = vmatprep.mubr.bf16.mxu1 %v404_v59  ;;  %v4931_v59 = vld [vmem:[%s5521_s29 + $0xa0c] ss:$16 sps:$4 sm:$0xff]   ;;  %v5006_v52 = vld [vmem:[%s5521_s29 + $0xba4] ss:$16 sps:$4 sm:$0xff]  }
 0x17d   : > { %3264 = vmatpush1.bf16.msra.mxu0 %v4836_v60  ;;  %3551 = vmatpush1.bf16.msra.mxu1 %v4839_v61  ;;  %v372_v60 = vcombine.high %v5907_v56, %v5907_v56  ;;  %v403_v61 = vpack.c.bf16 %v5834_v49, %v5834_v49  ;;  %v4932_v49 = vld [vmem:[%s5521_s29 + $0xa20] ss:$16 sps:$4 sm:$0xff]  }
 0x17e   : > { %3265 = vmatprep.subr.bf16.mxu0 %v4844_v43  ;;  %3552 = vmatprep.subr.bf16.mxu1 %v4847_v62  ;;  %v4926_v43 = vld [vmem:[%s5521_s29 + $0xa00] ss:$16 sps:$4 sm:$0xff]   ;;  %v4929_v62 = vld [vmem:[%s5521_s29 + $0xa08] ss:$16 sps:$4 sm:$0xff]  }
 0x181   : > { %3266 = vmatpush1.bf16.msra.mxu0 %v4842_v63  ;;  %3553 = vmatpush1.bf16.msra.mxu1 %v4845_v0  ;;  %v4934_v63 = vld [vmem:[%s5521_s29 + $0xa24] ss:$16 sps:$4 sm:$0xff]   ;;  %v4937_v0 = vld [vmem:[%s5521_s29 + $0xa2c] ss:$16 sps:$4 sm:$0xff]  }
 0x182   : > { %3267 = vmatprep.subr.bf16.mxu0 %v4850_v1  ;;  %3554 = vmatprep.subr.bf16.mxu1 %v4853_v2  ;;  %v406_v1 = vpack.c.bf16 %v372_v60, %v372_v60  ;;  %v4935_v2 = vld [vmem:[%s5521_s29 + $0xa28] ss:$16 sps:$4 sm:$0xff]   ;;  %v5021_v60 = vld [vmem:[%s5521_s29 + $0xbec] ss:$16 sps:$4 sm:$0xff]  }
 0x185   : > { %3268 = vmatpush1.bf16.msra.mxu0 %v4848_v3  ;;  %3555 = vmatpush1.bf16.msra.mxu1 %v4851_v4  ;;  %v4940_v3 = vld [vmem:[%s5521_s29 + $0xa44] ss:$16 sps:$4 sm:$0xff]   ;;  %v4943_v4 = vld [vmem:[%s5521_s29 + $0xa4c] ss:$16 sps:$4 sm:$0xff]  }
 0x186   : > { %3269 = vmatprep.subr.bf16.mxu0 %v4856_v6  ;;  %3556 = vmatprep.subr.bf16.mxu1 %v4859_v7  ;;  %v4938_v6 = vld [vmem:[%s5521_s29 + $0xa40] ss:$16 sps:$4 sm:$0xff]   ;;  %v4941_v7 = vld [vmem:[%s5521_s29 + $0xa48] ss:$16 sps:$4 sm:$0xff]  }
 0x189   : > { %3270 = vmatpush1.bf16.msra.mxu0 %v4854_v8  ;;  %3557 = vmatpush1.bf16.msra.mxu1 %v4857_v9  ;;  %v4946_v8 = vld [vmem:[%s5521_s29 + $0xa64] ss:$16 sps:$4 sm:$0xff]   ;;  %v4949_v9 = vld [vmem:[%s5521_s29 + $0xa6c] ss:$16 sps:$4 sm:$0xff]  }
 0x18a   : > { %3271 = vmatprep.subr.bf16.mxu0 %v4862_v10  ;;  %3558 = vmatprep.subr.bf16.mxu1 %v4865_v11  ;;  %v4944_v10 = vld [vmem:[%s5521_s29 + $0xa60] ss:$16 sps:$4 sm:$0xff]   ;;  %v4947_v11 = vld [vmem:[%s5521_s29 + $0xa68] ss:$16 sps:$4 sm:$0xff]  }
 0x18d   : > { %3272 = vmatpush1.bf16.msra.mxu0 %v4860_v12  ;;  %3559 = vmatpush1.bf16.msra.mxu1 %v4863_v13  ;;  %v4952_v12 = vld [vmem:[%s5521_s29 + $0xa84] ss:$16 sps:$4 sm:$0xff]   ;;  %v4955_v13 = vld [vmem:[%s5521_s29 + $0xa8c] ss:$16 sps:$4 sm:$0xff]  }
 0x18e   : > { %3273 = vmatprep.subr.bf16.mxu0 %v4868_v14  ;;  %3560 = vmatprep.subr.bf16.mxu1 %v4871_v15  ;;  %v4950_v14 = vld [vmem:[%s5521_s29 + $0xa80] ss:$16 sps:$4 sm:$0xff]   ;;  %v4953_v15 = vld [vmem:[%s5521_s29 + $0xa88] ss:$16 sps:$4 sm:$0xff]  }
 0x191   : > { %3274 = vmatpush1.bf16.msra.mxu0 %v4866_v16  ;;  %3561 = vmatpush1.bf16.msra.mxu1 %v4869_v17  ;;  %v4958_v16 = vld [vmem:[%s5521_s29 + $0xaa4] ss:$16 sps:$4 sm:$0xff]   ;;  %v4961_v17 = vld [vmem:[%s5521_s29 + $0xaac] ss:$16 sps:$4 sm:$0xff]  }
 0x192   : > { %3275 = vmatprep.subr.bf16.mxu0 %v4874_v18  ;;  %3562 = vmatprep.subr.bf16.mxu1 %v4877_v19  ;;  %v4956_v18 = vld [vmem:[%s5521_s29 + $0xaa0] ss:$16 sps:$4 sm:$0xff]   ;;  %v4959_v19 = vld [vmem:[%s5521_s29 + $0xaa8] ss:$16 sps:$4 sm:$0xff]  }
 0x195   : > { %3276 = vmatpush1.bf16.msra.mxu0 %v4872_v20  ;;  %3563 = vmatpush1.bf16.msra.mxu1 %v4875_v21  ;;  %v4964_v20 = vld [vmem:[%s5521_s29 + $0xac4] ss:$16 sps:$4 sm:$0xff]   ;;  %v4967_v21 = vld [vmem:[%s5521_s29 + $0xacc] ss:$16 sps:$4 sm:$0xff]  }
 0x196   : > { %3277 = vmatprep.subr.bf16.mxu0 %v4880_v22  ;;  %3564 = vmatprep.subr.bf16.mxu1 %v4883_v23  ;;  %v4962_v22 = vld [vmem:[%s5521_s29 + $0xac0] ss:$16 sps:$4 sm:$0xff]   ;;  %v4965_v23 = vld [vmem:[%s5521_s29 + $0xac8] ss:$16 sps:$4 sm:$0xff]  }
 0x199   : > { %3278 = vmatpush1.bf16.msra.mxu0 %v4878_v24  ;;  %3565 = vmatpush1.bf16.msra.mxu1 %v4881_v25  ;;  %v4970_v24 = vld [vmem:[%s5521_s29 + $0xae4] ss:$16 sps:$4 sm:$0xff]   ;;  %v4973_v25 = vld [vmem:[%s5521_s29 + $0xaec] ss:$16 sps:$4 sm:$0xff]  }
 0x19a   : > { %3279 = vmatprep.subr.bf16.mxu0 %v4886_v26  ;;  %3566 = vmatprep.subr.bf16.mxu1 %v4889_v27  ;;  %v4968_v26 = vld [vmem:[%s5521_s29 + $0xae0] ss:$16 sps:$4 sm:$0xff]   ;;  %v4971_v27 = vld [vmem:[%s5521_s29 + $0xae8] ss:$16 sps:$4 sm:$0xff]  }
 0x19d   : > { %3280 = vmatpush1.bf16.msra.mxu0 %v4884_v28  ;;  %3567 = vmatpush1.bf16.msra.mxu1 %v4887_v30  ;;  %v4976_v28 = vld [vmem:[%s5521_s29 + $0xb04] ss:$16 sps:$4 sm:$0xff]   ;;  %v4979_v30 = vld [vmem:[%s5521_s29 + $0xb0c] ss:$16 sps:$4 sm:$0xff]  }
 0x19e   : > { %3281 = vmatprep.subr.bf16.mxu0 %v4892_v31  ;;  %3568 = vmatprep.subr.bf16.mxu1 %v4895_v32  ;;  %v4974_v31 = vld [vmem:[%s5521_s29 + $0xb00] ss:$16 sps:$4 sm:$0xff]   ;;  %v4977_v32 = vld [vmem:[%s5521_s29 + $0xb08] ss:$16 sps:$4 sm:$0xff]  }
 0x1a1   : > { %3282 = vmatpush1.bf16.msra.mxu0 %v4890_v33  ;;  %3569 = vmatpush1.bf16.msra.mxu1 %v4893_v34  ;;  %v4982_v33 = vld [vmem:[%s5521_s29 + $0xb24] ss:$16 sps:$4 sm:$0xff]   ;;  %v4985_v34 = vld [vmem:[%s5521_s29 + $0xb2c] ss:$16 sps:$4 sm:$0xff]  }
 0x1a2   : > { %3283 = vmatprep.subr.bf16.mxu0 %v4898_v35  ;;  %3570 = vmatprep.subr.bf16.mxu1 %v4901_v36  ;;  %v4980_v35 = vld [vmem:[%s5521_s29 + $0xb20] ss:$16 sps:$4 sm:$0xff]   ;;  %v4983_v36 = vld [vmem:[%s5521_s29 + $0xb28] ss:$16 sps:$4 sm:$0xff]  }
 0x1a5   : > { %3284 = vmatpush1.bf16.msra.mxu0 %v4896_v37  ;;  %3571 = vmatpush1.bf16.msra.mxu1 %v4899_v38  ;;  %v4988_v37 = vld [vmem:[%s5521_s29 + $0xb44] ss:$16 sps:$4 sm:$0xff]   ;;  %v4991_v38 = vld [vmem:[%s5521_s29 + $0xb4c] ss:$16 sps:$4 sm:$0xff]  }
 0x1a6   : > { %3285 = vmatprep.subr.bf16.mxu0 %v4904_v39  ;;  %3572 = vmatprep.subr.bf16.mxu1 %v4907_v40  ;;  %v4986_v39 = vld [vmem:[%s5521_s29 + $0xb40] ss:$16 sps:$4 sm:$0xff]   ;;  %v4989_v40 = vld [vmem:[%s5521_s29 + $0xb48] ss:$16 sps:$4 sm:$0xff]  }
 0x1a9   : > { %3286 = vmatpush1.bf16.msra.mxu0 %v4902_v41  ;;  %3573 = vmatpush1.bf16.msra.mxu1 %v4905_v42  ;;  %v4994_v41 = vld [vmem:[%s5521_s29 + $0xb64] ss:$16 sps:$4 sm:$0xff]   ;;  %v4997_v42 = vld [vmem:[%s5521_s29 + $0xb6c] ss:$16 sps:$4 sm:$0xff]  }
 0x1aa   : > { %3287 = vmatprep.subr.bf16.mxu0 %v4910_v44  ;;  %3574 = vmatprep.subr.bf16.mxu1 %v4913_v46  ;;  %v4992_v44 = vld [vmem:[%s5521_s29 + $0xb60] ss:$16 sps:$4 sm:$0xff]   ;;  %v4995_v46 = vld [vmem:[%s5521_s29 + $0xb68] ss:$16 sps:$4 sm:$0xff]  }
 0x1ad   : > { %3288 = vmatpush1.bf16.msra.mxu0 %v4908_v47  ;;  %3575 = vmatpush1.bf16.msra.mxu1 %v4911_v48  ;;  %v5000_v47 = vld [vmem:[%s5521_s29 + $0xb84] ss:$16 sps:$4 sm:$0xff]   ;;  %v5003_v48 = vld [vmem:[%s5521_s29 + $0xb8c] ss:$16 sps:$4 sm:$0xff]  }
 0x1ae   : > { %3289 = vmatprep.subr.bf16.mxu0 %v4916_v50  ;;  %3576 = vmatprep.subr.bf16.mxu1 %v4919_v51  ;;  %v4998_v50 = vld [vmem:[%s5521_s29 + $0xb80] ss:$16 sps:$4 sm:$0xff]   ;;  %v5001_v51 = vld [vmem:[%s5521_s29 + $0xb88] ss:$16 sps:$4 sm:$0xff]  }
 0x1b1   : > { %3290 = vmatpush1.bf16.msra.mxu0 %v4914_v53  ;;  %3577 = vmatpush1.bf16.msra.mxu1 %v4917_v45  ;;  %v5009_v53 = vld [vmem:[%s5521_s29 + $0xbac] ss:$16 sps:$4 sm:$0xff]   ;;  %v5004_v45 = vld [vmem:[%s5521_s29 + $0xba0] ss:$16 sps:$4 sm:$0xff]  }
 0x1b2   : > { %3291 = vmatprep.subr.bf16.mxu0 %v4922_v54  ;;  %3578 = vmatprep.subr.bf16.mxu1 %v4925_v55  ;;  %v5007_v54 = vld [vmem:[%s5521_s29 + $0xba8] ss:$16 sps:$4 sm:$0xff]   ;;  %v5012_v55 = vld [vmem:[%s5521_s29 + $0xbc4] ss:$16 sps:$4 sm:$0xff]  }
 0x1b5   : > { %3292 = vmatpush1.bf16.msra.mxu0 %v4920_v29  ;;  %3579 = vmatpush1.bf16.msra.mxu1 %v4923_v57  ;;  %v5015_v29 = vld [vmem:[%s5521_s29 + $0xbcc] ss:$16 sps:$4 sm:$0xff]   ;;  %v5010_v57 = vld [vmem:[%s5521_s29 + $0xbc0] ss:$16 sps:$4 sm:$0xff]  }
 0x1b6   : > { %3302 = vmatprep.subr.bf16.mxu0 %v4928_v58  ;;  %3589 = vmatprep.subr.bf16.mxu1 %v4931_v59  ;;  %v5013_v58 = vld [vmem:[%s5521_s29 + $0xbc8] ss:$16 sps:$4 sm:$0xff]   ;;  %v5018_v59 = vld [vmem:[%s5521_s29 + $0xbe4] ss:$16 sps:$4 sm:$0xff]  }
 0x1b8   : > { %3294 = vmatmul.mubr.bf16.vlgmr.msra.gmra.mrb[0].mxu0 %v403_v61  ;;  %3581 = vmatmul.mubr.bf16.vlgmr.msra.gmra.mrb[0].mxu1 %v403_v61  ;;  %v5978_v61 = vld.sshfl [vmem:[%s5542_s9 + $0x18] sm:$0x33 pattern:$0x76325410] }
 0x1b9   : > { %3303 = vmatpush1.bf16.msra.mxu0 %v4926_v43  ;;  %3590 = vmatpush1.bf16.msra.mxu1 %v4929_v62  ;;  %v5016_v43 = vld [vmem:[%s5521_s29 + $0xbe0] ss:$16 sps:$4 sm:$0xff]   ;;  %v5019_v62 = vld [vmem:[%s5521_s29 + $0xbe8] ss:$16 sps:$4 sm:$0xff]  }
 0x1ba   : > { %3304 = vmatprep.subr.bf16.mxu0 %v4934_v63  ;;  %3591 = vmatprep.subr.bf16.mxu1 %v4937_v0  ;;  %v5025_v63 = vld [vmem:[%s5521_s29 + $0xc04] ss:$16 sps:$4 sm:$0xff]   ;;  %v5028_v0 = vld [vmem:[%s5521_s29 + $0xc0c] ss:$16 sps:$4 sm:$0xff]  }
 0x1bb   : > { %3334 = vmatprep.mubr.bf16.mxu0 %v406_v1  ;;  %3621 = vmatprep.mubr.bf16.mxu1 %v406_v1  ;;  %v380_v1 = vcombine.high %v5978_v61, %v5978_v61 }
 0x1bd   : > { %3305 = vmatpush1.bf16.msra.mxu0 %v4932_v49  ;;  %3592 = vmatpush1.bf16.msra.mxu1 %v4935_v2  ;;  %v405_v49 = vpack.c.bf16 %v5907_v56, %v5907_v56  ;;  %v5023_v2 = vld [vmem:[%s5521_s29 + $0xc00] ss:$16 sps:$4 sm:$0xff]  }
 0x1be   : > { %3306 = vmatprep.subr.bf16.mxu0 %v4940_v3  ;;  %3593 = vmatprep.subr.bf16.mxu1 %v4943_v4  ;;  %v5026_v3 = vld [vmem:[%s5521_s29 + $0xc08] ss:$16 sps:$4 sm:$0xff]   ;;  %v5031_v4 = vld [vmem:[%s5521_s29 + $0xc24] ss:$16 sps:$4 sm:$0xff]   ;;  %v5029_v56 = vld [vmem:[%s5521_s29 + $0xc20] ss:$16 sps:$4 sm:$0xff]  }
 0x1c1   : > { %3307 = vmatpush1.bf16.msra.mxu0 %v4938_v6  ;;  %3594 = vmatpush1.bf16.msra.mxu1 %v4941_v7  ;;  %v5034_v6 = vld [vmem:[%s5521_s29 + $0xc2c] ss:$16 sps:$4 sm:$0xff]   ;;  %v408_v7 = vpack.c.bf16 %v380_v1, %v380_v1 }
 0x1c2   : > { %3308 = vmatprep.subr.bf16.mxu0 %v4946_v8  ;;  %3595 = vmatprep.subr.bf16.mxu1 %v4949_v9  ;;  %v5032_v8 = vld [vmem:[%s5521_s29 + $0xc28] ss:$16 sps:$4 sm:$0xff]   ;;  %v5037_v9 = vld [vmem:[%s5521_s29 + $0xc44] ss:$16 sps:$4 sm:$0xff]   ;;  %v5118_v1 = vld [vmem:[%s5521_s29 + $0xdec] ss:$16 sps:$4 sm:$0xff]  }
 0x1c5   : > { %3309 = vmatpush1.bf16.msra.mxu0 %v4944_v10  ;;  %3596 = vmatpush1.bf16.msra.mxu1 %v4947_v11  ;;  %v5040_v10 = vld [vmem:[%s5521_s29 + $0xc4c] ss:$16 sps:$4 sm:$0xff]   ;;  %v5035_v11 = vld [vmem:[%s5521_s29 + $0xc40] ss:$16 sps:$4 sm:$0xff]  }
 0x1c6   : > { %3310 = vmatprep.subr.bf16.mxu0 %v4952_v12  ;;  %3597 = vmatprep.subr.bf16.mxu1 %v4955_v13  ;;  %v5038_v12 = vld [vmem:[%s5521_s29 + $0xc48] ss:$16 sps:$4 sm:$0xff]   ;;  %v5043_v13 = vld [vmem:[%s5521_s29 + $0xc64] ss:$16 sps:$4 sm:$0xff]  }
 0x1c9   : > { %3311 = vmatpush1.bf16.msra.mxu0 %v4950_v14  ;;  %3598 = vmatpush1.bf16.msra.mxu1 %v4953_v15  ;;  %v5046_v14 = vld [vmem:[%s5521_s29 + $0xc6c] ss:$16 sps:$4 sm:$0xff]   ;;  %v5041_v15 = vld [vmem:[%s5521_s29 + $0xc60] ss:$16 sps:$4 sm:$0xff]  }
 0x1ca   : > { %3312 = vmatprep.subr.bf16.mxu0 %v4958_v16  ;;  %3599 = vmatprep.subr.bf16.mxu1 %v4961_v17  ;;  %v5044_v16 = vld [vmem:[%s5521_s29 + $0xc68] ss:$16 sps:$4 sm:$0xff]   ;;  %v5049_v17 = vld [vmem:[%s5521_s29 + $0xc84] ss:$16 sps:$4 sm:$0xff]  }
 0x1cd   : > { %3313 = vmatpush1.bf16.msra.mxu0 %v4956_v18  ;;  %3600 = vmatpush1.bf16.msra.mxu1 %v4959_v19  ;;  %v5052_v18 = vld [vmem:[%s5521_s29 + $0xc8c] ss:$16 sps:$4 sm:$0xff]   ;;  %v5047_v19 = vld [vmem:[%s5521_s29 + $0xc80] ss:$16 sps:$4 sm:$0xff]  }
 0x1ce   : > { %3314 = vmatprep.subr.bf16.mxu0 %v4964_v20  ;;  %3601 = vmatprep.subr.bf16.mxu1 %v4967_v21  ;;  %v5050_v20 = vld [vmem:[%s5521_s29 + $0xc88] ss:$16 sps:$4 sm:$0xff]   ;;  %v5055_v21 = vld [vmem:[%s5521_s29 + $0xca4] ss:$16 sps:$4 sm:$0xff]  }
 0x1d1   : > { %3315 = vmatpush1.bf16.msra.mxu0 %v4962_v22  ;;  %3602 = vmatpush1.bf16.msra.mxu1 %v4965_v23  ;;  %v5058_v22 = vld [vmem:[%s5521_s29 + $0xcac] ss:$16 sps:$4 sm:$0xff]   ;;  %v5053_v23 = vld [vmem:[%s5521_s29 + $0xca0] ss:$16 sps:$4 sm:$0xff]  }
 0x1d2   : > { %3316 = vmatprep.subr.bf16.mxu0 %v4970_v24  ;;  %3603 = vmatprep.subr.bf16.mxu1 %v4973_v25  ;;  %v5056_v24 = vld [vmem:[%s5521_s29 + $0xca8] ss:$16 sps:$4 sm:$0xff]   ;;  %v5061_v25 = vld [vmem:[%s5521_s29 + $0xcc4] ss:$16 sps:$4 sm:$0xff]  }
 0x1d5   : > { %3317 = vmatpush1.bf16.msra.mxu0 %v4968_v26  ;;  %3604 = vmatpush1.bf16.msra.mxu1 %v4971_v27  ;;  %v5064_v26 = vld [vmem:[%s5521_s29 + $0xccc] ss:$16 sps:$4 sm:$0xff]   ;;  %v5059_v27 = vld [vmem:[%s5521_s29 + $0xcc0] ss:$16 sps:$4 sm:$0xff]  }
 0x1d6   : > { %3318 = vmatprep.subr.bf16.mxu0 %v4976_v28  ;;  %3605 = vmatprep.subr.bf16.mxu1 %v4979_v30  ;;  %v5062_v28 = vld [vmem:[%s5521_s29 + $0xcc8] ss:$16 sps:$4 sm:$0xff]   ;;  %v5067_v30 = vld [vmem:[%s5521_s29 + $0xce4] ss:$16 sps:$4 sm:$0xff]  }
 0x1d9   : > { %3319 = vmatpush1.bf16.msra.mxu0 %v4974_v31  ;;  %3606 = vmatpush1.bf16.msra.mxu1 %v4977_v32  ;;  %v5070_v31 = vld [vmem:[%s5521_s29 + $0xcec] ss:$16 sps:$4 sm:$0xff]   ;;  %v5065_v32 = vld [vmem:[%s5521_s29 + $0xce0] ss:$16 sps:$4 sm:$0xff]  }
 0x1da   : > { %3320 = vmatprep.subr.bf16.mxu0 %v4982_v33  ;;  %3607 = vmatprep.subr.bf16.mxu1 %v4985_v34  ;;  %v5068_v33 = vld [vmem:[%s5521_s29 + $0xce8] ss:$16 sps:$4 sm:$0xff]   ;;  %v5073_v34 = vld [vmem:[%s5521_s29 + $0xd04] ss:$16 sps:$4 sm:$0xff]  }
 0x1dd   : > { %3321 = vmatpush1.bf16.msra.mxu0 %v4980_v35  ;;  %3608 = vmatpush1.bf16.msra.mxu1 %v4983_v36  ;;  %v5076_v35 = vld [vmem:[%s5521_s29 + $0xd0c] ss:$16 sps:$4 sm:$0xff]   ;;  %v5071_v36 = vld [vmem:[%s5521_s29 + $0xd00] ss:$16 sps:$4 sm:$0xff]  }
 0x1de   : > { %3322 = vmatprep.subr.bf16.mxu0 %v4988_v37  ;;  %3609 = vmatprep.subr.bf16.mxu1 %v4991_v38  ;;  %v5074_v37 = vld [vmem:[%s5521_s29 + $0xd08] ss:$16 sps:$4 sm:$0xff]   ;;  %v5079_v38 = vld [vmem:[%s5521_s29 + $0xd24] ss:$16 sps:$4 sm:$0xff]  }
 0x1e1   : > { %3323 = vmatpush1.bf16.msra.mxu0 %v4986_v39  ;;  %3610 = vmatpush1.bf16.msra.mxu1 %v4989_v40  ;;  %v5082_v39 = vld [vmem:[%s5521_s29 + $0xd2c] ss:$16 sps:$4 sm:$0xff]   ;;  %v5077_v40 = vld [vmem:[%s5521_s29 + $0xd20] ss:$16 sps:$4 sm:$0xff]  }
 0x1e2   : > { %3324 = vmatprep.subr.bf16.mxu0 %v4994_v41  ;;  %3611 = vmatprep.subr.bf16.mxu1 %v4997_v42  ;;  %v5080_v41 = vld [vmem:[%s5521_s29 + $0xd28] ss:$16 sps:$4 sm:$0xff]   ;;  %v5085_v42 = vld [vmem:[%s5521_s29 + $0xd44] ss:$16 sps:$4 sm:$0xff]  }
 0x1e5   : > { %3325 = vmatpush1.bf16.msra.mxu0 %v4992_v44  ;;  %3612 = vmatpush1.bf16.msra.mxu1 %v4995_v46  ;;  %v5088_v44 = vld [vmem:[%s5521_s29 + $0xd4c] ss:$16 sps:$4 sm:$0xff]   ;;  %v5083_v46 = vld [vmem:[%s5521_s29 + $0xd40] ss:$16 sps:$4 sm:$0xff]  }
 0x1e6   : > { %3326 = vmatprep.subr.bf16.mxu0 %v5000_v47  ;;  %3613 = vmatprep.subr.bf16.mxu1 %v5003_v48  ;;  %v5086_v47 = vld [vmem:[%s5521_s29 + $0xd48] ss:$16 sps:$4 sm:$0xff]   ;;  %v5091_v48 = vld [vmem:[%s5521_s29 + $0xd64] ss:$16 sps:$4 sm:$0xff]  }
 0x1e9   : > { %3327 = vmatpush1.bf16.msra.mxu0 %v4998_v50  ;;  %3614 = vmatpush1.bf16.msra.mxu1 %v5001_v51  ;;  %v5094_v50 = vld [vmem:[%s5521_s29 + $0xd6c] ss:$16 sps:$4 sm:$0xff]   ;;  %v5089_v51 = vld [vmem:[%s5521_s29 + $0xd60] ss:$16 sps:$4 sm:$0xff]  }
 0x1ea   : > { %3328 = vmatprep.subr.bf16.mxu0 %v5006_v52  ;;  %3615 = vmatprep.subr.bf16.mxu1 %v5009_v53  ;;  %v5092_v52 = vld [vmem:[%s5521_s29 + $0xd68] ss:$16 sps:$4 sm:$0xff]   ;;  %v5097_v53 = vld [vmem:[%s5521_s29 + $0xd84] ss:$16 sps:$4 sm:$0xff]  }
 0x1ed   : > { %3329 = vmatpush1.bf16.msra.mxu0 %v5004_v45  ;;  %3616 = vmatpush1.bf16.msra.mxu1 %v5007_v54  ;;  %v5100_v45 = vld [vmem:[%s5521_s29 + $0xd8c] ss:$16 sps:$4 sm:$0xff]   ;;  %v5095_v54 = vld [vmem:[%s5521_s29 + $0xd80] ss:$16 sps:$4 sm:$0xff]  }
 0x1ee   : > { %3330 = vmatprep.subr.bf16.mxu0 %v5012_v55  ;;  %3617 = vmatprep.subr.bf16.mxu1 %v5015_v29  ;;  %v5098_v55 = vld [vmem:[%s5521_s29 + $0xd88] ss:$16 sps:$4 sm:$0xff]   ;;  %v5103_v29 = vld [vmem:[%s5521_s29 + $0xda4] ss:$16 sps:$4 sm:$0xff]  }
 0x1f1   : > { %3331 = vmatpush1.bf16.msra.mxu0 %v5010_v57  ;;  %3618 = vmatpush1.bf16.msra.mxu1 %v5013_v58  ;;  %v5106_v57 = vld [vmem:[%s5521_s29 + $0xdac] ss:$16 sps:$4 sm:$0xff]   ;;  %v5101_v58 = vld [vmem:[%s5521_s29 + $0xda0] ss:$16 sps:$4 sm:$0xff]  }
 0x1f2   : > { %3332 = vmatprep.subr.bf16.mxu0 %v5018_v59  ;;  %3619 = vmatprep.subr.bf16.mxu1 %v5021_v60  ;;  %v5104_v59 = vld [vmem:[%s5521_s29 + $0xda8] ss:$16 sps:$4 sm:$0xff]   ;;  %v5109_v60 = vld [vmem:[%s5521_s29 + $0xdc4] ss:$16 sps:$4 sm:$0xff]  }
 0x1f5   : > { %3333 = vmatpush1.bf16.msra.mxu0 %v5016_v43  ;;  %3620 = vmatpush1.bf16.msra.mxu1 %v5019_v62  ;;  %v5112_v43 = vld [vmem:[%s5521_s29 + $0xdcc] ss:$16 sps:$4 sm:$0xff]   ;;  %v5107_v62 = vld [vmem:[%s5521_s29 + $0xdc0] ss:$16 sps:$4 sm:$0xff]  }
 0x1f6   : > { %3343 = vmatprep.subr.bf16.mxu0 %v5025_v63  ;;  %3630 = vmatprep.subr.bf16.mxu1 %v5028_v0  ;;  %v5110_v63 = vld [vmem:[%s5521_s29 + $0xdc8] ss:$16 sps:$4 sm:$0xff]   ;;  %v5115_v0 = vld [vmem:[%s5521_s29 + $0xde4] ss:$16 sps:$4 sm:$0xff]  }
 0x1f8   : > { %3335 = vmatmul.mubr.bf16.vlgmr.msra.gmra.mrb[0].mxu0 %v405_v49  ;;  %3622 = vmatmul.mubr.bf16.vlgmr.msra.gmra.mrb[0].mxu1 %v405_v49  ;;  %v5113_v49 = vld [vmem:[%s5521_s29 + $0xde0] ss:$16 sps:$4 sm:$0xff]  }
 0x1f9   : > { %3344 = vmatpush1.bf16.msra.mxu0 %v5023_v2  ;;  %3631 = vmatpush1.bf16.msra.mxu1 %v5026_v3  ;;  %v5116_v2 = vld [vmem:[%s5521_s29 + $0xde8] ss:$16 sps:$4 sm:$0xff]   ;;  %v407_v3 = vpack.c.bf16 %v5978_v61, %v5978_v61 }
 0x1fa   : > { %3345 = vmatprep.subr.bf16.mxu0 %v5031_v4  ;;  %3632 = vmatprep.subr.bf16.mxu1 %v5034_v6 }
 0x1fb   : > { %3375 = vmatprep.mubr.bf16.mxu0 %v408_v7  ;;  %3662 = vmatprep.mubr.bf16.mxu1 %v408_v7 }
 0x1fd   : > { %3346 = vmatpush1.bf16.msra.mxu0 %v5029_v56  ;;  %3633 = vmatpush1.bf16.msra.mxu1 %v5032_v8 }
 0x1fe   : > { %3347 = vmatprep.subr.bf16.mxu0 %v5037_v9  ;;  %3634 = vmatprep.subr.bf16.mxu1 %v5040_v10 }
 0x201   : > { %3348 = vmatpush1.bf16.msra.mxu0 %v5035_v11  ;;  %3635 = vmatpush1.bf16.msra.mxu1 %v5038_v12 }
 0x202   : > { %3349 = vmatprep.subr.bf16.mxu0 %v5043_v13  ;;  %3636 = vmatprep.subr.bf16.mxu1 %v5046_v14 }
 0x205   : > { %3350 = vmatpush1.bf16.msra.mxu0 %v5041_v15  ;;  %3637 = vmatpush1.bf16.msra.mxu1 %v5044_v16  ;;  %v313_v15 = vld [vmem:[%s5537_s8] sm:$0xff] }
 0x206   : > { %3351 = vmatprep.subr.bf16.mxu0 %v5049_v17  ;;  %3638 = vmatprep.subr.bf16.mxu1 %v5052_v18 }
 0x209   : > { %3352 = vmatpush1.bf16.msra.mxu0 %v5047_v19  ;;  %3639 = vmatpush1.bf16.msra.mxu1 %v5050_v20 }
 0x20a   : > { %3353 = vmatprep.subr.bf16.mxu0 %v5055_v21  ;;  %3640 = vmatprep.subr.bf16.mxu1 %v5058_v22 }
 0x20d   : > { %3354 = vmatpush1.bf16.msra.mxu0 %v5053_v23  ;;  %3641 = vmatpush1.bf16.msra.mxu1 %v5056_v24 }
 0x20e   : > { %3355 = vmatprep.subr.bf16.mxu0 %v5061_v25  ;;  %3642 = vmatprep.subr.bf16.mxu1 %v5064_v26 }
 0x211   : > { %3356 = vmatpush1.bf16.msra.mxu0 %v5059_v27  ;;  %3643 = vmatpush1.bf16.msra.mxu1 %v5062_v28 }
 0x212   : > { %3357 = vmatprep.subr.bf16.mxu0 %v5067_v30  ;;  %3644 = vmatprep.subr.bf16.mxu1 %v5070_v31 }
 0x215   : > { %3358 = vmatpush1.bf16.msra.mxu0 %v5065_v32  ;;  %3645 = vmatpush1.bf16.msra.mxu1 %v5068_v33 }
 0x216   : > { %3359 = vmatprep.subr.bf16.mxu0 %v5073_v34  ;;  %3646 = vmatprep.subr.bf16.mxu1 %v5076_v35 }
 0x219   : > { %3360 = vmatpush1.bf16.msra.mxu0 %v5071_v36  ;;  %3647 = vmatpush1.bf16.msra.mxu1 %v5074_v37 }
 0x21a   : > { %3361 = vmatprep.subr.bf16.mxu0 %v5079_v38  ;;  %3648 = vmatprep.subr.bf16.mxu1 %v5082_v39 }
 0x21d   : > { %3362 = vmatpush1.bf16.msra.mxu0 %v5077_v40  ;;  %3649 = vmatpush1.bf16.msra.mxu1 %v5080_v41 }
 0x21e   : > { %3363 = vmatprep.subr.bf16.mxu0 %v5085_v42  ;;  %3650 = vmatprep.subr.bf16.mxu1 %v5088_v44 }
 0x221   : > { %3364 = vmatpush1.bf16.msra.mxu0 %v5083_v46  ;;  %3651 = vmatpush1.bf16.msra.mxu1 %v5086_v47 }
 0x222   : > { %3365 = vmatprep.subr.bf16.mxu0 %v5091_v48  ;;  %3652 = vmatprep.subr.bf16.mxu1 %v5094_v50 }
 0x225   : > { %3366 = vmatpush1.bf16.msra.mxu0 %v5089_v51  ;;  %3653 = vmatpush1.bf16.msra.mxu1 %v5092_v52 }
 0x226   : > { %3367 = vmatprep.subr.bf16.mxu0 %v5097_v53  ;;  %3654 = vmatprep.subr.bf16.mxu1 %v5100_v45 }
 0x229   : > { %3368 = vmatpush1.bf16.msra.mxu0 %v5095_v54  ;;  %3655 = vmatpush1.bf16.msra.mxu1 %v5098_v55 }
 0x22a   : > { %3369 = vmatprep.subr.bf16.mxu0 %v5103_v29  ;;  %3656 = vmatprep.subr.bf16.mxu1 %v5106_v57 }
 0x22d   : > { %3370 = vmatpush1.bf16.msra.mxu0 %v5101_v58  ;;  %3657 = vmatpush1.bf16.msra.mxu1 %v5104_v59 }
 0x22e   : > { %3371 = vmatprep.subr.bf16.mxu0 %v5109_v60  ;;  %3658 = vmatprep.subr.bf16.mxu1 %v5112_v43 }
 0x231   : > { %3372 = vmatpush1.bf16.msra.mxu0 %v5107_v62  ;;  %3659 = vmatpush1.bf16.msra.mxu1 %v5110_v63 }
 0x232   : > { %3373 = vmatprep.subr.bf16.mxu0 %v5115_v0  ;;  %3660 = vmatprep.subr.bf16.mxu1 %v5118_v1 }
 0x235   : > { %3374 = vmatpush1.bf16.msra.mxu0 %v5113_v49  ;;  %3661 = vmatpush1.bf16.msra.mxu1 %v5116_v2 }
 0x238   : > { %3376 = vmatmul.mubr.bf16.vlgmr.msra.gmra.mrb[0].mxu0 %v407_v3  ;;  %3663 = vmatmul.mubr.bf16.vlgmr.msra.gmra.mrb[0].mxu1 %v407_v3 }
 0x30b   : > { %v3377_v4 = vpop.f32.mrb[0].mxu0  ;;  %v3664_v6 = vpop.f32.mrb[0].mxu1 }
 0x30c   : > { %v3379_v7 = vpop.f32.mrb[1].mxu0  ;;  %v3666_v56 = vpop.f32.mrb[1].mxu1 }
 0x30d   : > { %v3675_v8 = vcombine.low %v3377_v4, %v3379_v7  ;;  %v3676_v9 = vcombine.low %v3664_v6, %v3666_v56  ;;  %v3381_v10 = vpop.f32.mrb[2].mxu0  ;;  %v3668_v11 = vpop.f32.mrb[2].mxu1 }
 0x30e   : > { %v3382_v12 = vpop.f32.mrb[3].mxu0  ;;  %v3669_v13 = vpop.f32.mrb[3].mxu1 }
 0x30f   : > { %v3683_v14 = vrot.slane %v3675_v8, %v5590_v5  ;;  %v3690_v61 = vrot.slane %v3676_v9, %v5590_v5  ;;  %3698 = sbr.rel (%p4284_p3) target bundleno = 800 (0x320), region = 48 }
 0x311   : > { %v3691_v16 = vcombine.low %v3683_v14, %v3690_v61 }
 0x313   : > { %v3693_v17 = vadd.f32 %v3691_v16, %v313_v15 }
 0x315   : > { %3694 = vst [vmem:[%s5537_s8] sm:$0xff] %v3693_v17 }
 0x31c   : > { %v3699_v18 = vld [vmem:[%s5537_s8] sm:$0xff] }
 0x31d   : > { %v3700_v19 = vmax.f32 %v3699_v18, 0.0 }
 0x31f   : > { %3701 = vst [vmem:[%s5537_s8] sm:$0xff] %v3700_v19 }
 0x320 PF: > { %s19_s22 = sadd.s32 1, %s5273_s22   ;;  %s6119_s29 = sld [smem:[#allocation8_spill]] }
 0x321   : > { %p16_p11 = scmp.ge.s32.totalorder %s19_s22, 16   ;;  %s6120_s12 = smov %s5237_s13 }
 0x322   : > { %s6121_s13 = smov %s5241_s14  ;;  %s6122_s14 = smov %s5470_s10 }
 0x323   : > { %s6123_s15 = smov %s5249_s16  ;;  %s6124_s16 = smov %s5253_s17 }
 0x324   : > { %s6125_s17 = smov %s5475_s28  ;;  %s6126_s18 = smov %s5265_s20 }
 0x325   : > { %s6127_s19 = smov %s5269_s21  ;;  %s6128_s20 = smov %s6131_s23 }
 0x326   : > { %s6129_s21 = smov %s6119_s29  ;;  %18 = sbr.rel (!%p16_p11) target bundleno = 11 (0xb), region = 96 }
 0x32d   :  { %3724 = vsyncpa [#allocation3], 1 }
 0x32e   :  { %3726 = vsyncpa [#allocation3 + $0x1], 1 }
 0x32f   :  { %3727 = vsyncpa [#allocation5], 1 }
 0x330   :  { %3729 = vsyncpa [#allocation5 + $0x1], 1 }

// kernel: roi_pre_forward.5
= control target key start
LH: loop header
LB: loop body
LE: loop exit
PB: predicated region body
PF: predicated region fallthrough
CT: control target
= control target key end

     0   :  { %s2500_s18 = smov 0   ;;  %s2885_s0 = inlined_call_operand.vmem [shape: f32[2,1024], index: 0, kind: input, shape index: {}]   ;;  %s2886_s1 = inlined_call_operand.vmem [shape: bf16[1024,1024], index: 1, kind: input, shape index: {}]   ;;  %s2887_s2 = inlined_call_operand.vmem [shape: f32[1,1024], index: 2, kind: input, shape index: {}]   ;;  %s2888_s3 = inlined_call_operand.vmem [shape: bf16[1024,128], index: 3, kind: input, shape index: {}]   ;;  %s2889_s4 = inlined_call_operand.vmem [shape: f32[1,128], index: 4, kind: input, shape index: {}]   ;;  %s2890_s5 = inlined_call_operand.vmem [shape: f32[2,128], index: 5, kind: output, shape index: {}]  }
   0x1 LB: > { %s2506_s19 = sadd.s32 4294967295, %s2466_s18   ;;  %p2093_p0 = scmp.ge.s32.totalorder %s2466_s18, 1  ;;  %s2466_s18 = sphi %s2500_s18, %s15_s18  }
   0x2   : > { %p195_p1 = scmp.lt.s32.totalorder %s2466_s18, 5 }
   0x4   : > { %p196_p2 = pnand %p2093_p0, %p195_p1 }
   0x5   : > { %s2094_s20 = sshll.u32 (!%p196_p2), %s2506_s19, 1  ;;  %s2096_s21 = sshll.u32 (!%p196_p2), %s2506_s19, 5 }
   0x6   : > { %199 = sbr.rel (%p196_p2) target bundleno = 626 (0x272), region = 40  ;;  %p225_p3 = scmp.lt.s32.totalorder (!%p196_p2), %s2094_s20, 7 }
   0x7   : > { %p231_p4 = scmp.lt.s32.totalorder (!%p196_p2), %s2096_s21, 127  ;;  %p2099_p5 = scmp.ne.s32.totalorder (!%p196_p2), %s2506_s19, 0 }
   0xd   : > { %s2892_s20 = smov (!%p225_p3, %s2094_s20), 7  ;;  %s2894_s21 = smov (!%p231_p4, %s2096_s21), 127 }
   0xe   : > { %s2095_s22 = sshll.u32 %s2892_s20, 1  ;;  %s2297_s26 = sshll.u32 %s2894_s21, 5  ;;  %v244_v0 = vlaneseq (!%p2099_p5)  ;;  %v2468_v1 = vmov (!%p2099_p5), 1983009808   ;;  %v242_v4 = vld [vmem:[%s2887_s2] sm:$0xff] (!%p2099_p5) }
   0xf   : > { %s2515_s25 = scalar_lea.vmem %s2885_s0, %s2095_s22  ;;  %s2520_s29 = scalar_lea.vmem %s2886_s1, %s2297_s26  ;;  %v279_v2 = vunpack.c.l.s4 (!%p2099_p5), %v2468_v1 }
  0x10   : > { %241 = sbr.rel (%p2099_p5) target bundleno = 32 (0x20), region = 44  ;;  %v245_v3 = vshrl.u32 (!%p2099_p5), %v244_v0, 7 }
  0x11   : > { %v280_v5 = vunpack.c.0.s8 (!%p2099_p5), %v279_v2 }
  0x12   : > { %v246_v6 = vsub.s32 (!%p2099_p5), 0, %v245_v3  ;;  %v250_v7 = vsub.s32 (!%p2099_p5), 1, %v245_v3  ;;  %v254_v8 = vsub.s32 (!%p2099_p5), 2, %v245_v3  ;;  %v258_v9 = vsub.s32 (!%p2099_p5), 3, %v245_v3 }
  0x13   : > { %v283_v10 = vsub.s32 (!%p2099_p5), %v280_v5, %v245_v3  ;;  %v262_v11 = vsub.s32 (!%p2099_p5), 4, %v245_v3  ;;  %v266_v12 = vsub.s32 (!%p2099_p5), 5, %v245_v3  ;;  %v270_v13 = vsub.s32 (!%p2099_p5), 6, %v245_v3 }
  0x14   : > { %v247_v14 = vrot.slane (!%p2099_p5), %v242_v4, %v246_v6  ;;  %v251_v15 = vrot.slane (!%p2099_p5), %v242_v4, %v250_v7  ;;  %v255_v16 = vrot.slane (!%p2099_p5), %v242_v4, %v254_v8  ;;  %v259_v17 = vrot.slane (!%p2099_p5), %v242_v4, %v258_v9 }
  0x15   : > { %v263_v18 = vrot.slane (!%p2099_p5), %v242_v4, %v262_v11  ;;  %v267_v19 = vrot.slane (!%p2099_p5), %v242_v4, %v266_v12  ;;  %v271_v20 = vrot.slane (!%p2099_p5), %v242_v4, %v270_v13  ;;  %v274_v21 = vsub.s32 (!%p2099_p5), 7, %v245_v3 }
  0x16   : > { %v276_v22 = vcombine.low (!%p2099_p5), %v247_v14, %v251_v15  ;;  %v277_v23 = vcombine.low (!%p2099_p5), %v255_v16, %v259_v17 }
  0x17   : > { %v275_v24 = vrot.slane %v242_v4, %v274_v21  ;;  %v293_v25 = vcombine.low %v263_v18, %v267_v19 }
  0x18   : > { %v284_v26 = vrot.slane %v276_v22, %v283_v10  ;;  %v291_v27 = vrot.slane %v277_v23, %v283_v10 }
  0x19   : > { %v294_v28 = vcombine.low %v271_v20, %v275_v24  ;;  %v301_v29 = vrot.slane %v293_v25, %v283_v10 }
  0x1a   : > { %v292_v30 = vcombine.low %v284_v26, %v291_v27 }
  0x1b   : > { %v308_v31 = vrot.slane %v294_v28, %v283_v10 }
  0x1c   : > { %312 = vst [vmem:[#allocation2] sm:$0xff] %v292_v30 }
  0x1d   : > { %v309_v32 = vcombine.low %v301_v29, %v308_v31 }
  0x1f   : > { %313 = vst [vmem:[#allocation2 + $0x8] sm:$0xff] %v309_v32 }
  0x20 PF: > { %v330_v33 = vld [vmem:[%s2520_s29] sm:$0xff]  ;;  %v331_v35 = vld [vmem:[%s2520_s29 + $0x8] sm:$0xff]  ;;  %p2229_p6 = scmp.ne.s32.totalorder %s2506_s19, 3 }
  0x21   : > { %v334_v34 = vld [vmem:[%s2520_s29 + $0x20] sm:$0xff]  ;;  %v335_v37 = vld [vmem:[%s2520_s29 + $0x28] sm:$0xff] }
  0x22   : > { %v2102_v36 = vcombine.high %v330_v33, %v334_v34  ;;  %v2101_v38 = vcombine.low %v330_v33, %v334_v34  ;;  %v338_v39 = vld [vmem:[%s2520_s29 + $0x40] sm:$0xff]  ;;  %v2104_v41 = vcombine.high %v331_v35, %v335_v37  ;;  %v2103_v42 = vcombine.low %v331_v35, %v335_v37  ;;  %v339_v44 = vld [vmem:[%s2520_s29 + $0x48] sm:$0xff] }
  0x23   : > { %v342_v40 = vld [vmem:[%s2520_s29 + $0x60] sm:$0xff]  ;;  %v343_v45 = vld [vmem:[%s2520_s29 + $0x68] sm:$0xff] }
  0x24   : > { %v2110_v43 = vcombine.high %v338_v39, %v342_v40  ;;  %v346_v46 = vld [vmem:[%s2520_s29 + $0x80] sm:$0xff]  ;;  %1098 = vmatprep.subr.bf16.mxu0 %v2102_v36  ;;  %v2112_v47 = vcombine.high %v339_v44, %v343_v45  ;;  %v347_v49 = vld [vmem:[%s2520_s29 + $0x88] sm:$0xff]  ;;  %1139 = vmatprep.subr.bf16.mxu1 %v2104_v41  ;;  %v2109_v51 = vcombine.low %v338_v39, %v342_v40 }
  0x25   : > { %v350_v48 = vld [vmem:[%s2520_s29 + $0xa0] sm:$0xff]  ;;  %v351_v50 = vld [vmem:[%s2520_s29 + $0xa8] sm:$0xff]  ;;  %1099 = vmatpush1.bf16.msra.mxu0 %v2101_v38  ;;  %1140 = vmatpush1.bf16.msra.mxu1 %v2103_v42  ;;  %v2111_v52 = vcombine.low %v339_v44, %v343_v45 }
  0x26   : > { %1100 = vmatprep.subr.bf16.mxu0 %v2110_v43  ;;  %v2118_v53 = vcombine.high %v346_v46, %v350_v48  ;;  %1141 = vmatprep.subr.bf16.mxu1 %v2112_v47  ;;  %v2120_v54 = vcombine.high %v347_v49, %v351_v50  ;;  %v354_v55 = vld [vmem:[%s2520_s29 + $0xc0] sm:$0xff]  ;;  %v355_v57 = vld [vmem:[%s2520_s29 + $0xc8] sm:$0xff]  ;;  %v2117_v59 = vcombine.low %v346_v46, %v350_v48 }
  0x27   : > { %v358_v56 = vld [vmem:[%s2520_s29 + $0xe0] sm:$0xff]  ;;  %v359_v58 = vld [vmem:[%s2520_s29 + $0xe8] sm:$0xff]  ;;  %v2119_v60 = vcombine.low %v347_v49, %v351_v50 }
  0x28   : > { %v2126_v61 = vcombine.high %v354_v55, %v358_v56  ;;  %v2128_v62 = vcombine.high %v355_v57, %v359_v58  ;;  %v362_v63 = vld [vmem:[%s2520_s29 + $0x100] sm:$0xff]  ;;  %v363_v1 = vld [vmem:[%s2520_s29 + $0x108] sm:$0xff]  ;;  %v2125_v3 = vcombine.low %v354_v55, %v358_v56  ;;  %v2127_v4 = vcombine.low %v355_v57, %v359_v58 }
  0x29   : > { %1101 = vmatpush1.bf16.msra.mxu0 %v2109_v51  ;;  %1142 = vmatpush1.bf16.msra.mxu1 %v2111_v52  ;;  %v366_v0 = vld [vmem:[%s2520_s29 + $0x120] sm:$0xff]  ;;  %v367_v2 = vld [vmem:[%s2520_s29 + $0x128] sm:$0xff] }
  0x2a   : > { %1102 = vmatprep.subr.bf16.mxu0 %v2118_v53  ;;  %1143 = vmatprep.subr.bf16.mxu1 %v2120_v54  ;;  %v2134_v5 = vcombine.high %v362_v63, %v366_v0  ;;  %v2136_v6 = vcombine.high %v363_v1, %v367_v2  ;;  %v370_v7 = vld [vmem:[%s2520_s29 + $0x140] sm:$0xff]  ;;  %v371_v9 = vld [vmem:[%s2520_s29 + $0x148] sm:$0xff]  ;;  %v2133_v11 = vcombine.low %v362_v63, %v366_v0 }
  0x2b   : > { %v374_v8 = vld [vmem:[%s2520_s29 + $0x160] sm:$0xff]  ;;  %v375_v10 = vld [vmem:[%s2520_s29 + $0x168] sm:$0xff]  ;;  %v2135_v12 = vcombine.low %v363_v1, %v367_v2 }
  0x2c   : > { %v2142_v13 = vcombine.high %v370_v7, %v374_v8  ;;  %v2144_v14 = vcombine.high %v371_v9, %v375_v10  ;;  %v378_v15 = vld [vmem:[%s2520_s29 + $0x180] sm:$0xff]  ;;  %v379_v17 = vld [vmem:[%s2520_s29 + $0x188] sm:$0xff]  ;;  %v2141_v19 = vcombine.low %v370_v7, %v374_v8  ;;  %v2143_v20 = vcombine.low %v371_v9, %v375_v10 }
  0x2d   : > { %1103 = vmatpush1.bf16.msra.mxu0 %v2117_v59  ;;  %1144 = vmatpush1.bf16.msra.mxu1 %v2119_v60  ;;  %v382_v16 = vld [vmem:[%s2520_s29 + $0x1a0] sm:$0xff]  ;;  %v383_v18 = vld [vmem:[%s2520_s29 + $0x1a8] sm:$0xff] }
  0x2e   : > { %1104 = vmatprep.subr.bf16.mxu0 %v2126_v61  ;;  %1145 = vmatprep.subr.bf16.mxu1 %v2128_v62  ;;  %v2150_v21 = vcombine.high %v378_v15, %v382_v16  ;;  %v2555_v22 = vld.sshfl [vmem:[%s2515_s25] sm:$0x33 pattern:$0x76325410]  ;;  %v2152_v23 = vcombine.high %v379_v17, %v383_v18  ;;  %v387_v27 = vld [vmem:[%s2520_s29 + $0x1c8] sm:$0xff]  ;;  %v2149_v29 = vcombine.low %v378_v15, %v382_v16 }
  0x2f   : > { %v386_v24 = vld [vmem:[%s2520_s29 + $0x1c0] sm:$0xff]  ;;  %v325_v26 = vcombine.high %v2555_v22, %v2555_v22  ;;  %v391_v28 = vld [vmem:[%s2520_s29 + $0x1e8] sm:$0xff]  ;;  %v2151_v31 = vcombine.low %v379_v17, %v383_v18 }
  0x30   : > { %v390_v25 = vld [vmem:[%s2520_s29 + $0x1e0] sm:$0xff]  ;;  %v2160_v33 = vcombine.high %v387_v27, %v391_v28  ;;  %v395_v36 = vld [vmem:[%s2520_s29 + $0x208] sm:$0xff]  ;;  %v2159_v39 = vcombine.low %v387_v27, %v391_v28 }
  0x31   : > { %1105 = vmatpush1.bf16.msra.mxu0 %v2125_v3  ;;  %1146 = vmatpush1.bf16.msra.mxu1 %v2127_v4  ;;  %v2563_v30 = vpack.c.bf16 %v325_v26, %v325_v26  ;;  %v2158_v32 = vcombine.high %v386_v24, %v390_v25  ;;  %v394_v34 = vld [vmem:[%s2520_s29 + $0x200] sm:$0xff]  ;;  %v399_v37 = vld [vmem:[%s2520_s29 + $0x228] sm:$0xff]  ;;  %v2157_v38 = vcombine.low %v386_v24, %v390_v25 }
  0x32   : > { %1106 = vmatprep.subr.bf16.mxu0 %v2134_v5  ;;  %1147 = vmatprep.subr.bf16.mxu1 %v2136_v6  ;;  %v398_v35 = vld [vmem:[%s2520_s29 + $0x220] sm:$0xff]  ;;  %v2168_v41 = vcombine.high %v395_v36, %v399_v37  ;;  %v403_v44 = vld [vmem:[%s2520_s29 + $0x248] sm:$0xff]  ;;  %v2167_v47 = vcombine.low %v395_v36, %v399_v37  ;;  %v332_v36 = vld [vmem:[%s2520_s29 + $0x10] sm:$0xff] }
  0x33   : > { %1130 = vmatprep.mubr.bf16.mxu0 %v2563_v30  ;;  %1171 = vmatprep.mubr.bf16.mxu1 %v2563_v30  ;;  %v2166_v40 = vcombine.high %v394_v34, %v398_v35  ;;  %v402_v42 = vld [vmem:[%s2520_s29 + $0x240] sm:$0xff]  ;;  %v407_v45 = vld [vmem:[%s2520_s29 + $0x268] sm:$0xff]  ;;  %v2165_v46 = vcombine.low %v394_v34, %v398_v35  ;;  %v336_v37 = vld [vmem:[%s2520_s29 + $0x30] sm:$0xff] }
  0x34   : > { %v406_v43 = vld [vmem:[%s2520_s29 + $0x260] sm:$0xff]  ;;  %v2176_v49 = vcombine.high %v403_v44, %v407_v45  ;;  %v411_v52 = vld [vmem:[%s2520_s29 + $0x288] sm:$0xff]  ;;  %v2175_v55 = vcombine.low %v403_v44, %v407_v45  ;;  %v340_v44 = vld [vmem:[%s2520_s29 + $0x50] sm:$0xff] }
  0x35   : > { %1107 = vmatpush1.bf16.msra.mxu0 %v2133_v11  ;;  %1148 = vmatpush1.bf16.msra.mxu1 %v2135_v12  ;;  %v2174_v48 = vcombine.high %v402_v42, %v406_v43  ;;  %v410_v50 = vld [vmem:[%s2520_s29 + $0x280] sm:$0xff]  ;;  %v415_v53 = vld [vmem:[%s2520_s29 + $0x2a8] sm:$0xff]  ;;  %v2173_v54 = vcombine.low %v402_v42, %v406_v43  ;;  %v2106_v42 = vcombine.high %v332_v36, %v336_v37  ;;  %v344_v45 = vld [vmem:[%s2520_s29 + $0x70] sm:$0xff] }
  0x36   : > { %1108 = vmatprep.subr.bf16.mxu0 %v2142_v13  ;;  %1149 = vmatprep.subr.bf16.mxu1 %v2144_v14  ;;  %v414_v51 = vld [vmem:[%s2520_s29 + $0x2a0] sm:$0xff]  ;;  %v2184_v57 = vcombine.high %v411_v52, %v415_v53  ;;  %v419_v60 = vld [vmem:[%s2520_s29 + $0x2c8] sm:$0xff]  ;;  %v2183_v63 = vcombine.low %v411_v52, %v415_v53  ;;  %v348_v53 = vld [vmem:[%s2520_s29 + $0x90] sm:$0xff] }
  0x37   : > { %v2182_v56 = vcombine.high %v410_v50, %v414_v51  ;;  %v418_v58 = vld [vmem:[%s2520_s29 + $0x2c0] sm:$0xff]  ;;  %v423_v61 = vld [vmem:[%s2520_s29 + $0x2e8] sm:$0xff]  ;;  %v2181_v62 = vcombine.low %v410_v50, %v414_v51  ;;  %v2114_v51 = vcombine.high %v340_v44, %v344_v45 }
  0x38   : > { %v422_v59 = vld [vmem:[%s2520_s29 + $0x2e0] sm:$0xff]  ;;  %v2192_v1 = vcombine.high %v419_v60, %v423_v61  ;;  %v427_v4 = vld [vmem:[%s2520_s29 + $0x308] sm:$0xff]  ;;  %v2191_v7 = vcombine.low %v419_v60, %v423_v61  ;;  %v356_v60 = vld [vmem:[%s2520_s29 + $0xd0] sm:$0xff] }
  0x39   : > { %1109 = vmatpush1.bf16.msra.mxu0 %v2141_v19  ;;  %1150 = vmatpush1.bf16.msra.mxu1 %v2143_v20  ;;  %v2190_v0 = vcombine.high %v418_v58, %v422_v59  ;;  %v426_v2 = vld [vmem:[%s2520_s29 + $0x300] sm:$0xff]  ;;  %v431_v5 = vld [vmem:[%s2520_s29 + $0x328] sm:$0xff]  ;;  %v2189_v6 = vcombine.low %v418_v58, %v422_v59  ;;  %v360_v61 = vld [vmem:[%s2520_s29 + $0xf0] sm:$0xff] }
  0x3a   : > { %1110 = vmatprep.subr.bf16.mxu0 %v2150_v21  ;;  %1151 = vmatprep.subr.bf16.mxu1 %v2152_v23  ;;  %v430_v3 = vld [vmem:[%s2520_s29 + $0x320] sm:$0xff]  ;;  %v2200_v9 = vcombine.high %v427_v4, %v431_v5  ;;  %v435_v12 = vld [vmem:[%s2520_s29 + $0x348] sm:$0xff]  ;;  %v2199_v15 = vcombine.low %v427_v4, %v431_v5  ;;  %v364_v4 = vld [vmem:[%s2520_s29 + $0x110] sm:$0xff] }
  0x3b   : > { %v2198_v8 = vcombine.high %v426_v2, %v430_v3  ;;  %v434_v10 = vld [vmem:[%s2520_s29 + $0x340] sm:$0xff]  ;;  %v439_v13 = vld [vmem:[%s2520_s29 + $0x368] sm:$0xff]  ;;  %v2197_v14 = vcombine.low %v426_v2, %v430_v3  ;;  %v2130_v2 = vcombine.high %v356_v60, %v360_v61  ;;  %v368_v5 = vld [vmem:[%s2520_s29 + $0x130] sm:$0xff] }
  0x3c   : > { %v438_v11 = vld [vmem:[%s2520_s29 + $0x360] sm:$0xff]  ;;  %v2208_v17 = vcombine.high %v435_v12, %v439_v13  ;;  %v443_v20 = vld [vmem:[%s2520_s29 + $0x388] sm:$0xff]  ;;  %v2207_v24 = vcombine.low %v435_v12, %v439_v13  ;;  %v376_v12 = vld [vmem:[%s2520_s29 + $0x170] sm:$0xff] }
  0x3d   : > { %1111 = vmatpush1.bf16.msra.mxu0 %v2149_v29  ;;  %1152 = vmatpush1.bf16.msra.mxu1 %v2151_v31  ;;  %v2206_v16 = vcombine.high %v434_v10, %v438_v11  ;;  %v442_v18 = vld [vmem:[%s2520_s29 + $0x380] sm:$0xff]  ;;  %v447_v21 = vld [vmem:[%s2520_s29 + $0x3a8] sm:$0xff]  ;;  %v2205_v23 = vcombine.low %v434_v10, %v438_v11  ;;  %v372_v11 = vld [vmem:[%s2520_s29 + $0x150] sm:$0xff] }
  0x3e   : > { %1112 = vmatprep.subr.bf16.mxu0 %v2158_v32  ;;  %1153 = vmatprep.subr.bf16.mxu1 %v2160_v33  ;;  %v446_v19 = vld [vmem:[%s2520_s29 + $0x3a0] sm:$0xff]  ;;  %v2216_v26 = vcombine.high %v443_v20, %v447_v21  ;;  %v451_v29 = vld [vmem:[%s2520_s29 + $0x3c8] sm:$0xff]  ;;  %v2215_v33 = vcombine.low %v443_v20, %v447_v21  ;;  %v373_v13 = vld [vmem:[%s2520_s29 + $0x158] sm:$0xff] }
  0x3f   : > { %v2214_v25 = vcombine.high %v442_v18, %v446_v19  ;;  %v450_v27 = vld [vmem:[%s2520_s29 + $0x3c0] sm:$0xff]  ;;  %v455_v31 = vld [vmem:[%s2520_s29 + $0x3e8] sm:$0xff]  ;;  %v2213_v32 = vcombine.low %v442_v18, %v446_v19  ;;  %v380_v19 = vld [vmem:[%s2520_s29 + $0x190] sm:$0xff] }
  0x40   : > { %v454_v28 = vld [vmem:[%s2520_s29 + $0x3e0] sm:$0xff]  ;;  %v2224_v35 = vcombine.high %v451_v29, %v455_v31  ;;  %v384_v20 = vld [vmem:[%s2520_s29 + $0x1b0] sm:$0xff]  ;;  %v381_v21 = vld [vmem:[%s2520_s29 + $0x198] sm:$0xff] }
  0x41   : > { %1113 = vmatpush1.bf16.msra.mxu0 %v2157_v38  ;;  %1154 = vmatpush1.bf16.msra.mxu1 %v2159_v39  ;;  %v2222_v34 = vcombine.high %v450_v27, %v454_v28  ;;  %v333_v38 = vld [vmem:[%s2520_s29 + $0x18] sm:$0xff] }
  0x42   : > { %1114 = vmatprep.subr.bf16.mxu0 %v2166_v40  ;;  %1155 = vmatprep.subr.bf16.mxu1 %v2168_v41  ;;  %v337_v39 = vld [vmem:[%s2520_s29 + $0x38] sm:$0xff]  ;;  %v2221_v40 = vcombine.low %v450_v27, %v454_v28  ;;  %v2223_v41 = vcombine.low %v451_v29, %v455_v31  ;;  %v388_v28 = vld [vmem:[%s2520_s29 + $0x1d0] sm:$0xff] }
  0x43   : > { %v2108_v43 = vcombine.high %v333_v38, %v337_v39  ;;  %v2107_v50 = vcombine.low %v333_v38, %v337_v39  ;;  %v392_v29 = vld [vmem:[%s2520_s29 + $0x1f0] sm:$0xff]  ;;  %v389_v31 = vld [vmem:[%s2520_s29 + $0x1d8] sm:$0xff] }
  0x44   : > { %v400_v38 = vld [vmem:[%s2520_s29 + $0x230] sm:$0xff]  ;;  %v397_v39 = vld [vmem:[%s2520_s29 + $0x218] sm:$0xff] }
  0x45   : > { %1115 = vmatpush1.bf16.msra.mxu0 %v2165_v46  ;;  %1156 = vmatpush1.bf16.msra.mxu1 %v2167_v47  ;;  %v2607_v46 = vpack.c.bf16 %v2555_v22, %v2555_v22  ;;  %v341_v47 = vld [vmem:[%s2520_s29 + $0x58] sm:$0xff] }
  0x46   : > { %1116 = vmatprep.subr.bf16.mxu0 %v2174_v48  ;;  %1157 = vmatprep.subr.bf16.mxu1 %v2176_v49  ;;  %v345_v48 = vld [vmem:[%s2520_s29 + $0x78] sm:$0xff]  ;;  %v2105_v49 = vcombine.low %v332_v36, %v336_v37  ;;  %v396_v37 = vld [vmem:[%s2520_s29 + $0x210] sm:$0xff] }
  0x47   : > { %v2116_v52 = vcombine.high %v341_v47, %v345_v48  ;;  %v349_v22 = vld [vmem:[%s2520_s29 + $0x98] sm:$0xff] }
  0x49   : > { %1117 = vmatpush1.bf16.msra.mxu0 %v2173_v54  ;;  %1158 = vmatpush1.bf16.msra.mxu1 %v2175_v55  ;;  %v352_v54 = vld [vmem:[%s2520_s29 + $0xb0] sm:$0xff]  ;;  %v353_v55 = vld [vmem:[%s2520_s29 + $0xb8] sm:$0xff] }
  0x4a   : > { %1118 = vmatprep.subr.bf16.mxu0 %v2182_v56  ;;  %1159 = vmatprep.subr.bf16.mxu1 %v2184_v57  ;;  %v2113_v56 = vcombine.low %v340_v44, %v344_v45  ;;  %v2115_v57 = vcombine.low %v341_v47, %v345_v48  ;;  %v2122_v58 = vcombine.high %v348_v53, %v352_v54  ;;  %v404_v45 = vld [vmem:[%s2520_s29 + $0x250] sm:$0xff]  ;;  %v405_v48 = vld [vmem:[%s2520_s29 + $0x258] sm:$0xff] }
  0x4b   : > { %v2124_v59 = vcombine.high %v349_v22, %v353_v55  ;;  %v408_v47 = vld [vmem:[%s2520_s29 + $0x270] sm:$0xff] }
  0x4d   : > { %1119 = vmatpush1.bf16.msra.mxu0 %v2181_v62  ;;  %1160 = vmatpush1.bf16.msra.mxu1 %v2183_v63  ;;  %v357_v62 = vld [vmem:[%s2520_s29 + $0xd8] sm:$0xff] }
  0x4e   : > { %1120 = vmatprep.subr.bf16.mxu0 %v2190_v0  ;;  %1161 = vmatprep.subr.bf16.mxu1 %v2192_v1  ;;  %v361_v63 = vld [vmem:[%s2520_s29 + $0xf8] sm:$0xff]  ;;  %v2121_v0 = vcombine.low %v348_v53, %v352_v54  ;;  %v2123_v1 = vcombine.low %v349_v22, %v353_v55  ;;  %v412_v54 = vld [vmem:[%s2520_s29 + $0x290] sm:$0xff] }
  0x4f   : > { %v2132_v3 = vcombine.high %v357_v62, %v361_v63  ;;  %v416_v22 = vld [vmem:[%s2520_s29 + $0x2b0] sm:$0xff]  ;;  %v413_v55 = vld [vmem:[%s2520_s29 + $0x298] sm:$0xff] }
  0x51   : > { %1121 = vmatpush1.bf16.msra.mxu0 %v2189_v6  ;;  %1162 = vmatpush1.bf16.msra.mxu1 %v2191_v7  ;;  %v365_v6 = vld [vmem:[%s2520_s29 + $0x118] sm:$0xff] }
  0x52   : > { %1122 = vmatprep.subr.bf16.mxu0 %v2198_v8  ;;  %1163 = vmatprep.subr.bf16.mxu1 %v2200_v9  ;;  %v369_v7 = vld [vmem:[%s2520_s29 + $0x138] sm:$0xff]  ;;  %v2129_v8 = vcombine.low %v356_v60, %v360_v61  ;;  %v2138_v9 = vcombine.high %v364_v4, %v368_v5  ;;  %v420_v61 = vld [vmem:[%s2520_s29 + $0x2d0] sm:$0xff] }
  0x53   : > { %v2140_v10 = vcombine.high %v365_v6, %v369_v7 }
  0x55   : > { %1123 = vmatpush1.bf16.msra.mxu0 %v2197_v14  ;;  %1164 = vmatpush1.bf16.msra.mxu1 %v2199_v15  ;;  %v377_v14 = vld [vmem:[%s2520_s29 + $0x178] sm:$0xff]  ;;  %v2137_v15 = vcombine.low %v364_v4, %v368_v5  ;;  %v428_v5 = vld [vmem:[%s2520_s29 + $0x310] sm:$0xff] }
  0x56   : > { %1124 = vmatprep.subr.bf16.mxu0 %v2206_v16  ;;  %1165 = vmatprep.subr.bf16.mxu1 %v2208_v17  ;;  %v2139_v16 = vcombine.low %v365_v6, %v369_v7  ;;  %v2146_v17 = vcombine.high %v372_v11, %v376_v12  ;;  %v2148_v18 = vcombine.high %v373_v13, %v377_v14  ;;  %v432_v6 = vld [vmem:[%s2520_s29 + $0x330] sm:$0xff]  ;;  %v429_v7 = vld [vmem:[%s2520_s29 + $0x318] sm:$0xff] }
  0x59   : > { %1125 = vmatpush1.bf16.msra.mxu0 %v2205_v23  ;;  %1166 = vmatpush1.bf16.msra.mxu1 %v2207_v24  ;;  %v385_v23 = vld [vmem:[%s2520_s29 + $0x1b8] sm:$0xff]  ;;  %v2145_v24 = vcombine.low %v372_v11, %v376_v12  ;;  %v436_v12 = vld [vmem:[%s2520_s29 + $0x350] sm:$0xff] }
  0x5a   : > { %1126 = vmatprep.subr.bf16.mxu0 %v2214_v25  ;;  %1167 = vmatprep.subr.bf16.mxu1 %v2216_v26  ;;  %v2147_v25 = vcombine.low %v373_v13, %v377_v14  ;;  %v2154_v26 = vcombine.high %v380_v19, %v384_v20  ;;  %v2156_v27 = vcombine.high %v381_v21, %v385_v23  ;;  %v440_v13 = vld [vmem:[%s2520_s29 + $0x370] sm:$0xff]  ;;  %v437_v14 = vld [vmem:[%s2520_s29 + $0x358] sm:$0xff] }
  0x5d   : > { %1127 = vmatpush1.bf16.msra.mxu0 %v2213_v32  ;;  %1168 = vmatpush1.bf16.msra.mxu1 %v2215_v33  ;;  %v393_v32 = vld [vmem:[%s2520_s29 + $0x1f8] sm:$0xff]  ;;  %v2153_v33 = vcombine.low %v380_v19, %v384_v20  ;;  %v444_v20 = vld [vmem:[%s2520_s29 + $0x390] sm:$0xff] }
  0x5e   : > { %1128 = vmatprep.subr.bf16.mxu0 %v2222_v34  ;;  %1169 = vmatprep.subr.bf16.mxu1 %v2224_v35  ;;  %v2155_v34 = vcombine.low %v381_v21, %v385_v23  ;;  %v2162_v35 = vcombine.high %v388_v28, %v392_v29  ;;  %v2164_v36 = vcombine.high %v389_v31, %v393_v32  ;;  %v448_v21 = vld [vmem:[%s2520_s29 + $0x3b0] sm:$0xff]  ;;  %v445_v23 = vld [vmem:[%s2520_s29 + $0x398] sm:$0xff] }
  0x61   : > { %1129 = vmatpush1.bf16.msra.mxu0 %v2221_v40  ;;  %1170 = vmatpush1.bf16.msra.mxu1 %v2223_v41  ;;  %v401_v40 = vld [vmem:[%s2520_s29 + $0x238] sm:$0xff]  ;;  %v2161_v41 = vcombine.low %v388_v28, %v392_v29  ;;  %v452_v29 = vld [vmem:[%s2520_s29 + $0x3d0] sm:$0xff] }
  0x62   : > { %1180 = vmatprep.subr.bf16.mxu0 %v2106_v42  ;;  %1221 = vmatprep.subr.bf16.mxu1 %v2108_v43  ;;  %v2163_v42 = vcombine.low %v389_v31, %v393_v32  ;;  %v2170_v43 = vcombine.high %v396_v37, %v400_v38  ;;  %v2172_v44 = vcombine.high %v397_v39, %v401_v40  ;;  %v456_v31 = vld [vmem:[%s2520_s29 + $0x3f0] sm:$0xff]  ;;  %v453_v32 = vld [vmem:[%s2520_s29 + $0x3d8] sm:$0xff] }
  0x64   : > { %1131 = vmatmul.mubr.bf16.vlgmr.msra.gmra.mrb[0].mxu0 %v2607_v46  ;;  %1172 = vmatmul.mubr.bf16.vlgmr.msra.gmra.mrb[0].mxu1 %v2607_v46 }
  0x65   : > { %1181 = vmatpush1.bf16.msra.mxu0 %v2105_v49  ;;  %1222 = vmatpush1.bf16.msra.mxu1 %v2107_v50  ;;  %v409_v49 = vld [vmem:[%s2520_s29 + $0x278] sm:$0xff]  ;;  %v2169_v50 = vcombine.low %v396_v37, %v400_v38  ;;  %v2225_v38 = vcombine.low %v452_v29, %v456_v31 }
  0x66   : > { %1182 = vmatprep.subr.bf16.mxu0 %v2114_v51  ;;  %1223 = vmatprep.subr.bf16.mxu1 %v2116_v52  ;;  %v2171_v51 = vcombine.low %v397_v39, %v401_v40  ;;  %v2178_v52 = vcombine.high %v404_v45, %v408_v47  ;;  %v2180_v53 = vcombine.high %v405_v48, %v409_v49  ;;  %v2469_v40 = vmov 1983009808  }
  0x67   : > { %1212 = vmatprep.mubr.bf16.mxu0 %v2563_v30  ;;  %1253 = vmatprep.mubr.bf16.mxu1 %v2563_v30  ;;  %v2131_v30 = vcombine.low %v357_v62, %v361_v63  ;;  %v424_v62 = vld [vmem:[%s2520_s29 + $0x2f0] sm:$0xff]  ;;  %v421_v63 = vld [vmem:[%s2520_s29 + $0x2d8] sm:$0xff] }
  0x69   : > { %1183 = vmatpush1.bf16.msra.mxu0 %v2113_v56  ;;  %1224 = vmatpush1.bf16.msra.mxu1 %v2115_v57  ;;  %v417_v56 = vld [vmem:[%s2520_s29 + $0x2b8] sm:$0xff]  ;;  %v2177_v57 = vcombine.low %v404_v45, %v408_v47 }
  0x6a   : > { %1184 = vmatprep.subr.bf16.mxu0 %v2122_v58  ;;  %1225 = vmatprep.subr.bf16.mxu1 %v2124_v59  ;;  %v2179_v58 = vcombine.low %v405_v48, %v409_v49  ;;  %v2186_v59 = vcombine.high %v412_v54, %v416_v22  ;;  %v2188_v60 = vcombine.high %v413_v55, %v417_v56 }
  0x6d   : > { %1185 = vmatpush1.bf16.msra.mxu0 %v2121_v0  ;;  %1226 = vmatpush1.bf16.msra.mxu1 %v2123_v1  ;;  %v425_v0 = vld [vmem:[%s2520_s29 + $0x2f8] sm:$0xff]  ;;  %v2185_v1 = vcombine.low %v412_v54, %v416_v22 }
  0x6e   : > { %1186 = vmatprep.subr.bf16.mxu0 %v2130_v2  ;;  %1227 = vmatprep.subr.bf16.mxu1 %v2132_v3  ;;  %v2187_v2 = vcombine.low %v413_v55, %v417_v56  ;;  %v2194_v3 = vcombine.high %v420_v61, %v424_v62  ;;  %v2196_v4 = vcombine.high %v421_v63, %v425_v0 }
  0x71   : > { %1187 = vmatpush1.bf16.msra.mxu0 %v2129_v8  ;;  %1228 = vmatpush1.bf16.msra.mxu1 %v2131_v30  ;;  %v433_v8 = vld [vmem:[%s2520_s29 + $0x338] sm:$0xff]  ;;  %v2193_v30 = vcombine.low %v420_v61, %v424_v62 }
  0x72   : > { %1188 = vmatprep.subr.bf16.mxu0 %v2138_v9  ;;  %1229 = vmatprep.subr.bf16.mxu1 %v2140_v10  ;;  %v2195_v9 = vcombine.low %v421_v63, %v425_v0  ;;  %v2202_v10 = vcombine.high %v428_v5, %v432_v6  ;;  %v2204_v11 = vcombine.high %v429_v7, %v433_v8 }
  0x75   : > { %1189 = vmatpush1.bf16.msra.mxu0 %v2137_v15  ;;  %1230 = vmatpush1.bf16.msra.mxu1 %v2139_v16  ;;  %v441_v15 = vld [vmem:[%s2520_s29 + $0x378] sm:$0xff]  ;;  %v2201_v16 = vcombine.low %v428_v5, %v432_v6 }
  0x76   : > { %1190 = vmatprep.subr.bf16.mxu0 %v2146_v17  ;;  %1231 = vmatprep.subr.bf16.mxu1 %v2148_v18  ;;  %v2203_v17 = vcombine.low %v429_v7, %v433_v8  ;;  %v2210_v18 = vcombine.high %v436_v12, %v440_v13  ;;  %v2212_v19 = vcombine.high %v437_v14, %v441_v15  ;;  %v315_v8 = vld [vmem:[#allocation2 + $0x8] sm:$0xff] }
  0x79   : > { %1191 = vmatpush1.bf16.msra.mxu0 %v2145_v24  ;;  %1232 = vmatpush1.bf16.msra.mxu1 %v2147_v25  ;;  %v449_v24 = vld [vmem:[%s2520_s29 + $0x3b8] sm:$0xff]  ;;  %v2209_v25 = vcombine.low %v436_v12, %v440_v13  ;;  %v2398_v12 = vld [vmem:[%s2888_s3] sm:$0xff] (!%p2229_p6)  }
  0x7a   : > { %1192 = vmatprep.subr.bf16.mxu0 %v2154_v26  ;;  %1233 = vmatprep.subr.bf16.mxu1 %v2156_v27  ;;  %v2211_v26 = vcombine.low %v437_v14, %v441_v15  ;;  %v2218_v27 = vcombine.high %v444_v20, %v448_v21  ;;  %v2220_v28 = vcombine.high %v445_v23, %v449_v24  ;;  %v2399_v13 = vld [vmem:[%s2888_s3 + $0x80] sm:$0xff] (!%p2229_p6)   ;;  %v2400_v14 = vld [vmem:[%s2888_s3 + $0x48] sm:$0xff] (!%p2229_p6)  }
  0x7b   : > { %v2401_v15 = vld [vmem:[%s2888_s3 + $0xc8] sm:$0xff] (!%p2229_p6)  }
  0x7d   : > { %1193 = vmatpush1.bf16.msra.mxu0 %v2153_v33  ;;  %1234 = vmatpush1.bf16.msra.mxu1 %v2155_v34  ;;  %v457_v33 = vld [vmem:[%s2520_s29 + $0x3f8] sm:$0xff]  ;;  %v2217_v34 = vcombine.low %v444_v20, %v448_v21  ;;  %v2406_v20 = vld [vmem:[%s2888_s3 + $0x10] sm:$0xff] (!%p2229_p6)  }
  0x7e   : > { %1194 = vmatprep.subr.bf16.mxu0 %v2162_v35  ;;  %1235 = vmatprep.subr.bf16.mxu1 %v2164_v36  ;;  %v2219_v35 = vcombine.low %v445_v23, %v449_v24  ;;  %v2226_v36 = vcombine.high %v452_v29, %v456_v31  ;;  %v2228_v37 = vcombine.high %v453_v32, %v457_v33  ;;  %v2407_v21 = vld [vmem:[%s2888_s3 + $0x90] sm:$0xff] (!%p2229_p6)   ;;  %v2408_v23 = vld [vmem:[%s2888_s3 + $0x58] sm:$0xff] (!%p2229_p6)   ;;  %v2414_v29 = vld [vmem:[%s2888_s3 + $0x20] sm:$0xff] (!%p2229_p6)  }
  0x7f   : > { %v2227_v39 = vcombine.low %v453_v32, %v457_v33  ;;  %v2409_v24 = vld [vmem:[%s2888_s3 + $0xd8] sm:$0xff] (!%p2229_p6)   ;;  %v2415_v31 = vld [vmem:[%s2888_s3 + $0xa0] sm:$0xff] (!%p2229_p6)   ;;  %v2416_v32 = vld [vmem:[%s2888_s3 + $0x68] sm:$0xff] (!%p2229_p6)  }
  0x80   : > { %v2417_v33 = vld [vmem:[%s2888_s3 + $0xe8] sm:$0xff] (!%p2229_p6)  }
  0x81   : > { %1195 = vmatpush1.bf16.msra.mxu0 %v2161_v41  ;;  %1236 = vmatpush1.bf16.msra.mxu1 %v2163_v42  ;;  %v1273_v41 = vunpack.c.l.s4 %v2469_v40  ;;  %v1275_v42 = vlaneseq  ;;  %v2424_v40 = vld [vmem:[%s2888_s3 + $0x78] sm:$0xff] (!%p2229_p6)  }
  0x82   : > { %1196 = vmatprep.subr.bf16.mxu0 %v2170_v43  ;;  %1237 = vmatprep.subr.bf16.mxu1 %v2172_v44 }
  0x83   : > { %v1274_v43 = vunpack.c.0.s8 %v1273_v41  ;;  %v1276_v44 = vshrl.u32 %v1275_v42, 7  ;;  %v2425_v41 = vld [vmem:[%s2888_s3 + $0xf8] sm:$0xff] (!%p2229_p6)  }
  0x84   : > { %v2426_v42 = vld [vmem:[%s2888_s3 + $0x38] sm:$0xff] (!%p2229_p6)  }
  0x85   : > { %1197 = vmatpush1.bf16.msra.mxu0 %v2169_v50  ;;  %1238 = vmatpush1.bf16.msra.mxu1 %v2171_v51  ;;  %v2673_v47 = vsub.s32 %v1274_v43, %v1276_v44  ;;  %v2427_v43 = vld [vmem:[%s2888_s3 + $0xb8] sm:$0xff] (!%p2229_p6)  }
  0x86   : > { %1198 = vmatprep.subr.bf16.mxu0 %v2178_v52  ;;  %1239 = vmatprep.subr.bf16.mxu1 %v2180_v53 }
  0x89   : > { %1199 = vmatpush1.bf16.msra.mxu0 %v2177_v57  ;;  %1240 = vmatpush1.bf16.msra.mxu1 %v2179_v58  ;;  %v314_v57 = vld [vmem:[#allocation2] sm:$0xff] }
  0x8a   : > { %1200 = vmatprep.subr.bf16.mxu0 %v2186_v59  ;;  %1241 = vmatprep.subr.bf16.mxu1 %v2188_v60 }
  0x8d   : > { %1201 = vmatpush1.bf16.msra.mxu0 %v2185_v1  ;;  %1242 = vmatpush1.bf16.msra.mxu1 %v2187_v2 }
  0x8e   : > { %1202 = vmatprep.subr.bf16.mxu0 %v2194_v3  ;;  %1243 = vmatprep.subr.bf16.mxu1 %v2196_v4 }
  0x91   : > { %1203 = vmatpush1.bf16.msra.mxu0 %v2193_v30  ;;  %1244 = vmatpush1.bf16.msra.mxu1 %v2195_v9 }
  0x92   : > { %1204 = vmatprep.subr.bf16.mxu0 %v2202_v10  ;;  %1245 = vmatprep.subr.bf16.mxu1 %v2204_v11  ;;  %v2396_v10 = vld [vmem:[%s2888_s3 + $0x40] sm:$0xff] (!%p2229_p6)  }
  0x93   : > { %v2397_v11 = vld [vmem:[%s2888_s3 + $0xc0] sm:$0xff] (!%p2229_p6)  }
  0x95   : > { %1205 = vmatpush1.bf16.msra.mxu0 %v2201_v16  ;;  %1246 = vmatpush1.bf16.msra.mxu1 %v2203_v17  ;;  %v2402_v16 = vld [vmem:[%s2888_s3 + $0x8] sm:$0xff] (!%p2229_p6)  }
  0x96   : > { %1206 = vmatprep.subr.bf16.mxu0 %v2210_v18  ;;  %1247 = vmatprep.subr.bf16.mxu1 %v2212_v19  ;;  %v2403_v17 = vld [vmem:[%s2888_s3 + $0x88] sm:$0xff] (!%p2229_p6)   ;;  %v2404_v18 = vld [vmem:[%s2888_s3 + $0x50] sm:$0xff] (!%p2229_p6)  }
  0x97   : > { %v2405_v19 = vld [vmem:[%s2888_s3 + $0xd0] sm:$0xff] (!%p2229_p6)  }
  0x99   : > { %1207 = vmatpush1.bf16.msra.mxu0 %v2209_v25  ;;  %1248 = vmatpush1.bf16.msra.mxu1 %v2211_v26  ;;  %v2410_v25 = vld [vmem:[%s2888_s3 + $0x18] sm:$0xff] (!%p2229_p6)  }
  0x9a   : > { %1208 = vmatprep.subr.bf16.mxu0 %v2218_v27  ;;  %1249 = vmatprep.subr.bf16.mxu1 %v2220_v28  ;;  %v2411_v26 = vld [vmem:[%s2888_s3 + $0x98] sm:$0xff] (!%p2229_p6)   ;;  %v2412_v27 = vld [vmem:[%s2888_s3 + $0x60] sm:$0xff] (!%p2229_p6)  }
  0x9b   : > { %v2413_v28 = vld [vmem:[%s2888_s3 + $0xe0] sm:$0xff] (!%p2229_p6)  }
  0x9d   : > { %1209 = vmatpush1.bf16.msra.mxu0 %v2217_v34  ;;  %1250 = vmatpush1.bf16.msra.mxu1 %v2219_v35  ;;  %v2418_v34 = vld [vmem:[%s2888_s3 + $0x28] sm:$0xff] (!%p2229_p6)  }
  0x9e   : > { %1210 = vmatprep.subr.bf16.mxu0 %v2226_v36  ;;  %1251 = vmatprep.subr.bf16.mxu1 %v2228_v37  ;;  %v2419_v35 = vld [vmem:[%s2888_s3 + $0xa8] sm:$0xff] (!%p2229_p6)   ;;  %v2420_v36 = vld [vmem:[%s2888_s3 + $0x70] sm:$0xff] (!%p2229_p6)  }
  0x9f   : > { %v2421_v37 = vld [vmem:[%s2888_s3 + $0xf0] sm:$0xff] (!%p2229_p6)  }
  0xa1   : > { %1211 = vmatpush1.bf16.msra.mxu0 %v2225_v38  ;;  %1252 = vmatpush1.bf16.msra.mxu1 %v2227_v39  ;;  %v2422_v38 = vld [vmem:[%s2888_s3 + $0x30] sm:$0xff] (!%p2229_p6)  }
  0xa2   : > { %2298 = vmatprep.subr.bf16.mxu0 (!%p2229_p6), %v2396_v10  ;;  %2320 = vmatprep.subr.bf16.mxu1 (!%p2229_p6), %v2397_v11  ;;  %v2423_v39 = vld [vmem:[%s2888_s3 + $0xb0] sm:$0xff] (!%p2229_p6)   ;;  %v2447_v10 = vld [vmem:[%s2888_s3 + $0x1a0] sm:$0xff] (!%p2229_p6)   ;;  %v2449_v11 = vld [vmem:[%s2888_s3 + $0x1e8] sm:$0xff] (!%p2229_p6)  }
  0xa4   : > { %1213 = vmatmul.mubr.bf16.vlgmr.msra.gmra.mrb[4].mxu0 %v2607_v46  ;;  %1254 = vmatmul.mubr.bf16.vlgmr.msra.gmra.mrb[4].mxu1 %v2607_v46 }
  0xa5   : > { %2299 = vmatpush3.bf16.msra.mxu0 (!%p2229_p6), %v2398_v12  ;;  %2321 = vmatpush3.bf16.msra.mxu1 (!%p2229_p6), %v2399_v13  ;;  %v2450_v12 = vld [vmem:[%s2888_s3 + $0x128] sm:$0xff] (!%p2229_p6)   ;;  %v2452_v13 = vld [vmem:[%s2888_s3 + $0x170] sm:$0xff] (!%p2229_p6)  }
  0xa6   : > { %2300 = vmatprep.subr.bf16.mxu0 (!%p2229_p6), %v2400_v14  ;;  %2322 = vmatprep.subr.bf16.mxu1 (!%p2229_p6), %v2401_v15  ;;  %v2451_v14 = vld [vmem:[%s2888_s3 + $0x1a8] sm:$0xff] (!%p2229_p6)   ;;  %v2453_v15 = vld [vmem:[%s2888_s3 + $0x1f0] sm:$0xff] (!%p2229_p6)  }
  0xa9   : > { %2301 = vmatpush3.bf16.msra.mxu0 (!%p2229_p6), %v2402_v16  ;;  %2323 = vmatpush3.bf16.msra.mxu1 (!%p2229_p6), %v2403_v17  ;;  %v2454_v16 = vld [vmem:[%s2888_s3 + $0x130] sm:$0xff] (!%p2229_p6)   ;;  %v2456_v17 = vld [vmem:[%s2888_s3 + $0x178] sm:$0xff] (!%p2229_p6)  }
  0xaa   : > { %2302 = vmatprep.subr.bf16.mxu0 (!%p2229_p6), %v2404_v18  ;;  %2324 = vmatprep.subr.bf16.mxu1 (!%p2229_p6), %v2405_v19  ;;  %v2455_v19 = vld [vmem:[%s2888_s3 + $0x1b0] sm:$0xff] (!%p2229_p6)  }
  0xad   : > { %2303 = vmatpush3.bf16.msra.mxu0 (!%p2229_p6), %v2406_v20  ;;  %2325 = vmatpush3.bf16.msra.mxu1 (!%p2229_p6), %v2407_v21  ;;  %v2457_v21 = vld [vmem:[%s2888_s3 + $0x1f8] sm:$0xff] (!%p2229_p6)  }
  0xae   : > { %2304 = vmatprep.subr.bf16.mxu0 (!%p2229_p6), %v2408_v23  ;;  %2326 = vmatprep.subr.bf16.mxu1 (!%p2229_p6), %v2409_v24  ;;  %v2458_v23 = vld [vmem:[%s2888_s3 + $0x138] sm:$0xff] (!%p2229_p6)  }
  0xb1   : > { %2305 = vmatpush3.bf16.msra.mxu0 (!%p2229_p6), %v2410_v25  ;;  %2327 = vmatpush3.bf16.msra.mxu1 (!%p2229_p6), %v2411_v26  ;;  %v2459_v26 = vld [vmem:[%s2888_s3 + $0x1b8] sm:$0xff] (!%p2229_p6)  }
  0xb2   : > { %2306 = vmatprep.subr.bf16.mxu0 (!%p2229_p6), %v2412_v27  ;;  %2328 = vmatprep.subr.bf16.mxu1 (!%p2229_p6), %v2413_v28 }
  0xb5   : > { %2307 = vmatpush3.bf16.msra.mxu0 (!%p2229_p6), %v2414_v29  ;;  %2329 = vmatpush3.bf16.msra.mxu1 (!%p2229_p6), %v2415_v31 }
  0xb6   : > { %2308 = vmatprep.subr.bf16.mxu0 (!%p2229_p6), %v2416_v32  ;;  %2330 = vmatprep.subr.bf16.mxu1 (!%p2229_p6), %v2417_v33 }
  0xb9   : > { %2309 = vmatpush3.bf16.msra.mxu0 (!%p2229_p6), %v2418_v34  ;;  %2331 = vmatpush3.bf16.msra.mxu1 (!%p2229_p6), %v2419_v35 }
  0xba   : > { %2310 = vmatprep.subr.bf16.mxu0 (!%p2229_p6), %v2420_v36  ;;  %2332 = vmatprep.subr.bf16.mxu1 (!%p2229_p6), %v2421_v37  ;;  %v2230_v36 = vld [vmem:[%s2889_s4] ss:$0 sm:$0xff] (!%p2229_p6) }
  0xbd   : > { %2311 = vmatpush3.bf16.msra.mxu0 (!%p2229_p6), %v2422_v38  ;;  %2333 = vmatpush3.bf16.msra.mxu1 (!%p2229_p6), %v2423_v39 }
  0xbe   : > { %2312 = vmatprep.subr.bf16.mxu0 (!%p2229_p6), %v2424_v40  ;;  %2334 = vmatprep.subr.bf16.mxu1 (!%p2229_p6), %v2425_v41 }
  0xc1   : > { %2313 = vmatpush3.bf16.msra.mxu0 (!%p2229_p6), %v2426_v42  ;;  %2335 = vmatpush3.bf16.msra.mxu1 (!%p2229_p6), %v2427_v43 }
 0x137   : > { %v1132_v45 = vpop.f32.mrb[0].mxu0  ;;  %v1173_v48 = vpop.f32.mrb[0].mxu1 }
 0x138   : > { %v1134_v49 = vpop.f32.mrb[1].mxu0  ;;  %v1175_v51 = vpop.f32.mrb[1].mxu1 }
 0x139   : > { %v1270_v50 = vcombine.low %v1132_v45, %v1134_v49  ;;  %v1136_v52 = vpop.f32.mrb[2].mxu0  ;;  %v1271_v53 = vcombine.low %v1173_v48, %v1175_v51  ;;  %v1177_v54 = vpop.f32.mrb[2].mxu1  ;;  %v2428_v48 = vld [vmem:[%s2888_s3 + $0x140] sm:$0xff] (!%p2229_p6)  }
 0x13a   : > { %v1137_v22 = vpop.f32.mrb[3].mxu0  ;;  %v1178_v56 = vpop.f32.mrb[3].mxu1  ;;  %v2429_v49 = vld [vmem:[%s2888_s3 + $0x1c0] sm:$0xff] (!%p2229_p6)   ;;  %2342 = vmatprep.subr.bf16.mxu0 (!%p2229_p6), %v2428_v48 }
 0x13b   : > { %v1278_v55 = vrot.slane %v1270_v50, %v2673_v47  ;;  %v1285_v46 = vrot.slane %v1271_v53, %v2673_v47  ;;  %2364 = vmatprep.subr.bf16.mxu1 (!%p2229_p6), %v2429_v49  ;;  %v2430_v56 = vld [vmem:[%s2888_s3 + $0x100] sm:$0xff] (!%p2229_p6)  }
 0x13d   : > { %v1286_v58 = vcombine.low %v1278_v55, %v1285_v46 }
 0x13f   : > { %v1306_v59 = vadd.f32 %v1286_v58, %v314_v57  ;;  %v2432_v57 = vld [vmem:[%s2888_s3 + $0x148] sm:$0xff] (!%p2229_p6)  }
 0x141   : > { %1308 = vst [vmem:[#allocation2] sm:$0xff] %v1306_v59  ;;  %v2431_v59 = vld [vmem:[%s2888_s3 + $0x180] sm:$0xff] (!%p2229_p6)  }
 0x148   : > { %v1314_v44 = vld [vmem:[#allocation2] sm:$0xff] (!%p2229_p6) }
 0x149   : > { %v1316_v45 = vmax.f32 (!%p2229_p6), %v1314_v44, 0.0 }
 0x14b   : > { %v1327_v50 = vrot.slane (!%p2229_p6), %v1316_v45, %v2673_v47  ;;  %v1320_v51 = vcombine.high (!%p2229_p6), %v1316_v45, %v1316_v45 }
 0x14d   : > { %v1335_v52 = vcombine.high (!%p2229_p6), %v1327_v50, %v1327_v50  ;;  %v1334_v53 = vrot.slane (!%p2229_p6), %v1320_v51, %v2673_v47  ;;  %v1362_v54 = vpack.c.bf16 (!%p2229_p6), %v1327_v50, %v1327_v50 }
 0x14f   : > { %v1363_v22 = vpack.c.bf16 (!%p2229_p6), %v1335_v52, %v1335_v52  ;;  %v1336_v55 = vcombine.high (!%p2229_p6), %v1334_v53, %v1334_v53  ;;  %v1364_v46 = vpack.c.bf16 (!%p2229_p6), %v1334_v53, %v1334_v53 }
 0x151   : > { %1921 = vmatprep.mubr.bf16.mxu0 (!%p2229_p6), %v1363_v22  ;;  %v1365_v58 = vpack.c.bf16 (!%p2229_p6), %v1336_v55, %v1336_v55 }
 0x152   : > { %1922 = vmatmul.mubr.bf16.vlgmr.msra.gmra.mrb[0].mxu0 (!%p2229_p6), %v1362_v54 }
 0x153   : > { %1961 = vmatprep.mubr.bf16.mxu1 (!%p2229_p6), %v1365_v58  ;;  %2343 = vmatpush3.bf16.msra.mxu0 (!%p2229_p6), %v2430_v56 }
 0x154   : > { %1962 = vmatmul.mubr.bf16.vlgmr.msra.gmra.mrb[0].mxu1 (!%p2229_p6), %v1364_v46  ;;  %2344 = vmatprep.subr.bf16.mxu0 (!%p2229_p6), %v2432_v57 }
 0x155   : > { %2365 = vmatpush3.bf16.msra.mxu1 (!%p2229_p6), %v2431_v59 }
 0x177   : > { %v1214_v60 = vpop.f32.mrb[4].mxu0  ;;  %v1255_v61 = vpop.f32.mrb[4].mxu1 }
 0x178   : > { %v1216_v62 = vpop.f32.mrb[5].mxu0  ;;  %v1257_v0 = vpop.f32.mrb[5].mxu1 }
 0x179   : > { %v1287_v63 = vcombine.low %v1214_v60, %v1216_v62  ;;  %v1218_v1 = vpop.f32.mrb[6].mxu0  ;;  %v1288_v2 = vcombine.low %v1255_v61, %v1257_v0  ;;  %v1259_v3 = vpop.f32.mrb[6].mxu1  ;;  %v2433_v60 = vld [vmem:[%s2888_s3 + $0x1c8] sm:$0xff] (!%p2229_p6)   ;;  %v2436_v62 = vld [vmem:[%s2888_s3 + $0x150] sm:$0xff] (!%p2229_p6)  }
 0x17a   : > { %v1219_v4 = vpop.f32.mrb[7].mxu0  ;;  %v1260_v6 = vpop.f32.mrb[7].mxu1  ;;  %v2434_v61 = vld [vmem:[%s2888_s3 + $0x108] sm:$0xff] (!%p2229_p6)   ;;  %2366 = vmatprep.subr.bf16.mxu1 (!%p2229_p6), %v2433_v60  ;;  %v2437_v0 = vld [vmem:[%s2888_s3 + $0x1d0] sm:$0xff] (!%p2229_p6)  }
 0x17b   : > { %v1295_v5 = vrot.slane %v1287_v63, %v2673_v47  ;;  %v1302_v7 = vrot.slane %v1288_v2, %v2673_v47  ;;  %1313 = sbr.rel (%p2229_p6) target bundleno = 626 (0x272), region = 48  ;;  %v2435_v63 = vld [vmem:[%s2888_s3 + $0x188] sm:$0xff] (!%p2229_p6)   ;;  %2345 = vmatpush3.bf16.msra.mxu0 (!%p2229_p6), %v2434_v61  ;;  %v2438_v1 = vld [vmem:[%s2888_s3 + $0x110] sm:$0xff] (!%p2229_p6)   ;;  %v2440_v2 = vld [vmem:[%s2888_s3 + $0x158] sm:$0xff] (!%p2229_p6)  }
 0x17c   : > { %2346 = vmatprep.subr.bf16.mxu0 (!%p2229_p6), %v2436_v62  ;;  %2367 = vmatpush3.bf16.msra.mxu1 (!%p2229_p6), %v2435_v63  ;;  %v2439_v3 = vld [vmem:[%s2888_s3 + $0x190] sm:$0xff] (!%p2229_p6)   ;;  %v2441_v4 = vld [vmem:[%s2888_s3 + $0x1d8] sm:$0xff] (!%p2229_p6)   ;;  %v2444_v6 = vld [vmem:[%s2888_s3 + $0x160] sm:$0xff] (!%p2229_p6)  }
 0x17d   : > { %v1303_v30 = vcombine.low %v1295_v5, %v1302_v7  ;;  %2368 = vmatprep.subr.bf16.mxu1 (!%p2229_p6), %v2437_v0  ;;  %v2442_v5 = vld [vmem:[%s2888_s3 + $0x118] sm:$0xff] (!%p2229_p6)  }
 0x17e   : > { %v2443_v7 = vld [vmem:[%s2888_s3 + $0x198] sm:$0xff] (!%p2229_p6)  }
 0x17f   : > { %v1307_v9 = vadd.f32 %v1303_v30, %v315_v8  ;;  %2347 = vmatpush3.bf16.msra.mxu0 (!%p2229_p6), %v2438_v1  ;;  %v2445_v8 = vld [vmem:[%s2888_s3 + $0x1e0] sm:$0xff] (!%p2229_p6)  }
 0x180   : > { %2348 = vmatprep.subr.bf16.mxu0 (!%p2229_p6), %v2440_v2  ;;  %2369 = vmatpush3.bf16.msra.mxu1 (!%p2229_p6), %v2439_v3  ;;  %v2446_v30 = vld [vmem:[%s2888_s3 + $0x120] sm:$0xff] (!%p2229_p6)  }
 0x181   : > { %1309 = vst [vmem:[#allocation2 + $0x8] sm:$0xff] %v1307_v9  ;;  %2370 = vmatprep.subr.bf16.mxu1 (!%p2229_p6), %v2441_v4  ;;  %v2448_v9 = vld [vmem:[%s2888_s3 + $0x168] sm:$0xff] (!%p2229_p6)  }
 0x183   : > { %2349 = vmatpush3.bf16.msra.mxu0 %v2442_v5 }
 0x184   : > { %2350 = vmatprep.subr.bf16.mxu0 %v2444_v6  ;;  %2371 = vmatpush3.bf16.msra.mxu1 %v2443_v7 }
 0x185   : > { %2372 = vmatprep.subr.bf16.mxu1 %v2445_v8 }
 0x187   : > { %2351 = vmatpush3.bf16.msra.mxu0 %v2446_v30 }
 0x188   : > { %2352 = vmatprep.subr.bf16.mxu0 %v2448_v9  ;;  %2373 = vmatpush3.bf16.msra.mxu1 %v2447_v10  ;;  %v1315_v18 = vld [vmem:[#allocation2 + $0x8] sm:$0xff] }
 0x189   : > { %2374 = vmatprep.subr.bf16.mxu1 %v2449_v11  ;;  %v1317_v20 = vmax.f32 %v1315_v18, 0.0 }
 0x18b   : > { %2353 = vmatpush3.bf16.msra.mxu0 %v2450_v12  ;;  %v1344_v24 = vrot.slane %v1317_v20, %v2673_v47  ;;  %v1337_v25 = vcombine.high %v1317_v20, %v1317_v20 }
 0x18c   : > { %2354 = vmatprep.subr.bf16.mxu0 %v2452_v13  ;;  %2375 = vmatpush3.bf16.msra.mxu1 %v2451_v14 }
 0x18d   : > { %2376 = vmatprep.subr.bf16.mxu1 %v2453_v15  ;;  %v1352_v27 = vcombine.high %v1344_v24, %v1344_v24  ;;  %v1351_v28 = vrot.slane %v1337_v25, %v2673_v47  ;;  %v1366_v29 = vpack.c.bf16 %v1344_v24, %v1344_v24 }
 0x18f   : > { %2355 = vmatpush3.bf16.msra.mxu0 %v2454_v16  ;;  %v1367_v31 = vpack.c.bf16 %v1352_v27, %v1352_v27  ;;  %v1353_v32 = vcombine.high %v1351_v28, %v1351_v28  ;;  %v1368_v33 = vpack.c.bf16 %v1351_v28, %v1351_v28 }
 0x190   : > { %2356 = vmatprep.subr.bf16.mxu0 %v2456_v17  ;;  %2377 = vmatpush3.bf16.msra.mxu1 %v2455_v19 }
 0x191   : > { %2378 = vmatprep.subr.bf16.mxu1 %v2457_v21  ;;  %2001 = vmatprep.mubr.bf16.mxu0 %v1367_v31  ;;  %v1369_v34 = vpack.c.bf16 %v1353_v32, %v1353_v32 }
 0x193   : > { %2357 = vmatpush3.bf16.msra.mxu0 %v2458_v23  ;;  %2041 = vmatprep.mubr.bf16.mxu1 %v1369_v34 }
 0x194   : > { %2379 = vmatpush3.bf16.msra.mxu1 %v2459_v26 }
 0x196   : > { %2002 = vmatmul.mubr.bf16.vlgmr.msra.gmra.mrb[4].mxu0 %v1366_v29 }
 0x197   : > { %2042 = vmatmul.mubr.bf16.vlgmr.msra.gmra.mrb[4].mxu1 %v1368_v33 }
 0x225   : > { %v2314_v35 = vpop.f32.mrb[0].mxu0 }
 0x226   : > { %v2315_v37 = vpop.f32.mrb[1].mxu0 }
 0x227   : > { %v2336_v38 = vpop.f32.mrb[0].mxu1  ;;  %v2316_v47 = vadd.f32 %v2315_v37, %v2314_v35  ;;  %v2317_v39 = vpop.f32.mrb[2].mxu0 }
 0x228   : > { %v2337_v40 = vpop.f32.mrb[1].mxu1  ;;  %v2318_v41 = vpop.f32.mrb[3].mxu0 }
 0x229   : > { %v1924_v42 = vadd.f32 %v2316_v47, %v2230_v36  ;;  %v2338_v43 = vadd.f32 %v2337_v40, %v2336_v38  ;;  %v2339_v44 = vpop.f32.mrb[2].mxu1 }
 0x22a   : > { %v2340_v45 = vpop.f32.mrb[3].mxu1 }
 0x22b   : > { %v1964_v48 = vadd.f32 %v2338_v43, %v1924_v42 }
 0x269   : > { %v2358_v49 = vpop.f32.mrb[4].mxu0 }
 0x26a   : > { %v2359_v50 = vpop.f32.mrb[5].mxu0  ;;  %v2380_v51 = vpop.f32.mrb[4].mxu1 }
 0x26b   : > { %v2360_v52 = vadd.f32 %v2359_v50, %v2358_v49  ;;  %v2361_v53 = vpop.f32.mrb[6].mxu0  ;;  %v2381_v54 = vpop.f32.mrb[5].mxu1 }
 0x26c   : > { %v2362_v22 = vpop.f32.mrb[7].mxu0  ;;  %v2382_v56 = vadd.f32 %v2381_v54, %v2380_v51  ;;  %v2383_v46 = vpop.f32.mrb[6].mxu1 }
 0x26d   : > { %v2004_v55 = vadd.f32 %v2360_v52, %v1964_v48  ;;  %v2384_v57 = vpop.f32.mrb[7].mxu1 }
 0x26f   : > { %v2044_v58 = vadd.f32 %v2382_v56, %v2004_v55 }
 0x271   : > { %2049 = vst [vmem:[%s2890_s5] sm:$0x3] %v2044_v58 }
 0x272 PF: > { %s15_s18 = sadd.s32 1, %s2466_s18  }
 0x273   : > { %p12_p7 = scmp.ge.s32.totalorder %s15_s18, 6  }
 0x275   :  { %14 = sbr.rel (!%p12_p7) target bundleno = 1 (0x1), region = 77 }

</bundles_post_ra>
